<compile_context>
chip_gen: v7x
topology: tpu7x:2x2x1
jax: 0.10.0
libtpu: 0.0.40
codegen_flags: <defaults>
</compile_context>

<pallas_src>
import functools
import numpy as np
import jax
import jax.numpy as jnp
from jax.experimental import pallas as pl
from jax.experimental.pallas import tpu as pltpu


# ----------------------------------------------------------------------------
# Fused Pallas kernel
# ----------------------------------------------------------------------------
def _asb_kernel(x0_ref, x1_ref, x2_ref, x3_ref,
                fcw1_ref, fcw2_ref, gw1_ref, gw2_ref,
                gates_ref, sum_acc, max_acc, *, inv_hw):
    """Fused AdaptiveSelectiveBlock.

    x*_ref    : (1, C, THW)     one spatial chunk of one sample (NCHW layout)
    fcw1_ref  : (C, C//8)       'fc' squeeze weight
    fcw2_ref  : (C//8, C)       'fc' excite weight
    gw1_ref   : (C, 4*(C//16))  fc0..fc3 first layers, concat along Cout
    gw2_ref   : (4*(C//16), 4C) fc0..fc3 second layers, block-diagonal
    gates_ref : (1, 1, 4*C)     sigmoid gates of the 4 branches (lane dense)
    sum_acc / max_acc : (1, C) f32 VMEM accumulators over the HW grid axis
    """
    h = pl.program_id(1)

    @pl.when(h == 0)
    def _init():
        sum_acc[...] = jnp.zeros_like(sum_acc)
        max_acc[...] = jnp.full_like(max_acc, -jnp.inf)

    # x0 + x1 + x2 + x3 for this spatial chunk, partial avg/max pooling.
    x = x0_ref[...] + x1_ref[...] + x2_ref[...] + x3_ref[...]      # (1, C, THW)
    sum_acc[...] = sum_acc[...] + jnp.sum(x, axis=2)               # lane reduce
    max_acc[...] = jnp.maximum(max_acc[...], jnp.max(x, axis=2))

    @pl.when(h == pl.num_programs(1) - 1)
    def _finalize():
        pooled = sum_acc[...] * inv_hw + max_acc[...]              # (1, C)
        hid = jnp.maximum(
            jnp.dot(pooled, fcw1_ref[...], preferred_element_type=jnp.float32),
            0.0)
        fusion = jnp.dot(hid, fcw2_ref[...], preferred_element_type=jnp.float32)
        ghid = jnp.maximum(
            jnp.dot(fusion, gw1_ref[...], preferred_element_type=jnp.float32),
            0.0)
        gates = jax.nn.sigmoid(
            jnp.dot(ghid, gw2_ref[...], preferred_element_type=jnp.float32))
        gates_ref[...] = gates[None]                               # (1, 1, 4C)


def _pick_hw_tile(hw, c, vmem_budget_bytes=8 * 1024 * 1024):
    """Largest multiple-of-128 divisor of hw whose 4 double-buffered f32 input
    tiles stay under the VMEM budget; falls back to the full extent."""
    max_rows = max(128, vmem_budget_bytes // (4 * 2 * 4 * c))
    best = None
    t = 128
    while t <= min(hw, max_rows):
        if hw % t == 0:
            best = t
        t += 128
    return best if best is not None else hw


def asb_pallas(x0, x1, x2, x3, fc_w1, fc_w2, gate_w1, gate_w2):
    """x*: (N, C, HW) float32.  Returns (N, 1, 4*C) sigmoid gates."""
    N, C, HW = x0.shape
    C8 = fc_w1.shape[1]
    GH = gate_w1.shape[1]                      # 4 * (C // 16)
    thw = _pick_hw_tile(HW, C)
    n_hw = HW // thw

    x_spec = pl.BlockSpec((1, C, thw), lambda n, h: (n, 0, h))

    def w_full(shape):
        return pl.BlockSpec(shape, lambda n, h: (0, 0))

    kernel = functools.partial(_asb_kernel, inv_hw=1.0 / HW)
    return pl.pallas_call(
        kernel,
        out_shape=jax.ShapeDtypeStruct((N, 1, 4 * C), jnp.float32),
        grid=(N, n_hw),
        in_specs=[x_spec, x_spec, x_spec, x_spec,
                  w_full((C, C8)), w_full((C8, C)),
                  w_full((C, GH)), w_full((GH, 4 * C))],
        out_specs=pl.BlockSpec((1, 1, 4 * C), lambda n, h: (n, 0, 0)),
        scratch_shapes=[pltpu.VMEM((1, C), jnp.float32),
                        pltpu.VMEM((1, C), jnp.float32)],
        compiler_params=pltpu.CompilerParams(
            dimension_semantics=("parallel", "arbitrary"),
            vmem_limit_bytes=32 * 1024 * 1024),
    )(x0, x1, x2, x3, fc_w1, fc_w2, gate_w1, gate_w2)


# ----------------------------------------------------------------------------
# Module forward (matches AdaptiveSelectiveBlock.forward semantics)
# ----------------------------------------------------------------------------
def adaptive_selective_block_forward(x0, x1, x2, x3, params):
    """Inputs x*: (N, C, H, W) (NCHW, like PyTorch).  Returns a list of four
    (N, C, 1, 1) channel-attention gates [branch_0..branch_3]."""
    N, C, H, W = x0.shape
    HW = H * W
    as3d = lambda t: t.reshape(N, C, HW).astype(jnp.float32)   # free (no copy)

    # Pack the four gate FCs: first layers concat along Cout, second layers
    # block-diagonal, so one matmul emits a lane-dense (1, 4*C) output.
    c16 = params["fc0_w1"].shape[1]
    gate_w1 = jnp.concatenate([params["fc%d_w1" % i] for i in range(4)], axis=1)
    gate_w2 = jnp.zeros((4 * c16, 4 * C), jnp.float32)
    for i in range(4):
        gate_w2 = gate_w2.at[i * c16:(i + 1) * c16, i * C:(i + 1) * C].set(
            params["fc%d_w2" % i])

    gates = asb_pallas(as3d(x0), as3d(x1), as3d(x2), as3d(x3),
                       params["fc_w1"], params["fc_w2"], gate_w1, gate_w2)
    gates = gates.reshape(N, 4, C)
    return [gates[:, i, :].reshape(N, C, 1, 1) for i in range(4)]


# ----------------------------------------------------------------------------
# Pure-JAX reference (for correctness check)
# ----------------------------------------------------------------------------
def adaptive_selective_block_ref(x0, x1, x2, x3, params):
    hi = jax.lax.Precision.HIGHEST
    x = (x0 + x1 + x2 + x3).astype(jnp.float32)
    pooled = jnp.mean(x, axis=(2, 3)) + jnp.max(x, axis=(2, 3))       # (N, C)
    fusion = jnp.dot(
        jnp.maximum(jnp.dot(pooled, params["fc_w1"], precision=hi), 0.0),
        params["fc_w2"], precision=hi)
    N, C = pooled.shape
    outs = []
    for i in range(4):
        h = jnp.maximum(jnp.dot(fusion, params["fc%d_w1" % i], precision=hi), 0.0)
        g = jax.nn.sigmoid(jnp.dot(h, params["fc%d_w2" % i], precision=hi))
        outs.append(g.reshape(N, C, 1, 1))
    return outs


# ----------------------------------------------------------------------------
# Deterministic parameter init (1x1 convs, bias=False -> plain matrices)
# ----------------------------------------------------------------------------
def init_params(key, in_planes):
    c = in_planes
    assert c >= 16 and c % 16 == 0, "in_planes must be a multiple of 16"
    keys = jax.random.split(key, 10)

    def w(k, cin, cout):
        return jax.random.normal(k, (cin, cout), jnp.float32) / np.sqrt(cin)

    p = {"fc_w1": w(keys[0], c, c // 8), "fc_w2": w(keys[1], c // 8, c)}
    for i in range(4):
        p["fc%d_w1" % i] = w(keys[2 + 2 * i], c, c // 16)
        p["fc%d_w2" % i] = w(keys[3 + 2 * i], c // 16, c)
    return p


if __name__ == "__main__":
    key = jax.random.PRNGKey(0)
    kp, kx = jax.random.split(key)

    # in_planes must be >= 16 (fc0..3 hidden width = in_planes // 16).
    N, C, H, W = 2, 128, 64, 64
    kxs = jax.random.split(kx, 4)
    xs = [jax.random.normal(kxs[i], (N, C, H, W), jnp.float32) for i in range(4)]
    params = init_params(kp, C)

    fwd = jax.jit(adaptive_selective_block_forward)
    outs = jax.block_until_ready(fwd(*xs, params))

    for o in outs:
        assert o.shape == (N, C, 1, 1)
        assert bool(jnp.all(jnp.isfinite(o)))

    refs = adaptive_selective_block_ref(*xs, params)
    err = max(float(jnp.max(jnp.abs(o - r))) for o, r in zip(outs, refs))
    assert err <= 2e-3, f"Pallas vs reference mismatch: max abs err {err}"

    print("KERNEL_OK")
</pallas_src>

<mosaic_0001>
module attributes {stable_mosaic.version = 11 : i64} {
  func.func @_asb_kernel(%arg0: i32, %arg1: i32, %arg2: memref<1x128x2048xf32, #tpu.memory_space<vmem>>, %arg3: memref<1x128x2048xf32, #tpu.memory_space<vmem>>, %arg4: memref<1x128x2048xf32, #tpu.memory_space<vmem>>, %arg5: memref<1x128x2048xf32, #tpu.memory_space<vmem>>, %arg6: memref<128x16xf32, #tpu.memory_space<vmem>>, %arg7: memref<16x128xf32, #tpu.memory_space<vmem>>, %arg8: memref<128x32xf32, #tpu.memory_space<vmem>>, %arg9: memref<32x512xf32, #tpu.memory_space<vmem>>, %arg10: memref<1x1x512xf32, #tpu.memory_space<vmem>>, %arg11: memref<1x128xf32, #tpu.memory_space<vmem>>, %arg12: memref<1x128xf32, #tpu.memory_space<vmem>>) attributes {dimension_semantics = [#tpu.dimension_semantics<parallel>, #tpu.dimension_semantics<arbitrary>], iteration_bounds = array<i64: 2, 2>, scalar_prefetch = 0 : i64, scratch_operands = 2 : i64, tpu.core_type = #tpu.core_type<tc>, window_params = [{transform_indices = @transform_0, window_bounds = array<i64: 1, 128, 2048>}, {transform_indices = @transform_1, window_bounds = array<i64: 1, 128, 2048>}, {transform_indices = @transform_2, window_bounds = array<i64: 1, 128, 2048>}, {transform_indices = @transform_3, window_bounds = array<i64: 1, 128, 2048>}, {pipeline_mode = #tpu.pipeline_mode<synchronous>, transform_indices = @transform_4, window_bounds = array<i64: 128, 16>}, {pipeline_mode = #tpu.pipeline_mode<synchronous>, transform_indices = @transform_5, window_bounds = array<i64: 16, 128>}, {pipeline_mode = #tpu.pipeline_mode<synchronous>, transform_indices = @transform_6, window_bounds = array<i64: 128, 32>}, {pipeline_mode = #tpu.pipeline_mode<synchronous>, transform_indices = @transform_7, window_bounds = array<i64: 32, 512>}, {transform_indices = @transform_8, window_bounds = array<i64: 1, 1, 512>}]} {
    %c0_i32 = arith.constant 0 : i32
    %0 = arith.cmpi eq, %arg1, %c0_i32 : i32
    %1 = arith.extui %0 : i1 to i32
    %c0_i32_0 = arith.constant 0 : i32
    %2 = arith.cmpi ne, %1, %c0_i32_0 : i32
    scf.if %2 {
      %cst_22 = arith.constant 0.000000e+00 : f32
      %21 = vector.broadcast %cst_22 : f32 to vector<1x128xf32>
      %c0_23 = arith.constant 0 : index
      %c0_24 = arith.constant 0 : index
      %22 = vector.load %arg11[%c0_23, %c0_24] : memref<1x128xf32, #tpu.memory_space<vmem>>, vector<1x128xf32>
      tpu.vector_store %arg11[%c0_23, %c0_24], %21 {strides = array<i32>} : memref<1x128xf32, #tpu.memory_space<vmem>>, vector<1x128xf32>,
      %cst_25 = arith.constant 0xFF800000 : f32
      %23 = vector.broadcast %cst_25 : f32 to vector<1x128xf32>
      %c0_26 = arith.constant 0 : index
      %c0_27 = arith.constant 0 : index
      %24 = vector.load %arg12[%c0_26, %c0_27] : memref<1x128xf32, #tpu.memory_space<vmem>>, vector<1x128xf32>
      tpu.vector_store %arg12[%c0_26, %c0_27], %23 {strides = array<i32>} : memref<1x128xf32, #tpu.memory_space<vmem>>, vector<1x128xf32>,
    } else {
    }
    %c0 = arith.constant 0 : index
    %c0_1 = arith.constant 0 : index
    %c0_2 = arith.constant 0 : index
    %3 = vector.load %arg2[%c0, %c0_1, %c0_2] : memref<1x128x2048xf32, #tpu.memory_space<vmem>>, vector<1x128x2048xf32>
    %c0_3 = arith.constant 0 : index
    %c0_4 = arith.constant 0 : index
    %c0_5 = arith.constant 0 : index
    %4 = vector.load %arg3[%c0_3, %c0_4, %c0_5] : memref<1x128x2048xf32, #tpu.memory_space<vmem>>, vector<1x128x2048xf32>
    %5 = arith.addf %3, %4 : vector<1x128x2048xf32>
    %c0_6 = arith.constant 0 : index
    %c0_7 = arith.constant 0 : index
    %c0_8 = arith.constant 0 : index
    %6 = vector.load %arg4[%c0_6, %c0_7, %c0_8] : memref<1x128x2048xf32, #tpu.memory_space<vmem>>, vector<1x128x2048xf32>
    %7 = arith.addf %5, %6 : vector<1x128x2048xf32>
    %c0_9 = arith.constant 0 : index
    %c0_10 = arith.constant 0 : index
    %c0_11 = arith.constant 0 : index
    %8 = vector.load %arg5[%c0_9, %c0_10, %c0_11] : memref<1x128x2048xf32, #tpu.memory_space<vmem>>, vector<1x128x2048xf32>
    %9 = arith.addf %7, %8 : vector<1x128x2048xf32>
    %c0_12 = arith.constant 0 : index
    %c0_13 = arith.constant 0 : index
    %10 = vector.load %arg11[%c0_12, %c0_13] : memref<1x128xf32, #tpu.memory_space<vmem>>, vector<1x128xf32>
    %cst = arith.constant dense<0.000000e+00> : vector<1x128xf32>
    %11 = vector.multi_reduction <add>, %9, %cst [2] : vector<1x128x2048xf32> to vector<1x128xf32>
    %12 = arith.addf %10, %11 : vector<1x128xf32>
    %c0_14 = arith.constant 0 : index
    %c0_15 = arith.constant 0 : index
    %13 = vector.load %arg11[%c0_14, %c0_15] : memref<1x128xf32, #tpu.memory_space<vmem>>, vector<1x128xf32>
    tpu.vector_store %arg11[%c0_14, %c0_15], %12 {strides = array<i32>} : memref<1x128xf32, #tpu.memory_space<vmem>>, vector<1x128xf32>,
    %c0_16 = arith.constant 0 : index
    %c0_17 = arith.constant 0 : index
    %14 = vector.load %arg12[%c0_16, %c0_17] : memref<1x128xf32, #tpu.memory_space<vmem>>, vector<1x128xf32>
    %cst_18 = arith.constant dense<0xFF800000> : vector<1x128xf32>
    %15 = vector.multi_reduction <maximumf>, %9, %cst_18 [2] : vector<1x128x2048xf32> to vector<1x128xf32>
    %16 = arith.maximumf %14, %15 : vector<1x128xf32>
    %c0_19 = arith.constant 0 : index
    %c0_20 = arith.constant 0 : index
    %17 = vector.load %arg12[%c0_19, %c0_20] : memref<1x128xf32, #tpu.memory_space<vmem>>, vector<1x128xf32>
    tpu.vector_store %arg12[%c0_19, %c0_20], %16 {strides = array<i32>} : memref<1x128xf32, #tpu.memory_space<vmem>>, vector<1x128xf32>,
    %c1_i32 = arith.constant 1 : i32
    %18 = arith.cmpi eq, %arg1, %c1_i32 : i32
    %19 = arith.extui %18 : i1 to i32
    %c0_i32_21 = arith.constant 0 : i32
    %20 = arith.cmpi ne, %19, %c0_i32_21 : i32
    scf.if %20 {
      %c0_22 = arith.constant 0 : index
      %c0_23 = arith.constant 0 : index
      %21 = vector.load %arg11[%c0_22, %c0_23] : memref<1x128xf32, #tpu.memory_space<vmem>>, vector<1x128xf32>
      %cst_24 = arith.constant 2.44140625E-4 : f32
      %22 = vector.broadcast %cst_24 : f32 to vector<1x128xf32>
      %23 = arith.mulf %21, %22 : vector<1x128xf32>
      %c0_25 = arith.constant 0 : index
      %c0_26 = arith.constant 0 : index
      %24 = vector.load %arg12[%c0_25, %c0_26] : memref<1x128xf32, #tpu.memory_space<vmem>>, vector<1x128xf32>
      %25 = arith.addf %23, %24 : vector<1x128xf32>
      %c0_27 = arith.constant 0 : index
      %c0_28 = arith.constant 0 : index
      %26 = vector.load %arg6[%c0_27, %c0_28] : memref<128x16xf32, #tpu.memory_space<vmem>>, vector<128x16xf32>
      %cst_29 = arith.constant dense<0.000000e+00> : vector<1x16xf32>
      %27 = tpu.matmul %25, %26, %cst_29 {dimension_numbers = #tpu.dot_dimension_numbers<[1], [0], [0], [1], [0, 0, 1, 1], [], []>} : vector<1x128xf32>, vector<128x16xf32>, vector<1x16xf32> -> vector<1x16xf32>
      %cst_30 = arith.constant 0.000000e+00 : f32
      %28 = vector.broadcast %cst_30 : f32 to vector<1x16xf32>
      %29 = arith.maximumf %27, %28 : vector<1x16xf32>
      %c0_31 = arith.constant 0 : index
      %c0_32 = arith.constant 0 : index
      %30 = vector.load %arg7[%c0_31, %c0_32] : memref<16x128xf32, #tpu.memory_space<vmem>>, vector<16x128xf32>
      %cst_33 = arith.constant dense<0.000000e+00> : vector<1x128xf32>
      %31 = tpu.matmul %29, %30, %cst_33 {dimension_numbers = #tpu.dot_dimension_numbers<[1], [0], [0], [1], [0, 0, 1, 1], [], []>} : vector<1x16xf32>, vector<16x128xf32>, vector<1x128xf32> -> vector<1x128xf32>
      %c0_34 = arith.constant 0 : index
      %c0_35 = arith.constant 0 : index
      %32 = vector.load %arg8[%c0_34, %c0_35] : memref<128x32xf32, #tpu.memory_space<vmem>>, vector<128x32xf32>
      %cst_36 = arith.constant dense<0.000000e+00> : vector<1x32xf32>
      %33 = tpu.matmul %31, %32, %cst_36 {dimension_numbers = #tpu.dot_dimension_numbers<[1], [0], [0], [1], [0, 0, 1, 1], [], []>} : vector<1x128xf32>, vector<128x32xf32>, vector<1x32xf32> -> vector<1x32xf32>
      %cst_37 = arith.constant 0.000000e+00 : f32
      %34 = vector.broadcast %cst_37 : f32 to vector<1x32xf32>
      %35 = arith.maximumf %33, %34 : vector<1x32xf32>
      %c0_38 = arith.constant 0 : index
      %c0_39 = arith.constant 0 : index
      %36 = vector.load %arg9[%c0_38, %c0_39] : memref<32x512xf32, #tpu.memory_space<vmem>>, vector<32x512xf32>
      %cst_40 = arith.constant dense<0.000000e+00> : vector<1x512xf32>
      %37 = tpu.matmul %35, %36, %cst_40 {dimension_numbers = #tpu.dot_dimension_numbers<[1], [0], [0], [1], [0, 0, 1, 1], [], []>} : vector<1x32xf32>, vector<32x512xf32>, vector<1x512xf32> -> vector<1x512xf32>
      %38 = arith.negf %37 : vector<1x512xf32>
      %39 = math.exp %38 : vector<1x512xf32>
      %cst_41 = arith.constant 1.000000e+00 : f32
      %40 = vector.broadcast %cst_41 : f32 to vector<1x512xf32>
      %41 = arith.addf %40, %39 : vector<1x512xf32>
      %42 = arith.divf %40, %41 : vector<1x512xf32>
      %43 = vector.shape_cast %42 : vector<1x512xf32> to vector<1x1x512xf32>
      %c0_42 = arith.constant 0 : index
      %c0_43 = arith.constant 0 : index
      %c0_44 = arith.constant 0 : index
      %44 = vector.load %arg10[%c0_42, %c0_43, %c0_44] : memref<1x1x512xf32, #tpu.memory_space<vmem>>, vector<1x1x512xf32>
      tpu.vector_store %arg10[%c0_42, %c0_43, %c0_44], %43 {strides = array<i32>} : memref<1x1x512xf32, #tpu.memory_space<vmem>>, vector<1x1x512xf32>,
    } else {
    }
    return
  }
  func.func @transform_0(%arg0: i32, %arg1: i32) -> (i32, i32, i32) {
    %c0_i32 = arith.constant 0 : i32
    %c0_i32_0 = arith.constant 0 : i32
    return %arg0, %c0_i32, %arg1 : i32, i32, i32
  }
  func.func @transform_1(%arg0: i32, %arg1: i32) -> (i32, i32, i32) {
    %c0_i32 = arith.constant 0 : i32
    %c0_i32_0 = arith.constant 0 : i32
    return %arg0, %c0_i32, %arg1 : i32, i32, i32
  }
  func.func @transform_2(%arg0: i32, %arg1: i32) -> (i32, i32, i32) {
    %c0_i32 = arith.constant 0 : i32
    %c0_i32_0 = arith.constant 0 : i32
    return %arg0, %c0_i32, %arg1 : i32, i32, i32
  }
  func.func @transform_3(%arg0: i32, %arg1: i32) -> (i32, i32, i32) {
    %c0_i32 = arith.constant 0 : i32
    %c0_i32_0 = arith.constant 0 : i32
    return %arg0, %c0_i32, %arg1 : i32, i32, i32
  }
  func.func @transform_4(%arg0: i32, %arg1: i32) -> (i32, i32) {
    %c0_i32 = arith.constant 0 : i32
    %c0_i32_0 = arith.constant 0 : i32
    %c0_i32_1 = arith.constant 0 : i32
    return %c0_i32, %c0_i32_0 : i32, i32
  }
  func.func @transform_5(%arg0: i32, %arg1: i32) -> (i32, i32) {
    %c0_i32 = arith.constant 0 : i32
    %c0_i32_0 = arith.constant 0 : i32
    %c0_i32_1 = arith.constant 0 : i32
    return %c0_i32, %c0_i32_0 : i32, i32
  }
  func.func @transform_6(%arg0: i32, %arg1: i32) -> (i32, i32) {
    %c0_i32 = arith.constant 0 : i32
    %c0_i32_0 = arith.constant 0 : i32
    %c0_i32_1 = arith.constant 0 : i32
    return %c0_i32, %c0_i32_0 : i32, i32
  }
  func.func @transform_7(%arg0: i32, %arg1: i32) -> (i32, i32) {
    %c0_i32 = arith.constant 0 : i32
    %c0_i32_0 = arith.constant 0 : i32
    %c0_i32_1 = arith.constant 0 : i32
    return %c0_i32, %c0_i32_0 : i32, i32
  }
  func.func @transform_8(%arg0: i32, %arg1: i32) -> (i32, i32, i32) {
    %c0_i32 = arith.constant 0 : i32
    %c0_i32_0 = arith.constant 0 : i32
    %c0_i32_1 = arith.constant 0 : i32
    return %arg0, %c0_i32, %c0_i32_0 : i32, i32, i32
  }
}

</mosaic_0001>

<bundles_post_ra>
// kernel: adaptive_selective_block_forward.1
= control target key start
LH: loop header
LB: loop body
LE: loop exit
PB: predicated region body
PF: predicated region fallthrough
CT: control target
= control target key end

     0   :  { %s8825_s27 = smov 0   ;;  %s8827_s28 = smov 0   ;;  %s13451_s0 = inlined_call_operand.vmem [shape: f32[2,128,4096], index: 0, kind: input, shape index: {}]   ;;  %s13452_s1 = inlined_call_operand.vmem [shape: f32[2,128,4096], index: 1, kind: input, shape index: {}]   ;;  %s13453_s2 = inlined_call_operand.vmem [shape: f32[2,128,4096], index: 2, kind: input, shape index: {}]   ;;  %s13454_s3 = inlined_call_operand.vmem [shape: f32[2,128,4096], index: 3, kind: input, shape index: {}]   ;;  %s13455_s4 = inlined_call_operand.vmem [shape: f32[128,16], index: 4, kind: input, shape index: {}]   ;;  %s13456_s5 = inlined_call_operand.vmem [shape: f32[16,128], index: 5, kind: input, shape index: {}]   ;;  %s13457_s6 = inlined_call_operand.vmem [shape: f32[128,32], index: 6, kind: input, shape index: {}]   ;;  %s13458_s7 = inlined_call_operand.vmem [shape: f32[32,512], index: 7, kind: input, shape index: {}]   ;;  %s13459_s8 = inlined_call_operand.vmem [shape: f32[2,1,512], index: 8, kind: output, shape index: {}]  }
   0x1   :  { %s8829_s29 = smov 0   ;;  %s8831_s30 = smov 0  }
   0x2   :  { %s8833_s9 = smov 0   ;;  %s8835_s10 = smov 0  }
   0x3   :  { %s8837_s11 = smov 0  }
   0x4 LB: > { %s27_s12 = sadd.s32 1, %s8763_s9  ;;  %s30_s13 = sadd.s32 1, %s8767_s10  ;;  %s8771_s11 = sphi %s8837_s11, %s18_s11   ;;  %s8767_s10 = sphi %s8835_s10, %s13585_s10   ;;  %s8763_s9 = sphi %s8833_s9, %s13584_s9   ;;  %s8759_s30 = sphi %s8831_s30, %s13583_s30   ;;  %s8755_s29 = sphi %s8829_s29, %s13582_s29   ;;  %s8751_s28 = sphi %s8827_s28, %s13581_s28   ;;  %s8747_s27 = sphi %s8825_s27, %s13580_s27  }
   0x5   : > { %p28_p0 = scmp.ge.s32.totalorder %s27_s12, 2  ;;  %p46_p1 = scmp.ne.s32.totalorder %s8751_s28, %s8747_s27 }
   0x6   : > { %p47_p2 = scmp.eq.s32.totalorder %s8771_s11, 0  ;;  %s39_s18 = sadd.s32 1, %s8751_s28 }
   0x7   : > { %s13587_s12 = smov (%p28_p0, %s27_s12), 0  ;;  %s13589_s13 = smov (!%p28_p0, %s30_s13), %s8767_s10 }
   0x8   : > { %p8868_p3 = por %p47_p2, %p46_p1  ;;  %p32_p4 = scmp.ge.s32.totalorder %s13589_s13, 2 }
   0x9   : > { %s35_s15 = ssub.s32 %s8763_s9, %s13587_s12  ;;  %p8421_p6 = scmp.ge.s32.totalorder %s8771_s11, 4 }
   0xa   : > { %s13591_s13 = smov (%p32_p4, %s13589_s13), 0 }
   0xb   : > { %s34_s16 = ssub.s32 %s8767_s10, %s13591_s13  ;;  %278 = sbr.rel (%p8421_p6) target bundleno = 558 (0x22e), region = 32 }
   0xc   : > { %s36_s17 = sor.u32 %s35_s15, %s34_s16 }
   0xd   : > { %p37_p5 = scmp.eq.s32.totalorder %s36_s17, 0 }
   0xf   : > { %s8880_s19 = scalar_select %p37_p5, %s8751_s28, %s39_s18  }
  0x12   : > { %281 = sbr.rel (!%p8868_p3) target bundleno = 153 (0x99), region = 36  ;;  %s283_s20 = sand.u32 (%p8868_p3), 1, %s8751_s28  }
  0x13   : > { %s8423_s21 = sshll.u32 (%p8868_p3), %s8763_s9, 4  ;;  %s8422_s22 = sshll.u32 (%p8868_p3), %s283_s20, 11 }
  0x14   : > { %s8424_s23 = sshll.u32 (%p8868_p3), %s8767_s10, 9  ;;  %s8896_s17 = scalar_lea.vmem (%p8868_p3), [#allocation4], %s8422_s22 }
  0x15   : > { %s288_s24 = sadd.s32 (%p8868_p3), %s8424_s23, %s8423_s21 }
  0x16   : > { %s8425_s25 = sshll.u32 (%p8868_p3), %s288_s24, 3 }
  0x17   : > { %s8891_s16 = scalar_lea.vmem (%p8868_p3), %s13451_s0, %s8425_s25 }
  0x18   : > { %v303_v0 = vld [vmem:[%s8891_s16] sm:$0xff] (%p8868_p3)  ;;  %v305_v1 = vld [vmem:[%s8891_s16 + $0x8] sm:$0xff] (%p8868_p3)  ;;  %v307_v2 = vld [vmem:[%s8891_s16 + $0x10] sm:$0xff] (%p8868_p3) }
  0x19   : > { %304 = vst [vmem:[%s8896_s17] sm:$0xff] %v303_v0  ;;  %306 = vst [vmem:[%s8896_s17 + $0x8] sm:$0xff] %v305_v1  ;;  %v309_v3 = vld [vmem:[%s8891_s16 + $0x18] sm:$0xff]  ;;  %v311_v4 = vld [vmem:[%s8891_s16 + $0x20] sm:$0xff] }
  0x1a   : > { %308 = vst [vmem:[%s8896_s17 + $0x10] sm:$0xff] %v307_v2  ;;  %v313_v5 = vld [vmem:[%s8891_s16 + $0x28] sm:$0xff]  ;;  %310 = vst [vmem:[%s8896_s17 + $0x18] sm:$0xff] %v309_v3  ;;  %v315_v6 = vld [vmem:[%s8891_s16 + $0x30] sm:$0xff] }
  0x1b   : > { %312 = vst [vmem:[%s8896_s17 + $0x20] sm:$0xff] %v311_v4  ;;  %314 = vst [vmem:[%s8896_s17 + $0x28] sm:$0xff] %v313_v5  ;;  %v317_v7 = vld [vmem:[%s8891_s16 + $0x38] sm:$0xff]  ;;  %v319_v8 = vld [vmem:[%s8891_s16 + $0x40] sm:$0xff] }
  0x1c   : > { %316 = vst [vmem:[%s8896_s17 + $0x30] sm:$0xff] %v315_v6  ;;  %318 = vst [vmem:[%s8896_s17 + $0x38] sm:$0xff] %v317_v7  ;;  %v321_v9 = vld [vmem:[%s8891_s16 + $0x48] sm:$0xff]  ;;  %v323_v10 = vld [vmem:[%s8891_s16 + $0x50] sm:$0xff] }
  0x1d   : > { %320 = vst [vmem:[%s8896_s17 + $0x40] sm:$0xff] %v319_v8  ;;  %v325_v11 = vld [vmem:[%s8891_s16 + $0x58] sm:$0xff]  ;;  %322 = vst [vmem:[%s8896_s17 + $0x48] sm:$0xff] %v321_v9  ;;  %v327_v12 = vld [vmem:[%s8891_s16 + $0x60] sm:$0xff] }
  0x1e   : > { %324 = vst [vmem:[%s8896_s17 + $0x50] sm:$0xff] %v323_v10  ;;  %326 = vst [vmem:[%s8896_s17 + $0x58] sm:$0xff] %v325_v11  ;;  %v329_v13 = vld [vmem:[%s8891_s16 + $0x68] sm:$0xff]  ;;  %v331_v14 = vld [vmem:[%s8891_s16 + $0x70] sm:$0xff] }
  0x1f   : > { %328 = vst [vmem:[%s8896_s17 + $0x60] sm:$0xff] %v327_v12  ;;  %330 = vst [vmem:[%s8896_s17 + $0x68] sm:$0xff] %v329_v13  ;;  %v333_v15 = vld [vmem:[%s8891_s16 + $0x78] sm:$0xff]  ;;  %v335_v16 = vld [vmem:[%s8891_s16 + $0x100] sm:$0xff] }
  0x20   : > { %332 = vst [vmem:[%s8896_s17 + $0x70] sm:$0xff] %v331_v14  ;;  %v337_v17 = vld [vmem:[%s8891_s16 + $0x108] sm:$0xff]  ;;  %334 = vst [vmem:[%s8896_s17 + $0x78] sm:$0xff] %v333_v15  ;;  %v339_v18 = vld [vmem:[%s8891_s16 + $0x110] sm:$0xff] }
  0x21   : > { %336 = vst [vmem:[%s8896_s17 + $0x80] sm:$0xff] %v335_v16  ;;  %338 = vst [vmem:[%s8896_s17 + $0x88] sm:$0xff] %v337_v17  ;;  %v341_v19 = vld [vmem:[%s8891_s16 + $0x118] sm:$0xff]  ;;  %v343_v20 = vld [vmem:[%s8891_s16 + $0x120] sm:$0xff] }
  0x22   : > { %340 = vst [vmem:[%s8896_s17 + $0x90] sm:$0xff] %v339_v18  ;;  %342 = vst [vmem:[%s8896_s17 + $0x98] sm:$0xff] %v341_v19  ;;  %v345_v21 = vld [vmem:[%s8891_s16 + $0x128] sm:$0xff]  ;;  %v347_v22 = vld [vmem:[%s8891_s16 + $0x130] sm:$0xff] }
  0x23   : > { %344 = vst [vmem:[%s8896_s17 + $0xa0] sm:$0xff] %v343_v20  ;;  %v349_v23 = vld [vmem:[%s8891_s16 + $0x138] sm:$0xff]  ;;  %346 = vst [vmem:[%s8896_s17 + $0xa8] sm:$0xff] %v345_v21  ;;  %v351_v24 = vld [vmem:[%s8891_s16 + $0x140] sm:$0xff] }
  0x24   : > { %348 = vst [vmem:[%s8896_s17 + $0xb0] sm:$0xff] %v347_v22  ;;  %350 = vst [vmem:[%s8896_s17 + $0xb8] sm:$0xff] %v349_v23  ;;  %v353_v25 = vld [vmem:[%s8891_s16 + $0x148] sm:$0xff]  ;;  %v355_v26 = vld [vmem:[%s8891_s16 + $0x150] sm:$0xff] }
  0x25   : > { %352 = vst [vmem:[%s8896_s17 + $0xc0] sm:$0xff] %v351_v24  ;;  %354 = vst [vmem:[%s8896_s17 + $0xc8] sm:$0xff] %v353_v25  ;;  %v357_v27 = vld [vmem:[%s8891_s16 + $0x158] sm:$0xff]  ;;  %v359_v28 = vld [vmem:[%s8891_s16 + $0x160] sm:$0xff] }
  0x26   : > { %356 = vst [vmem:[%s8896_s17 + $0xd0] sm:$0xff] %v355_v26  ;;  %v361_v29 = vld [vmem:[%s8891_s16 + $0x168] sm:$0xff]  ;;  %358 = vst [vmem:[%s8896_s17 + $0xd8] sm:$0xff] %v357_v27  ;;  %v363_v30 = vld [vmem:[%s8891_s16 + $0x170] sm:$0xff] }
  0x27   : > { %360 = vst [vmem:[%s8896_s17 + $0xe0] sm:$0xff] %v359_v28  ;;  %362 = vst [vmem:[%s8896_s17 + $0xe8] sm:$0xff] %v361_v29  ;;  %v365_v31 = vld [vmem:[%s8891_s16 + $0x178] sm:$0xff]  ;;  %v367_v32 = vld [vmem:[%s8891_s16 + $0x200] sm:$0xff] }
  0x28   : > { %364 = vst [vmem:[%s8896_s17 + $0xf0] sm:$0xff] %v363_v30  ;;  %366 = vst [vmem:[%s8896_s17 + $0xf8] sm:$0xff] %v365_v31  ;;  %v369_v33 = vld [vmem:[%s8891_s16 + $0x208] sm:$0xff]  ;;  %v371_v34 = vld [vmem:[%s8891_s16 + $0x210] sm:$0xff] }
  0x29   : > { %368 = vst [vmem:[%s8896_s17 + $0x100] sm:$0xff] %v367_v32  ;;  %v373_v35 = vld [vmem:[%s8891_s16 + $0x218] sm:$0xff]  ;;  %370 = vst [vmem:[%s8896_s17 + $0x108] sm:$0xff] %v369_v33  ;;  %v375_v36 = vld [vmem:[%s8891_s16 + $0x220] sm:$0xff] }
  0x2a   : > { %372 = vst [vmem:[%s8896_s17 + $0x110] sm:$0xff] %v371_v34  ;;  %374 = vst [vmem:[%s8896_s17 + $0x118] sm:$0xff] %v373_v35  ;;  %v377_v37 = vld [vmem:[%s8891_s16 + $0x228] sm:$0xff]  ;;  %v379_v38 = vld [vmem:[%s8891_s16 + $0x230] sm:$0xff] }
  0x2b   : > { %376 = vst [vmem:[%s8896_s17 + $0x120] sm:$0xff] %v375_v36  ;;  %378 = vst [vmem:[%s8896_s17 + $0x128] sm:$0xff] %v377_v37  ;;  %v381_v39 = vld [vmem:[%s8891_s16 + $0x238] sm:$0xff]  ;;  %v383_v40 = vld [vmem:[%s8891_s16 + $0x240] sm:$0xff] }
  0x2c   : > { %380 = vst [vmem:[%s8896_s17 + $0x130] sm:$0xff] %v379_v38  ;;  %v385_v41 = vld [vmem:[%s8891_s16 + $0x248] sm:$0xff]  ;;  %382 = vst [vmem:[%s8896_s17 + $0x138] sm:$0xff] %v381_v39  ;;  %v387_v42 = vld [vmem:[%s8891_s16 + $0x250] sm:$0xff] }
  0x2d   : > { %384 = vst [vmem:[%s8896_s17 + $0x140] sm:$0xff] %v383_v40  ;;  %386 = vst [vmem:[%s8896_s17 + $0x148] sm:$0xff] %v385_v41  ;;  %v389_v43 = vld [vmem:[%s8891_s16 + $0x258] sm:$0xff]  ;;  %v391_v44 = vld [vmem:[%s8891_s16 + $0x260] sm:$0xff] }
  0x2e   : > { %388 = vst [vmem:[%s8896_s17 + $0x150] sm:$0xff] %v387_v42  ;;  %390 = vst [vmem:[%s8896_s17 + $0x158] sm:$0xff] %v389_v43  ;;  %v393_v45 = vld [vmem:[%s8891_s16 + $0x268] sm:$0xff]  ;;  %v395_v46 = vld [vmem:[%s8891_s16 + $0x270] sm:$0xff] }
  0x2f   : > { %392 = vst [vmem:[%s8896_s17 + $0x160] sm:$0xff] %v391_v44  ;;  %v397_v47 = vld [vmem:[%s8891_s16 + $0x278] sm:$0xff]  ;;  %394 = vst [vmem:[%s8896_s17 + $0x168] sm:$0xff] %v393_v45  ;;  %v399_v48 = vld [vmem:[%s8891_s16 + $0x300] sm:$0xff] }
  0x30   : > { %396 = vst [vmem:[%s8896_s17 + $0x170] sm:$0xff] %v395_v46  ;;  %398 = vst [vmem:[%s8896_s17 + $0x178] sm:$0xff] %v397_v47  ;;  %v401_v49 = vld [vmem:[%s8891_s16 + $0x308] sm:$0xff]  ;;  %v403_v50 = vld [vmem:[%s8891_s16 + $0x310] sm:$0xff] }
  0x31   : > { %400 = vst [vmem:[%s8896_s17 + $0x180] sm:$0xff] %v399_v48  ;;  %402 = vst [vmem:[%s8896_s17 + $0x188] sm:$0xff] %v401_v49  ;;  %v405_v51 = vld [vmem:[%s8891_s16 + $0x318] sm:$0xff]  ;;  %v407_v52 = vld [vmem:[%s8891_s16 + $0x320] sm:$0xff] }
  0x32   : > { %404 = vst [vmem:[%s8896_s17 + $0x190] sm:$0xff] %v403_v50  ;;  %v409_v53 = vld [vmem:[%s8891_s16 + $0x328] sm:$0xff]  ;;  %406 = vst [vmem:[%s8896_s17 + $0x198] sm:$0xff] %v405_v51  ;;  %v411_v54 = vld [vmem:[%s8891_s16 + $0x330] sm:$0xff] }
  0x33   : > { %408 = vst [vmem:[%s8896_s17 + $0x1a0] sm:$0xff] %v407_v52  ;;  %410 = vst [vmem:[%s8896_s17 + $0x1a8] sm:$0xff] %v409_v53  ;;  %v413_v55 = vld [vmem:[%s8891_s16 + $0x338] sm:$0xff]  ;;  %v415_v56 = vld [vmem:[%s8891_s16 + $0x340] sm:$0xff] }
  0x34   : > { %412 = vst [vmem:[%s8896_s17 + $0x1b0] sm:$0xff] %v411_v54  ;;  %414 = vst [vmem:[%s8896_s17 + $0x1b8] sm:$0xff] %v413_v55  ;;  %v417_v57 = vld [vmem:[%s8891_s16 + $0x348] sm:$0xff]  ;;  %v419_v58 = vld [vmem:[%s8891_s16 + $0x350] sm:$0xff] }
  0x35   : > { %416 = vst [vmem:[%s8896_s17 + $0x1c0] sm:$0xff] %v415_v56  ;;  %v421_v59 = vld [vmem:[%s8891_s16 + $0x358] sm:$0xff]  ;;  %418 = vst [vmem:[%s8896_s17 + $0x1c8] sm:$0xff] %v417_v57  ;;  %v423_v60 = vld [vmem:[%s8891_s16 + $0x360] sm:$0xff] }
  0x36   : > { %420 = vst [vmem:[%s8896_s17 + $0x1d0] sm:$0xff] %v419_v58  ;;  %422 = vst [vmem:[%s8896_s17 + $0x1d8] sm:$0xff] %v421_v59  ;;  %v425_v61 = vld [vmem:[%s8891_s16 + $0x368] sm:$0xff]  ;;  %v427_v62 = vld [vmem:[%s8891_s16 + $0x370] sm:$0xff] }
  0x37   : > { %424 = vst [vmem:[%s8896_s17 + $0x1e0] sm:$0xff] %v423_v60  ;;  %426 = vst [vmem:[%s8896_s17 + $0x1e8] sm:$0xff] %v425_v61  ;;  %v429_v63 = vld [vmem:[%s8891_s16 + $0x378] sm:$0xff]  ;;  %v431_v0 = vld [vmem:[%s8891_s16 + $0x400] sm:$0xff] }
  0x38   : > { %428 = vst [vmem:[%s8896_s17 + $0x1f0] sm:$0xff] %v427_v62  ;;  %v433_v1 = vld [vmem:[%s8891_s16 + $0x408] sm:$0xff]  ;;  %430 = vst [vmem:[%s8896_s17 + $0x1f8] sm:$0xff] %v429_v63  ;;  %v435_v2 = vld [vmem:[%s8891_s16 + $0x410] sm:$0xff] }
  0x39   : > { %432 = vst [vmem:[%s8896_s17 + $0x200] sm:$0xff] %v431_v0  ;;  %434 = vst [vmem:[%s8896_s17 + $0x208] sm:$0xff] %v433_v1  ;;  %v437_v3 = vld [vmem:[%s8891_s16 + $0x418] sm:$0xff]  ;;  %v439_v4 = vld [vmem:[%s8891_s16 + $0x420] sm:$0xff] }
  0x3a   : > { %436 = vst [vmem:[%s8896_s17 + $0x210] sm:$0xff] %v435_v2  ;;  %438 = vst [vmem:[%s8896_s17 + $0x218] sm:$0xff] %v437_v3  ;;  %v441_v5 = vld [vmem:[%s8891_s16 + $0x428] sm:$0xff]  ;;  %v443_v6 = vld [vmem:[%s8891_s16 + $0x430] sm:$0xff] }
  0x3b   : > { %440 = vst [vmem:[%s8896_s17 + $0x220] sm:$0xff] %v439_v4  ;;  %v445_v7 = vld [vmem:[%s8891_s16 + $0x438] sm:$0xff]  ;;  %442 = vst [vmem:[%s8896_s17 + $0x228] sm:$0xff] %v441_v5  ;;  %v447_v8 = vld [vmem:[%s8891_s16 + $0x440] sm:$0xff] }
  0x3c   : > { %444 = vst [vmem:[%s8896_s17 + $0x230] sm:$0xff] %v443_v6  ;;  %446 = vst [vmem:[%s8896_s17 + $0x238] sm:$0xff] %v445_v7  ;;  %v449_v9 = vld [vmem:[%s8891_s16 + $0x448] sm:$0xff]  ;;  %v451_v10 = vld [vmem:[%s8891_s16 + $0x450] sm:$0xff] }
  0x3d   : > { %448 = vst [vmem:[%s8896_s17 + $0x240] sm:$0xff] %v447_v8  ;;  %450 = vst [vmem:[%s8896_s17 + $0x248] sm:$0xff] %v449_v9  ;;  %v453_v11 = vld [vmem:[%s8891_s16 + $0x458] sm:$0xff]  ;;  %v455_v12 = vld [vmem:[%s8891_s16 + $0x460] sm:$0xff] }
  0x3e   : > { %452 = vst [vmem:[%s8896_s17 + $0x250] sm:$0xff] %v451_v10  ;;  %v457_v13 = vld [vmem:[%s8891_s16 + $0x468] sm:$0xff]  ;;  %454 = vst [vmem:[%s8896_s17 + $0x258] sm:$0xff] %v453_v11  ;;  %v459_v14 = vld [vmem:[%s8891_s16 + $0x470] sm:$0xff] }
  0x3f   : > { %456 = vst [vmem:[%s8896_s17 + $0x260] sm:$0xff] %v455_v12  ;;  %458 = vst [vmem:[%s8896_s17 + $0x268] sm:$0xff] %v457_v13  ;;  %v461_v15 = vld [vmem:[%s8891_s16 + $0x478] sm:$0xff]  ;;  %v463_v16 = vld [vmem:[%s8891_s16 + $0x500] sm:$0xff] }
  0x40   : > { %460 = vst [vmem:[%s8896_s17 + $0x270] sm:$0xff] %v459_v14  ;;  %462 = vst [vmem:[%s8896_s17 + $0x278] sm:$0xff] %v461_v15  ;;  %v465_v17 = vld [vmem:[%s8891_s16 + $0x508] sm:$0xff]  ;;  %v467_v18 = vld [vmem:[%s8891_s16 + $0x510] sm:$0xff] }
  0x41   : > { %464 = vst [vmem:[%s8896_s17 + $0x280] sm:$0xff] %v463_v16  ;;  %v469_v19 = vld [vmem:[%s8891_s16 + $0x518] sm:$0xff]  ;;  %466 = vst [vmem:[%s8896_s17 + $0x288] sm:$0xff] %v465_v17  ;;  %v471_v20 = vld [vmem:[%s8891_s16 + $0x520] sm:$0xff] }
  0x42   : > { %468 = vst [vmem:[%s8896_s17 + $0x290] sm:$0xff] %v467_v18  ;;  %470 = vst [vmem:[%s8896_s17 + $0x298] sm:$0xff] %v469_v19  ;;  %v473_v21 = vld [vmem:[%s8891_s16 + $0x528] sm:$0xff]  ;;  %v475_v22 = vld [vmem:[%s8891_s16 + $0x530] sm:$0xff] }
  0x43   : > { %472 = vst [vmem:[%s8896_s17 + $0x2a0] sm:$0xff] %v471_v20  ;;  %474 = vst [vmem:[%s8896_s17 + $0x2a8] sm:$0xff] %v473_v21  ;;  %v477_v23 = vld [vmem:[%s8891_s16 + $0x538] sm:$0xff]  ;;  %v479_v24 = vld [vmem:[%s8891_s16 + $0x540] sm:$0xff] }
  0x44   : > { %476 = vst [vmem:[%s8896_s17 + $0x2b0] sm:$0xff] %v475_v22  ;;  %v481_v25 = vld [vmem:[%s8891_s16 + $0x548] sm:$0xff]  ;;  %478 = vst [vmem:[%s8896_s17 + $0x2b8] sm:$0xff] %v477_v23  ;;  %v483_v26 = vld [vmem:[%s8891_s16 + $0x550] sm:$0xff] }
  0x45   : > { %480 = vst [vmem:[%s8896_s17 + $0x2c0] sm:$0xff] %v479_v24  ;;  %482 = vst [vmem:[%s8896_s17 + $0x2c8] sm:$0xff] %v481_v25  ;;  %v485_v27 = vld [vmem:[%s8891_s16 + $0x558] sm:$0xff]  ;;  %v487_v28 = vld [vmem:[%s8891_s16 + $0x560] sm:$0xff] }
  0x46   : > { %484 = vst [vmem:[%s8896_s17 + $0x2d0] sm:$0xff] %v483_v26  ;;  %486 = vst [vmem:[%s8896_s17 + $0x2d8] sm:$0xff] %v485_v27  ;;  %v489_v29 = vld [vmem:[%s8891_s16 + $0x568] sm:$0xff]  ;;  %v491_v30 = vld [vmem:[%s8891_s16 + $0x570] sm:$0xff] }
  0x47   : > { %488 = vst [vmem:[%s8896_s17 + $0x2e0] sm:$0xff] %v487_v28  ;;  %v493_v31 = vld [vmem:[%s8891_s16 + $0x578] sm:$0xff]  ;;  %490 = vst [vmem:[%s8896_s17 + $0x2e8] sm:$0xff] %v489_v29  ;;  %v495_v32 = vld [vmem:[%s8891_s16 + $0x600] sm:$0xff] }
  0x48   : > { %492 = vst [vmem:[%s8896_s17 + $0x2f0] sm:$0xff] %v491_v30  ;;  %494 = vst [vmem:[%s8896_s17 + $0x2f8] sm:$0xff] %v493_v31  ;;  %v497_v33 = vld [vmem:[%s8891_s16 + $0x608] sm:$0xff]  ;;  %v499_v34 = vld [vmem:[%s8891_s16 + $0x610] sm:$0xff] }
  0x49   : > { %496 = vst [vmem:[%s8896_s17 + $0x300] sm:$0xff] %v495_v32  ;;  %498 = vst [vmem:[%s8896_s17 + $0x308] sm:$0xff] %v497_v33  ;;  %v501_v35 = vld [vmem:[%s8891_s16 + $0x618] sm:$0xff]  ;;  %v503_v36 = vld [vmem:[%s8891_s16 + $0x620] sm:$0xff] }
  0x4a   : > { %500 = vst [vmem:[%s8896_s17 + $0x310] sm:$0xff] %v499_v34  ;;  %v505_v37 = vld [vmem:[%s8891_s16 + $0x628] sm:$0xff]  ;;  %502 = vst [vmem:[%s8896_s17 + $0x318] sm:$0xff] %v501_v35  ;;  %v507_v38 = vld [vmem:[%s8891_s16 + $0x630] sm:$0xff] }
  0x4b   : > { %504 = vst [vmem:[%s8896_s17 + $0x320] sm:$0xff] %v503_v36  ;;  %506 = vst [vmem:[%s8896_s17 + $0x328] sm:$0xff] %v505_v37  ;;  %v509_v39 = vld [vmem:[%s8891_s16 + $0x638] sm:$0xff]  ;;  %v511_v40 = vld [vmem:[%s8891_s16 + $0x640] sm:$0xff] }
  0x4c   : > { %508 = vst [vmem:[%s8896_s17 + $0x330] sm:$0xff] %v507_v38  ;;  %510 = vst [vmem:[%s8896_s17 + $0x338] sm:$0xff] %v509_v39  ;;  %v513_v41 = vld [vmem:[%s8891_s16 + $0x648] sm:$0xff]  ;;  %v515_v42 = vld [vmem:[%s8891_s16 + $0x650] sm:$0xff] }
  0x4d   : > { %512 = vst [vmem:[%s8896_s17 + $0x340] sm:$0xff] %v511_v40  ;;  %v517_v43 = vld [vmem:[%s8891_s16 + $0x658] sm:$0xff]  ;;  %514 = vst [vmem:[%s8896_s17 + $0x348] sm:$0xff] %v513_v41  ;;  %v519_v44 = vld [vmem:[%s8891_s16 + $0x660] sm:$0xff] }
  0x4e   : > { %516 = vst [vmem:[%s8896_s17 + $0x350] sm:$0xff] %v515_v42  ;;  %518 = vst [vmem:[%s8896_s17 + $0x358] sm:$0xff] %v517_v43  ;;  %v521_v45 = vld [vmem:[%s8891_s16 + $0x668] sm:$0xff]  ;;  %v523_v46 = vld [vmem:[%s8891_s16 + $0x670] sm:$0xff] }
  0x4f   : > { %520 = vst [vmem:[%s8896_s17 + $0x360] sm:$0xff] %v519_v44  ;;  %522 = vst [vmem:[%s8896_s17 + $0x368] sm:$0xff] %v521_v45  ;;  %v525_v47 = vld [vmem:[%s8891_s16 + $0x678] sm:$0xff]  ;;  %v527_v48 = vld [vmem:[%s8891_s16 + $0x700] sm:$0xff] }
  0x50   : > { %524 = vst [vmem:[%s8896_s17 + $0x370] sm:$0xff] %v523_v46  ;;  %v529_v49 = vld [vmem:[%s8891_s16 + $0x708] sm:$0xff]  ;;  %526 = vst [vmem:[%s8896_s17 + $0x378] sm:$0xff] %v525_v47  ;;  %v531_v50 = vld [vmem:[%s8891_s16 + $0x710] sm:$0xff] }
  0x51   : > { %528 = vst [vmem:[%s8896_s17 + $0x380] sm:$0xff] %v527_v48  ;;  %530 = vst [vmem:[%s8896_s17 + $0x388] sm:$0xff] %v529_v49  ;;  %v533_v51 = vld [vmem:[%s8891_s16 + $0x718] sm:$0xff]  ;;  %v535_v52 = vld [vmem:[%s8891_s16 + $0x720] sm:$0xff] }
  0x52   : > { %532 = vst [vmem:[%s8896_s17 + $0x390] sm:$0xff] %v531_v50  ;;  %534 = vst [vmem:[%s8896_s17 + $0x398] sm:$0xff] %v533_v51  ;;  %v537_v53 = vld [vmem:[%s8891_s16 + $0x728] sm:$0xff]  ;;  %v539_v54 = vld [vmem:[%s8891_s16 + $0x730] sm:$0xff] }
  0x53   : > { %536 = vst [vmem:[%s8896_s17 + $0x3a0] sm:$0xff] %v535_v52  ;;  %v541_v55 = vld [vmem:[%s8891_s16 + $0x738] sm:$0xff]  ;;  %538 = vst [vmem:[%s8896_s17 + $0x3a8] sm:$0xff] %v537_v53  ;;  %v543_v56 = vld [vmem:[%s8891_s16 + $0x740] sm:$0xff] }
  0x54   : > { %540 = vst [vmem:[%s8896_s17 + $0x3b0] sm:$0xff] %v539_v54  ;;  %542 = vst [vmem:[%s8896_s17 + $0x3b8] sm:$0xff] %v541_v55  ;;  %v545_v57 = vld [vmem:[%s8891_s16 + $0x748] sm:$0xff]  ;;  %v547_v58 = vld [vmem:[%s8891_s16 + $0x750] sm:$0xff] }
  0x55   : > { %544 = vst [vmem:[%s8896_s17 + $0x3c0] sm:$0xff] %v543_v56  ;;  %546 = vst [vmem:[%s8896_s17 + $0x3c8] sm:$0xff] %v545_v57  ;;  %v549_v59 = vld [vmem:[%s8891_s16 + $0x758] sm:$0xff]  ;;  %v551_v60 = vld [vmem:[%s8891_s16 + $0x760] sm:$0xff] }
  0x56   : > { %548 = vst [vmem:[%s8896_s17 + $0x3d0] sm:$0xff] %v547_v58  ;;  %v553_v61 = vld [vmem:[%s8891_s16 + $0x768] sm:$0xff]  ;;  %550 = vst [vmem:[%s8896_s17 + $0x3d8] sm:$0xff] %v549_v59  ;;  %v555_v62 = vld [vmem:[%s8891_s16 + $0x770] sm:$0xff] }
  0x57   : > { %552 = vst [vmem:[%s8896_s17 + $0x3e0] sm:$0xff] %v551_v60  ;;  %554 = vst [vmem:[%s8896_s17 + $0x3e8] sm:$0xff] %v553_v61  ;;  %v557_v63 = vld [vmem:[%s8891_s16 + $0x778] sm:$0xff]  ;;  %v559_v0 = vld [vmem:[%s8891_s16 + $0x800] sm:$0xff] }
  0x58   : > { %556 = vst [vmem:[%s8896_s17 + $0x3f0] sm:$0xff] %v555_v62  ;;  %558 = vst [vmem:[%s8896_s17 + $0x3f8] sm:$0xff] %v557_v63  ;;  %v561_v1 = vld [vmem:[%s8891_s16 + $0x808] sm:$0xff]  ;;  %v563_v2 = vld [vmem:[%s8891_s16 + $0x810] sm:$0xff] }
  0x59   : > { %560 = vst [vmem:[%s8896_s17 + $0x400] sm:$0xff] %v559_v0  ;;  %v565_v3 = vld [vmem:[%s8891_s16 + $0x818] sm:$0xff]  ;;  %562 = vst [vmem:[%s8896_s17 + $0x408] sm:$0xff] %v561_v1  ;;  %v567_v4 = vld [vmem:[%s8891_s16 + $0x820] sm:$0xff] }
  0x5a   : > { %564 = vst [vmem:[%s8896_s17 + $0x410] sm:$0xff] %v563_v2  ;;  %566 = vst [vmem:[%s8896_s17 + $0x418] sm:$0xff] %v565_v3  ;;  %v569_v5 = vld [vmem:[%s8891_s16 + $0x828] sm:$0xff]  ;;  %v571_v6 = vld [vmem:[%s8891_s16 + $0x830] sm:$0xff] }
  0x5b   : > { %568 = vst [vmem:[%s8896_s17 + $0x420] sm:$0xff] %v567_v4  ;;  %570 = vst [vmem:[%s8896_s17 + $0x428] sm:$0xff] %v569_v5  ;;  %v573_v7 = vld [vmem:[%s8891_s16 + $0x838] sm:$0xff]  ;;  %v575_v8 = vld [vmem:[%s8891_s16 + $0x840] sm:$0xff] }
  0x5c   : > { %572 = vst [vmem:[%s8896_s17 + $0x430] sm:$0xff] %v571_v6  ;;  %v577_v9 = vld [vmem:[%s8891_s16 + $0x848] sm:$0xff]  ;;  %574 = vst [vmem:[%s8896_s17 + $0x438] sm:$0xff] %v573_v7  ;;  %v579_v10 = vld [vmem:[%s8891_s16 + $0x850] sm:$0xff] }
  0x5d   : > { %576 = vst [vmem:[%s8896_s17 + $0x440] sm:$0xff] %v575_v8  ;;  %578 = vst [vmem:[%s8896_s17 + $0x448] sm:$0xff] %v577_v9  ;;  %v581_v11 = vld [vmem:[%s8891_s16 + $0x858] sm:$0xff]  ;;  %v583_v12 = vld [vmem:[%s8891_s16 + $0x860] sm:$0xff] }
  0x5e   : > { %580 = vst [vmem:[%s8896_s17 + $0x450] sm:$0xff] %v579_v10  ;;  %582 = vst [vmem:[%s8896_s17 + $0x458] sm:$0xff] %v581_v11  ;;  %v585_v13 = vld [vmem:[%s8891_s16 + $0x868] sm:$0xff]  ;;  %v587_v14 = vld [vmem:[%s8891_s16 + $0x870] sm:$0xff] }
  0x5f   : > { %584 = vst [vmem:[%s8896_s17 + $0x460] sm:$0xff] %v583_v12  ;;  %v589_v15 = vld [vmem:[%s8891_s16 + $0x878] sm:$0xff]  ;;  %586 = vst [vmem:[%s8896_s17 + $0x468] sm:$0xff] %v585_v13  ;;  %v591_v16 = vld [vmem:[%s8891_s16 + $0x900] sm:$0xff] }
  0x60   : > { %588 = vst [vmem:[%s8896_s17 + $0x470] sm:$0xff] %v587_v14  ;;  %590 = vst [vmem:[%s8896_s17 + $0x478] sm:$0xff] %v589_v15  ;;  %v593_v17 = vld [vmem:[%s8891_s16 + $0x908] sm:$0xff]  ;;  %v595_v18 = vld [vmem:[%s8891_s16 + $0x910] sm:$0xff] }
  0x61   : > { %592 = vst [vmem:[%s8896_s17 + $0x480] sm:$0xff] %v591_v16  ;;  %594 = vst [vmem:[%s8896_s17 + $0x488] sm:$0xff] %v593_v17  ;;  %v597_v19 = vld [vmem:[%s8891_s16 + $0x918] sm:$0xff]  ;;  %v599_v20 = vld [vmem:[%s8891_s16 + $0x920] sm:$0xff] }
  0x62   : > { %596 = vst [vmem:[%s8896_s17 + $0x490] sm:$0xff] %v595_v18  ;;  %v601_v21 = vld [vmem:[%s8891_s16 + $0x928] sm:$0xff]  ;;  %598 = vst [vmem:[%s8896_s17 + $0x498] sm:$0xff] %v597_v19  ;;  %v603_v22 = vld [vmem:[%s8891_s16 + $0x930] sm:$0xff] }
  0x63   : > { %600 = vst [vmem:[%s8896_s17 + $0x4a0] sm:$0xff] %v599_v20  ;;  %602 = vst [vmem:[%s8896_s17 + $0x4a8] sm:$0xff] %v601_v21  ;;  %v605_v23 = vld [vmem:[%s8891_s16 + $0x938] sm:$0xff]  ;;  %v607_v24 = vld [vmem:[%s8891_s16 + $0x940] sm:$0xff] }
  0x64   : > { %604 = vst [vmem:[%s8896_s17 + $0x4b0] sm:$0xff] %v603_v22  ;;  %606 = vst [vmem:[%s8896_s17 + $0x4b8] sm:$0xff] %v605_v23  ;;  %v609_v25 = vld [vmem:[%s8891_s16 + $0x948] sm:$0xff]  ;;  %v611_v26 = vld [vmem:[%s8891_s16 + $0x950] sm:$0xff] }
  0x65   : > { %608 = vst [vmem:[%s8896_s17 + $0x4c0] sm:$0xff] %v607_v24  ;;  %v613_v27 = vld [vmem:[%s8891_s16 + $0x958] sm:$0xff]  ;;  %610 = vst [vmem:[%s8896_s17 + $0x4c8] sm:$0xff] %v609_v25  ;;  %v615_v28 = vld [vmem:[%s8891_s16 + $0x960] sm:$0xff] }
  0x66   : > { %612 = vst [vmem:[%s8896_s17 + $0x4d0] sm:$0xff] %v611_v26  ;;  %614 = vst [vmem:[%s8896_s17 + $0x4d8] sm:$0xff] %v613_v27  ;;  %v617_v29 = vld [vmem:[%s8891_s16 + $0x968] sm:$0xff]  ;;  %v619_v30 = vld [vmem:[%s8891_s16 + $0x970] sm:$0xff] }
  0x67   : > { %616 = vst [vmem:[%s8896_s17 + $0x4e0] sm:$0xff] %v615_v28  ;;  %618 = vst [vmem:[%s8896_s17 + $0x4e8] sm:$0xff] %v617_v29  ;;  %v621_v31 = vld [vmem:[%s8891_s16 + $0x978] sm:$0xff]  ;;  %v623_v32 = vld [vmem:[%s8891_s16 + $0xa00] sm:$0xff] }
  0x68   : > { %620 = vst [vmem:[%s8896_s17 + $0x4f0] sm:$0xff] %v619_v30  ;;  %v625_v33 = vld [vmem:[%s8891_s16 + $0xa08] sm:$0xff]  ;;  %622 = vst [vmem:[%s8896_s17 + $0x4f8] sm:$0xff] %v621_v31  ;;  %v627_v34 = vld [vmem:[%s8891_s16 + $0xa10] sm:$0xff] }
  0x69   : > { %624 = vst [vmem:[%s8896_s17 + $0x500] sm:$0xff] %v623_v32  ;;  %626 = vst [vmem:[%s8896_s17 + $0x508] sm:$0xff] %v625_v33  ;;  %v629_v35 = vld [vmem:[%s8891_s16 + $0xa18] sm:$0xff]  ;;  %v631_v36 = vld [vmem:[%s8891_s16 + $0xa20] sm:$0xff] }
  0x6a   : > { %628 = vst [vmem:[%s8896_s17 + $0x510] sm:$0xff] %v627_v34  ;;  %630 = vst [vmem:[%s8896_s17 + $0x518] sm:$0xff] %v629_v35  ;;  %v633_v37 = vld [vmem:[%s8891_s16 + $0xa28] sm:$0xff]  ;;  %v635_v38 = vld [vmem:[%s8891_s16 + $0xa30] sm:$0xff] }
  0x6b   : > { %632 = vst [vmem:[%s8896_s17 + $0x520] sm:$0xff] %v631_v36  ;;  %v637_v39 = vld [vmem:[%s8891_s16 + $0xa38] sm:$0xff]  ;;  %634 = vst [vmem:[%s8896_s17 + $0x528] sm:$0xff] %v633_v37  ;;  %v639_v40 = vld [vmem:[%s8891_s16 + $0xa40] sm:$0xff] }
  0x6c   : > { %636 = vst [vmem:[%s8896_s17 + $0x530] sm:$0xff] %v635_v38  ;;  %638 = vst [vmem:[%s8896_s17 + $0x538] sm:$0xff] %v637_v39  ;;  %v641_v41 = vld [vmem:[%s8891_s16 + $0xa48] sm:$0xff]  ;;  %v643_v42 = vld [vmem:[%s8891_s16 + $0xa50] sm:$0xff] }
  0x6d   : > { %640 = vst [vmem:[%s8896_s17 + $0x540] sm:$0xff] %v639_v40  ;;  %642 = vst [vmem:[%s8896_s17 + $0x548] sm:$0xff] %v641_v41  ;;  %v645_v43 = vld [vmem:[%s8891_s16 + $0xa58] sm:$0xff]  ;;  %v647_v44 = vld [vmem:[%s8891_s16 + $0xa60] sm:$0xff] }
  0x6e   : > { %644 = vst [vmem:[%s8896_s17 + $0x550] sm:$0xff] %v643_v42  ;;  %v649_v45 = vld [vmem:[%s8891_s16 + $0xa68] sm:$0xff]  ;;  %646 = vst [vmem:[%s8896_s17 + $0x558] sm:$0xff] %v645_v43  ;;  %v651_v46 = vld [vmem:[%s8891_s16 + $0xa70] sm:$0xff] }
  0x6f   : > { %648 = vst [vmem:[%s8896_s17 + $0x560] sm:$0xff] %v647_v44  ;;  %650 = vst [vmem:[%s8896_s17 + $0x568] sm:$0xff] %v649_v45  ;;  %v653_v47 = vld [vmem:[%s8891_s16 + $0xa78] sm:$0xff]  ;;  %v655_v48 = vld [vmem:[%s8891_s16 + $0xb00] sm:$0xff] }
  0x70   : > { %652 = vst [vmem:[%s8896_s17 + $0x570] sm:$0xff] %v651_v46  ;;  %654 = vst [vmem:[%s8896_s17 + $0x578] sm:$0xff] %v653_v47  ;;  %v657_v49 = vld [vmem:[%s8891_s16 + $0xb08] sm:$0xff]  ;;  %v659_v50 = vld [vmem:[%s8891_s16 + $0xb10] sm:$0xff] }
  0x71   : > { %656 = vst [vmem:[%s8896_s17 + $0x580] sm:$0xff] %v655_v48  ;;  %v661_v51 = vld [vmem:[%s8891_s16 + $0xb18] sm:$0xff]  ;;  %658 = vst [vmem:[%s8896_s17 + $0x588] sm:$0xff] %v657_v49  ;;  %v663_v52 = vld [vmem:[%s8891_s16 + $0xb20] sm:$0xff] }
  0x72   : > { %660 = vst [vmem:[%s8896_s17 + $0x590] sm:$0xff] %v659_v50  ;;  %662 = vst [vmem:[%s8896_s17 + $0x598] sm:$0xff] %v661_v51  ;;  %v665_v53 = vld [vmem:[%s8891_s16 + $0xb28] sm:$0xff]  ;;  %v667_v54 = vld [vmem:[%s8891_s16 + $0xb30] sm:$0xff] }
  0x73   : > { %664 = vst [vmem:[%s8896_s17 + $0x5a0] sm:$0xff] %v663_v52  ;;  %666 = vst [vmem:[%s8896_s17 + $0x5a8] sm:$0xff] %v665_v53  ;;  %v669_v55 = vld [vmem:[%s8891_s16 + $0xb38] sm:$0xff]  ;;  %v671_v56 = vld [vmem:[%s8891_s16 + $0xb40] sm:$0xff] }
  0x74   : > { %668 = vst [vmem:[%s8896_s17 + $0x5b0] sm:$0xff] %v667_v54  ;;  %v673_v57 = vld [vmem:[%s8891_s16 + $0xb48] sm:$0xff]  ;;  %670 = vst [vmem:[%s8896_s17 + $0x5b8] sm:$0xff] %v669_v55  ;;  %v675_v58 = vld [vmem:[%s8891_s16 + $0xb50] sm:$0xff] }
  0x75   : > { %672 = vst [vmem:[%s8896_s17 + $0x5c0] sm:$0xff] %v671_v56  ;;  %674 = vst [vmem:[%s8896_s17 + $0x5c8] sm:$0xff] %v673_v57  ;;  %v677_v59 = vld [vmem:[%s8891_s16 + $0xb58] sm:$0xff]  ;;  %v679_v60 = vld [vmem:[%s8891_s16 + $0xb60] sm:$0xff] }
  0x76   : > { %676 = vst [vmem:[%s8896_s17 + $0x5d0] sm:$0xff] %v675_v58  ;;  %678 = vst [vmem:[%s8896_s17 + $0x5d8] sm:$0xff] %v677_v59  ;;  %v681_v61 = vld [vmem:[%s8891_s16 + $0xb68] sm:$0xff]  ;;  %v683_v62 = vld [vmem:[%s8891_s16 + $0xb70] sm:$0xff] }
  0x77   : > { %680 = vst [vmem:[%s8896_s17 + $0x5e0] sm:$0xff] %v679_v60  ;;  %v685_v63 = vld [vmem:[%s8891_s16 + $0xb78] sm:$0xff]  ;;  %682 = vst [vmem:[%s8896_s17 + $0x5e8] sm:$0xff] %v681_v61  ;;  %v687_v0 = vld [vmem:[%s8891_s16 + $0xc00] sm:$0xff] }
  0x78   : > { %684 = vst [vmem:[%s8896_s17 + $0x5f0] sm:$0xff] %v683_v62  ;;  %686 = vst [vmem:[%s8896_s17 + $0x5f8] sm:$0xff] %v685_v63  ;;  %v689_v1 = vld [vmem:[%s8891_s16 + $0xc08] sm:$0xff]  ;;  %v691_v2 = vld [vmem:[%s8891_s16 + $0xc10] sm:$0xff] }
  0x79   : > { %688 = vst [vmem:[%s8896_s17 + $0x600] sm:$0xff] %v687_v0  ;;  %690 = vst [vmem:[%s8896_s17 + $0x608] sm:$0xff] %v689_v1  ;;  %v693_v3 = vld [vmem:[%s8891_s16 + $0xc18] sm:$0xff]  ;;  %v695_v4 = vld [vmem:[%s8891_s16 + $0xc20] sm:$0xff] }
  0x7a   : > { %692 = vst [vmem:[%s8896_s17 + $0x610] sm:$0xff] %v691_v2  ;;  %v697_v5 = vld [vmem:[%s8891_s16 + $0xc28] sm:$0xff]  ;;  %694 = vst [vmem:[%s8896_s17 + $0x618] sm:$0xff] %v693_v3  ;;  %v699_v6 = vld [vmem:[%s8891_s16 + $0xc30] sm:$0xff] }
  0x7b   : > { %696 = vst [vmem:[%s8896_s17 + $0x620] sm:$0xff] %v695_v4  ;;  %698 = vst [vmem:[%s8896_s17 + $0x628] sm:$0xff] %v697_v5  ;;  %v701_v7 = vld [vmem:[%s8891_s16 + $0xc38] sm:$0xff]  ;;  %v703_v8 = vld [vmem:[%s8891_s16 + $0xc40] sm:$0xff] }
  0x7c   : > { %700 = vst [vmem:[%s8896_s17 + $0x630] sm:$0xff] %v699_v6  ;;  %702 = vst [vmem:[%s8896_s17 + $0x638] sm:$0xff] %v701_v7  ;;  %v705_v9 = vld [vmem:[%s8891_s16 + $0xc48] sm:$0xff]  ;;  %v707_v10 = vld [vmem:[%s8891_s16 + $0xc50] sm:$0xff] }
  0x7d   : > { %704 = vst [vmem:[%s8896_s17 + $0x640] sm:$0xff] %v703_v8  ;;  %v709_v11 = vld [vmem:[%s8891_s16 + $0xc58] sm:$0xff]  ;;  %706 = vst [vmem:[%s8896_s17 + $0x648] sm:$0xff] %v705_v9  ;;  %v711_v12 = vld [vmem:[%s8891_s16 + $0xc60] sm:$0xff] }
  0x7e   : > { %708 = vst [vmem:[%s8896_s17 + $0x650] sm:$0xff] %v707_v10  ;;  %710 = vst [vmem:[%s8896_s17 + $0x658] sm:$0xff] %v709_v11  ;;  %v713_v13 = vld [vmem:[%s8891_s16 + $0xc68] sm:$0xff]  ;;  %v715_v14 = vld [vmem:[%s8891_s16 + $0xc70] sm:$0xff] }
  0x7f   : > { %712 = vst [vmem:[%s8896_s17 + $0x660] sm:$0xff] %v711_v12  ;;  %714 = vst [vmem:[%s8896_s17 + $0x668] sm:$0xff] %v713_v13  ;;  %v717_v15 = vld [vmem:[%s8891_s16 + $0xc78] sm:$0xff]  ;;  %v719_v16 = vld [vmem:[%s8891_s16 + $0xd00] sm:$0xff] }
  0x80   : > { %716 = vst [vmem:[%s8896_s17 + $0x670] sm:$0xff] %v715_v14  ;;  %v721_v17 = vld [vmem:[%s8891_s16 + $0xd08] sm:$0xff]  ;;  %718 = vst [vmem:[%s8896_s17 + $0x678] sm:$0xff] %v717_v15  ;;  %v723_v18 = vld [vmem:[%s8891_s16 + $0xd10] sm:$0xff] }
  0x81   : > { %720 = vst [vmem:[%s8896_s17 + $0x680] sm:$0xff] %v719_v16  ;;  %722 = vst [vmem:[%s8896_s17 + $0x688] sm:$0xff] %v721_v17  ;;  %v725_v19 = vld [vmem:[%s8891_s16 + $0xd18] sm:$0xff]  ;;  %v727_v20 = vld [vmem:[%s8891_s16 + $0xd20] sm:$0xff] }
  0x82   : > { %724 = vst [vmem:[%s8896_s17 + $0x690] sm:$0xff] %v723_v18  ;;  %726 = vst [vmem:[%s8896_s17 + $0x698] sm:$0xff] %v725_v19  ;;  %v729_v21 = vld [vmem:[%s8891_s16 + $0xd28] sm:$0xff]  ;;  %v731_v22 = vld [vmem:[%s8891_s16 + $0xd30] sm:$0xff] }
  0x83   : > { %728 = vst [vmem:[%s8896_s17 + $0x6a0] sm:$0xff] %v727_v20  ;;  %v733_v23 = vld [vmem:[%s8891_s16 + $0xd38] sm:$0xff]  ;;  %730 = vst [vmem:[%s8896_s17 + $0x6a8] sm:$0xff] %v729_v21  ;;  %v735_v24 = vld [vmem:[%s8891_s16 + $0xd40] sm:$0xff] }
  0x84   : > { %732 = vst [vmem:[%s8896_s17 + $0x6b0] sm:$0xff] %v731_v22  ;;  %734 = vst [vmem:[%s8896_s17 + $0x6b8] sm:$0xff] %v733_v23  ;;  %v737_v25 = vld [vmem:[%s8891_s16 + $0xd48] sm:$0xff]  ;;  %v739_v26 = vld [vmem:[%s8891_s16 + $0xd50] sm:$0xff] }
  0x85   : > { %736 = vst [vmem:[%s8896_s17 + $0x6c0] sm:$0xff] %v735_v24  ;;  %738 = vst [vmem:[%s8896_s17 + $0x6c8] sm:$0xff] %v737_v25  ;;  %v741_v27 = vld [vmem:[%s8891_s16 + $0xd58] sm:$0xff]  ;;  %v743_v28 = vld [vmem:[%s8891_s16 + $0xd60] sm:$0xff] }
  0x86   : > { %740 = vst [vmem:[%s8896_s17 + $0x6d0] sm:$0xff] %v739_v26  ;;  %v745_v29 = vld [vmem:[%s8891_s16 + $0xd68] sm:$0xff]  ;;  %742 = vst [vmem:[%s8896_s17 + $0x6d8] sm:$0xff] %v741_v27  ;;  %v747_v30 = vld [vmem:[%s8891_s16 + $0xd70] sm:$0xff] }
  0x87   : > { %744 = vst [vmem:[%s8896_s17 + $0x6e0] sm:$0xff] %v743_v28  ;;  %746 = vst [vmem:[%s8896_s17 + $0x6e8] sm:$0xff] %v745_v29  ;;  %v749_v31 = vld [vmem:[%s8891_s16 + $0xd78] sm:$0xff]  ;;  %v751_v32 = vld [vmem:[%s8891_s16 + $0xe00] sm:$0xff] }
  0x88   : > { %748 = vst [vmem:[%s8896_s17 + $0x6f0] sm:$0xff] %v747_v30  ;;  %750 = vst [vmem:[%s8896_s17 + $0x6f8] sm:$0xff] %v749_v31  ;;  %v753_v33 = vld [vmem:[%s8891_s16 + $0xe08] sm:$0xff]  ;;  %v755_v34 = vld [vmem:[%s8891_s16 + $0xe10] sm:$0xff] }
  0x89   : > { %752 = vst [vmem:[%s8896_s17 + $0x700] sm:$0xff] %v751_v32  ;;  %v757_v35 = vld [vmem:[%s8891_s16 + $0xe18] sm:$0xff]  ;;  %754 = vst [vmem:[%s8896_s17 + $0x708] sm:$0xff] %v753_v33  ;;  %v759_v36 = vld [vmem:[%s8891_s16 + $0xe20] sm:$0xff] }
  0x8a   : > { %756 = vst [vmem:[%s8896_s17 + $0x710] sm:$0xff] %v755_v34  ;;  %758 = vst [vmem:[%s8896_s17 + $0x718] sm:$0xff] %v757_v35  ;;  %v761_v37 = vld [vmem:[%s8891_s16 + $0xe28] sm:$0xff]  ;;  %v763_v38 = vld [vmem:[%s8891_s16 + $0xe30] sm:$0xff] }
  0x8b   : > { %760 = vst [vmem:[%s8896_s17 + $0x720] sm:$0xff] %v759_v36  ;;  %762 = vst [vmem:[%s8896_s17 + $0x728] sm:$0xff] %v761_v37  ;;  %v765_v39 = vld [vmem:[%s8891_s16 + $0xe38] sm:$0xff]  ;;  %v767_v40 = vld [vmem:[%s8891_s16 + $0xe40] sm:$0xff] }
  0x8c   : > { %764 = vst [vmem:[%s8896_s17 + $0x730] sm:$0xff] %v763_v38  ;;  %v769_v41 = vld [vmem:[%s8891_s16 + $0xe48] sm:$0xff]  ;;  %766 = vst [vmem:[%s8896_s17 + $0x738] sm:$0xff] %v765_v39  ;;  %v771_v42 = vld [vmem:[%s8891_s16 + $0xe50] sm:$0xff] }
  0x8d   : > { %768 = vst [vmem:[%s8896_s17 + $0x740] sm:$0xff] %v767_v40  ;;  %770 = vst [vmem:[%s8896_s17 + $0x748] sm:$0xff] %v769_v41  ;;  %v773_v43 = vld [vmem:[%s8891_s16 + $0xe58] sm:$0xff]  ;;  %v775_v44 = vld [vmem:[%s8891_s16 + $0xe60] sm:$0xff] }
  0x8e   : > { %772 = vst [vmem:[%s8896_s17 + $0x750] sm:$0xff] %v771_v42  ;;  %774 = vst [vmem:[%s8896_s17 + $0x758] sm:$0xff] %v773_v43  ;;  %v777_v45 = vld [vmem:[%s8891_s16 + $0xe68] sm:$0xff]  ;;  %v779_v46 = vld [vmem:[%s8891_s16 + $0xe70] sm:$0xff] }
  0x8f   : > { %776 = vst [vmem:[%s8896_s17 + $0x760] sm:$0xff] %v775_v44  ;;  %v781_v47 = vld [vmem:[%s8891_s16 + $0xe78] sm:$0xff]  ;;  %778 = vst [vmem:[%s8896_s17 + $0x768] sm:$0xff] %v777_v45  ;;  %v783_v48 = vld [vmem:[%s8891_s16 + $0xf00] sm:$0xff] }
  0x90   : > { %780 = vst [vmem:[%s8896_s17 + $0x770] sm:$0xff] %v779_v46  ;;  %782 = vst [vmem:[%s8896_s17 + $0x778] sm:$0xff] %v781_v47  ;;  %v785_v49 = vld [vmem:[%s8891_s16 + $0xf08] sm:$0xff]  ;;  %v787_v50 = vld [vmem:[%s8891_s16 + $0xf10] sm:$0xff] }
  0x91   : > { %784 = vst [vmem:[%s8896_s17 + $0x780] sm:$0xff] %v783_v48  ;;  %786 = vst [vmem:[%s8896_s17 + $0x788] sm:$0xff] %v785_v49  ;;  %v789_v51 = vld [vmem:[%s8891_s16 + $0xf18] sm:$0xff]  ;;  %v791_v52 = vld [vmem:[%s8891_s16 + $0xf20] sm:$0xff] }
  0x92   : > { %788 = vst [vmem:[%s8896_s17 + $0x790] sm:$0xff] %v787_v50  ;;  %v793_v53 = vld [vmem:[%s8891_s16 + $0xf28] sm:$0xff]  ;;  %790 = vst [vmem:[%s8896_s17 + $0x798] sm:$0xff] %v789_v51  ;;  %v795_v54 = vld [vmem:[%s8891_s16 + $0xf30] sm:$0xff] }
  0x93   : > { %792 = vst [vmem:[%s8896_s17 + $0x7a0] sm:$0xff] %v791_v52  ;;  %794 = vst [vmem:[%s8896_s17 + $0x7a8] sm:$0xff] %v793_v53  ;;  %v797_v55 = vld [vmem:[%s8891_s16 + $0xf38] sm:$0xff]  ;;  %v799_v56 = vld [vmem:[%s8891_s16 + $0xf40] sm:$0xff] }
  0x94   : > { %796 = vst [vmem:[%s8896_s17 + $0x7b0] sm:$0xff] %v795_v54  ;;  %798 = vst [vmem:[%s8896_s17 + $0x7b8] sm:$0xff] %v797_v55  ;;  %v801_v57 = vld [vmem:[%s8891_s16 + $0xf48] sm:$0xff]  ;;  %v803_v58 = vld [vmem:[%s8891_s16 + $0xf50] sm:$0xff] }
  0x95   : > { %800 = vst [vmem:[%s8896_s17 + $0x7c0] sm:$0xff] %v799_v56  ;;  %v805_v59 = vld [vmem:[%s8891_s16 + $0xf58] sm:$0xff]  ;;  %802 = vst [vmem:[%s8896_s17 + $0x7c8] sm:$0xff] %v801_v57  ;;  %v807_v60 = vld [vmem:[%s8891_s16 + $0xf60] sm:$0xff] }
  0x96   : > { %804 = vst [vmem:[%s8896_s17 + $0x7d0] sm:$0xff] %v803_v58  ;;  %806 = vst [vmem:[%s8896_s17 + $0x7d8] sm:$0xff] %v805_v59  ;;  %v809_v61 = vld [vmem:[%s8891_s16 + $0xf68] sm:$0xff]  ;;  %v811_v62 = vld [vmem:[%s8891_s16 + $0xf70] sm:$0xff] }
  0x97   : > { %808 = vst [vmem:[%s8896_s17 + $0x7e0] sm:$0xff] %v807_v60  ;;  %810 = vst [vmem:[%s8896_s17 + $0x7e8] sm:$0xff] %v809_v61  ;;  %v813_v63 = vld [vmem:[%s8891_s16 + $0xf78] sm:$0xff] }
  0x98   : > { %812 = vst [vmem:[%s8896_s17 + $0x7f0] sm:$0xff] %v811_v62  ;;  %814 = vst [vmem:[%s8896_s17 + $0x7f8] sm:$0xff] %v813_v63 }
  0x99 PF: > { %820 = sbr.rel (!%p8868_p3) target bundleno = 288 (0x120), region = 59  ;;  %s822_s18 = sand.u32 (%p8868_p3), 1, %s8751_s28  }
  0x9a   : > { %s8427_s20 = sshll.u32 (%p8868_p3), %s8763_s9, 4  ;;  %s8426_s21 = sshll.u32 (%p8868_p3), %s822_s18, 11 }
  0x9b   : > { %s8428_s22 = sshll.u32 (%p8868_p3), %s8767_s10, 9  ;;  %s9420_s16 = scalar_lea.vmem (%p8868_p3), [#allocation5], %s8426_s21 }
  0x9c   : > { %s827_s23 = sadd.s32 (%p8868_p3), %s8428_s22, %s8427_s20 }
  0x9d   : > { %s8429_s24 = sshll.u32 (%p8868_p3), %s827_s23, 3 }
  0x9e   : > { %s9415_s15 = scalar_lea.vmem (%p8868_p3), %s13452_s1, %s8429_s24 }
  0x9f   : > { %v842_v0 = vld [vmem:[%s9415_s15] sm:$0xff] (%p8868_p3)  ;;  %v844_v1 = vld [vmem:[%s9415_s15 + $0x8] sm:$0xff] (%p8868_p3)  ;;  %v846_v2 = vld [vmem:[%s9415_s15 + $0x10] sm:$0xff] (%p8868_p3) }
  0xa0   : > { %843 = vst [vmem:[%s9420_s16] sm:$0xff] %v842_v0  ;;  %845 = vst [vmem:[%s9420_s16 + $0x8] sm:$0xff] %v844_v1  ;;  %v848_v3 = vld [vmem:[%s9415_s15 + $0x18] sm:$0xff]  ;;  %v850_v4 = vld [vmem:[%s9415_s15 + $0x20] sm:$0xff] }
  0xa1   : > { %847 = vst [vmem:[%s9420_s16 + $0x10] sm:$0xff] %v846_v2  ;;  %v852_v5 = vld [vmem:[%s9415_s15 + $0x28] sm:$0xff]  ;;  %849 = vst [vmem:[%s9420_s16 + $0x18] sm:$0xff] %v848_v3  ;;  %v854_v6 = vld [vmem:[%s9415_s15 + $0x30] sm:$0xff] }
  0xa2   : > { %851 = vst [vmem:[%s9420_s16 + $0x20] sm:$0xff] %v850_v4  ;;  %853 = vst [vmem:[%s9420_s16 + $0x28] sm:$0xff] %v852_v5  ;;  %v856_v7 = vld [vmem:[%s9415_s15 + $0x38] sm:$0xff]  ;;  %v858_v8 = vld [vmem:[%s9415_s15 + $0x40] sm:$0xff] }
  0xa3   : > { %855 = vst [vmem:[%s9420_s16 + $0x30] sm:$0xff] %v854_v6  ;;  %857 = vst [vmem:[%s9420_s16 + $0x38] sm:$0xff] %v856_v7  ;;  %v860_v9 = vld [vmem:[%s9415_s15 + $0x48] sm:$0xff]  ;;  %v862_v10 = vld [vmem:[%s9415_s15 + $0x50] sm:$0xff] }
  0xa4   : > { %859 = vst [vmem:[%s9420_s16 + $0x40] sm:$0xff] %v858_v8  ;;  %v864_v11 = vld [vmem:[%s9415_s15 + $0x58] sm:$0xff]  ;;  %861 = vst [vmem:[%s9420_s16 + $0x48] sm:$0xff] %v860_v9  ;;  %v866_v12 = vld [vmem:[%s9415_s15 + $0x60] sm:$0xff] }
  0xa5   : > { %863 = vst [vmem:[%s9420_s16 + $0x50] sm:$0xff] %v862_v10  ;;  %865 = vst [vmem:[%s9420_s16 + $0x58] sm:$0xff] %v864_v11  ;;  %v868_v13 = vld [vmem:[%s9415_s15 + $0x68] sm:$0xff]  ;;  %v870_v14 = vld [vmem:[%s9415_s15 + $0x70] sm:$0xff] }
  0xa6   : > { %867 = vst [vmem:[%s9420_s16 + $0x60] sm:$0xff] %v866_v12  ;;  %869 = vst [vmem:[%s9420_s16 + $0x68] sm:$0xff] %v868_v13  ;;  %v872_v15 = vld [vmem:[%s9415_s15 + $0x78] sm:$0xff]  ;;  %v874_v16 = vld [vmem:[%s9415_s15 + $0x100] sm:$0xff] }
  0xa7   : > { %871 = vst [vmem:[%s9420_s16 + $0x70] sm:$0xff] %v870_v14  ;;  %v876_v17 = vld [vmem:[%s9415_s15 + $0x108] sm:$0xff]  ;;  %873 = vst [vmem:[%s9420_s16 + $0x78] sm:$0xff] %v872_v15  ;;  %v878_v18 = vld [vmem:[%s9415_s15 + $0x110] sm:$0xff] }
  0xa8   : > { %875 = vst [vmem:[%s9420_s16 + $0x80] sm:$0xff] %v874_v16  ;;  %877 = vst [vmem:[%s9420_s16 + $0x88] sm:$0xff] %v876_v17  ;;  %v880_v19 = vld [vmem:[%s9415_s15 + $0x118] sm:$0xff]  ;;  %v882_v20 = vld [vmem:[%s9415_s15 + $0x120] sm:$0xff] }
  0xa9   : > { %879 = vst [vmem:[%s9420_s16 + $0x90] sm:$0xff] %v878_v18  ;;  %881 = vst [vmem:[%s9420_s16 + $0x98] sm:$0xff] %v880_v19  ;;  %v884_v21 = vld [vmem:[%s9415_s15 + $0x128] sm:$0xff]  ;;  %v886_v22 = vld [vmem:[%s9415_s15 + $0x130] sm:$0xff] }
  0xaa   : > { %883 = vst [vmem:[%s9420_s16 + $0xa0] sm:$0xff] %v882_v20  ;;  %v888_v23 = vld [vmem:[%s9415_s15 + $0x138] sm:$0xff]  ;;  %885 = vst [vmem:[%s9420_s16 + $0xa8] sm:$0xff] %v884_v21  ;;  %v890_v24 = vld [vmem:[%s9415_s15 + $0x140] sm:$0xff] }
  0xab   : > { %887 = vst [vmem:[%s9420_s16 + $0xb0] sm:$0xff] %v886_v22  ;;  %889 = vst [vmem:[%s9420_s16 + $0xb8] sm:$0xff] %v888_v23  ;;  %v892_v25 = vld [vmem:[%s9415_s15 + $0x148] sm:$0xff]  ;;  %v894_v26 = vld [vmem:[%s9415_s15 + $0x150] sm:$0xff] }
  0xac   : > { %891 = vst [vmem:[%s9420_s16 + $0xc0] sm:$0xff] %v890_v24  ;;  %893 = vst [vmem:[%s9420_s16 + $0xc8] sm:$0xff] %v892_v25  ;;  %v896_v27 = vld [vmem:[%s9415_s15 + $0x158] sm:$0xff]  ;;  %v898_v28 = vld [vmem:[%s9415_s15 + $0x160] sm:$0xff] }
  0xad   : > { %895 = vst [vmem:[%s9420_s16 + $0xd0] sm:$0xff] %v894_v26  ;;  %v900_v29 = vld [vmem:[%s9415_s15 + $0x168] sm:$0xff]  ;;  %897 = vst [vmem:[%s9420_s16 + $0xd8] sm:$0xff] %v896_v27  ;;  %v902_v30 = vld [vmem:[%s9415_s15 + $0x170] sm:$0xff] }
  0xae   : > { %899 = vst [vmem:[%s9420_s16 + $0xe0] sm:$0xff] %v898_v28  ;;  %901 = vst [vmem:[%s9420_s16 + $0xe8] sm:$0xff] %v900_v29  ;;  %v904_v31 = vld [vmem:[%s9415_s15 + $0x178] sm:$0xff]  ;;  %v906_v32 = vld [vmem:[%s9415_s15 + $0x200] sm:$0xff] }
  0xaf   : > { %903 = vst [vmem:[%s9420_s16 + $0xf0] sm:$0xff] %v902_v30  ;;  %905 = vst [vmem:[%s9420_s16 + $0xf8] sm:$0xff] %v904_v31  ;;  %v908_v33 = vld [vmem:[%s9415_s15 + $0x208] sm:$0xff]  ;;  %v910_v34 = vld [vmem:[%s9415_s15 + $0x210] sm:$0xff] }
  0xb0   : > { %907 = vst [vmem:[%s9420_s16 + $0x100] sm:$0xff] %v906_v32  ;;  %v912_v35 = vld [vmem:[%s9415_s15 + $0x218] sm:$0xff]  ;;  %909 = vst [vmem:[%s9420_s16 + $0x108] sm:$0xff] %v908_v33  ;;  %v914_v36 = vld [vmem:[%s9415_s15 + $0x220] sm:$0xff] }
  0xb1   : > { %911 = vst [vmem:[%s9420_s16 + $0x110] sm:$0xff] %v910_v34  ;;  %913 = vst [vmem:[%s9420_s16 + $0x118] sm:$0xff] %v912_v35  ;;  %v916_v37 = vld [vmem:[%s9415_s15 + $0x228] sm:$0xff]  ;;  %v918_v38 = vld [vmem:[%s9415_s15 + $0x230] sm:$0xff] }
  0xb2   : > { %915 = vst [vmem:[%s9420_s16 + $0x120] sm:$0xff] %v914_v36  ;;  %917 = vst [vmem:[%s9420_s16 + $0x128] sm:$0xff] %v916_v37  ;;  %v920_v39 = vld [vmem:[%s9415_s15 + $0x238] sm:$0xff]  ;;  %v922_v40 = vld [vmem:[%s9415_s15 + $0x240] sm:$0xff] }
  0xb3   : > { %919 = vst [vmem:[%s9420_s16 + $0x130] sm:$0xff] %v918_v38  ;;  %v924_v41 = vld [vmem:[%s9415_s15 + $0x248] sm:$0xff]  ;;  %921 = vst [vmem:[%s9420_s16 + $0x138] sm:$0xff] %v920_v39  ;;  %v926_v42 = vld [vmem:[%s9415_s15 + $0x250] sm:$0xff] }
  0xb4   : > { %923 = vst [vmem:[%s9420_s16 + $0x140] sm:$0xff] %v922_v40  ;;  %925 = vst [vmem:[%s9420_s16 + $0x148] sm:$0xff] %v924_v41  ;;  %v928_v43 = vld [vmem:[%s9415_s15 + $0x258] sm:$0xff]  ;;  %v930_v44 = vld [vmem:[%s9415_s15 + $0x260] sm:$0xff] }
  0xb5   : > { %927 = vst [vmem:[%s9420_s16 + $0x150] sm:$0xff] %v926_v42  ;;  %929 = vst [vmem:[%s9420_s16 + $0x158] sm:$0xff] %v928_v43  ;;  %v932_v45 = vld [vmem:[%s9415_s15 + $0x268] sm:$0xff]  ;;  %v934_v46 = vld [vmem:[%s9415_s15 + $0x270] sm:$0xff] }
  0xb6   : > { %931 = vst [vmem:[%s9420_s16 + $0x160] sm:$0xff] %v930_v44  ;;  %v936_v47 = vld [vmem:[%s9415_s15 + $0x278] sm:$0xff]  ;;  %933 = vst [vmem:[%s9420_s16 + $0x168] sm:$0xff] %v932_v45  ;;  %v938_v48 = vld [vmem:[%s9415_s15 + $0x300] sm:$0xff] }
  0xb7   : > { %935 = vst [vmem:[%s9420_s16 + $0x170] sm:$0xff] %v934_v46  ;;  %937 = vst [vmem:[%s9420_s16 + $0x178] sm:$0xff] %v936_v47  ;;  %v940_v49 = vld [vmem:[%s9415_s15 + $0x308] sm:$0xff]  ;;  %v942_v50 = vld [vmem:[%s9415_s15 + $0x310] sm:$0xff] }
  0xb8   : > { %939 = vst [vmem:[%s9420_s16 + $0x180] sm:$0xff] %v938_v48  ;;  %941 = vst [vmem:[%s9420_s16 + $0x188] sm:$0xff] %v940_v49  ;;  %v944_v51 = vld [vmem:[%s9415_s15 + $0x318] sm:$0xff]  ;;  %v946_v52 = vld [vmem:[%s9415_s15 + $0x320] sm:$0xff] }
  0xb9   : > { %943 = vst [vmem:[%s9420_s16 + $0x190] sm:$0xff] %v942_v50  ;;  %v948_v53 = vld [vmem:[%s9415_s15 + $0x328] sm:$0xff]  ;;  %945 = vst [vmem:[%s9420_s16 + $0x198] sm:$0xff] %v944_v51  ;;  %v950_v54 = vld [vmem:[%s9415_s15 + $0x330] sm:$0xff] }
  0xba   : > { %947 = vst [vmem:[%s9420_s16 + $0x1a0] sm:$0xff] %v946_v52  ;;  %949 = vst [vmem:[%s9420_s16 + $0x1a8] sm:$0xff] %v948_v53  ;;  %v952_v55 = vld [vmem:[%s9415_s15 + $0x338] sm:$0xff]  ;;  %v954_v56 = vld [vmem:[%s9415_s15 + $0x340] sm:$0xff] }
  0xbb   : > { %951 = vst [vmem:[%s9420_s16 + $0x1b0] sm:$0xff] %v950_v54  ;;  %953 = vst [vmem:[%s9420_s16 + $0x1b8] sm:$0xff] %v952_v55  ;;  %v956_v57 = vld [vmem:[%s9415_s15 + $0x348] sm:$0xff]  ;;  %v958_v58 = vld [vmem:[%s9415_s15 + $0x350] sm:$0xff] }
  0xbc   : > { %955 = vst [vmem:[%s9420_s16 + $0x1c0] sm:$0xff] %v954_v56  ;;  %v960_v59 = vld [vmem:[%s9415_s15 + $0x358] sm:$0xff]  ;;  %957 = vst [vmem:[%s9420_s16 + $0x1c8] sm:$0xff] %v956_v57  ;;  %v962_v60 = vld [vmem:[%s9415_s15 + $0x360] sm:$0xff] }
  0xbd   : > { %959 = vst [vmem:[%s9420_s16 + $0x1d0] sm:$0xff] %v958_v58  ;;  %961 = vst [vmem:[%s9420_s16 + $0x1d8] sm:$0xff] %v960_v59  ;;  %v964_v61 = vld [vmem:[%s9415_s15 + $0x368] sm:$0xff]  ;;  %v966_v62 = vld [vmem:[%s9415_s15 + $0x370] sm:$0xff] }
  0xbe   : > { %963 = vst [vmem:[%s9420_s16 + $0x1e0] sm:$0xff] %v962_v60  ;;  %965 = vst [vmem:[%s9420_s16 + $0x1e8] sm:$0xff] %v964_v61  ;;  %v968_v63 = vld [vmem:[%s9415_s15 + $0x378] sm:$0xff]  ;;  %v970_v0 = vld [vmem:[%s9415_s15 + $0x400] sm:$0xff] }
  0xbf   : > { %967 = vst [vmem:[%s9420_s16 + $0x1f0] sm:$0xff] %v966_v62  ;;  %v972_v1 = vld [vmem:[%s9415_s15 + $0x408] sm:$0xff]  ;;  %969 = vst [vmem:[%s9420_s16 + $0x1f8] sm:$0xff] %v968_v63  ;;  %v974_v2 = vld [vmem:[%s9415_s15 + $0x410] sm:$0xff] }
  0xc0   : > { %971 = vst [vmem:[%s9420_s16 + $0x200] sm:$0xff] %v970_v0  ;;  %973 = vst [vmem:[%s9420_s16 + $0x208] sm:$0xff] %v972_v1  ;;  %v976_v3 = vld [vmem:[%s9415_s15 + $0x418] sm:$0xff]  ;;  %v978_v4 = vld [vmem:[%s9415_s15 + $0x420] sm:$0xff] }
  0xc1   : > { %975 = vst [vmem:[%s9420_s16 + $0x210] sm:$0xff] %v974_v2  ;;  %977 = vst [vmem:[%s9420_s16 + $0x218] sm:$0xff] %v976_v3  ;;  %v980_v5 = vld [vmem:[%s9415_s15 + $0x428] sm:$0xff]  ;;  %v982_v6 = vld [vmem:[%s9415_s15 + $0x430] sm:$0xff] }
  0xc2   : > { %979 = vst [vmem:[%s9420_s16 + $0x220] sm:$0xff] %v978_v4  ;;  %v984_v7 = vld [vmem:[%s9415_s15 + $0x438] sm:$0xff]  ;;  %981 = vst [vmem:[%s9420_s16 + $0x228] sm:$0xff] %v980_v5  ;;  %v986_v8 = vld [vmem:[%s9415_s15 + $0x440] sm:$0xff] }
  0xc3   : > { %983 = vst [vmem:[%s9420_s16 + $0x230] sm:$0xff] %v982_v6  ;;  %985 = vst [vmem:[%s9420_s16 + $0x238] sm:$0xff] %v984_v7  ;;  %v988_v9 = vld [vmem:[%s9415_s15 + $0x448] sm:$0xff]  ;;  %v990_v10 = vld [vmem:[%s9415_s15 + $0x450] sm:$0xff] }
  0xc4   : > { %987 = vst [vmem:[%s9420_s16 + $0x240] sm:$0xff] %v986_v8  ;;  %989 = vst [vmem:[%s9420_s16 + $0x248] sm:$0xff] %v988_v9  ;;  %v992_v11 = vld [vmem:[%s9415_s15 + $0x458] sm:$0xff]  ;;  %v994_v12 = vld [vmem:[%s9415_s15 + $0x460] sm:$0xff] }
  0xc5   : > { %991 = vst [vmem:[%s9420_s16 + $0x250] sm:$0xff] %v990_v10  ;;  %v996_v13 = vld [vmem:[%s9415_s15 + $0x468] sm:$0xff]  ;;  %993 = vst [vmem:[%s9420_s16 + $0x258] sm:$0xff] %v992_v11  ;;  %v998_v14 = vld [vmem:[%s9415_s15 + $0x470] sm:$0xff] }
  0xc6   : > { %995 = vst [vmem:[%s9420_s16 + $0x260] sm:$0xff] %v994_v12  ;;  %997 = vst [vmem:[%s9420_s16 + $0x268] sm:$0xff] %v996_v13  ;;  %v1000_v15 = vld [vmem:[%s9415_s15 + $0x478] sm:$0xff]  ;;  %v1002_v16 = vld [vmem:[%s9415_s15 + $0x500] sm:$0xff] }
  0xc7   : > { %999 = vst [vmem:[%s9420_s16 + $0x270] sm:$0xff] %v998_v14  ;;  %1001 = vst [vmem:[%s9420_s16 + $0x278] sm:$0xff] %v1000_v15  ;;  %v1004_v17 = vld [vmem:[%s9415_s15 + $0x508] sm:$0xff]  ;;  %v1006_v18 = vld [vmem:[%s9415_s15 + $0x510] sm:$0xff] }
  0xc8   : > { %1003 = vst [vmem:[%s9420_s16 + $0x280] sm:$0xff] %v1002_v16  ;;  %v1008_v19 = vld [vmem:[%s9415_s15 + $0x518] sm:$0xff]  ;;  %1005 = vst [vmem:[%s9420_s16 + $0x288] sm:$0xff] %v1004_v17  ;;  %v1010_v20 = vld [vmem:[%s9415_s15 + $0x520] sm:$0xff] }
  0xc9   : > { %1007 = vst [vmem:[%s9420_s16 + $0x290] sm:$0xff] %v1006_v18  ;;  %1009 = vst [vmem:[%s9420_s16 + $0x298] sm:$0xff] %v1008_v19  ;;  %v1012_v21 = vld [vmem:[%s9415_s15 + $0x528] sm:$0xff]  ;;  %v1014_v22 = vld [vmem:[%s9415_s15 + $0x530] sm:$0xff] }
  0xca   : > { %1011 = vst [vmem:[%s9420_s16 + $0x2a0] sm:$0xff] %v1010_v20  ;;  %1013 = vst [vmem:[%s9420_s16 + $0x2a8] sm:$0xff] %v1012_v21  ;;  %v1016_v23 = vld [vmem:[%s9415_s15 + $0x538] sm:$0xff]  ;;  %v1018_v24 = vld [vmem:[%s9415_s15 + $0x540] sm:$0xff] }
  0xcb   : > { %1015 = vst [vmem:[%s9420_s16 + $0x2b0] sm:$0xff] %v1014_v22  ;;  %v1020_v25 = vld [vmem:[%s9415_s15 + $0x548] sm:$0xff]  ;;  %1017 = vst [vmem:[%s9420_s16 + $0x2b8] sm:$0xff] %v1016_v23  ;;  %v1022_v26 = vld [vmem:[%s9415_s15 + $0x550] sm:$0xff] }
  0xcc   : > { %1019 = vst [vmem:[%s9420_s16 + $0x2c0] sm:$0xff] %v1018_v24  ;;  %1021 = vst [vmem:[%s9420_s16 + $0x2c8] sm:$0xff] %v1020_v25  ;;  %v1024_v27 = vld [vmem:[%s9415_s15 + $0x558] sm:$0xff]  ;;  %v1026_v28 = vld [vmem:[%s9415_s15 + $0x560] sm:$0xff] }
  0xcd   : > { %1023 = vst [vmem:[%s9420_s16 + $0x2d0] sm:$0xff] %v1022_v26  ;;  %1025 = vst [vmem:[%s9420_s16 + $0x2d8] sm:$0xff] %v1024_v27  ;;  %v1028_v29 = vld [vmem:[%s9415_s15 + $0x568] sm:$0xff]  ;;  %v1030_v30 = vld [vmem:[%s9415_s15 + $0x570] sm:$0xff] }
  0xce   : > { %1027 = vst [vmem:[%s9420_s16 + $0x2e0] sm:$0xff] %v1026_v28  ;;  %v1032_v31 = vld [vmem:[%s9415_s15 + $0x578] sm:$0xff]  ;;  %1029 = vst [vmem:[%s9420_s16 + $0x2e8] sm:$0xff] %v1028_v29  ;;  %v1034_v32 = vld [vmem:[%s9415_s15 + $0x600] sm:$0xff] }
  0xcf   : > { %1031 = vst [vmem:[%s9420_s16 + $0x2f0] sm:$0xff] %v1030_v30  ;;  %1033 = vst [vmem:[%s9420_s16 + $0x2f8] sm:$0xff] %v1032_v31  ;;  %v1036_v33 = vld [vmem:[%s9415_s15 + $0x608] sm:$0xff]  ;;  %v1038_v34 = vld [vmem:[%s9415_s15 + $0x610] sm:$0xff] }
  0xd0   : > { %1035 = vst [vmem:[%s9420_s16 + $0x300] sm:$0xff] %v1034_v32  ;;  %1037 = vst [vmem:[%s9420_s16 + $0x308] sm:$0xff] %v1036_v33  ;;  %v1040_v35 = vld [vmem:[%s9415_s15 + $0x618] sm:$0xff]  ;;  %v1042_v36 = vld [vmem:[%s9415_s15 + $0x620] sm:$0xff] }
  0xd1   : > { %1039 = vst [vmem:[%s9420_s16 + $0x310] sm:$0xff] %v1038_v34  ;;  %v1044_v37 = vld [vmem:[%s9415_s15 + $0x628] sm:$0xff]  ;;  %1041 = vst [vmem:[%s9420_s16 + $0x318] sm:$0xff] %v1040_v35  ;;  %v1046_v38 = vld [vmem:[%s9415_s15 + $0x630] sm:$0xff] }
  0xd2   : > { %1043 = vst [vmem:[%s9420_s16 + $0x320] sm:$0xff] %v1042_v36  ;;  %1045 = vst [vmem:[%s9420_s16 + $0x328] sm:$0xff] %v1044_v37  ;;  %v1048_v39 = vld [vmem:[%s9415_s15 + $0x638] sm:$0xff]  ;;  %v1050_v40 = vld [vmem:[%s9415_s15 + $0x640] sm:$0xff] }
  0xd3   : > { %1047 = vst [vmem:[%s9420_s16 + $0x330] sm:$0xff] %v1046_v38  ;;  %1049 = vst [vmem:[%s9420_s16 + $0x338] sm:$0xff] %v1048_v39  ;;  %v1052_v41 = vld [vmem:[%s9415_s15 + $0x648] sm:$0xff]  ;;  %v1054_v42 = vld [vmem:[%s9415_s15 + $0x650] sm:$0xff] }
  0xd4   : > { %1051 = vst [vmem:[%s9420_s16 + $0x340] sm:$0xff] %v1050_v40  ;;  %v1056_v43 = vld [vmem:[%s9415_s15 + $0x658] sm:$0xff]  ;;  %1053 = vst [vmem:[%s9420_s16 + $0x348] sm:$0xff] %v1052_v41  ;;  %v1058_v44 = vld [vmem:[%s9415_s15 + $0x660] sm:$0xff] }
  0xd5   : > { %1055 = vst [vmem:[%s9420_s16 + $0x350] sm:$0xff] %v1054_v42  ;;  %1057 = vst [vmem:[%s9420_s16 + $0x358] sm:$0xff] %v1056_v43  ;;  %v1060_v45 = vld [vmem:[%s9415_s15 + $0x668] sm:$0xff]  ;;  %v1062_v46 = vld [vmem:[%s9415_s15 + $0x670] sm:$0xff] }
  0xd6   : > { %1059 = vst [vmem:[%s9420_s16 + $0x360] sm:$0xff] %v1058_v44  ;;  %1061 = vst [vmem:[%s9420_s16 + $0x368] sm:$0xff] %v1060_v45  ;;  %v1064_v47 = vld [vmem:[%s9415_s15 + $0x678] sm:$0xff]  ;;  %v1066_v48 = vld [vmem:[%s9415_s15 + $0x700] sm:$0xff] }
  0xd7   : > { %1063 = vst [vmem:[%s9420_s16 + $0x370] sm:$0xff] %v1062_v46  ;;  %v1068_v49 = vld [vmem:[%s9415_s15 + $0x708] sm:$0xff]  ;;  %1065 = vst [vmem:[%s9420_s16 + $0x378] sm:$0xff] %v1064_v47  ;;  %v1070_v50 = vld [vmem:[%s9415_s15 + $0x710] sm:$0xff] }
  0xd8   : > { %1067 = vst [vmem:[%s9420_s16 + $0x380] sm:$0xff] %v1066_v48  ;;  %1069 = vst [vmem:[%s9420_s16 + $0x388] sm:$0xff] %v1068_v49  ;;  %v1072_v51 = vld [vmem:[%s9415_s15 + $0x718] sm:$0xff]  ;;  %v1074_v52 = vld [vmem:[%s9415_s15 + $0x720] sm:$0xff] }
  0xd9   : > { %1071 = vst [vmem:[%s9420_s16 + $0x390] sm:$0xff] %v1070_v50  ;;  %1073 = vst [vmem:[%s9420_s16 + $0x398] sm:$0xff] %v1072_v51  ;;  %v1076_v53 = vld [vmem:[%s9415_s15 + $0x728] sm:$0xff]  ;;  %v1078_v54 = vld [vmem:[%s9415_s15 + $0x730] sm:$0xff] }
  0xda   : > { %1075 = vst [vmem:[%s9420_s16 + $0x3a0] sm:$0xff] %v1074_v52  ;;  %v1080_v55 = vld [vmem:[%s9415_s15 + $0x738] sm:$0xff]  ;;  %1077 = vst [vmem:[%s9420_s16 + $0x3a8] sm:$0xff] %v1076_v53  ;;  %v1082_v56 = vld [vmem:[%s9415_s15 + $0x740] sm:$0xff] }
  0xdb   : > { %1079 = vst [vmem:[%s9420_s16 + $0x3b0] sm:$0xff] %v1078_v54  ;;  %1081 = vst [vmem:[%s9420_s16 + $0x3b8] sm:$0xff] %v1080_v55  ;;  %v1084_v57 = vld [vmem:[%s9415_s15 + $0x748] sm:$0xff]  ;;  %v1086_v58 = vld [vmem:[%s9415_s15 + $0x750] sm:$0xff] }
  0xdc   : > { %1083 = vst [vmem:[%s9420_s16 + $0x3c0] sm:$0xff] %v1082_v56  ;;  %1085 = vst [vmem:[%s9420_s16 + $0x3c8] sm:$0xff] %v1084_v57  ;;  %v1088_v59 = vld [vmem:[%s9415_s15 + $0x758] sm:$0xff]  ;;  %v1090_v60 = vld [vmem:[%s9415_s15 + $0x760] sm:$0xff] }
  0xdd   : > { %1087 = vst [vmem:[%s9420_s16 + $0x3d0] sm:$0xff] %v1086_v58  ;;  %v1092_v61 = vld [vmem:[%s9415_s15 + $0x768] sm:$0xff]  ;;  %1089 = vst [vmem:[%s9420_s16 + $0x3d8] sm:$0xff] %v1088_v59  ;;  %v1094_v62 = vld [vmem:[%s9415_s15 + $0x770] sm:$0xff] }
  0xde   : > { %1091 = vst [vmem:[%s9420_s16 + $0x3e0] sm:$0xff] %v1090_v60  ;;  %1093 = vst [vmem:[%s9420_s16 + $0x3e8] sm:$0xff] %v1092_v61  ;;  %v1096_v63 = vld [vmem:[%s9415_s15 + $0x778] sm:$0xff]  ;;  %v1098_v0 = vld [vmem:[%s9415_s15 + $0x800] sm:$0xff] }
  0xdf   : > { %1095 = vst [vmem:[%s9420_s16 + $0x3f0] sm:$0xff] %v1094_v62  ;;  %1097 = vst [vmem:[%s9420_s16 + $0x3f8] sm:$0xff] %v1096_v63  ;;  %v1100_v1 = vld [vmem:[%s9415_s15 + $0x808] sm:$0xff]  ;;  %v1102_v2 = vld [vmem:[%s9415_s15 + $0x810] sm:$0xff] }
  0xe0   : > { %1099 = vst [vmem:[%s9420_s16 + $0x400] sm:$0xff] %v1098_v0  ;;  %v1104_v3 = vld [vmem:[%s9415_s15 + $0x818] sm:$0xff]  ;;  %1101 = vst [vmem:[%s9420_s16 + $0x408] sm:$0xff] %v1100_v1  ;;  %v1106_v4 = vld [vmem:[%s9415_s15 + $0x820] sm:$0xff] }
  0xe1   : > { %1103 = vst [vmem:[%s9420_s16 + $0x410] sm:$0xff] %v1102_v2  ;;  %1105 = vst [vmem:[%s9420_s16 + $0x418] sm:$0xff] %v1104_v3  ;;  %v1108_v5 = vld [vmem:[%s9415_s15 + $0x828] sm:$0xff]  ;;  %v1110_v6 = vld [vmem:[%s9415_s15 + $0x830] sm:$0xff] }
  0xe2   : > { %1107 = vst [vmem:[%s9420_s16 + $0x420] sm:$0xff] %v1106_v4  ;;  %1109 = vst [vmem:[%s9420_s16 + $0x428] sm:$0xff] %v1108_v5  ;;  %v1112_v7 = vld [vmem:[%s9415_s15 + $0x838] sm:$0xff]  ;;  %v1114_v8 = vld [vmem:[%s9415_s15 + $0x840] sm:$0xff] }
  0xe3   : > { %1111 = vst [vmem:[%s9420_s16 + $0x430] sm:$0xff] %v1110_v6  ;;  %v1116_v9 = vld [vmem:[%s9415_s15 + $0x848] sm:$0xff]  ;;  %1113 = vst [vmem:[%s9420_s16 + $0x438] sm:$0xff] %v1112_v7  ;;  %v1118_v10 = vld [vmem:[%s9415_s15 + $0x850] sm:$0xff] }
  0xe4   : > { %1115 = vst [vmem:[%s9420_s16 + $0x440] sm:$0xff] %v1114_v8  ;;  %1117 = vst [vmem:[%s9420_s16 + $0x448] sm:$0xff] %v1116_v9  ;;  %v1120_v11 = vld [vmem:[%s9415_s15 + $0x858] sm:$0xff]  ;;  %v1122_v12 = vld [vmem:[%s9415_s15 + $0x860] sm:$0xff] }
  0xe5   : > { %1119 = vst [vmem:[%s9420_s16 + $0x450] sm:$0xff] %v1118_v10  ;;  %1121 = vst [vmem:[%s9420_s16 + $0x458] sm:$0xff] %v1120_v11  ;;  %v1124_v13 = vld [vmem:[%s9415_s15 + $0x868] sm:$0xff]  ;;  %v1126_v14 = vld [vmem:[%s9415_s15 + $0x870] sm:$0xff] }
  0xe6   : > { %1123 = vst [vmem:[%s9420_s16 + $0x460] sm:$0xff] %v1122_v12  ;;  %v1128_v15 = vld [vmem:[%s9415_s15 + $0x878] sm:$0xff]  ;;  %1125 = vst [vmem:[%s9420_s16 + $0x468] sm:$0xff] %v1124_v13  ;;  %v1130_v16 = vld [vmem:[%s9415_s15 + $0x900] sm:$0xff] }
  0xe7   : > { %1127 = vst [vmem:[%s9420_s16 + $0x470] sm:$0xff] %v1126_v14  ;;  %1129 = vst [vmem:[%s9420_s16 + $0x478] sm:$0xff] %v1128_v15  ;;  %v1132_v17 = vld [vmem:[%s9415_s15 + $0x908] sm:$0xff]  ;;  %v1134_v18 = vld [vmem:[%s9415_s15 + $0x910] sm:$0xff] }
  0xe8   : > { %1131 = vst [vmem:[%s9420_s16 + $0x480] sm:$0xff] %v1130_v16  ;;  %1133 = vst [vmem:[%s9420_s16 + $0x488] sm:$0xff] %v1132_v17  ;;  %v1136_v19 = vld [vmem:[%s9415_s15 + $0x918] sm:$0xff]  ;;  %v1138_v20 = vld [vmem:[%s9415_s15 + $0x920] sm:$0xff] }
  0xe9   : > { %1135 = vst [vmem:[%s9420_s16 + $0x490] sm:$0xff] %v1134_v18  ;;  %v1140_v21 = vld [vmem:[%s9415_s15 + $0x928] sm:$0xff]  ;;  %1137 = vst [vmem:[%s9420_s16 + $0x498] sm:$0xff] %v1136_v19  ;;  %v1142_v22 = vld [vmem:[%s9415_s15 + $0x930] sm:$0xff] }
  0xea   : > { %1139 = vst [vmem:[%s9420_s16 + $0x4a0] sm:$0xff] %v1138_v20  ;;  %1141 = vst [vmem:[%s9420_s16 + $0x4a8] sm:$0xff] %v1140_v21  ;;  %v1144_v23 = vld [vmem:[%s9415_s15 + $0x938] sm:$0xff]  ;;  %v1146_v24 = vld [vmem:[%s9415_s15 + $0x940] sm:$0xff] }
  0xeb   : > { %1143 = vst [vmem:[%s9420_s16 + $0x4b0] sm:$0xff] %v1142_v22  ;;  %1145 = vst [vmem:[%s9420_s16 + $0x4b8] sm:$0xff] %v1144_v23  ;;  %v1148_v25 = vld [vmem:[%s9415_s15 + $0x948] sm:$0xff]  ;;  %v1150_v26 = vld [vmem:[%s9415_s15 + $0x950] sm:$0xff] }
  0xec   : > { %1147 = vst [vmem:[%s9420_s16 + $0x4c0] sm:$0xff] %v1146_v24  ;;  %v1152_v27 = vld [vmem:[%s9415_s15 + $0x958] sm:$0xff]  ;;  %1149 = vst [vmem:[%s9420_s16 + $0x4c8] sm:$0xff] %v1148_v25  ;;  %v1154_v28 = vld [vmem:[%s9415_s15 + $0x960] sm:$0xff] }
  0xed   : > { %1151 = vst [vmem:[%s9420_s16 + $0x4d0] sm:$0xff] %v1150_v26  ;;  %1153 = vst [vmem:[%s9420_s16 + $0x4d8] sm:$0xff] %v1152_v27  ;;  %v1156_v29 = vld [vmem:[%s9415_s15 + $0x968] sm:$0xff]  ;;  %v1158_v30 = vld [vmem:[%s9415_s15 + $0x970] sm:$0xff] }
  0xee   : > { %1155 = vst [vmem:[%s9420_s16 + $0x4e0] sm:$0xff] %v1154_v28  ;;  %1157 = vst [vmem:[%s9420_s16 + $0x4e8] sm:$0xff] %v1156_v29  ;;  %v1160_v31 = vld [vmem:[%s9415_s15 + $0x978] sm:$0xff]  ;;  %v1162_v32 = vld [vmem:[%s9415_s15 + $0xa00] sm:$0xff] }
  0xef   : > { %1159 = vst [vmem:[%s9420_s16 + $0x4f0] sm:$0xff] %v1158_v30  ;;  %v1164_v33 = vld [vmem:[%s9415_s15 + $0xa08] sm:$0xff]  ;;  %1161 = vst [vmem:[%s9420_s16 + $0x4f8] sm:$0xff] %v1160_v31  ;;  %v1166_v34 = vld [vmem:[%s9415_s15 + $0xa10] sm:$0xff] }
  0xf0   : > { %1163 = vst [vmem:[%s9420_s16 + $0x500] sm:$0xff] %v1162_v32  ;;  %1165 = vst [vmem:[%s9420_s16 + $0x508] sm:$0xff] %v1164_v33  ;;  %v1168_v35 = vld [vmem:[%s9415_s15 + $0xa18] sm:$0xff]  ;;  %v1170_v36 = vld [vmem:[%s9415_s15 + $0xa20] sm:$0xff] }
  0xf1   : > { %1167 = vst [vmem:[%s9420_s16 + $0x510] sm:$0xff] %v1166_v34  ;;  %1169 = vst [vmem:[%s9420_s16 + $0x518] sm:$0xff] %v1168_v35  ;;  %v1172_v37 = vld [vmem:[%s9415_s15 + $0xa28] sm:$0xff]  ;;  %v1174_v38 = vld [vmem:[%s9415_s15 + $0xa30] sm:$0xff] }
  0xf2   : > { %1171 = vst [vmem:[%s9420_s16 + $0x520] sm:$0xff] %v1170_v36  ;;  %v1176_v39 = vld [vmem:[%s9415_s15 + $0xa38] sm:$0xff]  ;;  %1173 = vst [vmem:[%s9420_s16 + $0x528] sm:$0xff] %v1172_v37  ;;  %v1178_v40 = vld [vmem:[%s9415_s15 + $0xa40] sm:$0xff] }
  0xf3   : > { %1175 = vst [vmem:[%s9420_s16 + $0x530] sm:$0xff] %v1174_v38  ;;  %1177 = vst [vmem:[%s9420_s16 + $0x538] sm:$0xff] %v1176_v39  ;;  %v1180_v41 = vld [vmem:[%s9415_s15 + $0xa48] sm:$0xff]  ;;  %v1182_v42 = vld [vmem:[%s9415_s15 + $0xa50] sm:$0xff] }
  0xf4   : > { %1179 = vst [vmem:[%s9420_s16 + $0x540] sm:$0xff] %v1178_v40  ;;  %1181 = vst [vmem:[%s9420_s16 + $0x548] sm:$0xff] %v1180_v41  ;;  %v1184_v43 = vld [vmem:[%s9415_s15 + $0xa58] sm:$0xff]  ;;  %v1186_v44 = vld [vmem:[%s9415_s15 + $0xa60] sm:$0xff] }
  0xf5   : > { %1183 = vst [vmem:[%s9420_s16 + $0x550] sm:$0xff] %v1182_v42  ;;  %v1188_v45 = vld [vmem:[%s9415_s15 + $0xa68] sm:$0xff]  ;;  %1185 = vst [vmem:[%s9420_s16 + $0x558] sm:$0xff] %v1184_v43  ;;  %v1190_v46 = vld [vmem:[%s9415_s15 + $0xa70] sm:$0xff] }
  0xf6   : > { %1187 = vst [vmem:[%s9420_s16 + $0x560] sm:$0xff] %v1186_v44  ;;  %1189 = vst [vmem:[%s9420_s16 + $0x568] sm:$0xff] %v1188_v45  ;;  %v1192_v47 = vld [vmem:[%s9415_s15 + $0xa78] sm:$0xff]  ;;  %v1194_v48 = vld [vmem:[%s9415_s15 + $0xb00] sm:$0xff] }
  0xf7   : > { %1191 = vst [vmem:[%s9420_s16 + $0x570] sm:$0xff] %v1190_v46  ;;  %1193 = vst [vmem:[%s9420_s16 + $0x578] sm:$0xff] %v1192_v47  ;;  %v1196_v49 = vld [vmem:[%s9415_s15 + $0xb08] sm:$0xff]  ;;  %v1198_v50 = vld [vmem:[%s9415_s15 + $0xb10] sm:$0xff] }
  0xf8   : > { %1195 = vst [vmem:[%s9420_s16 + $0x580] sm:$0xff] %v1194_v48  ;;  %v1200_v51 = vld [vmem:[%s9415_s15 + $0xb18] sm:$0xff]  ;;  %1197 = vst [vmem:[%s9420_s16 + $0x588] sm:$0xff] %v1196_v49  ;;  %v1202_v52 = vld [vmem:[%s9415_s15 + $0xb20] sm:$0xff] }
  0xf9   : > { %1199 = vst [vmem:[%s9420_s16 + $0x590] sm:$0xff] %v1198_v50  ;;  %1201 = vst [vmem:[%s9420_s16 + $0x598] sm:$0xff] %v1200_v51  ;;  %v1204_v53 = vld [vmem:[%s9415_s15 + $0xb28] sm:$0xff]  ;;  %v1206_v54 = vld [vmem:[%s9415_s15 + $0xb30] sm:$0xff] }
  0xfa   : > { %1203 = vst [vmem:[%s9420_s16 + $0x5a0] sm:$0xff] %v1202_v52  ;;  %1205 = vst [vmem:[%s9420_s16 + $0x5a8] sm:$0xff] %v1204_v53  ;;  %v1208_v55 = vld [vmem:[%s9415_s15 + $0xb38] sm:$0xff]  ;;  %v1210_v56 = vld [vmem:[%s9415_s15 + $0xb40] sm:$0xff] }
  0xfb   : > { %1207 = vst [vmem:[%s9420_s16 + $0x5b0] sm:$0xff] %v1206_v54  ;;  %v1212_v57 = vld [vmem:[%s9415_s15 + $0xb48] sm:$0xff]  ;;  %1209 = vst [vmem:[%s9420_s16 + $0x5b8] sm:$0xff] %v1208_v55  ;;  %v1214_v58 = vld [vmem:[%s9415_s15 + $0xb50] sm:$0xff] }
  0xfc   : > { %1211 = vst [vmem:[%s9420_s16 + $0x5c0] sm:$0xff] %v1210_v56  ;;  %1213 = vst [vmem:[%s9420_s16 + $0x5c8] sm:$0xff] %v1212_v57  ;;  %v1216_v59 = vld [vmem:[%s9415_s15 + $0xb58] sm:$0xff]  ;;  %v1218_v60 = vld [vmem:[%s9415_s15 + $0xb60] sm:$0xff] }
  0xfd   : > { %1215 = vst [vmem:[%s9420_s16 + $0x5d0] sm:$0xff] %v1214_v58  ;;  %1217 = vst [vmem:[%s9420_s16 + $0x5d8] sm:$0xff] %v1216_v59  ;;  %v1220_v61 = vld [vmem:[%s9415_s15 + $0xb68] sm:$0xff]  ;;  %v1222_v62 = vld [vmem:[%s9415_s15 + $0xb70] sm:$0xff] }
  0xfe   : > { %1219 = vst [vmem:[%s9420_s16 + $0x5e0] sm:$0xff] %v1218_v60  ;;  %v1224_v63 = vld [vmem:[%s9415_s15 + $0xb78] sm:$0xff]  ;;  %1221 = vst [vmem:[%s9420_s16 + $0x5e8] sm:$0xff] %v1220_v61  ;;  %v1226_v0 = vld [vmem:[%s9415_s15 + $0xc00] sm:$0xff] }
  0xff   : > { %1223 = vst [vmem:[%s9420_s16 + $0x5f0] sm:$0xff] %v1222_v62  ;;  %1225 = vst [vmem:[%s9420_s16 + $0x5f8] sm:$0xff] %v1224_v63  ;;  %v1228_v1 = vld [vmem:[%s9415_s15 + $0xc08] sm:$0xff]  ;;  %v1230_v2 = vld [vmem:[%s9415_s15 + $0xc10] sm:$0xff] }
 0x100   : > { %1227 = vst [vmem:[%s9420_s16 + $0x600] sm:$0xff] %v1226_v0  ;;  %1229 = vst [vmem:[%s9420_s16 + $0x608] sm:$0xff] %v1228_v1  ;;  %v1232_v3 = vld [vmem:[%s9415_s15 + $0xc18] sm:$0xff]  ;;  %v1234_v4 = vld [vmem:[%s9415_s15 + $0xc20] sm:$0xff] }
 0x101   : > { %1231 = vst [vmem:[%s9420_s16 + $0x610] sm:$0xff] %v1230_v2  ;;  %v1236_v5 = vld [vmem:[%s9415_s15 + $0xc28] sm:$0xff]  ;;  %1233 = vst [vmem:[%s9420_s16 + $0x618] sm:$0xff] %v1232_v3  ;;  %v1238_v6 = vld [vmem:[%s9415_s15 + $0xc30] sm:$0xff] }
 0x102   : > { %1235 = vst [vmem:[%s9420_s16 + $0x620] sm:$0xff] %v1234_v4  ;;  %1237 = vst [vmem:[%s9420_s16 + $0x628] sm:$0xff] %v1236_v5  ;;  %v1240_v7 = vld [vmem:[%s9415_s15 + $0xc38] sm:$0xff]  ;;  %v1242_v8 = vld [vmem:[%s9415_s15 + $0xc40] sm:$0xff] }
 0x103   : > { %1239 = vst [vmem:[%s9420_s16 + $0x630] sm:$0xff] %v1238_v6  ;;  %1241 = vst [vmem:[%s9420_s16 + $0x638] sm:$0xff] %v1240_v7  ;;  %v1244_v9 = vld [vmem:[%s9415_s15 + $0xc48] sm:$0xff]  ;;  %v1246_v10 = vld [vmem:[%s9415_s15 + $0xc50] sm:$0xff] }
 0x104   : > { %1243 = vst [vmem:[%s9420_s16 + $0x640] sm:$0xff] %v1242_v8  ;;  %v1248_v11 = vld [vmem:[%s9415_s15 + $0xc58] sm:$0xff]  ;;  %1245 = vst [vmem:[%s9420_s16 + $0x648] sm:$0xff] %v1244_v9  ;;  %v1250_v12 = vld [vmem:[%s9415_s15 + $0xc60] sm:$0xff] }
 0x105   : > { %1247 = vst [vmem:[%s9420_s16 + $0x650] sm:$0xff] %v1246_v10  ;;  %1249 = vst [vmem:[%s9420_s16 + $0x658] sm:$0xff] %v1248_v11  ;;  %v1252_v13 = vld [vmem:[%s9415_s15 + $0xc68] sm:$0xff]  ;;  %v1254_v14 = vld [vmem:[%s9415_s15 + $0xc70] sm:$0xff] }
 0x106   : > { %1251 = vst [vmem:[%s9420_s16 + $0x660] sm:$0xff] %v1250_v12  ;;  %1253 = vst [vmem:[%s9420_s16 + $0x668] sm:$0xff] %v1252_v13  ;;  %v1256_v15 = vld [vmem:[%s9415_s15 + $0xc78] sm:$0xff]  ;;  %v1258_v16 = vld [vmem:[%s9415_s15 + $0xd00] sm:$0xff] }
 0x107   : > { %1255 = vst [vmem:[%s9420_s16 + $0x670] sm:$0xff] %v1254_v14  ;;  %v1260_v17 = vld [vmem:[%s9415_s15 + $0xd08] sm:$0xff]  ;;  %1257 = vst [vmem:[%s9420_s16 + $0x678] sm:$0xff] %v1256_v15  ;;  %v1262_v18 = vld [vmem:[%s9415_s15 + $0xd10] sm:$0xff] }
 0x108   : > { %1259 = vst [vmem:[%s9420_s16 + $0x680] sm:$0xff] %v1258_v16  ;;  %1261 = vst [vmem:[%s9420_s16 + $0x688] sm:$0xff] %v1260_v17  ;;  %v1264_v19 = vld [vmem:[%s9415_s15 + $0xd18] sm:$0xff]  ;;  %v1266_v20 = vld [vmem:[%s9415_s15 + $0xd20] sm:$0xff] }
 0x109   : > { %1263 = vst [vmem:[%s9420_s16 + $0x690] sm:$0xff] %v1262_v18  ;;  %1265 = vst [vmem:[%s9420_s16 + $0x698] sm:$0xff] %v1264_v19  ;;  %v1268_v21 = vld [vmem:[%s9415_s15 + $0xd28] sm:$0xff]  ;;  %v1270_v22 = vld [vmem:[%s9415_s15 + $0xd30] sm:$0xff] }
 0x10a   : > { %1267 = vst [vmem:[%s9420_s16 + $0x6a0] sm:$0xff] %v1266_v20  ;;  %v1272_v23 = vld [vmem:[%s9415_s15 + $0xd38] sm:$0xff]  ;;  %1269 = vst [vmem:[%s9420_s16 + $0x6a8] sm:$0xff] %v1268_v21  ;;  %v1274_v24 = vld [vmem:[%s9415_s15 + $0xd40] sm:$0xff] }
 0x10b   : > { %1271 = vst [vmem:[%s9420_s16 + $0x6b0] sm:$0xff] %v1270_v22  ;;  %1273 = vst [vmem:[%s9420_s16 + $0x6b8] sm:$0xff] %v1272_v23  ;;  %v1276_v25 = vld [vmem:[%s9415_s15 + $0xd48] sm:$0xff]  ;;  %v1278_v26 = vld [vmem:[%s9415_s15 + $0xd50] sm:$0xff] }
 0x10c   : > { %1275 = vst [vmem:[%s9420_s16 + $0x6c0] sm:$0xff] %v1274_v24  ;;  %1277 = vst [vmem:[%s9420_s16 + $0x6c8] sm:$0xff] %v1276_v25  ;;  %v1280_v27 = vld [vmem:[%s9415_s15 + $0xd58] sm:$0xff]  ;;  %v1282_v28 = vld [vmem:[%s9415_s15 + $0xd60] sm:$0xff] }
 0x10d   : > { %1279 = vst [vmem:[%s9420_s16 + $0x6d0] sm:$0xff] %v1278_v26  ;;  %v1284_v29 = vld [vmem:[%s9415_s15 + $0xd68] sm:$0xff]  ;;  %1281 = vst [vmem:[%s9420_s16 + $0x6d8] sm:$0xff] %v1280_v27  ;;  %v1286_v30 = vld [vmem:[%s9415_s15 + $0xd70] sm:$0xff] }
 0x10e   : > { %1283 = vst [vmem:[%s9420_s16 + $0x6e0] sm:$0xff] %v1282_v28  ;;  %1285 = vst [vmem:[%s9420_s16 + $0x6e8] sm:$0xff] %v1284_v29  ;;  %v1288_v31 = vld [vmem:[%s9415_s15 + $0xd78] sm:$0xff]  ;;  %v1290_v32 = vld [vmem:[%s9415_s15 + $0xe00] sm:$0xff] }
 0x10f   : > { %1287 = vst [vmem:[%s9420_s16 + $0x6f0] sm:$0xff] %v1286_v30  ;;  %1289 = vst [vmem:[%s9420_s16 + $0x6f8] sm:$0xff] %v1288_v31  ;;  %v1292_v33 = vld [vmem:[%s9415_s15 + $0xe08] sm:$0xff]  ;;  %v1294_v34 = vld [vmem:[%s9415_s15 + $0xe10] sm:$0xff] }
 0x110   : > { %1291 = vst [vmem:[%s9420_s16 + $0x700] sm:$0xff] %v1290_v32  ;;  %v1296_v35 = vld [vmem:[%s9415_s15 + $0xe18] sm:$0xff]  ;;  %1293 = vst [vmem:[%s9420_s16 + $0x708] sm:$0xff] %v1292_v33  ;;  %v1298_v36 = vld [vmem:[%s9415_s15 + $0xe20] sm:$0xff] }
 0x111   : > { %1295 = vst [vmem:[%s9420_s16 + $0x710] sm:$0xff] %v1294_v34  ;;  %1297 = vst [vmem:[%s9420_s16 + $0x718] sm:$0xff] %v1296_v35  ;;  %v1300_v37 = vld [vmem:[%s9415_s15 + $0xe28] sm:$0xff]  ;;  %v1302_v38 = vld [vmem:[%s9415_s15 + $0xe30] sm:$0xff] }
 0x112   : > { %1299 = vst [vmem:[%s9420_s16 + $0x720] sm:$0xff] %v1298_v36  ;;  %1301 = vst [vmem:[%s9420_s16 + $0x728] sm:$0xff] %v1300_v37  ;;  %v1304_v39 = vld [vmem:[%s9415_s15 + $0xe38] sm:$0xff]  ;;  %v1306_v40 = vld [vmem:[%s9415_s15 + $0xe40] sm:$0xff] }
 0x113   : > { %1303 = vst [vmem:[%s9420_s16 + $0x730] sm:$0xff] %v1302_v38  ;;  %v1308_v41 = vld [vmem:[%s9415_s15 + $0xe48] sm:$0xff]  ;;  %1305 = vst [vmem:[%s9420_s16 + $0x738] sm:$0xff] %v1304_v39  ;;  %v1310_v42 = vld [vmem:[%s9415_s15 + $0xe50] sm:$0xff] }
 0x114   : > { %1307 = vst [vmem:[%s9420_s16 + $0x740] sm:$0xff] %v1306_v40  ;;  %1309 = vst [vmem:[%s9420_s16 + $0x748] sm:$0xff] %v1308_v41  ;;  %v1312_v43 = vld [vmem:[%s9415_s15 + $0xe58] sm:$0xff]  ;;  %v1314_v44 = vld [vmem:[%s9415_s15 + $0xe60] sm:$0xff] }
 0x115   : > { %1311 = vst [vmem:[%s9420_s16 + $0x750] sm:$0xff] %v1310_v42  ;;  %1313 = vst [vmem:[%s9420_s16 + $0x758] sm:$0xff] %v1312_v43  ;;  %v1316_v45 = vld [vmem:[%s9415_s15 + $0xe68] sm:$0xff]  ;;  %v1318_v46 = vld [vmem:[%s9415_s15 + $0xe70] sm:$0xff] }
 0x116   : > { %1315 = vst [vmem:[%s9420_s16 + $0x760] sm:$0xff] %v1314_v44  ;;  %v1320_v47 = vld [vmem:[%s9415_s15 + $0xe78] sm:$0xff]  ;;  %1317 = vst [vmem:[%s9420_s16 + $0x768] sm:$0xff] %v1316_v45  ;;  %v1322_v48 = vld [vmem:[%s9415_s15 + $0xf00] sm:$0xff] }
 0x117   : > { %1319 = vst [vmem:[%s9420_s16 + $0x770] sm:$0xff] %v1318_v46  ;;  %1321 = vst [vmem:[%s9420_s16 + $0x778] sm:$0xff] %v1320_v47  ;;  %v1324_v49 = vld [vmem:[%s9415_s15 + $0xf08] sm:$0xff]  ;;  %v1326_v50 = vld [vmem:[%s9415_s15 + $0xf10] sm:$0xff] }
 0x118   : > { %1323 = vst [vmem:[%s9420_s16 + $0x780] sm:$0xff] %v1322_v48  ;;  %1325 = vst [vmem:[%s9420_s16 + $0x788] sm:$0xff] %v1324_v49  ;;  %v1328_v51 = vld [vmem:[%s9415_s15 + $0xf18] sm:$0xff]  ;;  %v1330_v52 = vld [vmem:[%s9415_s15 + $0xf20] sm:$0xff] }
 0x119   : > { %1327 = vst [vmem:[%s9420_s16 + $0x790] sm:$0xff] %v1326_v50  ;;  %v1332_v53 = vld [vmem:[%s9415_s15 + $0xf28] sm:$0xff]  ;;  %1329 = vst [vmem:[%s9420_s16 + $0x798] sm:$0xff] %v1328_v51  ;;  %v1334_v54 = vld [vmem:[%s9415_s15 + $0xf30] sm:$0xff] }
 0x11a   : > { %1331 = vst [vmem:[%s9420_s16 + $0x7a0] sm:$0xff] %v1330_v52  ;;  %1333 = vst [vmem:[%s9420_s16 + $0x7a8] sm:$0xff] %v1332_v53  ;;  %v1336_v55 = vld [vmem:[%s9415_s15 + $0xf38] sm:$0xff]  ;;  %v1338_v56 = vld [vmem:[%s9415_s15 + $0xf40] sm:$0xff] }
 0x11b   : > { %1335 = vst [vmem:[%s9420_s16 + $0x7b0] sm:$0xff] %v1334_v54  ;;  %1337 = vst [vmem:[%s9420_s16 + $0x7b8] sm:$0xff] %v1336_v55  ;;  %v1340_v57 = vld [vmem:[%s9415_s15 + $0xf48] sm:$0xff]  ;;  %v1342_v58 = vld [vmem:[%s9415_s15 + $0xf50] sm:$0xff] }
 0x11c   : > { %1339 = vst [vmem:[%s9420_s16 + $0x7c0] sm:$0xff] %v1338_v56  ;;  %v1344_v59 = vld [vmem:[%s9415_s15 + $0xf58] sm:$0xff]  ;;  %1341 = vst [vmem:[%s9420_s16 + $0x7c8] sm:$0xff] %v1340_v57  ;;  %v1346_v60 = vld [vmem:[%s9415_s15 + $0xf60] sm:$0xff] }
 0x11d   : > { %1343 = vst [vmem:[%s9420_s16 + $0x7d0] sm:$0xff] %v1342_v58  ;;  %1345 = vst [vmem:[%s9420_s16 + $0x7d8] sm:$0xff] %v1344_v59  ;;  %v1348_v61 = vld [vmem:[%s9415_s15 + $0xf68] sm:$0xff]  ;;  %v1350_v62 = vld [vmem:[%s9415_s15 + $0xf70] sm:$0xff] }
 0x11e   : > { %1347 = vst [vmem:[%s9420_s16 + $0x7e0] sm:$0xff] %v1346_v60  ;;  %1349 = vst [vmem:[%s9420_s16 + $0x7e8] sm:$0xff] %v1348_v61  ;;  %v1352_v63 = vld [vmem:[%s9415_s15 + $0xf78] sm:$0xff] }
 0x11f   : > { %1351 = vst [vmem:[%s9420_s16 + $0x7f0] sm:$0xff] %v1350_v62  ;;  %1353 = vst [vmem:[%s9420_s16 + $0x7f8] sm:$0xff] %v1352_v63 }
 0x120 PF: > { %1359 = sbr.rel (!%p8868_p3) target bundleno = 423 (0x1a7), region = 82  ;;  %s1361_s17 = sand.u32 (%p8868_p3), 1, %s8751_s28  }
 0x121   : > { %s8431_s18 = sshll.u32 (%p8868_p3), %s8763_s9, 4  ;;  %s8430_s20 = sshll.u32 (%p8868_p3), %s1361_s17, 11 }
 0x122   : > { %s8432_s21 = sshll.u32 (%p8868_p3), %s8767_s10, 9  ;;  %s9944_s15 = scalar_lea.vmem (%p8868_p3), [#allocation6], %s8430_s20 }
 0x123   : > { %s1366_s22 = sadd.s32 (%p8868_p3), %s8432_s21, %s8431_s18 }
 0x124   : > { %s8433_s23 = sshll.u32 (%p8868_p3), %s1366_s22, 3 }
 0x125   : > { %s9939_s26 = scalar_lea.vmem (%p8868_p3), %s13453_s2, %s8433_s23 }
 0x126   : > { %v1381_v0 = vld [vmem:[%s9939_s26] sm:$0xff] (%p8868_p3)  ;;  %v1383_v1 = vld [vmem:[%s9939_s26 + $0x8] sm:$0xff] (%p8868_p3)  ;;  %v1385_v2 = vld [vmem:[%s9939_s26 + $0x10] sm:$0xff] (%p8868_p3) }
 0x127   : > { %1382 = vst [vmem:[%s9944_s15] sm:$0xff] %v1381_v0  ;;  %1384 = vst [vmem:[%s9944_s15 + $0x8] sm:$0xff] %v1383_v1  ;;  %v1387_v3 = vld [vmem:[%s9939_s26 + $0x18] sm:$0xff]  ;;  %v1389_v4 = vld [vmem:[%s9939_s26 + $0x20] sm:$0xff] }
 0x128   : > { %1386 = vst [vmem:[%s9944_s15 + $0x10] sm:$0xff] %v1385_v2  ;;  %v1391_v5 = vld [vmem:[%s9939_s26 + $0x28] sm:$0xff]  ;;  %1388 = vst [vmem:[%s9944_s15 + $0x18] sm:$0xff] %v1387_v3  ;;  %v1393_v6 = vld [vmem:[%s9939_s26 + $0x30] sm:$0xff] }
 0x129   : > { %1390 = vst [vmem:[%s9944_s15 + $0x20] sm:$0xff] %v1389_v4  ;;  %1392 = vst [vmem:[%s9944_s15 + $0x28] sm:$0xff] %v1391_v5  ;;  %v1395_v7 = vld [vmem:[%s9939_s26 + $0x38] sm:$0xff]  ;;  %v1397_v8 = vld [vmem:[%s9939_s26 + $0x40] sm:$0xff] }
 0x12a   : > { %1394 = vst [vmem:[%s9944_s15 + $0x30] sm:$0xff] %v1393_v6  ;;  %1396 = vst [vmem:[%s9944_s15 + $0x38] sm:$0xff] %v1395_v7  ;;  %v1399_v9 = vld [vmem:[%s9939_s26 + $0x48] sm:$0xff]  ;;  %v1401_v10 = vld [vmem:[%s9939_s26 + $0x50] sm:$0xff] }
 0x12b   : > { %1398 = vst [vmem:[%s9944_s15 + $0x40] sm:$0xff] %v1397_v8  ;;  %v1403_v11 = vld [vmem:[%s9939_s26 + $0x58] sm:$0xff]  ;;  %1400 = vst [vmem:[%s9944_s15 + $0x48] sm:$0xff] %v1399_v9  ;;  %v1405_v12 = vld [vmem:[%s9939_s26 + $0x60] sm:$0xff] }
 0x12c   : > { %1402 = vst [vmem:[%s9944_s15 + $0x50] sm:$0xff] %v1401_v10  ;;  %1404 = vst [vmem:[%s9944_s15 + $0x58] sm:$0xff] %v1403_v11  ;;  %v1407_v13 = vld [vmem:[%s9939_s26 + $0x68] sm:$0xff]  ;;  %v1409_v14 = vld [vmem:[%s9939_s26 + $0x70] sm:$0xff] }
 0x12d   : > { %1406 = vst [vmem:[%s9944_s15 + $0x60] sm:$0xff] %v1405_v12  ;;  %1408 = vst [vmem:[%s9944_s15 + $0x68] sm:$0xff] %v1407_v13  ;;  %v1411_v15 = vld [vmem:[%s9939_s26 + $0x78] sm:$0xff]  ;;  %v1413_v16 = vld [vmem:[%s9939_s26 + $0x100] sm:$0xff] }
 0x12e   : > { %1410 = vst [vmem:[%s9944_s15 + $0x70] sm:$0xff] %v1409_v14  ;;  %v1415_v17 = vld [vmem:[%s9939_s26 + $0x108] sm:$0xff]  ;;  %1412 = vst [vmem:[%s9944_s15 + $0x78] sm:$0xff] %v1411_v15  ;;  %v1417_v18 = vld [vmem:[%s9939_s26 + $0x110] sm:$0xff] }
 0x12f   : > { %1414 = vst [vmem:[%s9944_s15 + $0x80] sm:$0xff] %v1413_v16  ;;  %1416 = vst [vmem:[%s9944_s15 + $0x88] sm:$0xff] %v1415_v17  ;;  %v1419_v19 = vld [vmem:[%s9939_s26 + $0x118] sm:$0xff]  ;;  %v1421_v20 = vld [vmem:[%s9939_s26 + $0x120] sm:$0xff] }
 0x130   : > { %1418 = vst [vmem:[%s9944_s15 + $0x90] sm:$0xff] %v1417_v18  ;;  %1420 = vst [vmem:[%s9944_s15 + $0x98] sm:$0xff] %v1419_v19  ;;  %v1423_v21 = vld [vmem:[%s9939_s26 + $0x128] sm:$0xff]  ;;  %v1425_v22 = vld [vmem:[%s9939_s26 + $0x130] sm:$0xff] }
 0x131   : > { %1422 = vst [vmem:[%s9944_s15 + $0xa0] sm:$0xff] %v1421_v20  ;;  %v1427_v23 = vld [vmem:[%s9939_s26 + $0x138] sm:$0xff]  ;;  %1424 = vst [vmem:[%s9944_s15 + $0xa8] sm:$0xff] %v1423_v21  ;;  %v1429_v24 = vld [vmem:[%s9939_s26 + $0x140] sm:$0xff] }
 0x132   : > { %1426 = vst [vmem:[%s9944_s15 + $0xb0] sm:$0xff] %v1425_v22  ;;  %1428 = vst [vmem:[%s9944_s15 + $0xb8] sm:$0xff] %v1427_v23  ;;  %v1431_v25 = vld [vmem:[%s9939_s26 + $0x148] sm:$0xff]  ;;  %v1433_v26 = vld [vmem:[%s9939_s26 + $0x150] sm:$0xff] }
 0x133   : > { %1430 = vst [vmem:[%s9944_s15 + $0xc0] sm:$0xff] %v1429_v24  ;;  %1432 = vst [vmem:[%s9944_s15 + $0xc8] sm:$0xff] %v1431_v25  ;;  %v1435_v27 = vld [vmem:[%s9939_s26 + $0x158] sm:$0xff]  ;;  %v1437_v28 = vld [vmem:[%s9939_s26 + $0x160] sm:$0xff] }
 0x134   : > { %1434 = vst [vmem:[%s9944_s15 + $0xd0] sm:$0xff] %v1433_v26  ;;  %v1439_v29 = vld [vmem:[%s9939_s26 + $0x168] sm:$0xff]  ;;  %1436 = vst [vmem:[%s9944_s15 + $0xd8] sm:$0xff] %v1435_v27  ;;  %v1441_v30 = vld [vmem:[%s9939_s26 + $0x170] sm:$0xff] }
 0x135   : > { %1438 = vst [vmem:[%s9944_s15 + $0xe0] sm:$0xff] %v1437_v28  ;;  %1440 = vst [vmem:[%s9944_s15 + $0xe8] sm:$0xff] %v1439_v29  ;;  %v1443_v31 = vld [vmem:[%s9939_s26 + $0x178] sm:$0xff]  ;;  %v1445_v32 = vld [vmem:[%s9939_s26 + $0x200] sm:$0xff] }
 0x136   : > { %1442 = vst [vmem:[%s9944_s15 + $0xf0] sm:$0xff] %v1441_v30  ;;  %1444 = vst [vmem:[%s9944_s15 + $0xf8] sm:$0xff] %v1443_v31  ;;  %v1447_v33 = vld [vmem:[%s9939_s26 + $0x208] sm:$0xff]  ;;  %v1449_v34 = vld [vmem:[%s9939_s26 + $0x210] sm:$0xff] }
 0x137   : > { %1446 = vst [vmem:[%s9944_s15 + $0x100] sm:$0xff] %v1445_v32  ;;  %v1451_v35 = vld [vmem:[%s9939_s26 + $0x218] sm:$0xff]  ;;  %1448 = vst [vmem:[%s9944_s15 + $0x108] sm:$0xff] %v1447_v33  ;;  %v1453_v36 = vld [vmem:[%s9939_s26 + $0x220] sm:$0xff] }
 0x138   : > { %1450 = vst [vmem:[%s9944_s15 + $0x110] sm:$0xff] %v1449_v34  ;;  %1452 = vst [vmem:[%s9944_s15 + $0x118] sm:$0xff] %v1451_v35  ;;  %v1455_v37 = vld [vmem:[%s9939_s26 + $0x228] sm:$0xff]  ;;  %v1457_v38 = vld [vmem:[%s9939_s26 + $0x230] sm:$0xff] }
 0x139   : > { %1454 = vst [vmem:[%s9944_s15 + $0x120] sm:$0xff] %v1453_v36  ;;  %1456 = vst [vmem:[%s9944_s15 + $0x128] sm:$0xff] %v1455_v37  ;;  %v1459_v39 = vld [vmem:[%s9939_s26 + $0x238] sm:$0xff]  ;;  %v1461_v40 = vld [vmem:[%s9939_s26 + $0x240] sm:$0xff] }
 0x13a   : > { %1458 = vst [vmem:[%s9944_s15 + $0x130] sm:$0xff] %v1457_v38  ;;  %v1463_v41 = vld [vmem:[%s9939_s26 + $0x248] sm:$0xff]  ;;  %1460 = vst [vmem:[%s9944_s15 + $0x138] sm:$0xff] %v1459_v39  ;;  %v1465_v42 = vld [vmem:[%s9939_s26 + $0x250] sm:$0xff] }
 0x13b   : > { %1462 = vst [vmem:[%s9944_s15 + $0x140] sm:$0xff] %v1461_v40  ;;  %1464 = vst [vmem:[%s9944_s15 + $0x148] sm:$0xff] %v1463_v41  ;;  %v1467_v43 = vld [vmem:[%s9939_s26 + $0x258] sm:$0xff]  ;;  %v1469_v44 = vld [vmem:[%s9939_s26 + $0x260] sm:$0xff] }
 0x13c   : > { %1466 = vst [vmem:[%s9944_s15 + $0x150] sm:$0xff] %v1465_v42  ;;  %1468 = vst [vmem:[%s9944_s15 + $0x158] sm:$0xff] %v1467_v43  ;;  %v1471_v45 = vld [vmem:[%s9939_s26 + $0x268] sm:$0xff]  ;;  %v1473_v46 = vld [vmem:[%s9939_s26 + $0x270] sm:$0xff] }
 0x13d   : > { %1470 = vst [vmem:[%s9944_s15 + $0x160] sm:$0xff] %v1469_v44  ;;  %v1475_v47 = vld [vmem:[%s9939_s26 + $0x278] sm:$0xff]  ;;  %1472 = vst [vmem:[%s9944_s15 + $0x168] sm:$0xff] %v1471_v45  ;;  %v1477_v48 = vld [vmem:[%s9939_s26 + $0x300] sm:$0xff] }
 0x13e   : > { %1474 = vst [vmem:[%s9944_s15 + $0x170] sm:$0xff] %v1473_v46  ;;  %1476 = vst [vmem:[%s9944_s15 + $0x178] sm:$0xff] %v1475_v47  ;;  %v1479_v49 = vld [vmem:[%s9939_s26 + $0x308] sm:$0xff]  ;;  %v1481_v50 = vld [vmem:[%s9939_s26 + $0x310] sm:$0xff] }
 0x13f   : > { %1478 = vst [vmem:[%s9944_s15 + $0x180] sm:$0xff] %v1477_v48  ;;  %1480 = vst [vmem:[%s9944_s15 + $0x188] sm:$0xff] %v1479_v49  ;;  %v1483_v51 = vld [vmem:[%s9939_s26 + $0x318] sm:$0xff]  ;;  %v1485_v52 = vld [vmem:[%s9939_s26 + $0x320] sm:$0xff] }
 0x140   : > { %1482 = vst [vmem:[%s9944_s15 + $0x190] sm:$0xff] %v1481_v50  ;;  %v1487_v53 = vld [vmem:[%s9939_s26 + $0x328] sm:$0xff]  ;;  %1484 = vst [vmem:[%s9944_s15 + $0x198] sm:$0xff] %v1483_v51  ;;  %v1489_v54 = vld [vmem:[%s9939_s26 + $0x330] sm:$0xff] }
 0x141   : > { %1486 = vst [vmem:[%s9944_s15 + $0x1a0] sm:$0xff] %v1485_v52  ;;  %1488 = vst [vmem:[%s9944_s15 + $0x1a8] sm:$0xff] %v1487_v53  ;;  %v1491_v55 = vld [vmem:[%s9939_s26 + $0x338] sm:$0xff]  ;;  %v1493_v56 = vld [vmem:[%s9939_s26 + $0x340] sm:$0xff] }
 0x142   : > { %1490 = vst [vmem:[%s9944_s15 + $0x1b0] sm:$0xff] %v1489_v54  ;;  %1492 = vst [vmem:[%s9944_s15 + $0x1b8] sm:$0xff] %v1491_v55  ;;  %v1495_v57 = vld [vmem:[%s9939_s26 + $0x348] sm:$0xff]  ;;  %v1497_v58 = vld [vmem:[%s9939_s26 + $0x350] sm:$0xff] }
 0x143   : > { %1494 = vst [vmem:[%s9944_s15 + $0x1c0] sm:$0xff] %v1493_v56  ;;  %v1499_v59 = vld [vmem:[%s9939_s26 + $0x358] sm:$0xff]  ;;  %1496 = vst [vmem:[%s9944_s15 + $0x1c8] sm:$0xff] %v1495_v57  ;;  %v1501_v60 = vld [vmem:[%s9939_s26 + $0x360] sm:$0xff] }
 0x144   : > { %1498 = vst [vmem:[%s9944_s15 + $0x1d0] sm:$0xff] %v1497_v58  ;;  %1500 = vst [vmem:[%s9944_s15 + $0x1d8] sm:$0xff] %v1499_v59  ;;  %v1503_v61 = vld [vmem:[%s9939_s26 + $0x368] sm:$0xff]  ;;  %v1505_v62 = vld [vmem:[%s9939_s26 + $0x370] sm:$0xff] }
 0x145   : > { %1502 = vst [vmem:[%s9944_s15 + $0x1e0] sm:$0xff] %v1501_v60  ;;  %1504 = vst [vmem:[%s9944_s15 + $0x1e8] sm:$0xff] %v1503_v61  ;;  %v1507_v63 = vld [vmem:[%s9939_s26 + $0x378] sm:$0xff]  ;;  %v1509_v0 = vld [vmem:[%s9939_s26 + $0x400] sm:$0xff] }
 0x146   : > { %1506 = vst [vmem:[%s9944_s15 + $0x1f0] sm:$0xff] %v1505_v62  ;;  %v1511_v1 = vld [vmem:[%s9939_s26 + $0x408] sm:$0xff]  ;;  %1508 = vst [vmem:[%s9944_s15 + $0x1f8] sm:$0xff] %v1507_v63  ;;  %v1513_v2 = vld [vmem:[%s9939_s26 + $0x410] sm:$0xff] }
 0x147   : > { %1510 = vst [vmem:[%s9944_s15 + $0x200] sm:$0xff] %v1509_v0  ;;  %1512 = vst [vmem:[%s9944_s15 + $0x208] sm:$0xff] %v1511_v1  ;;  %v1515_v3 = vld [vmem:[%s9939_s26 + $0x418] sm:$0xff]  ;;  %v1517_v4 = vld [vmem:[%s9939_s26 + $0x420] sm:$0xff] }
 0x148   : > { %1514 = vst [vmem:[%s9944_s15 + $0x210] sm:$0xff] %v1513_v2  ;;  %1516 = vst [vmem:[%s9944_s15 + $0x218] sm:$0xff] %v1515_v3  ;;  %v1519_v5 = vld [vmem:[%s9939_s26 + $0x428] sm:$0xff]  ;;  %v1521_v6 = vld [vmem:[%s9939_s26 + $0x430] sm:$0xff] }
 0x149   : > { %1518 = vst [vmem:[%s9944_s15 + $0x220] sm:$0xff] %v1517_v4  ;;  %v1523_v7 = vld [vmem:[%s9939_s26 + $0x438] sm:$0xff]  ;;  %1520 = vst [vmem:[%s9944_s15 + $0x228] sm:$0xff] %v1519_v5  ;;  %v1525_v8 = vld [vmem:[%s9939_s26 + $0x440] sm:$0xff] }
 0x14a   : > { %1522 = vst [vmem:[%s9944_s15 + $0x230] sm:$0xff] %v1521_v6  ;;  %1524 = vst [vmem:[%s9944_s15 + $0x238] sm:$0xff] %v1523_v7  ;;  %v1527_v9 = vld [vmem:[%s9939_s26 + $0x448] sm:$0xff]  ;;  %v1529_v10 = vld [vmem:[%s9939_s26 + $0x450] sm:$0xff] }
 0x14b   : > { %1526 = vst [vmem:[%s9944_s15 + $0x240] sm:$0xff] %v1525_v8  ;;  %1528 = vst [vmem:[%s9944_s15 + $0x248] sm:$0xff] %v1527_v9  ;;  %v1531_v11 = vld [vmem:[%s9939_s26 + $0x458] sm:$0xff]  ;;  %v1533_v12 = vld [vmem:[%s9939_s26 + $0x460] sm:$0xff] }
 0x14c   : > { %1530 = vst [vmem:[%s9944_s15 + $0x250] sm:$0xff] %v1529_v10  ;;  %v1535_v13 = vld [vmem:[%s9939_s26 + $0x468] sm:$0xff]  ;;  %1532 = vst [vmem:[%s9944_s15 + $0x258] sm:$0xff] %v1531_v11  ;;  %v1537_v14 = vld [vmem:[%s9939_s26 + $0x470] sm:$0xff] }
 0x14d   : > { %1534 = vst [vmem:[%s9944_s15 + $0x260] sm:$0xff] %v1533_v12  ;;  %1536 = vst [vmem:[%s9944_s15 + $0x268] sm:$0xff] %v1535_v13  ;;  %v1539_v15 = vld [vmem:[%s9939_s26 + $0x478] sm:$0xff]  ;;  %v1541_v16 = vld [vmem:[%s9939_s26 + $0x500] sm:$0xff] }
 0x14e   : > { %1538 = vst [vmem:[%s9944_s15 + $0x270] sm:$0xff] %v1537_v14  ;;  %1540 = vst [vmem:[%s9944_s15 + $0x278] sm:$0xff] %v1539_v15  ;;  %v1543_v17 = vld [vmem:[%s9939_s26 + $0x508] sm:$0xff]  ;;  %v1545_v18 = vld [vmem:[%s9939_s26 + $0x510] sm:$0xff] }
 0x14f   : > { %1542 = vst [vmem:[%s9944_s15 + $0x280] sm:$0xff] %v1541_v16  ;;  %v1547_v19 = vld [vmem:[%s9939_s26 + $0x518] sm:$0xff]  ;;  %1544 = vst [vmem:[%s9944_s15 + $0x288] sm:$0xff] %v1543_v17  ;;  %v1549_v20 = vld [vmem:[%s9939_s26 + $0x520] sm:$0xff] }
 0x150   : > { %1546 = vst [vmem:[%s9944_s15 + $0x290] sm:$0xff] %v1545_v18  ;;  %1548 = vst [vmem:[%s9944_s15 + $0x298] sm:$0xff] %v1547_v19  ;;  %v1551_v21 = vld [vmem:[%s9939_s26 + $0x528] sm:$0xff]  ;;  %v1553_v22 = vld [vmem:[%s9939_s26 + $0x530] sm:$0xff] }
 0x151   : > { %1550 = vst [vmem:[%s9944_s15 + $0x2a0] sm:$0xff] %v1549_v20  ;;  %1552 = vst [vmem:[%s9944_s15 + $0x2a8] sm:$0xff] %v1551_v21  ;;  %v1555_v23 = vld [vmem:[%s9939_s26 + $0x538] sm:$0xff]  ;;  %v1557_v24 = vld [vmem:[%s9939_s26 + $0x540] sm:$0xff] }
 0x152   : > { %1554 = vst [vmem:[%s9944_s15 + $0x2b0] sm:$0xff] %v1553_v22  ;;  %v1559_v25 = vld [vmem:[%s9939_s26 + $0x548] sm:$0xff]  ;;  %1556 = vst [vmem:[%s9944_s15 + $0x2b8] sm:$0xff] %v1555_v23  ;;  %v1561_v26 = vld [vmem:[%s9939_s26 + $0x550] sm:$0xff] }
 0x153   : > { %1558 = vst [vmem:[%s9944_s15 + $0x2c0] sm:$0xff] %v1557_v24  ;;  %1560 = vst [vmem:[%s9944_s15 + $0x2c8] sm:$0xff] %v1559_v25  ;;  %v1563_v27 = vld [vmem:[%s9939_s26 + $0x558] sm:$0xff]  ;;  %v1565_v28 = vld [vmem:[%s9939_s26 + $0x560] sm:$0xff] }
 0x154   : > { %1562 = vst [vmem:[%s9944_s15 + $0x2d0] sm:$0xff] %v1561_v26  ;;  %1564 = vst [vmem:[%s9944_s15 + $0x2d8] sm:$0xff] %v1563_v27  ;;  %v1567_v29 = vld [vmem:[%s9939_s26 + $0x568] sm:$0xff]  ;;  %v1569_v30 = vld [vmem:[%s9939_s26 + $0x570] sm:$0xff] }
 0x155   : > { %1566 = vst [vmem:[%s9944_s15 + $0x2e0] sm:$0xff] %v1565_v28  ;;  %v1571_v31 = vld [vmem:[%s9939_s26 + $0x578] sm:$0xff]  ;;  %1568 = vst [vmem:[%s9944_s15 + $0x2e8] sm:$0xff] %v1567_v29  ;;  %v1573_v32 = vld [vmem:[%s9939_s26 + $0x600] sm:$0xff] }
 0x156   : > { %1570 = vst [vmem:[%s9944_s15 + $0x2f0] sm:$0xff] %v1569_v30  ;;  %1572 = vst [vmem:[%s9944_s15 + $0x2f8] sm:$0xff] %v1571_v31  ;;  %v1575_v33 = vld [vmem:[%s9939_s26 + $0x608] sm:$0xff]  ;;  %v1577_v34 = vld [vmem:[%s9939_s26 + $0x610] sm:$0xff] }
 0x157   : > { %1574 = vst [vmem:[%s9944_s15 + $0x300] sm:$0xff] %v1573_v32  ;;  %1576 = vst [vmem:[%s9944_s15 + $0x308] sm:$0xff] %v1575_v33  ;;  %v1579_v35 = vld [vmem:[%s9939_s26 + $0x618] sm:$0xff]  ;;  %v1581_v36 = vld [vmem:[%s9939_s26 + $0x620] sm:$0xff] }
 0x158   : > { %1578 = vst [vmem:[%s9944_s15 + $0x310] sm:$0xff] %v1577_v34  ;;  %v1583_v37 = vld [vmem:[%s9939_s26 + $0x628] sm:$0xff]  ;;  %1580 = vst [vmem:[%s9944_s15 + $0x318] sm:$0xff] %v1579_v35  ;;  %v1585_v38 = vld [vmem:[%s9939_s26 + $0x630] sm:$0xff] }
 0x159   : > { %1582 = vst [vmem:[%s9944_s15 + $0x320] sm:$0xff] %v1581_v36  ;;  %1584 = vst [vmem:[%s9944_s15 + $0x328] sm:$0xff] %v1583_v37  ;;  %v1587_v39 = vld [vmem:[%s9939_s26 + $0x638] sm:$0xff]  ;;  %v1589_v40 = vld [vmem:[%s9939_s26 + $0x640] sm:$0xff] }
 0x15a   : > { %1586 = vst [vmem:[%s9944_s15 + $0x330] sm:$0xff] %v1585_v38  ;;  %1588 = vst [vmem:[%s9944_s15 + $0x338] sm:$0xff] %v1587_v39  ;;  %v1591_v41 = vld [vmem:[%s9939_s26 + $0x648] sm:$0xff]  ;;  %v1593_v42 = vld [vmem:[%s9939_s26 + $0x650] sm:$0xff] }
 0x15b   : > { %1590 = vst [vmem:[%s9944_s15 + $0x340] sm:$0xff] %v1589_v40  ;;  %v1595_v43 = vld [vmem:[%s9939_s26 + $0x658] sm:$0xff]  ;;  %1592 = vst [vmem:[%s9944_s15 + $0x348] sm:$0xff] %v1591_v41  ;;  %v1597_v44 = vld [vmem:[%s9939_s26 + $0x660] sm:$0xff] }
 0x15c   : > { %1594 = vst [vmem:[%s9944_s15 + $0x350] sm:$0xff] %v1593_v42  ;;  %1596 = vst [vmem:[%s9944_s15 + $0x358] sm:$0xff] %v1595_v43  ;;  %v1599_v45 = vld [vmem:[%s9939_s26 + $0x668] sm:$0xff]  ;;  %v1601_v46 = vld [vmem:[%s9939_s26 + $0x670] sm:$0xff] }
 0x15d   : > { %1598 = vst [vmem:[%s9944_s15 + $0x360] sm:$0xff] %v1597_v44  ;;  %1600 = vst [vmem:[%s9944_s15 + $0x368] sm:$0xff] %v1599_v45  ;;  %v1603_v47 = vld [vmem:[%s9939_s26 + $0x678] sm:$0xff]  ;;  %v1605_v48 = vld [vmem:[%s9939_s26 + $0x700] sm:$0xff] }
 0x15e   : > { %1602 = vst [vmem:[%s9944_s15 + $0x370] sm:$0xff] %v1601_v46  ;;  %v1607_v49 = vld [vmem:[%s9939_s26 + $0x708] sm:$0xff]  ;;  %1604 = vst [vmem:[%s9944_s15 + $0x378] sm:$0xff] %v1603_v47  ;;  %v1609_v50 = vld [vmem:[%s9939_s26 + $0x710] sm:$0xff] }
 0x15f   : > { %1606 = vst [vmem:[%s9944_s15 + $0x380] sm:$0xff] %v1605_v48  ;;  %1608 = vst [vmem:[%s9944_s15 + $0x388] sm:$0xff] %v1607_v49  ;;  %v1611_v51 = vld [vmem:[%s9939_s26 + $0x718] sm:$0xff]  ;;  %v1613_v52 = vld [vmem:[%s9939_s26 + $0x720] sm:$0xff] }
 0x160   : > { %1610 = vst [vmem:[%s9944_s15 + $0x390] sm:$0xff] %v1609_v50  ;;  %1612 = vst [vmem:[%s9944_s15 + $0x398] sm:$0xff] %v1611_v51  ;;  %v1615_v53 = vld [vmem:[%s9939_s26 + $0x728] sm:$0xff]  ;;  %v1617_v54 = vld [vmem:[%s9939_s26 + $0x730] sm:$0xff] }
 0x161   : > { %1614 = vst [vmem:[%s9944_s15 + $0x3a0] sm:$0xff] %v1613_v52  ;;  %v1619_v55 = vld [vmem:[%s9939_s26 + $0x738] sm:$0xff]  ;;  %1616 = vst [vmem:[%s9944_s15 + $0x3a8] sm:$0xff] %v1615_v53  ;;  %v1621_v56 = vld [vmem:[%s9939_s26 + $0x740] sm:$0xff] }
 0x162   : > { %1618 = vst [vmem:[%s9944_s15 + $0x3b0] sm:$0xff] %v1617_v54  ;;  %1620 = vst [vmem:[%s9944_s15 + $0x3b8] sm:$0xff] %v1619_v55  ;;  %v1623_v57 = vld [vmem:[%s9939_s26 + $0x748] sm:$0xff]  ;;  %v1625_v58 = vld [vmem:[%s9939_s26 + $0x750] sm:$0xff] }
 0x163   : > { %1622 = vst [vmem:[%s9944_s15 + $0x3c0] sm:$0xff] %v1621_v56  ;;  %1624 = vst [vmem:[%s9944_s15 + $0x3c8] sm:$0xff] %v1623_v57  ;;  %v1627_v59 = vld [vmem:[%s9939_s26 + $0x758] sm:$0xff]  ;;  %v1629_v60 = vld [vmem:[%s9939_s26 + $0x760] sm:$0xff] }
 0x164   : > { %1626 = vst [vmem:[%s9944_s15 + $0x3d0] sm:$0xff] %v1625_v58  ;;  %v1631_v61 = vld [vmem:[%s9939_s26 + $0x768] sm:$0xff]  ;;  %1628 = vst [vmem:[%s9944_s15 + $0x3d8] sm:$0xff] %v1627_v59  ;;  %v1633_v62 = vld [vmem:[%s9939_s26 + $0x770] sm:$0xff] }
 0x165   : > { %1630 = vst [vmem:[%s9944_s15 + $0x3e0] sm:$0xff] %v1629_v60  ;;  %1632 = vst [vmem:[%s9944_s15 + $0x3e8] sm:$0xff] %v1631_v61  ;;  %v1635_v63 = vld [vmem:[%s9939_s26 + $0x778] sm:$0xff]  ;;  %v1637_v0 = vld [vmem:[%s9939_s26 + $0x800] sm:$0xff] }
 0x166   : > { %1634 = vst [vmem:[%s9944_s15 + $0x3f0] sm:$0xff] %v1633_v62  ;;  %1636 = vst [vmem:[%s9944_s15 + $0x3f8] sm:$0xff] %v1635_v63  ;;  %v1639_v1 = vld [vmem:[%s9939_s26 + $0x808] sm:$0xff]  ;;  %v1641_v2 = vld [vmem:[%s9939_s26 + $0x810] sm:$0xff] }
 0x167   : > { %1638 = vst [vmem:[%s9944_s15 + $0x400] sm:$0xff] %v1637_v0  ;;  %v1643_v3 = vld [vmem:[%s9939_s26 + $0x818] sm:$0xff]  ;;  %1640 = vst [vmem:[%s9944_s15 + $0x408] sm:$0xff] %v1639_v1  ;;  %v1645_v4 = vld [vmem:[%s9939_s26 + $0x820] sm:$0xff] }
 0x168   : > { %1642 = vst [vmem:[%s9944_s15 + $0x410] sm:$0xff] %v1641_v2  ;;  %1644 = vst [vmem:[%s9944_s15 + $0x418] sm:$0xff] %v1643_v3  ;;  %v1647_v5 = vld [vmem:[%s9939_s26 + $0x828] sm:$0xff]  ;;  %v1649_v6 = vld [vmem:[%s9939_s26 + $0x830] sm:$0xff] }
 0x169   : > { %1646 = vst [vmem:[%s9944_s15 + $0x420] sm:$0xff] %v1645_v4  ;;  %1648 = vst [vmem:[%s9944_s15 + $0x428] sm:$0xff] %v1647_v5  ;;  %v1651_v7 = vld [vmem:[%s9939_s26 + $0x838] sm:$0xff]  ;;  %v1653_v8 = vld [vmem:[%s9939_s26 + $0x840] sm:$0xff] }
 0x16a   : > { %1650 = vst [vmem:[%s9944_s15 + $0x430] sm:$0xff] %v1649_v6  ;;  %v1655_v9 = vld [vmem:[%s9939_s26 + $0x848] sm:$0xff]  ;;  %1652 = vst [vmem:[%s9944_s15 + $0x438] sm:$0xff] %v1651_v7  ;;  %v1657_v10 = vld [vmem:[%s9939_s26 + $0x850] sm:$0xff] }
 0x16b   : > { %1654 = vst [vmem:[%s9944_s15 + $0x440] sm:$0xff] %v1653_v8  ;;  %1656 = vst [vmem:[%s9944_s15 + $0x448] sm:$0xff] %v1655_v9  ;;  %v1659_v11 = vld [vmem:[%s9939_s26 + $0x858] sm:$0xff]  ;;  %v1661_v12 = vld [vmem:[%s9939_s26 + $0x860] sm:$0xff] }
 0x16c   : > { %1658 = vst [vmem:[%s9944_s15 + $0x450] sm:$0xff] %v1657_v10  ;;  %1660 = vst [vmem:[%s9944_s15 + $0x458] sm:$0xff] %v1659_v11  ;;  %v1663_v13 = vld [vmem:[%s9939_s26 + $0x868] sm:$0xff]  ;;  %v1665_v14 = vld [vmem:[%s9939_s26 + $0x870] sm:$0xff] }
 0x16d   : > { %1662 = vst [vmem:[%s9944_s15 + $0x460] sm:$0xff] %v1661_v12  ;;  %v1667_v15 = vld [vmem:[%s9939_s26 + $0x878] sm:$0xff]  ;;  %1664 = vst [vmem:[%s9944_s15 + $0x468] sm:$0xff] %v1663_v13  ;;  %v1669_v16 = vld [vmem:[%s9939_s26 + $0x900] sm:$0xff] }
 0x16e   : > { %1666 = vst [vmem:[%s9944_s15 + $0x470] sm:$0xff] %v1665_v14  ;;  %1668 = vst [vmem:[%s9944_s15 + $0x478] sm:$0xff] %v1667_v15  ;;  %v1671_v17 = vld [vmem:[%s9939_s26 + $0x908] sm:$0xff]  ;;  %v1673_v18 = vld [vmem:[%s9939_s26 + $0x910] sm:$0xff] }
 0x16f   : > { %1670 = vst [vmem:[%s9944_s15 + $0x480] sm:$0xff] %v1669_v16  ;;  %1672 = vst [vmem:[%s9944_s15 + $0x488] sm:$0xff] %v1671_v17  ;;  %v1675_v19 = vld [vmem:[%s9939_s26 + $0x918] sm:$0xff]  ;;  %v1677_v20 = vld [vmem:[%s9939_s26 + $0x920] sm:$0xff] }
 0x170   : > { %1674 = vst [vmem:[%s9944_s15 + $0x490] sm:$0xff] %v1673_v18  ;;  %v1679_v21 = vld [vmem:[%s9939_s26 + $0x928] sm:$0xff]  ;;  %1676 = vst [vmem:[%s9944_s15 + $0x498] sm:$0xff] %v1675_v19  ;;  %v1681_v22 = vld [vmem:[%s9939_s26 + $0x930] sm:$0xff] }
 0x171   : > { %1678 = vst [vmem:[%s9944_s15 + $0x4a0] sm:$0xff] %v1677_v20  ;;  %1680 = vst [vmem:[%s9944_s15 + $0x4a8] sm:$0xff] %v1679_v21  ;;  %v1683_v23 = vld [vmem:[%s9939_s26 + $0x938] sm:$0xff]  ;;  %v1685_v24 = vld [vmem:[%s9939_s26 + $0x940] sm:$0xff] }
 0x172   : > { %1682 = vst [vmem:[%s9944_s15 + $0x4b0] sm:$0xff] %v1681_v22  ;;  %1684 = vst [vmem:[%s9944_s15 + $0x4b8] sm:$0xff] %v1683_v23  ;;  %v1687_v25 = vld [vmem:[%s9939_s26 + $0x948] sm:$0xff]  ;;  %v1689_v26 = vld [vmem:[%s9939_s26 + $0x950] sm:$0xff] }
 0x173   : > { %1686 = vst [vmem:[%s9944_s15 + $0x4c0] sm:$0xff] %v1685_v24  ;;  %v1691_v27 = vld [vmem:[%s9939_s26 + $0x958] sm:$0xff]  ;;  %1688 = vst [vmem:[%s9944_s15 + $0x4c8] sm:$0xff] %v1687_v25  ;;  %v1693_v28 = vld [vmem:[%s9939_s26 + $0x960] sm:$0xff] }
 0x174   : > { %1690 = vst [vmem:[%s9944_s15 + $0x4d0] sm:$0xff] %v1689_v26  ;;  %1692 = vst [vmem:[%s9944_s15 + $0x4d8] sm:$0xff] %v1691_v27  ;;  %v1695_v29 = vld [vmem:[%s9939_s26 + $0x968] sm:$0xff]  ;;  %v1697_v30 = vld [vmem:[%s9939_s26 + $0x970] sm:$0xff] }
 0x175   : > { %1694 = vst [vmem:[%s9944_s15 + $0x4e0] sm:$0xff] %v1693_v28  ;;  %1696 = vst [vmem:[%s9944_s15 + $0x4e8] sm:$0xff] %v1695_v29  ;;  %v1699_v31 = vld [vmem:[%s9939_s26 + $0x978] sm:$0xff]  ;;  %v1701_v32 = vld [vmem:[%s9939_s26 + $0xa00] sm:$0xff] }
 0x176   : > { %1698 = vst [vmem:[%s9944_s15 + $0x4f0] sm:$0xff] %v1697_v30  ;;  %v1703_v33 = vld [vmem:[%s9939_s26 + $0xa08] sm:$0xff]  ;;  %1700 = vst [vmem:[%s9944_s15 + $0x4f8] sm:$0xff] %v1699_v31  ;;  %v1705_v34 = vld [vmem:[%s9939_s26 + $0xa10] sm:$0xff] }
 0x177   : > { %1702 = vst [vmem:[%s9944_s15 + $0x500] sm:$0xff] %v1701_v32  ;;  %1704 = vst [vmem:[%s9944_s15 + $0x508] sm:$0xff] %v1703_v33  ;;  %v1707_v35 = vld [vmem:[%s9939_s26 + $0xa18] sm:$0xff]  ;;  %v1709_v36 = vld [vmem:[%s9939_s26 + $0xa20] sm:$0xff] }
 0x178   : > { %1706 = vst [vmem:[%s9944_s15 + $0x510] sm:$0xff] %v1705_v34  ;;  %1708 = vst [vmem:[%s9944_s15 + $0x518] sm:$0xff] %v1707_v35  ;;  %v1711_v37 = vld [vmem:[%s9939_s26 + $0xa28] sm:$0xff]  ;;  %v1713_v38 = vld [vmem:[%s9939_s26 + $0xa30] sm:$0xff] }
 0x179   : > { %1710 = vst [vmem:[%s9944_s15 + $0x520] sm:$0xff] %v1709_v36  ;;  %v1715_v39 = vld [vmem:[%s9939_s26 + $0xa38] sm:$0xff]  ;;  %1712 = vst [vmem:[%s9944_s15 + $0x528] sm:$0xff] %v1711_v37  ;;  %v1717_v40 = vld [vmem:[%s9939_s26 + $0xa40] sm:$0xff] }
 0x17a   : > { %1714 = vst [vmem:[%s9944_s15 + $0x530] sm:$0xff] %v1713_v38  ;;  %1716 = vst [vmem:[%s9944_s15 + $0x538] sm:$0xff] %v1715_v39  ;;  %v1719_v41 = vld [vmem:[%s9939_s26 + $0xa48] sm:$0xff]  ;;  %v1721_v42 = vld [vmem:[%s9939_s26 + $0xa50] sm:$0xff] }
 0x17b   : > { %1718 = vst [vmem:[%s9944_s15 + $0x540] sm:$0xff] %v1717_v40  ;;  %1720 = vst [vmem:[%s9944_s15 + $0x548] sm:$0xff] %v1719_v41  ;;  %v1723_v43 = vld [vmem:[%s9939_s26 + $0xa58] sm:$0xff]  ;;  %v1725_v44 = vld [vmem:[%s9939_s26 + $0xa60] sm:$0xff] }
 0x17c   : > { %1722 = vst [vmem:[%s9944_s15 + $0x550] sm:$0xff] %v1721_v42  ;;  %v1727_v45 = vld [vmem:[%s9939_s26 + $0xa68] sm:$0xff]  ;;  %1724 = vst [vmem:[%s9944_s15 + $0x558] sm:$0xff] %v1723_v43  ;;  %v1729_v46 = vld [vmem:[%s9939_s26 + $0xa70] sm:$0xff] }
 0x17d   : > { %1726 = vst [vmem:[%s9944_s15 + $0x560] sm:$0xff] %v1725_v44  ;;  %1728 = vst [vmem:[%s9944_s15 + $0x568] sm:$0xff] %v1727_v45  ;;  %v1731_v47 = vld [vmem:[%s9939_s26 + $0xa78] sm:$0xff]  ;;  %v1733_v48 = vld [vmem:[%s9939_s26 + $0xb00] sm:$0xff] }
 0x17e   : > { %1730 = vst [vmem:[%s9944_s15 + $0x570] sm:$0xff] %v1729_v46  ;;  %1732 = vst [vmem:[%s9944_s15 + $0x578] sm:$0xff] %v1731_v47  ;;  %v1735_v49 = vld [vmem:[%s9939_s26 + $0xb08] sm:$0xff]  ;;  %v1737_v50 = vld [vmem:[%s9939_s26 + $0xb10] sm:$0xff] }
 0x17f   : > { %1734 = vst [vmem:[%s9944_s15 + $0x580] sm:$0xff] %v1733_v48  ;;  %v1739_v51 = vld [vmem:[%s9939_s26 + $0xb18] sm:$0xff]  ;;  %1736 = vst [vmem:[%s9944_s15 + $0x588] sm:$0xff] %v1735_v49  ;;  %v1741_v52 = vld [vmem:[%s9939_s26 + $0xb20] sm:$0xff] }
 0x180   : > { %1738 = vst [vmem:[%s9944_s15 + $0x590] sm:$0xff] %v1737_v50  ;;  %1740 = vst [vmem:[%s9944_s15 + $0x598] sm:$0xff] %v1739_v51  ;;  %v1743_v53 = vld [vmem:[%s9939_s26 + $0xb28] sm:$0xff]  ;;  %v1745_v54 = vld [vmem:[%s9939_s26 + $0xb30] sm:$0xff] }
 0x181   : > { %1742 = vst [vmem:[%s9944_s15 + $0x5a0] sm:$0xff] %v1741_v52  ;;  %1744 = vst [vmem:[%s9944_s15 + $0x5a8] sm:$0xff] %v1743_v53  ;;  %v1747_v55 = vld [vmem:[%s9939_s26 + $0xb38] sm:$0xff]  ;;  %v1749_v56 = vld [vmem:[%s9939_s26 + $0xb40] sm:$0xff] }
 0x182   : > { %1746 = vst [vmem:[%s9944_s15 + $0x5b0] sm:$0xff] %v1745_v54  ;;  %v1751_v57 = vld [vmem:[%s9939_s26 + $0xb48] sm:$0xff]  ;;  %1748 = vst [vmem:[%s9944_s15 + $0x5b8] sm:$0xff] %v1747_v55  ;;  %v1753_v58 = vld [vmem:[%s9939_s26 + $0xb50] sm:$0xff] }
 0x183   : > { %1750 = vst [vmem:[%s9944_s15 + $0x5c0] sm:$0xff] %v1749_v56  ;;  %1752 = vst [vmem:[%s9944_s15 + $0x5c8] sm:$0xff] %v1751_v57  ;;  %v1755_v59 = vld [vmem:[%s9939_s26 + $0xb58] sm:$0xff]  ;;  %v1757_v60 = vld [vmem:[%s9939_s26 + $0xb60] sm:$0xff] }
 0x184   : > { %1754 = vst [vmem:[%s9944_s15 + $0x5d0] sm:$0xff] %v1753_v58  ;;  %1756 = vst [vmem:[%s9944_s15 + $0x5d8] sm:$0xff] %v1755_v59  ;;  %v1759_v61 = vld [vmem:[%s9939_s26 + $0xb68] sm:$0xff]  ;;  %v1761_v62 = vld [vmem:[%s9939_s26 + $0xb70] sm:$0xff] }
 0x185   : > { %1758 = vst [vmem:[%s9944_s15 + $0x5e0] sm:$0xff] %v1757_v60  ;;  %v1763_v63 = vld [vmem:[%s9939_s26 + $0xb78] sm:$0xff]  ;;  %1760 = vst [vmem:[%s9944_s15 + $0x5e8] sm:$0xff] %v1759_v61  ;;  %v1765_v0 = vld [vmem:[%s9939_s26 + $0xc00] sm:$0xff] }
 0x186   : > { %1762 = vst [vmem:[%s9944_s15 + $0x5f0] sm:$0xff] %v1761_v62  ;;  %1764 = vst [vmem:[%s9944_s15 + $0x5f8] sm:$0xff] %v1763_v63  ;;  %v1767_v1 = vld [vmem:[%s9939_s26 + $0xc08] sm:$0xff]  ;;  %v1769_v2 = vld [vmem:[%s9939_s26 + $0xc10] sm:$0xff] }
 0x187   : > { %1766 = vst [vmem:[%s9944_s15 + $0x600] sm:$0xff] %v1765_v0  ;;  %1768 = vst [vmem:[%s9944_s15 + $0x608] sm:$0xff] %v1767_v1  ;;  %v1771_v3 = vld [vmem:[%s9939_s26 + $0xc18] sm:$0xff]  ;;  %v1773_v4 = vld [vmem:[%s9939_s26 + $0xc20] sm:$0xff] }
 0x188   : > { %1770 = vst [vmem:[%s9944_s15 + $0x610] sm:$0xff] %v1769_v2  ;;  %v1775_v5 = vld [vmem:[%s9939_s26 + $0xc28] sm:$0xff]  ;;  %1772 = vst [vmem:[%s9944_s15 + $0x618] sm:$0xff] %v1771_v3  ;;  %v1777_v6 = vld [vmem:[%s9939_s26 + $0xc30] sm:$0xff] }
 0x189   : > { %1774 = vst [vmem:[%s9944_s15 + $0x620] sm:$0xff] %v1773_v4  ;;  %1776 = vst [vmem:[%s9944_s15 + $0x628] sm:$0xff] %v1775_v5  ;;  %v1779_v7 = vld [vmem:[%s9939_s26 + $0xc38] sm:$0xff]  ;;  %v1781_v8 = vld [vmem:[%s9939_s26 + $0xc40] sm:$0xff] }
 0x18a   : > { %1778 = vst [vmem:[%s9944_s15 + $0x630] sm:$0xff] %v1777_v6  ;;  %1780 = vst [vmem:[%s9944_s15 + $0x638] sm:$0xff] %v1779_v7  ;;  %v1783_v9 = vld [vmem:[%s9939_s26 + $0xc48] sm:$0xff]  ;;  %v1785_v10 = vld [vmem:[%s9939_s26 + $0xc50] sm:$0xff] }
 0x18b   : > { %1782 = vst [vmem:[%s9944_s15 + $0x640] sm:$0xff] %v1781_v8  ;;  %v1787_v11 = vld [vmem:[%s9939_s26 + $0xc58] sm:$0xff]  ;;  %1784 = vst [vmem:[%s9944_s15 + $0x648] sm:$0xff] %v1783_v9  ;;  %v1789_v12 = vld [vmem:[%s9939_s26 + $0xc60] sm:$0xff] }
 0x18c   : > { %1786 = vst [vmem:[%s9944_s15 + $0x650] sm:$0xff] %v1785_v10  ;;  %1788 = vst [vmem:[%s9944_s15 + $0x658] sm:$0xff] %v1787_v11  ;;  %v1791_v13 = vld [vmem:[%s9939_s26 + $0xc68] sm:$0xff]  ;;  %v1793_v14 = vld [vmem:[%s9939_s26 + $0xc70] sm:$0xff] }
 0x18d   : > { %1790 = vst [vmem:[%s9944_s15 + $0x660] sm:$0xff] %v1789_v12  ;;  %1792 = vst [vmem:[%s9944_s15 + $0x668] sm:$0xff] %v1791_v13  ;;  %v1795_v15 = vld [vmem:[%s9939_s26 + $0xc78] sm:$0xff]  ;;  %v1797_v16 = vld [vmem:[%s9939_s26 + $0xd00] sm:$0xff] }
 0x18e   : > { %1794 = vst [vmem:[%s9944_s15 + $0x670] sm:$0xff] %v1793_v14  ;;  %v1799_v17 = vld [vmem:[%s9939_s26 + $0xd08] sm:$0xff]  ;;  %1796 = vst [vmem:[%s9944_s15 + $0x678] sm:$0xff] %v1795_v15  ;;  %v1801_v18 = vld [vmem:[%s9939_s26 + $0xd10] sm:$0xff] }
 0x18f   : > { %1798 = vst [vmem:[%s9944_s15 + $0x680] sm:$0xff] %v1797_v16  ;;  %1800 = vst [vmem:[%s9944_s15 + $0x688] sm:$0xff] %v1799_v17  ;;  %v1803_v19 = vld [vmem:[%s9939_s26 + $0xd18] sm:$0xff]  ;;  %v1805_v20 = vld [vmem:[%s9939_s26 + $0xd20] sm:$0xff] }
 0x190   : > { %1802 = vst [vmem:[%s9944_s15 + $0x690] sm:$0xff] %v1801_v18  ;;  %1804 = vst [vmem:[%s9944_s15 + $0x698] sm:$0xff] %v1803_v19  ;;  %v1807_v21 = vld [vmem:[%s9939_s26 + $0xd28] sm:$0xff]  ;;  %v1809_v22 = vld [vmem:[%s9939_s26 + $0xd30] sm:$0xff] }
 0x191   : > { %1806 = vst [vmem:[%s9944_s15 + $0x6a0] sm:$0xff] %v1805_v20  ;;  %v1811_v23 = vld [vmem:[%s9939_s26 + $0xd38] sm:$0xff]  ;;  %1808 = vst [vmem:[%s9944_s15 + $0x6a8] sm:$0xff] %v1807_v21  ;;  %v1813_v24 = vld [vmem:[%s9939_s26 + $0xd40] sm:$0xff] }
 0x192   : > { %1810 = vst [vmem:[%s9944_s15 + $0x6b0] sm:$0xff] %v1809_v22  ;;  %1812 = vst [vmem:[%s9944_s15 + $0x6b8] sm:$0xff] %v1811_v23  ;;  %v1815_v25 = vld [vmem:[%s9939_s26 + $0xd48] sm:$0xff]  ;;  %v1817_v26 = vld [vmem:[%s9939_s26 + $0xd50] sm:$0xff] }
 0x193   : > { %1814 = vst [vmem:[%s9944_s15 + $0x6c0] sm:$0xff] %v1813_v24  ;;  %1816 = vst [vmem:[%s9944_s15 + $0x6c8] sm:$0xff] %v1815_v25  ;;  %v1819_v27 = vld [vmem:[%s9939_s26 + $0xd58] sm:$0xff]  ;;  %v1821_v28 = vld [vmem:[%s9939_s26 + $0xd60] sm:$0xff] }
 0x194   : > { %1818 = vst [vmem:[%s9944_s15 + $0x6d0] sm:$0xff] %v1817_v26  ;;  %v1823_v29 = vld [vmem:[%s9939_s26 + $0xd68] sm:$0xff]  ;;  %1820 = vst [vmem:[%s9944_s15 + $0x6d8] sm:$0xff] %v1819_v27  ;;  %v1825_v30 = vld [vmem:[%s9939_s26 + $0xd70] sm:$0xff] }
 0x195   : > { %1822 = vst [vmem:[%s9944_s15 + $0x6e0] sm:$0xff] %v1821_v28  ;;  %1824 = vst [vmem:[%s9944_s15 + $0x6e8] sm:$0xff] %v1823_v29  ;;  %v1827_v31 = vld [vmem:[%s9939_s26 + $0xd78] sm:$0xff]  ;;  %v1829_v32 = vld [vmem:[%s9939_s26 + $0xe00] sm:$0xff] }
 0x196   : > { %1826 = vst [vmem:[%s9944_s15 + $0x6f0] sm:$0xff] %v1825_v30  ;;  %1828 = vst [vmem:[%s9944_s15 + $0x6f8] sm:$0xff] %v1827_v31  ;;  %v1831_v33 = vld [vmem:[%s9939_s26 + $0xe08] sm:$0xff]  ;;  %v1833_v34 = vld [vmem:[%s9939_s26 + $0xe10] sm:$0xff] }
 0x197   : > { %1830 = vst [vmem:[%s9944_s15 + $0x700] sm:$0xff] %v1829_v32  ;;  %v1835_v35 = vld [vmem:[%s9939_s26 + $0xe18] sm:$0xff]  ;;  %1832 = vst [vmem:[%s9944_s15 + $0x708] sm:$0xff] %v1831_v33  ;;  %v1837_v36 = vld [vmem:[%s9939_s26 + $0xe20] sm:$0xff] }
 0x198   : > { %1834 = vst [vmem:[%s9944_s15 + $0x710] sm:$0xff] %v1833_v34  ;;  %1836 = vst [vmem:[%s9944_s15 + $0x718] sm:$0xff] %v1835_v35  ;;  %v1839_v37 = vld [vmem:[%s9939_s26 + $0xe28] sm:$0xff]  ;;  %v1841_v38 = vld [vmem:[%s9939_s26 + $0xe30] sm:$0xff] }
 0x199   : > { %1838 = vst [vmem:[%s9944_s15 + $0x720] sm:$0xff] %v1837_v36  ;;  %1840 = vst [vmem:[%s9944_s15 + $0x728] sm:$0xff] %v1839_v37  ;;  %v1843_v39 = vld [vmem:[%s9939_s26 + $0xe38] sm:$0xff]  ;;  %v1845_v40 = vld [vmem:[%s9939_s26 + $0xe40] sm:$0xff] }
 0x19a   : > { %1842 = vst [vmem:[%s9944_s15 + $0x730] sm:$0xff] %v1841_v38  ;;  %v1847_v41 = vld [vmem:[%s9939_s26 + $0xe48] sm:$0xff]  ;;  %1844 = vst [vmem:[%s9944_s15 + $0x738] sm:$0xff] %v1843_v39  ;;  %v1849_v42 = vld [vmem:[%s9939_s26 + $0xe50] sm:$0xff] }
 0x19b   : > { %1846 = vst [vmem:[%s9944_s15 + $0x740] sm:$0xff] %v1845_v40  ;;  %1848 = vst [vmem:[%s9944_s15 + $0x748] sm:$0xff] %v1847_v41  ;;  %v1851_v43 = vld [vmem:[%s9939_s26 + $0xe58] sm:$0xff]  ;;  %v1853_v44 = vld [vmem:[%s9939_s26 + $0xe60] sm:$0xff] }
 0x19c   : > { %1850 = vst [vmem:[%s9944_s15 + $0x750] sm:$0xff] %v1849_v42  ;;  %1852 = vst [vmem:[%s9944_s15 + $0x758] sm:$0xff] %v1851_v43  ;;  %v1855_v45 = vld [vmem:[%s9939_s26 + $0xe68] sm:$0xff]  ;;  %v1857_v46 = vld [vmem:[%s9939_s26 + $0xe70] sm:$0xff] }
 0x19d   : > { %1854 = vst [vmem:[%s9944_s15 + $0x760] sm:$0xff] %v1853_v44  ;;  %v1859_v47 = vld [vmem:[%s9939_s26 + $0xe78] sm:$0xff]  ;;  %1856 = vst [vmem:[%s9944_s15 + $0x768] sm:$0xff] %v1855_v45  ;;  %v1861_v48 = vld [vmem:[%s9939_s26 + $0xf00] sm:$0xff] }
 0x19e   : > { %1858 = vst [vmem:[%s9944_s15 + $0x770] sm:$0xff] %v1857_v46  ;;  %1860 = vst [vmem:[%s9944_s15 + $0x778] sm:$0xff] %v1859_v47  ;;  %v1863_v49 = vld [vmem:[%s9939_s26 + $0xf08] sm:$0xff]  ;;  %v1865_v50 = vld [vmem:[%s9939_s26 + $0xf10] sm:$0xff] }
 0x19f   : > { %1862 = vst [vmem:[%s9944_s15 + $0x780] sm:$0xff] %v1861_v48  ;;  %1864 = vst [vmem:[%s9944_s15 + $0x788] sm:$0xff] %v1863_v49  ;;  %v1867_v51 = vld [vmem:[%s9939_s26 + $0xf18] sm:$0xff]  ;;  %v1869_v52 = vld [vmem:[%s9939_s26 + $0xf20] sm:$0xff] }
 0x1a0   : > { %1866 = vst [vmem:[%s9944_s15 + $0x790] sm:$0xff] %v1865_v50  ;;  %v1871_v53 = vld [vmem:[%s9939_s26 + $0xf28] sm:$0xff]  ;;  %1868 = vst [vmem:[%s9944_s15 + $0x798] sm:$0xff] %v1867_v51  ;;  %v1873_v54 = vld [vmem:[%s9939_s26 + $0xf30] sm:$0xff] }
 0x1a1   : > { %1870 = vst [vmem:[%s9944_s15 + $0x7a0] sm:$0xff] %v1869_v52  ;;  %1872 = vst [vmem:[%s9944_s15 + $0x7a8] sm:$0xff] %v1871_v53  ;;  %v1875_v55 = vld [vmem:[%s9939_s26 + $0xf38] sm:$0xff]  ;;  %v1877_v56 = vld [vmem:[%s9939_s26 + $0xf40] sm:$0xff] }
 0x1a2   : > { %1874 = vst [vmem:[%s9944_s15 + $0x7b0] sm:$0xff] %v1873_v54  ;;  %1876 = vst [vmem:[%s9944_s15 + $0x7b8] sm:$0xff] %v1875_v55  ;;  %v1879_v57 = vld [vmem:[%s9939_s26 + $0xf48] sm:$0xff]  ;;  %v1881_v58 = vld [vmem:[%s9939_s26 + $0xf50] sm:$0xff] }
 0x1a3   : > { %1878 = vst [vmem:[%s9944_s15 + $0x7c0] sm:$0xff] %v1877_v56  ;;  %v1883_v59 = vld [vmem:[%s9939_s26 + $0xf58] sm:$0xff]  ;;  %1880 = vst [vmem:[%s9944_s15 + $0x7c8] sm:$0xff] %v1879_v57  ;;  %v1885_v60 = vld [vmem:[%s9939_s26 + $0xf60] sm:$0xff] }
 0x1a4   : > { %1882 = vst [vmem:[%s9944_s15 + $0x7d0] sm:$0xff] %v1881_v58  ;;  %1884 = vst [vmem:[%s9944_s15 + $0x7d8] sm:$0xff] %v1883_v59  ;;  %v1887_v61 = vld [vmem:[%s9939_s26 + $0xf68] sm:$0xff]  ;;  %v1889_v62 = vld [vmem:[%s9939_s26 + $0xf70] sm:$0xff] }
 0x1a5   : > { %1886 = vst [vmem:[%s9944_s15 + $0x7e0] sm:$0xff] %v1885_v60  ;;  %1888 = vst [vmem:[%s9944_s15 + $0x7e8] sm:$0xff] %v1887_v61  ;;  %v1891_v63 = vld [vmem:[%s9939_s26 + $0xf78] sm:$0xff] }
 0x1a6   : > { %1890 = vst [vmem:[%s9944_s15 + $0x7f0] sm:$0xff] %v1889_v62  ;;  %1892 = vst [vmem:[%s9944_s15 + $0x7f8] sm:$0xff] %v1891_v63 }
 0x1a7 PF: > { %1898 = sbr.rel (!%p8868_p3) target bundleno = 558 (0x22e), region = 105  ;;  %s1900_s16 = sand.u32 (%p8868_p3), 1, %s8751_s28  }
 0x1a8   : > { %s8435_s17 = sshll.u32 (%p8868_p3), %s8763_s9, 4  ;;  %s8434_s18 = sshll.u32 (%p8868_p3), %s1900_s16, 11 }
 0x1a9   : > { %s8436_s20 = sshll.u32 (%p8868_p3), %s8767_s10, 9  ;;  %s10468_s14 = scalar_lea.vmem (%p8868_p3), [#allocation7], %s8434_s18 }
 0x1aa   : > { %s1905_s21 = sadd.s32 (%p8868_p3), %s8436_s20, %s8435_s17 }
 0x1ab   : > { %s8437_s22 = sshll.u32 (%p8868_p3), %s1905_s21, 3 }
 0x1ac   : > { %s10463_s25 = scalar_lea.vmem (%p8868_p3), %s13454_s3, %s8437_s22 }
 0x1ad   : > { %v1920_v0 = vld [vmem:[%s10463_s25] sm:$0xff] (%p8868_p3)  ;;  %v1922_v1 = vld [vmem:[%s10463_s25 + $0x8] sm:$0xff] (%p8868_p3)  ;;  %v1924_v2 = vld [vmem:[%s10463_s25 + $0x10] sm:$0xff] (%p8868_p3) }
 0x1ae   : > { %1921 = vst [vmem:[%s10468_s14] sm:$0xff] %v1920_v0  ;;  %1923 = vst [vmem:[%s10468_s14 + $0x8] sm:$0xff] %v1922_v1  ;;  %v1926_v3 = vld [vmem:[%s10463_s25 + $0x18] sm:$0xff]  ;;  %v1928_v4 = vld [vmem:[%s10463_s25 + $0x20] sm:$0xff] }
 0x1af   : > { %1925 = vst [vmem:[%s10468_s14 + $0x10] sm:$0xff] %v1924_v2  ;;  %v1930_v5 = vld [vmem:[%s10463_s25 + $0x28] sm:$0xff]  ;;  %1927 = vst [vmem:[%s10468_s14 + $0x18] sm:$0xff] %v1926_v3  ;;  %v1932_v6 = vld [vmem:[%s10463_s25 + $0x30] sm:$0xff] }
 0x1b0   : > { %1929 = vst [vmem:[%s10468_s14 + $0x20] sm:$0xff] %v1928_v4  ;;  %1931 = vst [vmem:[%s10468_s14 + $0x28] sm:$0xff] %v1930_v5  ;;  %v1934_v7 = vld [vmem:[%s10463_s25 + $0x38] sm:$0xff]  ;;  %v1936_v8 = vld [vmem:[%s10463_s25 + $0x40] sm:$0xff] }
 0x1b1   : > { %1933 = vst [vmem:[%s10468_s14 + $0x30] sm:$0xff] %v1932_v6  ;;  %1935 = vst [vmem:[%s10468_s14 + $0x38] sm:$0xff] %v1934_v7  ;;  %v1938_v9 = vld [vmem:[%s10463_s25 + $0x48] sm:$0xff]  ;;  %v1940_v10 = vld [vmem:[%s10463_s25 + $0x50] sm:$0xff] }
 0x1b2   : > { %1937 = vst [vmem:[%s10468_s14 + $0x40] sm:$0xff] %v1936_v8  ;;  %v1942_v11 = vld [vmem:[%s10463_s25 + $0x58] sm:$0xff]  ;;  %1939 = vst [vmem:[%s10468_s14 + $0x48] sm:$0xff] %v1938_v9  ;;  %v1944_v12 = vld [vmem:[%s10463_s25 + $0x60] sm:$0xff] }
 0x1b3   : > { %1941 = vst [vmem:[%s10468_s14 + $0x50] sm:$0xff] %v1940_v10  ;;  %1943 = vst [vmem:[%s10468_s14 + $0x58] sm:$0xff] %v1942_v11  ;;  %v1946_v13 = vld [vmem:[%s10463_s25 + $0x68] sm:$0xff]  ;;  %v1948_v14 = vld [vmem:[%s10463_s25 + $0x70] sm:$0xff] }
 0x1b4   : > { %1945 = vst [vmem:[%s10468_s14 + $0x60] sm:$0xff] %v1944_v12  ;;  %1947 = vst [vmem:[%s10468_s14 + $0x68] sm:$0xff] %v1946_v13  ;;  %v1950_v15 = vld [vmem:[%s10463_s25 + $0x78] sm:$0xff]  ;;  %v1952_v16 = vld [vmem:[%s10463_s25 + $0x100] sm:$0xff] }
 0x1b5   : > { %1949 = vst [vmem:[%s10468_s14 + $0x70] sm:$0xff] %v1948_v14  ;;  %v1954_v17 = vld [vmem:[%s10463_s25 + $0x108] sm:$0xff]  ;;  %1951 = vst [vmem:[%s10468_s14 + $0x78] sm:$0xff] %v1950_v15  ;;  %v1956_v18 = vld [vmem:[%s10463_s25 + $0x110] sm:$0xff] }
 0x1b6   : > { %1953 = vst [vmem:[%s10468_s14 + $0x80] sm:$0xff] %v1952_v16  ;;  %1955 = vst [vmem:[%s10468_s14 + $0x88] sm:$0xff] %v1954_v17  ;;  %v1958_v19 = vld [vmem:[%s10463_s25 + $0x118] sm:$0xff]  ;;  %v1960_v20 = vld [vmem:[%s10463_s25 + $0x120] sm:$0xff] }
 0x1b7   : > { %1957 = vst [vmem:[%s10468_s14 + $0x90] sm:$0xff] %v1956_v18  ;;  %1959 = vst [vmem:[%s10468_s14 + $0x98] sm:$0xff] %v1958_v19  ;;  %v1962_v21 = vld [vmem:[%s10463_s25 + $0x128] sm:$0xff]  ;;  %v1964_v22 = vld [vmem:[%s10463_s25 + $0x130] sm:$0xff] }
 0x1b8   : > { %1961 = vst [vmem:[%s10468_s14 + $0xa0] sm:$0xff] %v1960_v20  ;;  %v1966_v23 = vld [vmem:[%s10463_s25 + $0x138] sm:$0xff]  ;;  %1963 = vst [vmem:[%s10468_s14 + $0xa8] sm:$0xff] %v1962_v21  ;;  %v1968_v24 = vld [vmem:[%s10463_s25 + $0x140] sm:$0xff] }
 0x1b9   : > { %1965 = vst [vmem:[%s10468_s14 + $0xb0] sm:$0xff] %v1964_v22  ;;  %1967 = vst [vmem:[%s10468_s14 + $0xb8] sm:$0xff] %v1966_v23  ;;  %v1970_v25 = vld [vmem:[%s10463_s25 + $0x148] sm:$0xff]  ;;  %v1972_v26 = vld [vmem:[%s10463_s25 + $0x150] sm:$0xff] }
 0x1ba   : > { %1969 = vst [vmem:[%s10468_s14 + $0xc0] sm:$0xff] %v1968_v24  ;;  %1971 = vst [vmem:[%s10468_s14 + $0xc8] sm:$0xff] %v1970_v25  ;;  %v1974_v27 = vld [vmem:[%s10463_s25 + $0x158] sm:$0xff]  ;;  %v1976_v28 = vld [vmem:[%s10463_s25 + $0x160] sm:$0xff] }
 0x1bb   : > { %1973 = vst [vmem:[%s10468_s14 + $0xd0] sm:$0xff] %v1972_v26  ;;  %v1978_v29 = vld [vmem:[%s10463_s25 + $0x168] sm:$0xff]  ;;  %1975 = vst [vmem:[%s10468_s14 + $0xd8] sm:$0xff] %v1974_v27  ;;  %v1980_v30 = vld [vmem:[%s10463_s25 + $0x170] sm:$0xff] }
 0x1bc   : > { %1977 = vst [vmem:[%s10468_s14 + $0xe0] sm:$0xff] %v1976_v28  ;;  %1979 = vst [vmem:[%s10468_s14 + $0xe8] sm:$0xff] %v1978_v29  ;;  %v1982_v31 = vld [vmem:[%s10463_s25 + $0x178] sm:$0xff]  ;;  %v1984_v32 = vld [vmem:[%s10463_s25 + $0x200] sm:$0xff] }
 0x1bd   : > { %1981 = vst [vmem:[%s10468_s14 + $0xf0] sm:$0xff] %v1980_v30  ;;  %1983 = vst [vmem:[%s10468_s14 + $0xf8] sm:$0xff] %v1982_v31  ;;  %v1986_v33 = vld [vmem:[%s10463_s25 + $0x208] sm:$0xff]  ;;  %v1988_v34 = vld [vmem:[%s10463_s25 + $0x210] sm:$0xff] }
 0x1be   : > { %1985 = vst [vmem:[%s10468_s14 + $0x100] sm:$0xff] %v1984_v32  ;;  %v1990_v35 = vld [vmem:[%s10463_s25 + $0x218] sm:$0xff]  ;;  %1987 = vst [vmem:[%s10468_s14 + $0x108] sm:$0xff] %v1986_v33  ;;  %v1992_v36 = vld [vmem:[%s10463_s25 + $0x220] sm:$0xff] }
 0x1bf   : > { %1989 = vst [vmem:[%s10468_s14 + $0x110] sm:$0xff] %v1988_v34  ;;  %1991 = vst [vmem:[%s10468_s14 + $0x118] sm:$0xff] %v1990_v35  ;;  %v1994_v37 = vld [vmem:[%s10463_s25 + $0x228] sm:$0xff]  ;;  %v1996_v38 = vld [vmem:[%s10463_s25 + $0x230] sm:$0xff] }
 0x1c0   : > { %1993 = vst [vmem:[%s10468_s14 + $0x120] sm:$0xff] %v1992_v36  ;;  %1995 = vst [vmem:[%s10468_s14 + $0x128] sm:$0xff] %v1994_v37  ;;  %v1998_v39 = vld [vmem:[%s10463_s25 + $0x238] sm:$0xff]  ;;  %v2000_v40 = vld [vmem:[%s10463_s25 + $0x240] sm:$0xff] }
 0x1c1   : > { %1997 = vst [vmem:[%s10468_s14 + $0x130] sm:$0xff] %v1996_v38  ;;  %v2002_v41 = vld [vmem:[%s10463_s25 + $0x248] sm:$0xff]  ;;  %1999 = vst [vmem:[%s10468_s14 + $0x138] sm:$0xff] %v1998_v39  ;;  %v2004_v42 = vld [vmem:[%s10463_s25 + $0x250] sm:$0xff] }
 0x1c2   : > { %2001 = vst [vmem:[%s10468_s14 + $0x140] sm:$0xff] %v2000_v40  ;;  %2003 = vst [vmem:[%s10468_s14 + $0x148] sm:$0xff] %v2002_v41  ;;  %v2006_v43 = vld [vmem:[%s10463_s25 + $0x258] sm:$0xff]  ;;  %v2008_v44 = vld [vmem:[%s10463_s25 + $0x260] sm:$0xff] }
 0x1c3   : > { %2005 = vst [vmem:[%s10468_s14 + $0x150] sm:$0xff] %v2004_v42  ;;  %2007 = vst [vmem:[%s10468_s14 + $0x158] sm:$0xff] %v2006_v43  ;;  %v2010_v45 = vld [vmem:[%s10463_s25 + $0x268] sm:$0xff]  ;;  %v2012_v46 = vld [vmem:[%s10463_s25 + $0x270] sm:$0xff] }
 0x1c4   : > { %2009 = vst [vmem:[%s10468_s14 + $0x160] sm:$0xff] %v2008_v44  ;;  %v2014_v47 = vld [vmem:[%s10463_s25 + $0x278] sm:$0xff]  ;;  %2011 = vst [vmem:[%s10468_s14 + $0x168] sm:$0xff] %v2010_v45  ;;  %v2016_v48 = vld [vmem:[%s10463_s25 + $0x300] sm:$0xff] }
 0x1c5   : > { %2013 = vst [vmem:[%s10468_s14 + $0x170] sm:$0xff] %v2012_v46  ;;  %2015 = vst [vmem:[%s10468_s14 + $0x178] sm:$0xff] %v2014_v47  ;;  %v2018_v49 = vld [vmem:[%s10463_s25 + $0x308] sm:$0xff]  ;;  %v2020_v50 = vld [vmem:[%s10463_s25 + $0x310] sm:$0xff] }
 0x1c6   : > { %2017 = vst [vmem:[%s10468_s14 + $0x180] sm:$0xff] %v2016_v48  ;;  %2019 = vst [vmem:[%s10468_s14 + $0x188] sm:$0xff] %v2018_v49  ;;  %v2022_v51 = vld [vmem:[%s10463_s25 + $0x318] sm:$0xff]  ;;  %v2024_v52 = vld [vmem:[%s10463_s25 + $0x320] sm:$0xff] }
 0x1c7   : > { %2021 = vst [vmem:[%s10468_s14 + $0x190] sm:$0xff] %v2020_v50  ;;  %v2026_v53 = vld [vmem:[%s10463_s25 + $0x328] sm:$0xff]  ;;  %2023 = vst [vmem:[%s10468_s14 + $0x198] sm:$0xff] %v2022_v51  ;;  %v2028_v54 = vld [vmem:[%s10463_s25 + $0x330] sm:$0xff] }
 0x1c8   : > { %2025 = vst [vmem:[%s10468_s14 + $0x1a0] sm:$0xff] %v2024_v52  ;;  %2027 = vst [vmem:[%s10468_s14 + $0x1a8] sm:$0xff] %v2026_v53  ;;  %v2030_v55 = vld [vmem:[%s10463_s25 + $0x338] sm:$0xff]  ;;  %v2032_v56 = vld [vmem:[%s10463_s25 + $0x340] sm:$0xff] }
 0x1c9   : > { %2029 = vst [vmem:[%s10468_s14 + $0x1b0] sm:$0xff] %v2028_v54  ;;  %2031 = vst [vmem:[%s10468_s14 + $0x1b8] sm:$0xff] %v2030_v55  ;;  %v2034_v57 = vld [vmem:[%s10463_s25 + $0x348] sm:$0xff]  ;;  %v2036_v58 = vld [vmem:[%s10463_s25 + $0x350] sm:$0xff] }
 0x1ca   : > { %2033 = vst [vmem:[%s10468_s14 + $0x1c0] sm:$0xff] %v2032_v56  ;;  %v2038_v59 = vld [vmem:[%s10463_s25 + $0x358] sm:$0xff]  ;;  %2035 = vst [vmem:[%s10468_s14 + $0x1c8] sm:$0xff] %v2034_v57  ;;  %v2040_v60 = vld [vmem:[%s10463_s25 + $0x360] sm:$0xff] }
 0x1cb   : > { %2037 = vst [vmem:[%s10468_s14 + $0x1d0] sm:$0xff] %v2036_v58  ;;  %2039 = vst [vmem:[%s10468_s14 + $0x1d8] sm:$0xff] %v2038_v59  ;;  %v2042_v61 = vld [vmem:[%s10463_s25 + $0x368] sm:$0xff]  ;;  %v2044_v62 = vld [vmem:[%s10463_s25 + $0x370] sm:$0xff] }
 0x1cc   : > { %2041 = vst [vmem:[%s10468_s14 + $0x1e0] sm:$0xff] %v2040_v60  ;;  %2043 = vst [vmem:[%s10468_s14 + $0x1e8] sm:$0xff] %v2042_v61  ;;  %v2046_v63 = vld [vmem:[%s10463_s25 + $0x378] sm:$0xff]  ;;  %v2048_v0 = vld [vmem:[%s10463_s25 + $0x400] sm:$0xff] }
 0x1cd   : > { %2045 = vst [vmem:[%s10468_s14 + $0x1f0] sm:$0xff] %v2044_v62  ;;  %v2050_v1 = vld [vmem:[%s10463_s25 + $0x408] sm:$0xff]  ;;  %2047 = vst [vmem:[%s10468_s14 + $0x1f8] sm:$0xff] %v2046_v63  ;;  %v2052_v2 = vld [vmem:[%s10463_s25 + $0x410] sm:$0xff] }
 0x1ce   : > { %2049 = vst [vmem:[%s10468_s14 + $0x200] sm:$0xff] %v2048_v0  ;;  %2051 = vst [vmem:[%s10468_s14 + $0x208] sm:$0xff] %v2050_v1  ;;  %v2054_v3 = vld [vmem:[%s10463_s25 + $0x418] sm:$0xff]  ;;  %v2056_v4 = vld [vmem:[%s10463_s25 + $0x420] sm:$0xff] }
 0x1cf   : > { %2053 = vst [vmem:[%s10468_s14 + $0x210] sm:$0xff] %v2052_v2  ;;  %2055 = vst [vmem:[%s10468_s14 + $0x218] sm:$0xff] %v2054_v3  ;;  %v2058_v5 = vld [vmem:[%s10463_s25 + $0x428] sm:$0xff]  ;;  %v2060_v6 = vld [vmem:[%s10463_s25 + $0x430] sm:$0xff] }
 0x1d0   : > { %2057 = vst [vmem:[%s10468_s14 + $0x220] sm:$0xff] %v2056_v4  ;;  %v2062_v7 = vld [vmem:[%s10463_s25 + $0x438] sm:$0xff]  ;;  %2059 = vst [vmem:[%s10468_s14 + $0x228] sm:$0xff] %v2058_v5  ;;  %v2064_v8 = vld [vmem:[%s10463_s25 + $0x440] sm:$0xff] }
 0x1d1   : > { %2061 = vst [vmem:[%s10468_s14 + $0x230] sm:$0xff] %v2060_v6  ;;  %2063 = vst [vmem:[%s10468_s14 + $0x238] sm:$0xff] %v2062_v7  ;;  %v2066_v9 = vld [vmem:[%s10463_s25 + $0x448] sm:$0xff]  ;;  %v2068_v10 = vld [vmem:[%s10463_s25 + $0x450] sm:$0xff] }
 0x1d2   : > { %2065 = vst [vmem:[%s10468_s14 + $0x240] sm:$0xff] %v2064_v8  ;;  %2067 = vst [vmem:[%s10468_s14 + $0x248] sm:$0xff] %v2066_v9  ;;  %v2070_v11 = vld [vmem:[%s10463_s25 + $0x458] sm:$0xff]  ;;  %v2072_v12 = vld [vmem:[%s10463_s25 + $0x460] sm:$0xff] }
 0x1d3   : > { %2069 = vst [vmem:[%s10468_s14 + $0x250] sm:$0xff] %v2068_v10  ;;  %v2074_v13 = vld [vmem:[%s10463_s25 + $0x468] sm:$0xff]  ;;  %2071 = vst [vmem:[%s10468_s14 + $0x258] sm:$0xff] %v2070_v11  ;;  %v2076_v14 = vld [vmem:[%s10463_s25 + $0x470] sm:$0xff] }
 0x1d4   : > { %2073 = vst [vmem:[%s10468_s14 + $0x260] sm:$0xff] %v2072_v12  ;;  %2075 = vst [vmem:[%s10468_s14 + $0x268] sm:$0xff] %v2074_v13  ;;  %v2078_v15 = vld [vmem:[%s10463_s25 + $0x478] sm:$0xff]  ;;  %v2080_v16 = vld [vmem:[%s10463_s25 + $0x500] sm:$0xff] }
 0x1d5   : > { %2077 = vst [vmem:[%s10468_s14 + $0x270] sm:$0xff] %v2076_v14  ;;  %2079 = vst [vmem:[%s10468_s14 + $0x278] sm:$0xff] %v2078_v15  ;;  %v2082_v17 = vld [vmem:[%s10463_s25 + $0x508] sm:$0xff]  ;;  %v2084_v18 = vld [vmem:[%s10463_s25 + $0x510] sm:$0xff] }
 0x1d6   : > { %2081 = vst [vmem:[%s10468_s14 + $0x280] sm:$0xff] %v2080_v16  ;;  %v2086_v19 = vld [vmem:[%s10463_s25 + $0x518] sm:$0xff]  ;;  %2083 = vst [vmem:[%s10468_s14 + $0x288] sm:$0xff] %v2082_v17  ;;  %v2088_v20 = vld [vmem:[%s10463_s25 + $0x520] sm:$0xff] }
 0x1d7   : > { %2085 = vst [vmem:[%s10468_s14 + $0x290] sm:$0xff] %v2084_v18  ;;  %2087 = vst [vmem:[%s10468_s14 + $0x298] sm:$0xff] %v2086_v19  ;;  %v2090_v21 = vld [vmem:[%s10463_s25 + $0x528] sm:$0xff]  ;;  %v2092_v22 = vld [vmem:[%s10463_s25 + $0x530] sm:$0xff] }
 0x1d8   : > { %2089 = vst [vmem:[%s10468_s14 + $0x2a0] sm:$0xff] %v2088_v20  ;;  %2091 = vst [vmem:[%s10468_s14 + $0x2a8] sm:$0xff] %v2090_v21  ;;  %v2094_v23 = vld [vmem:[%s10463_s25 + $0x538] sm:$0xff]  ;;  %v2096_v24 = vld [vmem:[%s10463_s25 + $0x540] sm:$0xff] }
 0x1d9   : > { %2093 = vst [vmem:[%s10468_s14 + $0x2b0] sm:$0xff] %v2092_v22  ;;  %v2098_v25 = vld [vmem:[%s10463_s25 + $0x548] sm:$0xff]  ;;  %2095 = vst [vmem:[%s10468_s14 + $0x2b8] sm:$0xff] %v2094_v23  ;;  %v2100_v26 = vld [vmem:[%s10463_s25 + $0x550] sm:$0xff] }
 0x1da   : > { %2097 = vst [vmem:[%s10468_s14 + $0x2c0] sm:$0xff] %v2096_v24  ;;  %2099 = vst [vmem:[%s10468_s14 + $0x2c8] sm:$0xff] %v2098_v25  ;;  %v2102_v27 = vld [vmem:[%s10463_s25 + $0x558] sm:$0xff]  ;;  %v2104_v28 = vld [vmem:[%s10463_s25 + $0x560] sm:$0xff] }
 0x1db   : > { %2101 = vst [vmem:[%s10468_s14 + $0x2d0] sm:$0xff] %v2100_v26  ;;  %2103 = vst [vmem:[%s10468_s14 + $0x2d8] sm:$0xff] %v2102_v27  ;;  %v2106_v29 = vld [vmem:[%s10463_s25 + $0x568] sm:$0xff]  ;;  %v2108_v30 = vld [vmem:[%s10463_s25 + $0x570] sm:$0xff] }
 0x1dc   : > { %2105 = vst [vmem:[%s10468_s14 + $0x2e0] sm:$0xff] %v2104_v28  ;;  %v2110_v31 = vld [vmem:[%s10463_s25 + $0x578] sm:$0xff]  ;;  %2107 = vst [vmem:[%s10468_s14 + $0x2e8] sm:$0xff] %v2106_v29  ;;  %v2112_v32 = vld [vmem:[%s10463_s25 + $0x600] sm:$0xff] }
 0x1dd   : > { %2109 = vst [vmem:[%s10468_s14 + $0x2f0] sm:$0xff] %v2108_v30  ;;  %2111 = vst [vmem:[%s10468_s14 + $0x2f8] sm:$0xff] %v2110_v31  ;;  %v2114_v33 = vld [vmem:[%s10463_s25 + $0x608] sm:$0xff]  ;;  %v2116_v34 = vld [vmem:[%s10463_s25 + $0x610] sm:$0xff] }
 0x1de   : > { %2113 = vst [vmem:[%s10468_s14 + $0x300] sm:$0xff] %v2112_v32  ;;  %2115 = vst [vmem:[%s10468_s14 + $0x308] sm:$0xff] %v2114_v33  ;;  %v2118_v35 = vld [vmem:[%s10463_s25 + $0x618] sm:$0xff]  ;;  %v2120_v36 = vld [vmem:[%s10463_s25 + $0x620] sm:$0xff] }
 0x1df   : > { %2117 = vst [vmem:[%s10468_s14 + $0x310] sm:$0xff] %v2116_v34  ;;  %v2122_v37 = vld [vmem:[%s10463_s25 + $0x628] sm:$0xff]  ;;  %2119 = vst [vmem:[%s10468_s14 + $0x318] sm:$0xff] %v2118_v35  ;;  %v2124_v38 = vld [vmem:[%s10463_s25 + $0x630] sm:$0xff] }
 0x1e0   : > { %2121 = vst [vmem:[%s10468_s14 + $0x320] sm:$0xff] %v2120_v36  ;;  %2123 = vst [vmem:[%s10468_s14 + $0x328] sm:$0xff] %v2122_v37  ;;  %v2126_v39 = vld [vmem:[%s10463_s25 + $0x638] sm:$0xff]  ;;  %v2128_v40 = vld [vmem:[%s10463_s25 + $0x640] sm:$0xff] }
 0x1e1   : > { %2125 = vst [vmem:[%s10468_s14 + $0x330] sm:$0xff] %v2124_v38  ;;  %2127 = vst [vmem:[%s10468_s14 + $0x338] sm:$0xff] %v2126_v39  ;;  %v2130_v41 = vld [vmem:[%s10463_s25 + $0x648] sm:$0xff]  ;;  %v2132_v42 = vld [vmem:[%s10463_s25 + $0x650] sm:$0xff] }
 0x1e2   : > { %2129 = vst [vmem:[%s10468_s14 + $0x340] sm:$0xff] %v2128_v40  ;;  %v2134_v43 = vld [vmem:[%s10463_s25 + $0x658] sm:$0xff]  ;;  %2131 = vst [vmem:[%s10468_s14 + $0x348] sm:$0xff] %v2130_v41  ;;  %v2136_v44 = vld [vmem:[%s10463_s25 + $0x660] sm:$0xff] }
 0x1e3   : > { %2133 = vst [vmem:[%s10468_s14 + $0x350] sm:$0xff] %v2132_v42  ;;  %2135 = vst [vmem:[%s10468_s14 + $0x358] sm:$0xff] %v2134_v43  ;;  %v2138_v45 = vld [vmem:[%s10463_s25 + $0x668] sm:$0xff]  ;;  %v2140_v46 = vld [vmem:[%s10463_s25 + $0x670] sm:$0xff] }
 0x1e4   : > { %2137 = vst [vmem:[%s10468_s14 + $0x360] sm:$0xff] %v2136_v44  ;;  %2139 = vst [vmem:[%s10468_s14 + $0x368] sm:$0xff] %v2138_v45  ;;  %v2142_v47 = vld [vmem:[%s10463_s25 + $0x678] sm:$0xff]  ;;  %v2144_v48 = vld [vmem:[%s10463_s25 + $0x700] sm:$0xff] }
 0x1e5   : > { %2141 = vst [vmem:[%s10468_s14 + $0x370] sm:$0xff] %v2140_v46  ;;  %v2146_v49 = vld [vmem:[%s10463_s25 + $0x708] sm:$0xff]  ;;  %2143 = vst [vmem:[%s10468_s14 + $0x378] sm:$0xff] %v2142_v47  ;;  %v2148_v50 = vld [vmem:[%s10463_s25 + $0x710] sm:$0xff] }
 0x1e6   : > { %2145 = vst [vmem:[%s10468_s14 + $0x380] sm:$0xff] %v2144_v48  ;;  %2147 = vst [vmem:[%s10468_s14 + $0x388] sm:$0xff] %v2146_v49  ;;  %v2150_v51 = vld [vmem:[%s10463_s25 + $0x718] sm:$0xff]  ;;  %v2152_v52 = vld [vmem:[%s10463_s25 + $0x720] sm:$0xff] }
 0x1e7   : > { %2149 = vst [vmem:[%s10468_s14 + $0x390] sm:$0xff] %v2148_v50  ;;  %2151 = vst [vmem:[%s10468_s14 + $0x398] sm:$0xff] %v2150_v51  ;;  %v2154_v53 = vld [vmem:[%s10463_s25 + $0x728] sm:$0xff]  ;;  %v2156_v54 = vld [vmem:[%s10463_s25 + $0x730] sm:$0xff] }
 0x1e8   : > { %2153 = vst [vmem:[%s10468_s14 + $0x3a0] sm:$0xff] %v2152_v52  ;;  %v2158_v55 = vld [vmem:[%s10463_s25 + $0x738] sm:$0xff]  ;;  %2155 = vst [vmem:[%s10468_s14 + $0x3a8] sm:$0xff] %v2154_v53  ;;  %v2160_v56 = vld [vmem:[%s10463_s25 + $0x740] sm:$0xff] }
 0x1e9   : > { %2157 = vst [vmem:[%s10468_s14 + $0x3b0] sm:$0xff] %v2156_v54  ;;  %2159 = vst [vmem:[%s10468_s14 + $0x3b8] sm:$0xff] %v2158_v55  ;;  %v2162_v57 = vld [vmem:[%s10463_s25 + $0x748] sm:$0xff]  ;;  %v2164_v58 = vld [vmem:[%s10463_s25 + $0x750] sm:$0xff] }
 0x1ea   : > { %2161 = vst [vmem:[%s10468_s14 + $0x3c0] sm:$0xff] %v2160_v56  ;;  %2163 = vst [vmem:[%s10468_s14 + $0x3c8] sm:$0xff] %v2162_v57  ;;  %v2166_v59 = vld [vmem:[%s10463_s25 + $0x758] sm:$0xff]  ;;  %v2168_v60 = vld [vmem:[%s10463_s25 + $0x760] sm:$0xff] }
 0x1eb   : > { %2165 = vst [vmem:[%s10468_s14 + $0x3d0] sm:$0xff] %v2164_v58  ;;  %v2170_v61 = vld [vmem:[%s10463_s25 + $0x768] sm:$0xff]  ;;  %2167 = vst [vmem:[%s10468_s14 + $0x3d8] sm:$0xff] %v2166_v59  ;;  %v2172_v62 = vld [vmem:[%s10463_s25 + $0x770] sm:$0xff] }
 0x1ec   : > { %2169 = vst [vmem:[%s10468_s14 + $0x3e0] sm:$0xff] %v2168_v60  ;;  %2171 = vst [vmem:[%s10468_s14 + $0x3e8] sm:$0xff] %v2170_v61  ;;  %v2174_v63 = vld [vmem:[%s10463_s25 + $0x778] sm:$0xff]  ;;  %v2176_v0 = vld [vmem:[%s10463_s25 + $0x800] sm:$0xff] }
 0x1ed   : > { %2173 = vst [vmem:[%s10468_s14 + $0x3f0] sm:$0xff] %v2172_v62  ;;  %2175 = vst [vmem:[%s10468_s14 + $0x3f8] sm:$0xff] %v2174_v63  ;;  %v2178_v1 = vld [vmem:[%s10463_s25 + $0x808] sm:$0xff]  ;;  %v2180_v2 = vld [vmem:[%s10463_s25 + $0x810] sm:$0xff] }
 0x1ee   : > { %2177 = vst [vmem:[%s10468_s14 + $0x400] sm:$0xff] %v2176_v0  ;;  %v2182_v3 = vld [vmem:[%s10463_s25 + $0x818] sm:$0xff]  ;;  %2179 = vst [vmem:[%s10468_s14 + $0x408] sm:$0xff] %v2178_v1  ;;  %v2184_v4 = vld [vmem:[%s10463_s25 + $0x820] sm:$0xff] }
 0x1ef   : > { %2181 = vst [vmem:[%s10468_s14 + $0x410] sm:$0xff] %v2180_v2  ;;  %2183 = vst [vmem:[%s10468_s14 + $0x418] sm:$0xff] %v2182_v3  ;;  %v2186_v5 = vld [vmem:[%s10463_s25 + $0x828] sm:$0xff]  ;;  %v2188_v6 = vld [vmem:[%s10463_s25 + $0x830] sm:$0xff] }
 0x1f0   : > { %2185 = vst [vmem:[%s10468_s14 + $0x420] sm:$0xff] %v2184_v4  ;;  %2187 = vst [vmem:[%s10468_s14 + $0x428] sm:$0xff] %v2186_v5  ;;  %v2190_v7 = vld [vmem:[%s10463_s25 + $0x838] sm:$0xff]  ;;  %v2192_v8 = vld [vmem:[%s10463_s25 + $0x840] sm:$0xff] }
 0x1f1   : > { %2189 = vst [vmem:[%s10468_s14 + $0x430] sm:$0xff] %v2188_v6  ;;  %v2194_v9 = vld [vmem:[%s10463_s25 + $0x848] sm:$0xff]  ;;  %2191 = vst [vmem:[%s10468_s14 + $0x438] sm:$0xff] %v2190_v7  ;;  %v2196_v10 = vld [vmem:[%s10463_s25 + $0x850] sm:$0xff] }
 0x1f2   : > { %2193 = vst [vmem:[%s10468_s14 + $0x440] sm:$0xff] %v2192_v8  ;;  %2195 = vst [vmem:[%s10468_s14 + $0x448] sm:$0xff] %v2194_v9  ;;  %v2198_v11 = vld [vmem:[%s10463_s25 + $0x858] sm:$0xff]  ;;  %v2200_v12 = vld [vmem:[%s10463_s25 + $0x860] sm:$0xff] }
 0x1f3   : > { %2197 = vst [vmem:[%s10468_s14 + $0x450] sm:$0xff] %v2196_v10  ;;  %2199 = vst [vmem:[%s10468_s14 + $0x458] sm:$0xff] %v2198_v11  ;;  %v2202_v13 = vld [vmem:[%s10463_s25 + $0x868] sm:$0xff]  ;;  %v2204_v14 = vld [vmem:[%s10463_s25 + $0x870] sm:$0xff] }
 0x1f4   : > { %2201 = vst [vmem:[%s10468_s14 + $0x460] sm:$0xff] %v2200_v12  ;;  %v2206_v15 = vld [vmem:[%s10463_s25 + $0x878] sm:$0xff]  ;;  %2203 = vst [vmem:[%s10468_s14 + $0x468] sm:$0xff] %v2202_v13  ;;  %v2208_v16 = vld [vmem:[%s10463_s25 + $0x900] sm:$0xff] }
 0x1f5   : > { %2205 = vst [vmem:[%s10468_s14 + $0x470] sm:$0xff] %v2204_v14  ;;  %2207 = vst [vmem:[%s10468_s14 + $0x478] sm:$0xff] %v2206_v15  ;;  %v2210_v17 = vld [vmem:[%s10463_s25 + $0x908] sm:$0xff]  ;;  %v2212_v18 = vld [vmem:[%s10463_s25 + $0x910] sm:$0xff] }
 0x1f6   : > { %2209 = vst [vmem:[%s10468_s14 + $0x480] sm:$0xff] %v2208_v16  ;;  %2211 = vst [vmem:[%s10468_s14 + $0x488] sm:$0xff] %v2210_v17  ;;  %v2214_v19 = vld [vmem:[%s10463_s25 + $0x918] sm:$0xff]  ;;  %v2216_v20 = vld [vmem:[%s10463_s25 + $0x920] sm:$0xff] }
 0x1f7   : > { %2213 = vst [vmem:[%s10468_s14 + $0x490] sm:$0xff] %v2212_v18  ;;  %v2218_v21 = vld [vmem:[%s10463_s25 + $0x928] sm:$0xff]  ;;  %2215 = vst [vmem:[%s10468_s14 + $0x498] sm:$0xff] %v2214_v19  ;;  %v2220_v22 = vld [vmem:[%s10463_s25 + $0x930] sm:$0xff] }
 0x1f8   : > { %2217 = vst [vmem:[%s10468_s14 + $0x4a0] sm:$0xff] %v2216_v20  ;;  %2219 = vst [vmem:[%s10468_s14 + $0x4a8] sm:$0xff] %v2218_v21  ;;  %v2222_v23 = vld [vmem:[%s10463_s25 + $0x938] sm:$0xff]  ;;  %v2224_v24 = vld [vmem:[%s10463_s25 + $0x940] sm:$0xff] }
 0x1f9   : > { %2221 = vst [vmem:[%s10468_s14 + $0x4b0] sm:$0xff] %v2220_v22  ;;  %2223 = vst [vmem:[%s10468_s14 + $0x4b8] sm:$0xff] %v2222_v23  ;;  %v2226_v25 = vld [vmem:[%s10463_s25 + $0x948] sm:$0xff]  ;;  %v2228_v26 = vld [vmem:[%s10463_s25 + $0x950] sm:$0xff] }
 0x1fa   : > { %2225 = vst [vmem:[%s10468_s14 + $0x4c0] sm:$0xff] %v2224_v24  ;;  %v2230_v27 = vld [vmem:[%s10463_s25 + $0x958] sm:$0xff]  ;;  %2227 = vst [vmem:[%s10468_s14 + $0x4c8] sm:$0xff] %v2226_v25  ;;  %v2232_v28 = vld [vmem:[%s10463_s25 + $0x960] sm:$0xff] }
 0x1fb   : > { %2229 = vst [vmem:[%s10468_s14 + $0x4d0] sm:$0xff] %v2228_v26  ;;  %2231 = vst [vmem:[%s10468_s14 + $0x4d8] sm:$0xff] %v2230_v27  ;;  %v2234_v29 = vld [vmem:[%s10463_s25 + $0x968] sm:$0xff]  ;;  %v2236_v30 = vld [vmem:[%s10463_s25 + $0x970] sm:$0xff] }
 0x1fc   : > { %2233 = vst [vmem:[%s10468_s14 + $0x4e0] sm:$0xff] %v2232_v28  ;;  %2235 = vst [vmem:[%s10468_s14 + $0x4e8] sm:$0xff] %v2234_v29  ;;  %v2238_v31 = vld [vmem:[%s10463_s25 + $0x978] sm:$0xff]  ;;  %v2240_v32 = vld [vmem:[%s10463_s25 + $0xa00] sm:$0xff] }
 0x1fd   : > { %2237 = vst [vmem:[%s10468_s14 + $0x4f0] sm:$0xff] %v2236_v30  ;;  %v2242_v33 = vld [vmem:[%s10463_s25 + $0xa08] sm:$0xff]  ;;  %2239 = vst [vmem:[%s10468_s14 + $0x4f8] sm:$0xff] %v2238_v31  ;;  %v2244_v34 = vld [vmem:[%s10463_s25 + $0xa10] sm:$0xff] }
 0x1fe   : > { %2241 = vst [vmem:[%s10468_s14 + $0x500] sm:$0xff] %v2240_v32  ;;  %2243 = vst [vmem:[%s10468_s14 + $0x508] sm:$0xff] %v2242_v33  ;;  %v2246_v35 = vld [vmem:[%s10463_s25 + $0xa18] sm:$0xff]  ;;  %v2248_v36 = vld [vmem:[%s10463_s25 + $0xa20] sm:$0xff] }
 0x1ff   : > { %2245 = vst [vmem:[%s10468_s14 + $0x510] sm:$0xff] %v2244_v34  ;;  %2247 = vst [vmem:[%s10468_s14 + $0x518] sm:$0xff] %v2246_v35  ;;  %v2250_v37 = vld [vmem:[%s10463_s25 + $0xa28] sm:$0xff]  ;;  %v2252_v38 = vld [vmem:[%s10463_s25 + $0xa30] sm:$0xff] }
 0x200   : > { %2249 = vst [vmem:[%s10468_s14 + $0x520] sm:$0xff] %v2248_v36  ;;  %v2254_v39 = vld [vmem:[%s10463_s25 + $0xa38] sm:$0xff]  ;;  %2251 = vst [vmem:[%s10468_s14 + $0x528] sm:$0xff] %v2250_v37  ;;  %v2256_v40 = vld [vmem:[%s10463_s25 + $0xa40] sm:$0xff] }
 0x201   : > { %2253 = vst [vmem:[%s10468_s14 + $0x530] sm:$0xff] %v2252_v38  ;;  %2255 = vst [vmem:[%s10468_s14 + $0x538] sm:$0xff] %v2254_v39  ;;  %v2258_v41 = vld [vmem:[%s10463_s25 + $0xa48] sm:$0xff]  ;;  %v2260_v42 = vld [vmem:[%s10463_s25 + $0xa50] sm:$0xff] }
 0x202   : > { %2257 = vst [vmem:[%s10468_s14 + $0x540] sm:$0xff] %v2256_v40  ;;  %2259 = vst [vmem:[%s10468_s14 + $0x548] sm:$0xff] %v2258_v41  ;;  %v2262_v43 = vld [vmem:[%s10463_s25 + $0xa58] sm:$0xff]  ;;  %v2264_v44 = vld [vmem:[%s10463_s25 + $0xa60] sm:$0xff] }
 0x203   : > { %2261 = vst [vmem:[%s10468_s14 + $0x550] sm:$0xff] %v2260_v42  ;;  %v2266_v45 = vld [vmem:[%s10463_s25 + $0xa68] sm:$0xff]  ;;  %2263 = vst [vmem:[%s10468_s14 + $0x558] sm:$0xff] %v2262_v43  ;;  %v2268_v46 = vld [vmem:[%s10463_s25 + $0xa70] sm:$0xff] }
 0x204   : > { %2265 = vst [vmem:[%s10468_s14 + $0x560] sm:$0xff] %v2264_v44  ;;  %2267 = vst [vmem:[%s10468_s14 + $0x568] sm:$0xff] %v2266_v45  ;;  %v2270_v47 = vld [vmem:[%s10463_s25 + $0xa78] sm:$0xff]  ;;  %v2272_v48 = vld [vmem:[%s10463_s25 + $0xb00] sm:$0xff] }
 0x205   : > { %2269 = vst [vmem:[%s10468_s14 + $0x570] sm:$0xff] %v2268_v46  ;;  %2271 = vst [vmem:[%s10468_s14 + $0x578] sm:$0xff] %v2270_v47  ;;  %v2274_v49 = vld [vmem:[%s10463_s25 + $0xb08] sm:$0xff]  ;;  %v2276_v50 = vld [vmem:[%s10463_s25 + $0xb10] sm:$0xff] }
 0x206   : > { %2273 = vst [vmem:[%s10468_s14 + $0x580] sm:$0xff] %v2272_v48  ;;  %v2278_v51 = vld [vmem:[%s10463_s25 + $0xb18] sm:$0xff]  ;;  %2275 = vst [vmem:[%s10468_s14 + $0x588] sm:$0xff] %v2274_v49  ;;  %v2280_v52 = vld [vmem:[%s10463_s25 + $0xb20] sm:$0xff] }
 0x207   : > { %2277 = vst [vmem:[%s10468_s14 + $0x590] sm:$0xff] %v2276_v50  ;;  %2279 = vst [vmem:[%s10468_s14 + $0x598] sm:$0xff] %v2278_v51  ;;  %v2282_v53 = vld [vmem:[%s10463_s25 + $0xb28] sm:$0xff]  ;;  %v2284_v54 = vld [vmem:[%s10463_s25 + $0xb30] sm:$0xff] }
 0x208   : > { %2281 = vst [vmem:[%s10468_s14 + $0x5a0] sm:$0xff] %v2280_v52  ;;  %2283 = vst [vmem:[%s10468_s14 + $0x5a8] sm:$0xff] %v2282_v53  ;;  %v2286_v55 = vld [vmem:[%s10463_s25 + $0xb38] sm:$0xff]  ;;  %v2288_v56 = vld [vmem:[%s10463_s25 + $0xb40] sm:$0xff] }
 0x209   : > { %2285 = vst [vmem:[%s10468_s14 + $0x5b0] sm:$0xff] %v2284_v54  ;;  %v2290_v57 = vld [vmem:[%s10463_s25 + $0xb48] sm:$0xff]  ;;  %2287 = vst [vmem:[%s10468_s14 + $0x5b8] sm:$0xff] %v2286_v55  ;;  %v2292_v58 = vld [vmem:[%s10463_s25 + $0xb50] sm:$0xff] }
 0x20a   : > { %2289 = vst [vmem:[%s10468_s14 + $0x5c0] sm:$0xff] %v2288_v56  ;;  %2291 = vst [vmem:[%s10468_s14 + $0x5c8] sm:$0xff] %v2290_v57  ;;  %v2294_v59 = vld [vmem:[%s10463_s25 + $0xb58] sm:$0xff]  ;;  %v2296_v60 = vld [vmem:[%s10463_s25 + $0xb60] sm:$0xff] }
 0x20b   : > { %2293 = vst [vmem:[%s10468_s14 + $0x5d0] sm:$0xff] %v2292_v58  ;;  %2295 = vst [vmem:[%s10468_s14 + $0x5d8] sm:$0xff] %v2294_v59  ;;  %v2298_v61 = vld [vmem:[%s10463_s25 + $0xb68] sm:$0xff]  ;;  %v2300_v62 = vld [vmem:[%s10463_s25 + $0xb70] sm:$0xff] }
 0x20c   : > { %2297 = vst [vmem:[%s10468_s14 + $0x5e0] sm:$0xff] %v2296_v60  ;;  %v2302_v63 = vld [vmem:[%s10463_s25 + $0xb78] sm:$0xff]  ;;  %2299 = vst [vmem:[%s10468_s14 + $0x5e8] sm:$0xff] %v2298_v61  ;;  %v2304_v0 = vld [vmem:[%s10463_s25 + $0xc00] sm:$0xff] }
 0x20d   : > { %2301 = vst [vmem:[%s10468_s14 + $0x5f0] sm:$0xff] %v2300_v62  ;;  %2303 = vst [vmem:[%s10468_s14 + $0x5f8] sm:$0xff] %v2302_v63  ;;  %v2306_v1 = vld [vmem:[%s10463_s25 + $0xc08] sm:$0xff]  ;;  %v2308_v2 = vld [vmem:[%s10463_s25 + $0xc10] sm:$0xff] }
 0x20e   : > { %2305 = vst [vmem:[%s10468_s14 + $0x600] sm:$0xff] %v2304_v0  ;;  %2307 = vst [vmem:[%s10468_s14 + $0x608] sm:$0xff] %v2306_v1  ;;  %v2310_v3 = vld [vmem:[%s10463_s25 + $0xc18] sm:$0xff]  ;;  %v2312_v4 = vld [vmem:[%s10463_s25 + $0xc20] sm:$0xff] }
 0x20f   : > { %2309 = vst [vmem:[%s10468_s14 + $0x610] sm:$0xff] %v2308_v2  ;;  %v2314_v5 = vld [vmem:[%s10463_s25 + $0xc28] sm:$0xff]  ;;  %2311 = vst [vmem:[%s10468_s14 + $0x618] sm:$0xff] %v2310_v3  ;;  %v2316_v6 = vld [vmem:[%s10463_s25 + $0xc30] sm:$0xff] }
 0x210   : > { %2313 = vst [vmem:[%s10468_s14 + $0x620] sm:$0xff] %v2312_v4  ;;  %2315 = vst [vmem:[%s10468_s14 + $0x628] sm:$0xff] %v2314_v5  ;;  %v2318_v7 = vld [vmem:[%s10463_s25 + $0xc38] sm:$0xff]  ;;  %v2320_v8 = vld [vmem:[%s10463_s25 + $0xc40] sm:$0xff] }
 0x211   : > { %2317 = vst [vmem:[%s10468_s14 + $0x630] sm:$0xff] %v2316_v6  ;;  %2319 = vst [vmem:[%s10468_s14 + $0x638] sm:$0xff] %v2318_v7  ;;  %v2322_v9 = vld [vmem:[%s10463_s25 + $0xc48] sm:$0xff]  ;;  %v2324_v10 = vld [vmem:[%s10463_s25 + $0xc50] sm:$0xff] }
 0x212   : > { %2321 = vst [vmem:[%s10468_s14 + $0x640] sm:$0xff] %v2320_v8  ;;  %v2326_v11 = vld [vmem:[%s10463_s25 + $0xc58] sm:$0xff]  ;;  %2323 = vst [vmem:[%s10468_s14 + $0x648] sm:$0xff] %v2322_v9  ;;  %v2328_v12 = vld [vmem:[%s10463_s25 + $0xc60] sm:$0xff] }
 0x213   : > { %2325 = vst [vmem:[%s10468_s14 + $0x650] sm:$0xff] %v2324_v10  ;;  %2327 = vst [vmem:[%s10468_s14 + $0x658] sm:$0xff] %v2326_v11  ;;  %v2330_v13 = vld [vmem:[%s10463_s25 + $0xc68] sm:$0xff]  ;;  %v2332_v14 = vld [vmem:[%s10463_s25 + $0xc70] sm:$0xff] }
 0x214   : > { %2329 = vst [vmem:[%s10468_s14 + $0x660] sm:$0xff] %v2328_v12  ;;  %2331 = vst [vmem:[%s10468_s14 + $0x668] sm:$0xff] %v2330_v13  ;;  %v2334_v15 = vld [vmem:[%s10463_s25 + $0xc78] sm:$0xff]  ;;  %v2336_v16 = vld [vmem:[%s10463_s25 + $0xd00] sm:$0xff] }
 0x215   : > { %2333 = vst [vmem:[%s10468_s14 + $0x670] sm:$0xff] %v2332_v14  ;;  %v2338_v17 = vld [vmem:[%s10463_s25 + $0xd08] sm:$0xff]  ;;  %2335 = vst [vmem:[%s10468_s14 + $0x678] sm:$0xff] %v2334_v15  ;;  %v2340_v18 = vld [vmem:[%s10463_s25 + $0xd10] sm:$0xff] }
 0x216   : > { %2337 = vst [vmem:[%s10468_s14 + $0x680] sm:$0xff] %v2336_v16  ;;  %2339 = vst [vmem:[%s10468_s14 + $0x688] sm:$0xff] %v2338_v17  ;;  %v2342_v19 = vld [vmem:[%s10463_s25 + $0xd18] sm:$0xff]  ;;  %v2344_v20 = vld [vmem:[%s10463_s25 + $0xd20] sm:$0xff] }
 0x217   : > { %2341 = vst [vmem:[%s10468_s14 + $0x690] sm:$0xff] %v2340_v18  ;;  %2343 = vst [vmem:[%s10468_s14 + $0x698] sm:$0xff] %v2342_v19  ;;  %v2346_v21 = vld [vmem:[%s10463_s25 + $0xd28] sm:$0xff]  ;;  %v2348_v22 = vld [vmem:[%s10463_s25 + $0xd30] sm:$0xff] }
 0x218   : > { %2345 = vst [vmem:[%s10468_s14 + $0x6a0] sm:$0xff] %v2344_v20  ;;  %v2350_v23 = vld [vmem:[%s10463_s25 + $0xd38] sm:$0xff]  ;;  %2347 = vst [vmem:[%s10468_s14 + $0x6a8] sm:$0xff] %v2346_v21  ;;  %v2352_v24 = vld [vmem:[%s10463_s25 + $0xd40] sm:$0xff] }
 0x219   : > { %2349 = vst [vmem:[%s10468_s14 + $0x6b0] sm:$0xff] %v2348_v22  ;;  %2351 = vst [vmem:[%s10468_s14 + $0x6b8] sm:$0xff] %v2350_v23  ;;  %v2354_v25 = vld [vmem:[%s10463_s25 + $0xd48] sm:$0xff]  ;;  %v2356_v26 = vld [vmem:[%s10463_s25 + $0xd50] sm:$0xff] }
 0x21a   : > { %2353 = vst [vmem:[%s10468_s14 + $0x6c0] sm:$0xff] %v2352_v24  ;;  %2355 = vst [vmem:[%s10468_s14 + $0x6c8] sm:$0xff] %v2354_v25  ;;  %v2358_v27 = vld [vmem:[%s10463_s25 + $0xd58] sm:$0xff]  ;;  %v2360_v28 = vld [vmem:[%s10463_s25 + $0xd60] sm:$0xff] }
 0x21b   : > { %2357 = vst [vmem:[%s10468_s14 + $0x6d0] sm:$0xff] %v2356_v26  ;;  %v2362_v29 = vld [vmem:[%s10463_s25 + $0xd68] sm:$0xff]  ;;  %2359 = vst [vmem:[%s10468_s14 + $0x6d8] sm:$0xff] %v2358_v27  ;;  %v2364_v30 = vld [vmem:[%s10463_s25 + $0xd70] sm:$0xff] }
 0x21c   : > { %2361 = vst [vmem:[%s10468_s14 + $0x6e0] sm:$0xff] %v2360_v28  ;;  %2363 = vst [vmem:[%s10468_s14 + $0x6e8] sm:$0xff] %v2362_v29  ;;  %v2366_v31 = vld [vmem:[%s10463_s25 + $0xd78] sm:$0xff]  ;;  %v2368_v32 = vld [vmem:[%s10463_s25 + $0xe00] sm:$0xff] }
 0x21d   : > { %2365 = vst [vmem:[%s10468_s14 + $0x6f0] sm:$0xff] %v2364_v30  ;;  %2367 = vst [vmem:[%s10468_s14 + $0x6f8] sm:$0xff] %v2366_v31  ;;  %v2370_v33 = vld [vmem:[%s10463_s25 + $0xe08] sm:$0xff]  ;;  %v2372_v34 = vld [vmem:[%s10463_s25 + $0xe10] sm:$0xff] }
 0x21e   : > { %2369 = vst [vmem:[%s10468_s14 + $0x700] sm:$0xff] %v2368_v32  ;;  %v2374_v35 = vld [vmem:[%s10463_s25 + $0xe18] sm:$0xff]  ;;  %2371 = vst [vmem:[%s10468_s14 + $0x708] sm:$0xff] %v2370_v33  ;;  %v2376_v36 = vld [vmem:[%s10463_s25 + $0xe20] sm:$0xff] }
 0x21f   : > { %2373 = vst [vmem:[%s10468_s14 + $0x710] sm:$0xff] %v2372_v34  ;;  %2375 = vst [vmem:[%s10468_s14 + $0x718] sm:$0xff] %v2374_v35  ;;  %v2378_v37 = vld [vmem:[%s10463_s25 + $0xe28] sm:$0xff]  ;;  %v2380_v38 = vld [vmem:[%s10463_s25 + $0xe30] sm:$0xff] }
 0x220   : > { %2377 = vst [vmem:[%s10468_s14 + $0x720] sm:$0xff] %v2376_v36  ;;  %2379 = vst [vmem:[%s10468_s14 + $0x728] sm:$0xff] %v2378_v37  ;;  %v2382_v39 = vld [vmem:[%s10463_s25 + $0xe38] sm:$0xff]  ;;  %v2384_v40 = vld [vmem:[%s10463_s25 + $0xe40] sm:$0xff] }
 0x221   : > { %2381 = vst [vmem:[%s10468_s14 + $0x730] sm:$0xff] %v2380_v38  ;;  %v2386_v41 = vld [vmem:[%s10463_s25 + $0xe48] sm:$0xff]  ;;  %2383 = vst [vmem:[%s10468_s14 + $0x738] sm:$0xff] %v2382_v39  ;;  %v2388_v42 = vld [vmem:[%s10463_s25 + $0xe50] sm:$0xff] }
 0x222   : > { %2385 = vst [vmem:[%s10468_s14 + $0x740] sm:$0xff] %v2384_v40  ;;  %2387 = vst [vmem:[%s10468_s14 + $0x748] sm:$0xff] %v2386_v41  ;;  %v2390_v43 = vld [vmem:[%s10463_s25 + $0xe58] sm:$0xff]  ;;  %v2392_v44 = vld [vmem:[%s10463_s25 + $0xe60] sm:$0xff] }
 0x223   : > { %2389 = vst [vmem:[%s10468_s14 + $0x750] sm:$0xff] %v2388_v42  ;;  %2391 = vst [vmem:[%s10468_s14 + $0x758] sm:$0xff] %v2390_v43  ;;  %v2394_v45 = vld [vmem:[%s10463_s25 + $0xe68] sm:$0xff]  ;;  %v2396_v46 = vld [vmem:[%s10463_s25 + $0xe70] sm:$0xff] }
 0x224   : > { %2393 = vst [vmem:[%s10468_s14 + $0x760] sm:$0xff] %v2392_v44  ;;  %v2398_v47 = vld [vmem:[%s10463_s25 + $0xe78] sm:$0xff]  ;;  %2395 = vst [vmem:[%s10468_s14 + $0x768] sm:$0xff] %v2394_v45  ;;  %v2400_v48 = vld [vmem:[%s10463_s25 + $0xf00] sm:$0xff] }
 0x225   : > { %2397 = vst [vmem:[%s10468_s14 + $0x770] sm:$0xff] %v2396_v46  ;;  %2399 = vst [vmem:[%s10468_s14 + $0x778] sm:$0xff] %v2398_v47  ;;  %v2402_v49 = vld [vmem:[%s10463_s25 + $0xf08] sm:$0xff]  ;;  %v2404_v50 = vld [vmem:[%s10463_s25 + $0xf10] sm:$0xff] }
 0x226   : > { %2401 = vst [vmem:[%s10468_s14 + $0x780] sm:$0xff] %v2400_v48  ;;  %2403 = vst [vmem:[%s10468_s14 + $0x788] sm:$0xff] %v2402_v49  ;;  %v2406_v51 = vld [vmem:[%s10463_s25 + $0xf18] sm:$0xff]  ;;  %v2408_v52 = vld [vmem:[%s10463_s25 + $0xf20] sm:$0xff] }
 0x227   : > { %2405 = vst [vmem:[%s10468_s14 + $0x790] sm:$0xff] %v2404_v50  ;;  %v2410_v53 = vld [vmem:[%s10463_s25 + $0xf28] sm:$0xff]  ;;  %2407 = vst [vmem:[%s10468_s14 + $0x798] sm:$0xff] %v2406_v51  ;;  %v2412_v54 = vld [vmem:[%s10463_s25 + $0xf30] sm:$0xff] }
 0x228   : > { %2409 = vst [vmem:[%s10468_s14 + $0x7a0] sm:$0xff] %v2408_v52  ;;  %2411 = vst [vmem:[%s10468_s14 + $0x7a8] sm:$0xff] %v2410_v53  ;;  %v2414_v55 = vld [vmem:[%s10463_s25 + $0xf38] sm:$0xff]  ;;  %v2416_v56 = vld [vmem:[%s10463_s25 + $0xf40] sm:$0xff] }
 0x229   : > { %2413 = vst [vmem:[%s10468_s14 + $0x7b0] sm:$0xff] %v2412_v54  ;;  %2415 = vst [vmem:[%s10468_s14 + $0x7b8] sm:$0xff] %v2414_v55  ;;  %v2418_v57 = vld [vmem:[%s10463_s25 + $0xf48] sm:$0xff]  ;;  %v2420_v58 = vld [vmem:[%s10463_s25 + $0xf50] sm:$0xff] }
 0x22a   : > { %2417 = vst [vmem:[%s10468_s14 + $0x7c0] sm:$0xff] %v2416_v56  ;;  %v2422_v59 = vld [vmem:[%s10463_s25 + $0xf58] sm:$0xff]  ;;  %2419 = vst [vmem:[%s10468_s14 + $0x7c8] sm:$0xff] %v2418_v57  ;;  %v2424_v60 = vld [vmem:[%s10463_s25 + $0xf60] sm:$0xff] }
 0x22b   : > { %2421 = vst [vmem:[%s10468_s14 + $0x7d0] sm:$0xff] %v2420_v58  ;;  %2423 = vst [vmem:[%s10468_s14 + $0x7d8] sm:$0xff] %v2422_v59  ;;  %v2426_v61 = vld [vmem:[%s10463_s25 + $0xf68] sm:$0xff]  ;;  %v2428_v62 = vld [vmem:[%s10463_s25 + $0xf70] sm:$0xff] }
 0x22c   : > { %2425 = vst [vmem:[%s10468_s14 + $0x7e0] sm:$0xff] %v2424_v60  ;;  %2427 = vst [vmem:[%s10468_s14 + $0x7e8] sm:$0xff] %v2426_v61  ;;  %v2430_v63 = vld [vmem:[%s10463_s25 + $0xf78] sm:$0xff] }
 0x22d   : > { %2429 = vst [vmem:[%s10468_s14 + $0x7f0] sm:$0xff] %v2428_v62  ;;  %2431 = vst [vmem:[%s10468_s14 + $0x7f8] sm:$0xff] %v2430_v63 }
 0x22e PF: > { %p8438_p7 = scmp.ge.s32.totalorder %s8771_s11, 1  ;;  %p2436_p8 = scmp.lt.s32.totalorder %s8771_s11, 5 }
 0x230   : > { %p2437_p9 = pnand %p8438_p7, %p2436_p8 }
 0x232   : > { %2440 = sbr.rel (%p2437_p9) target bundleno = 2208 (0x8a0), region = 128 }
 0x239   : > { %s2443_s26 = sand.u32 1, %s8747_s27   ;;  %p2512_p10 = scmp.lt.s32.totalorder %s8759_s30, 1 }
 0x23a   : > { %s8439_s15 = sshll.u32 %s2443_s26, 11  ;;  %p8444_p11 = scmp.ne.s32.totalorder %s8755_s29, 0 }
 0x23b   : > { %s13593_s30 = smov (!%p2512_p10, %s8759_s30), 1  ;;  %s10989_s21 = scalar_lea.vmem [#allocation4], %s8439_s15  ;;  %v8773_v0 = vmov (!%p8444_p11), 0.0   ;;  %v8774_v1 = vmov (!%p8444_p11), -inf  }
 0x23c   : > { %s8443_s16 = sshll.u32 %s13593_s30, 2  ;;  %s10991_s22 = scalar_lea.vmem [#allocation5], %s8439_s15  ;;  %2520 = vst [vmem:[#allocation2] sm:$0x1] (!%p8444_p11), %v8773_v0  ;;  %2521 = vst [vmem:[#allocation3] sm:$0x1] (!%p8444_p11), %v8774_v1 }
 0x23d   : > { %s10987_s20 = scalar_lea.vmem %s13459_s8, %s8443_s16  ;;  %s10993_s23 = scalar_lea.vmem [#allocation6], %s8439_s15 }
 0x23e   : > { %s10995_s24 = scalar_lea.vmem [#allocation7], %s8439_s15  ;;  %2519 = sbr.rel (%p8444_p11) target bundleno = 581 (0x245), region = 148 }
 0x245 PF: > { %v2554_v2 = vld [vmem:[%s10989_s21 + $0x100] sm:$0xff]  ;;  %v2555_v3 = vld [vmem:[%s10989_s21 + $0x108] sm:$0xff]  ;;  %v2556_v4 = vld [vmem:[%s10989_s21 + $0x110] sm:$0xff]  ;;  %vm5958_vm0 = vcmask 130112   ;;  %vm5965_vm1 = vcmask 195712   ;;  %vm5972_vm2 = vcmask 261312  }
 0x246   : > { %v2810_v5 = vld [vmem:[%s10991_s22 + $0x100] sm:$0xff]  ;;  %v2811_v6 = vld [vmem:[%s10991_s22 + $0x108] sm:$0xff]  ;;  %v2812_v7 = vld [vmem:[%s10991_s22 + $0x110] sm:$0xff]  ;;  %vm5979_vm3 = vcmask 326912   ;;  %vm5986_vm4 = vcmask 392512   ;;  %vm5993_vm5 = vcmask 458112  }
 0x247   : > { %v2557_v8 = vld [vmem:[%s10989_s21 + $0x118] sm:$0xff]  ;;  %v2558_v10 = vld [vmem:[%s10989_s21 + $0x120] sm:$0xff]  ;;  %v3066_v12 = vadd.f32 %v2810_v5, %v2554_v2  ;;  %v3067_v13 = vadd.f32 %v2811_v6, %v2555_v3  ;;  %v3068_v14 = vadd.f32 %v2812_v7, %v2556_v4  ;;  %v2559_v15 = vld [vmem:[%s10989_s21 + $0x128] sm:$0xff]  ;;  %vm6000_vm6 = vcmask 523712   ;;  %p8445_p12 = scmp.ne.s32.totalorder %s8755_s29, 1 }
 0x248   : > { %v2813_v9 = vld [vmem:[%s10991_s22 + $0x118] sm:$0xff]  ;;  %v2814_v11 = vld [vmem:[%s10991_s22 + $0x120] sm:$0xff]  ;;  %v2815_v16 = vld [vmem:[%s10991_s22 + $0x128] sm:$0xff]  ;;  %vm6007_vm7 = vcmask 589312   ;;  %vm6014_vm8 = vcmask 654912   ;;  %vm6021_vm9 = vcmask 720512  }
 0x249   : > { %v3069_v17 = vadd.f32 %v2813_v9, %v2557_v8  ;;  %v3322_v18 = vld [vmem:[%s10993_s23 + $0x100] sm:$0xff]  ;;  %v3323_v19 = vld [vmem:[%s10993_s23 + $0x108] sm:$0xff]  ;;  %v3324_v20 = vld [vmem:[%s10993_s23 + $0x110] sm:$0xff]  ;;  %v3070_v22 = vadd.f32 %v2814_v11, %v2558_v10  ;;  %v3071_v30 = vadd.f32 %v2815_v16, %v2559_v15  ;;  %vm6028_vm10 = vcmask 786112  }
 0x24a   : > { %v3325_v21 = vld [vmem:[%s10993_s23 + $0x118] sm:$0xff]  ;;  %v2560_v23 = vld [vmem:[%s10989_s21 + $0x130] sm:$0xff]  ;;  %v3326_v25 = vld [vmem:[%s10993_s23 + $0x120] sm:$0xff]  ;;  %v3578_v26 = vadd.f32 %v3322_v18, %v3066_v12  ;;  %v3579_v27 = vadd.f32 %v3323_v19, %v3067_v13  ;;  %v3580_v28 = vadd.f32 %v3324_v20, %v3068_v14  ;;  %vm6035_vm11 = vcmask 851712  }
 0x24b   : > { %v2816_v24 = vld [vmem:[%s10991_s22 + $0x130] sm:$0xff]  ;;  %v2561_v29 = vld [vmem:[%s10989_s21 + $0x138] sm:$0xff]  ;;  %v3581_v31 = vadd.f32 %v3325_v21, %v3069_v17  ;;  %v2562_v32 = vld [vmem:[%s10989_s21 + $0x140] sm:$0xff]  ;;  %v3582_v37 = vadd.f32 %v3326_v25, %v3070_v22  ;;  %vm6042_vm12 = vcmask 917312   ;;  %vm6049_vm13 = vcmask 982912  }
 0x24c   : > { %v2817_v33 = vld [vmem:[%s10991_s22 + $0x138] sm:$0xff]  ;;  %v2818_v34 = vld [vmem:[%s10991_s22 + $0x140] sm:$0xff]  ;;  %v3327_v35 = vld [vmem:[%s10993_s23 + $0x128] sm:$0xff]  ;;  %v3072_v36 = vadd.f32 %v2816_v24, %v2560_v23  ;;  %vm6056_vm14 = vcmask 1048512   ;;  %vm8778_vm15 = vmmov (!%p8445_p12), 0  }
 0x24d   : > { %v3834_v38 = vld [vmem:[%s10995_s24 + $0x100] sm:$0xff]  ;;  %v3835_v39 = vld [vmem:[%s10995_s24 + $0x108] sm:$0xff]  ;;  %v3836_v40 = vld [vmem:[%s10995_s24 + $0x110] sm:$0xff]  ;;  %v3073_v48 = vadd.f32 %v2817_v33, %v2561_v29  ;;  %v3583_v49 = vadd.f32 %v3327_v35, %v3071_v30  ;;  %v3074_v56 = vadd.f32 %v2818_v34, %v2562_v32 }
 0x24e   : > { %v3328_v41 = vld [vmem:[%s10993_s23 + $0x130] sm:$0xff]  ;;  %v3837_v42 = vld [vmem:[%s10995_s24 + $0x118] sm:$0xff]  ;;  %v3838_v43 = vld [vmem:[%s10995_s24 + $0x120] sm:$0xff]  ;;  %v11028_v44 = vadd.f32 %v3834_v38, %v3578_v26  ;;  %v11030_v45 = vadd.f32 %v3835_v39, %v3579_v27  ;;  %v4092_v46 = vadd.f32 %v3836_v40, %v3580_v28 }
 0x24f   : > { %v2563_v47 = vld [vmem:[%s10989_s21 + $0x148] sm:$0xff]  ;;  %v4093_v50 = vadd.f32 %v3837_v42, %v3581_v31  ;;  %v3329_v52 = vld [vmem:[%s10993_s23 + $0x138] sm:$0xff]  ;;  %v2564_v55 = vld [vmem:[%s10989_s21 + $0x150] sm:$0xff]  ;;  %v3584_v57 = vadd.f32 %v3328_v41, %v3072_v36  ;;  %v4094_v59 = vadd.f32 %v3838_v43, %v3582_v37 }
 0x250   : > { %v2819_v51 = vld [vmem:[%s10991_s22 + $0x148] sm:$0xff]  ;;  %v4349_v54 = vadd.f32 %v11030_v45, %v11028_v44  ;;  %v2820_v60 = vld [vmem:[%s10991_s22 + $0x150] sm:$0xff]  ;;  %v3330_v61 = vld [vmem:[%s10993_s23 + $0x140] sm:$0xff]  ;;  %v3585_v3 = vadd.f32 %v3329_v52, %v3073_v48 }
 0x251   : > { %v3839_v53 = vld [vmem:[%s10995_s24 + $0x128] sm:$0xff]  ;;  %v6111_v58 = vmax.f32 %v4093_v50, %v4092_v46  ;;  %v3840_v62 = vld [vmem:[%s10995_s24 + $0x130] sm:$0xff]  ;;  %v2565_v0 = vld [vmem:[%s10989_s21 + $0x158] sm:$0xff]  ;;  %v3075_v2 = vadd.f32 %v2819_v51, %v2563_v47  ;;  %v3076_v13 = vadd.f32 %v2820_v60, %v2564_v55  ;;  %v3586_v14 = vadd.f32 %v3330_v61, %v3074_v56 }
 0x252   : > { %v4350_v63 = vadd.f32 %v4349_v54, %v4092_v46  ;;  %v2566_v1 = vld [vmem:[%s10989_s21 + $0x160] sm:$0xff]  ;;  %v4095_v5 = vadd.f32 %v3839_v53, %v3583_v49  ;;  %v2821_v6 = vld [vmem:[%s10991_s22 + $0x158] sm:$0xff]  ;;  %v3331_v7 = vld [vmem:[%s10993_s23 + $0x148] sm:$0xff]  ;;  %v4096_v16 = vadd.f32 %v3840_v62, %v3584_v57 }
 0x253   : > { %v6112_v4 = vmax.f32 %v6111_v58, %v4094_v59  ;;  %v3841_v8 = vld [vmem:[%s10995_s24 + $0x138] sm:$0xff]  ;;  %v2567_v10 = vld [vmem:[%s10989_s21 + $0x168] sm:$0xff]  ;;  %v2822_v11 = vld [vmem:[%s10991_s22 + $0x160] sm:$0xff]  ;;  %v3077_v22 = vadd.f32 %v2821_v6, %v2565_v0  ;;  %v3587_v25 = vadd.f32 %v3331_v7, %v3075_v2 }
 0x254   : > { %v4351_v9 = vadd.f32 %v4350_v63, %v4093_v50  ;;  %v2823_v12 = vld [vmem:[%s10991_s22 + $0x168] sm:$0xff]  ;;  %v2568_v17 = vld [vmem:[%s10989_s21 + $0x170] sm:$0xff]  ;;  %v3842_v20 = vld [vmem:[%s10995_s24 + $0x140] sm:$0xff]  ;;  %v4097_v28 = vadd.f32 %v3841_v8, %v3585_v3  ;;  %v3078_v29 = vadd.f32 %v2822_v11, %v2566_v1 }
 0x255   : > { %v6113_v15 = vmax.f32 %v6112_v4, %v4095_v5  ;;  %v2824_v18 = vld [vmem:[%s10991_s22 + $0x170] sm:$0xff]  ;;  %v3333_v23 = vld [vmem:[%s10993_s23 + $0x158] sm:$0xff]  ;;  %v3334_v24 = vld [vmem:[%s10993_s23 + $0x160] sm:$0xff]  ;;  %v4098_v38 = vadd.f32 %v3842_v20, %v3586_v14  ;;  %v3079_v42 = vadd.f32 %v2823_v12, %v2567_v10 }
 0x256   : > { %v3332_v19 = vld [vmem:[%s10993_s23 + $0x150] sm:$0xff]  ;;  %v4352_v21 = vadd.f32 %v4351_v9, %v4094_v59  ;;  %v3843_v26 = vld [vmem:[%s10995_s24 + $0x148] sm:$0xff]  ;;  %v2522_v32 = vld [vmem:[%s10989_s21] sm:$0xff]  ;;  %v3080_v49 = vadd.f32 %v2824_v18, %v2568_v17  ;;  %v3589_v51 = vadd.f32 %v3333_v23, %v3077_v22  ;;  %v3590_v57 = vadd.f32 %v3334_v24, %v3078_v29 }
 0x257   : > { %v6114_v27 = vmax.f32 %v6113_v15, %v4096_v16  ;;  %v3844_v30 = vld [vmem:[%s10995_s24 + $0x150] sm:$0xff]  ;;  %v2569_v34 = vld [vmem:[%s10989_s21 + $0x178] sm:$0xff]  ;;  %v3588_v36 = vadd.f32 %v3332_v19, %v3076_v13  ;;  %v2523_v46 = vld [vmem:[%s10989_s21 + $0x8] sm:$0xff]  ;;  %v4099_v53 = vadd.f32 %v3843_v26, %v3587_v25 }
 0x258   : > { %v4353_v31 = vadd.f32 %v4352_v21, %v4095_v5  ;;  %v2524_v33 = vld [vmem:[%s10989_s21 + $0x10] sm:$0xff]  ;;  %v2825_v35 = vld [vmem:[%s10991_s22 + $0x178] sm:$0xff]  ;;  %v2778_v47 = vld [vmem:[%s10991_s22] sm:$0xff] }
 0x259   : > { %v6115_v37 = vmax.f32 %v6114_v27, %v4097_v28  ;;  %v2525_v39 = vld [vmem:[%s10989_s21 + $0x18] sm:$0xff]  ;;  %v2780_v40 = vld [vmem:[%s10991_s22 + $0x10] sm:$0xff]  ;;  %v2779_v48 = vld [vmem:[%s10991_s22 + $0x8] sm:$0xff]  ;;  %v4100_v1 = vadd.f32 %v3844_v30, %v3588_v36  ;;  %v3034_v4 = vadd.f32 %v2778_v47, %v2522_v32  ;;  %v3081_v7 = vadd.f32 %v2825_v35, %v2569_v34 }
 0x25a   : > { %v2781_v41 = vld [vmem:[%s10991_s22 + $0x18] sm:$0xff]  ;;  %v4354_v43 = vadd.f32 %v4353_v31, %v4096_v16  ;;  %v3335_v50 = vld [vmem:[%s10993_s23 + $0x168] sm:$0xff]  ;;  %v2526_v54 = vld [vmem:[%s10989_s21 + $0x20] sm:$0xff]  ;;  %v3036_v61 = vadd.f32 %v2780_v40, %v2524_v33  ;;  %v3035_v5 = vadd.f32 %v2779_v48, %v2523_v46 }
 0x25b   : > { %v6116_v52 = vmax.f32 %v6115_v37, %v4098_v38  ;;  %v2782_v55 = vld [vmem:[%s10991_s22 + $0x20] sm:$0xff]  ;;  %v3336_v56 = vld [vmem:[%s10993_s23 + $0x170] sm:$0xff]  ;;  %v3845_v58 = vld [vmem:[%s10995_s24 + $0x158] sm:$0xff]  ;;  %v3037_v62 = vadd.f32 %v2781_v41, %v2525_v39  ;;  %v3591_v14 = vadd.f32 %v3335_v50, %v3079_v42 }
 0x25c   : > { %v3846_v59 = vld [vmem:[%s10995_s24 + $0x160] sm:$0xff]  ;;  %v4355_v60 = vadd.f32 %v4354_v43, %v4097_v28  ;;  %v3337_v63 = vld [vmem:[%s10993_s23 + $0x178] sm:$0xff]  ;;  %v2527_v2 = vld [vmem:[%s10989_s21 + $0x28] sm:$0xff]  ;;  %v3038_v10 = vadd.f32 %v2782_v55, %v2526_v54  ;;  %v3592_v15 = vadd.f32 %v3336_v56, %v3080_v49  ;;  %v4101_v17 = vadd.f32 %v3845_v58, %v3589_v51 }
 0x25d   : > { %v6117_v0 = vmax.f32 %v6116_v52, %v4099_v53  ;;  %v2783_v3 = vld [vmem:[%s10991_s22 + $0x28] sm:$0xff]  ;;  %v3292_v6 = vld [vmem:[%s10993_s23 + $0x10] sm:$0xff]  ;;  %v3290_v11 = vld [vmem:[%s10993_s23] sm:$0xff]  ;;  %v4102_v29 = vadd.f32 %v3846_v59, %v3590_v57  ;;  %v3593_v35 = vadd.f32 %v3337_v63, %v3081_v7 }
 0x25e   : > { %v3847_v8 = vld [vmem:[%s10995_s24 + $0x168] sm:$0xff]  ;;  %v4356_v9 = vadd.f32 %v4355_v60, %v4098_v38  ;;  %v3293_v13 = vld [vmem:[%s10993_s23 + $0x18] sm:$0xff]  ;;  %v2528_v18 = vld [vmem:[%s10989_s21 + $0x30] sm:$0xff]  ;;  %v3039_v25 = vadd.f32 %v2783_v3, %v2527_v2  ;;  %v3548_v26 = vadd.f32 %v3292_v6, %v3036_v61  ;;  %v3546_v33 = vadd.f32 %v3290_v11, %v3034_v4 }
 0x25f   : > { %v3291_v12 = vld [vmem:[%s10993_s23 + $0x8] sm:$0xff]  ;;  %v6118_v16 = vmax.f32 %v6117_v0, %v4100_v1  ;;  %v2784_v19 = vld [vmem:[%s10991_s22 + $0x30] sm:$0xff]  ;;  %v3294_v20 = vld [vmem:[%s10993_s23 + $0x20] sm:$0xff]  ;;  %v3549_v27 = vadd.f32 %v3293_v13, %v3037_v62  ;;  %v4103_v43 = vadd.f32 %v3847_v8, %v3591_v14 }
 0x260   : > { %v3848_v21 = vld [vmem:[%s10995_s24 + $0x170] sm:$0xff]  ;;  %v4357_v22 = vadd.f32 %v4356_v9, %v4099_v53  ;;  %v2529_v23 = vld [vmem:[%s10989_s21 + $0x38] sm:$0xff]  ;;  %v2530_v30 = vld [vmem:[%s10989_s21 + $0x40] sm:$0xff]  ;;  %v3547_v34 = vadd.f32 %v3291_v12, %v3035_v5  ;;  %v3040_v37 = vadd.f32 %v2784_v19, %v2528_v18  ;;  %v3550_v39 = vadd.f32 %v3294_v20, %v3038_v10 }
 0x261   : > { %v2785_v24 = vld [vmem:[%s10991_s22 + $0x38] sm:$0xff]  ;;  %v6119_v28 = vmax.f32 %v6118_v16, %v4101_v17  ;;  %v2786_v31 = vld [vmem:[%s10991_s22 + $0x40] sm:$0xff]  ;;  %v3295_v32 = vld [vmem:[%s10993_s23 + $0x28] sm:$0xff]  ;;  %v4104_v46 = vadd.f32 %v3848_v21, %v3592_v15 }
 0x262   : > { %v4358_v36 = vadd.f32 %v4357_v22, %v4100_v1  ;;  %v3296_v38 = vld [vmem:[%s10993_s23 + $0x30] sm:$0xff]  ;;  %v3802_v40 = vld [vmem:[%s10995_s24] sm:$0xff]  ;;  %v3803_v41 = vld [vmem:[%s10995_s24 + $0x8] sm:$0xff]  ;;  %v3041_v47 = vadd.f32 %v2785_v24, %v2529_v23  ;;  %v3551_v55 = vadd.f32 %v3295_v32, %v3039_v25  ;;  %v3042_v59 = vadd.f32 %v2786_v31, %v2530_v30 }
 0x263   : > { %v6120_v42 = vmax.f32 %v6119_v28, %v4102_v29  ;;  %v3804_v48 = vld [vmem:[%s10995_s24 + $0x10] sm:$0xff]  ;;  %v3805_v49 = vld [vmem:[%s10995_s24 + $0x18] sm:$0xff]  ;;  %v3806_v50 = vld [vmem:[%s10995_s24 + $0x20] sm:$0xff]  ;;  %v11102_v62 = vadd.f32 %v3802_v40, %v3546_v33  ;;  %v11104_v63 = vadd.f32 %v3803_v41, %v3547_v34  ;;  %v3552_v3 = vadd.f32 %v3296_v38, %v3040_v37 }
 0x264   : > { %v3849_v51 = vld [vmem:[%s10995_s24 + $0x178] sm:$0xff]  ;;  %v4359_v52 = vadd.f32 %v4358_v36, %v4101_v17  ;;  %v2531_v53 = vld [vmem:[%s10989_s21 + $0x48] sm:$0xff]  ;;  %v4060_v56 = vadd.f32 %v3804_v48, %v3548_v26  ;;  %v4061_v57 = vadd.f32 %v3805_v49, %v3549_v27  ;;  %v2532_v1 = vld [vmem:[%s10989_s21 + $0x50] sm:$0xff]  ;;  %v4062_v5 = vadd.f32 %v3806_v50, %v3550_v39 }
 0x265   : > { %v2787_v54 = vld [vmem:[%s10991_s22 + $0x48] sm:$0xff]  ;;  %v6121_v58 = vmax.f32 %v6120_v42, %v4103_v43  ;;  %v3297_v60 = vld [vmem:[%s10993_s23 + $0x38] sm:$0xff]  ;;  %v2788_v2 = vld [vmem:[%s10991_s22 + $0x50] sm:$0xff]  ;;  %v11110_v7 = vadd.f32 %v3849_v51, %v3593_v35  ;;  %v4315_v22 = vadd.f32 %v11104_v63, %v11102_v62 }
 0x266   : > { %v3807_v61 = vld [vmem:[%s10995_s24 + $0x28] sm:$0xff]  ;;  %v4360_v0 = vadd.f32 %v4359_v52, %v4102_v29  ;;  %v6077_v4 = vmax.f32 %v4061_v57, %v4060_v56  ;;  %v3043_v8 = vadd.f32 %v2787_v54, %v2531_v53  ;;  %v3298_v9 = vld [vmem:[%s10993_s23 + $0x40] sm:$0xff]  ;;  %v3808_v10 = vld [vmem:[%s10995_s24 + $0x30] sm:$0xff]  ;;  %v3553_v14 = vadd.f32 %v3297_v60, %v3041_v47 }
 0x267   : > { %v11108_v6 = vmax.f32 %v6121_v58, %v4104_v46  ;;  %v2533_v12 = vld [vmem:[%s10989_s21 + $0x58] sm:$0xff]  ;;  %v4063_v16 = vadd.f32 %v3807_v61, %v3551_v55  ;;  %v2534_v18 = vld [vmem:[%s10989_s21 + $0x60] sm:$0xff]  ;;  %v3044_v19 = vadd.f32 %v2788_v2, %v2532_v1  ;;  %v3299_v20 = vld [vmem:[%s10993_s23 + $0x48] sm:$0xff]  ;;  %v3554_v27 = vadd.f32 %v3298_v9, %v3042_v59 }
 0x268   : > { %v4361_v11 = vadd.f32 %v4360_v0, %v4103_v43  ;;  %v2789_v13 = vld [vmem:[%s10991_s22 + $0x58] sm:$0xff]  ;;  %v6078_v15 = vmax.f32 %v6077_v4, %v4062_v5  ;;  %v2535_v24 = vld [vmem:[%s10989_s21 + $0x68] sm:$0xff]  ;;  %v2790_v25 = vld [vmem:[%s10991_s22 + $0x60] sm:$0xff]  ;;  %v4064_v29 = vadd.f32 %v3808_v10, %v3552_v3  ;;  %v4316_v35 = vadd.f32 %v4315_v22, %v4060_v56 }
 0x269   : > { %v3809_v21 = vld [vmem:[%s10995_s24 + $0x38] sm:$0xff]  ;;  %v2791_v26 = vld [vmem:[%s10991_s22 + $0x68] sm:$0xff]  ;;  %v2536_v30 = vld [vmem:[%s10989_s21 + $0x70] sm:$0xff]  ;;  %v3045_v32 = vadd.f32 %v2789_v13, %v2533_v12  ;;  %v3555_v39 = vadd.f32 %v3299_v20, %v3043_v8  ;;  %v3046_v43 = vadd.f32 %v2790_v25, %v2534_v18 }
 0x26a   : > { %v4362_v23 = vadd.f32 %v4361_v11, %v4104_v46  ;;  %v6079_v28 = vmax.f32 %v6078_v15, %v4063_v16  ;;  %v2792_v31 = vld [vmem:[%s10991_s22 + $0x70] sm:$0xff]  ;;  %v3810_v34 = vld [vmem:[%s10995_s24 + $0x40] sm:$0xff]  ;;  %v3301_v37 = vld [vmem:[%s10993_s23 + $0x58] sm:$0xff]  ;;  %v4065_v42 = vadd.f32 %v3809_v21, %v3553_v14  ;;  %v4317_v47 = vadd.f32 %v4316_v35, %v4061_v57 }
 0x26b   : > { %v3300_v33 = vld [vmem:[%s10993_s23 + $0x50] sm:$0xff]  ;;  %v3302_v38 = vld [vmem:[%s10993_s23 + $0x60] sm:$0xff]  ;;  %v3811_v40 = vld [vmem:[%s10995_s24 + $0x48] sm:$0xff]  ;;  %v4066_v54 = vadd.f32 %v3810_v34, %v3554_v27  ;;  %v3047_v59 = vadd.f32 %v2791_v26, %v2535_v24  ;;  %v3048_v1 = vadd.f32 %v2792_v31, %v2536_v30  ;;  %v3557_v3 = vadd.f32 %v3301_v37, %v3045_v32 }
 0x26c   : > { %v4363_v36 = vadd.f32 %v4362_v23, %v11110_v7  ;;  %v6080_v41 = vmax.f32 %v6079_v28, %v4064_v29  ;;  %v3812_v46 = vld [vmem:[%s10995_s24 + $0x50] sm:$0xff]  ;;  %v2570_v48 = vld [vmem:[%s10989_s21 + $0x180] sm:$0xff]  ;;  %v2537_v50 = vld [vmem:[%s10989_s21 + $0x78] sm:$0xff]  ;;  %v3556_v52 = vadd.f32 %v3300_v33, %v3044_v19  ;;  %v4318_v57 = vadd.f32 %v4317_v47, %v4062_v5 }
 0x26d   : > { %v2572_v49 = vld [vmem:[%s10989_s21 + $0x190] sm:$0xff]  ;;  %v2793_v51 = vld [vmem:[%s10991_s22 + $0x78] sm:$0xff]  ;;  %v2571_v60 = vld [vmem:[%s10989_s21 + $0x188] sm:$0xff]  ;;  %v4067_v8 = vadd.f32 %v3811_v40, %v3555_v39  ;;  %v3558_v12 = vadd.f32 %v3302_v38, %v3046_v43 }
 0x26e   : > { %4364 = vadd.xlane.f32.xlu1 %v4363_v36  ;;  %v6081_v53 = vmax.f32 %v6080_v41, %v4065_v42  ;;  %v2573_v55 = vld [vmem:[%s10989_s21 + $0x198] sm:$0xff]  ;;  %v2828_v56 = vld [vmem:[%s10991_s22 + $0x190] sm:$0xff]  ;;  %v2826_v61 = vld [vmem:[%s10991_s22 + $0x180] sm:$0xff]  ;;  %v4319_v5 = vadd.f32 %v4318_v57, %v4063_v16  ;;  %v4068_v21 = vadd.f32 %v3812_v46, %v3556_v52  ;;  %v3049_v27 = vadd.f32 %v2793_v51, %v2537_v50 }
 0x26f   : > { %v2829_v58 = vld [vmem:[%s10991_s22 + $0x198] sm:$0xff]  ;;  %v2827_v0 = vld [vmem:[%s10991_s22 + $0x188] sm:$0xff]  ;;  %v2574_v9 = vld [vmem:[%s10989_s21 + $0x1a0] sm:$0xff]  ;;  %v3084_v15 = vadd.f32 %v2828_v56, %v2572_v49  ;;  %v3082_v24 = vadd.f32 %v2826_v61, %v2570_v48 }
 0x270   : > { %v3303_v2 = vld [vmem:[%s10993_s23 + $0x68] sm:$0xff]  ;;  %v6082_v4 = vmax.f32 %v6081_v53, %v4066_v54  ;;  %v2830_v10 = vld [vmem:[%s10991_s22 + $0x1a0] sm:$0xff]  ;;  %v3304_v11 = vld [vmem:[%s10993_s23 + $0x70] sm:$0xff]  ;;  %v3085_v18 = vadd.f32 %v2829_v58, %v2573_v55  ;;  %v3083_v25 = vadd.f32 %v2827_v0, %v2571_v60  ;;  %v4320_v16 = vadd.f32 %v4319_v5, %v4064_v29 }
 0x271   : > { %v3813_v13 = vld [vmem:[%s10995_s24 + $0x58] sm:$0xff]  ;;  %v3814_v14 = vld [vmem:[%s10995_s24 + $0x60] sm:$0xff]  ;;  %v2575_v22 = vld [vmem:[%s10989_s21 + $0x1a8] sm:$0xff]  ;;  %v3086_v30 = vadd.f32 %v2830_v10, %v2574_v9  ;;  %v3559_v34 = vadd.f32 %v3303_v2, %v3047_v59  ;;  %v3560_v35 = vadd.f32 %v3304_v11, %v3048_v1 }
 0x272   : > { %v3305_v19 = vld [vmem:[%s10993_s23 + $0x78] sm:$0xff]  ;;  %v6083_v20 = vmax.f32 %v6082_v4, %v4067_v8  ;;  %v2831_v23 = vld [vmem:[%s10991_s22 + $0x1a8] sm:$0xff]  ;;  %v3338_v26 = vld [vmem:[%s10993_s23 + $0x180] sm:$0xff]  ;;  %v4069_v37 = vadd.f32 %v3813_v13, %v3557_v3  ;;  %v4321_v43 = vadd.f32 %v4320_v16, %v4065_v42  ;;  %v4070_v51 = vadd.f32 %v3814_v14, %v3558_v12 }
 0x273   : > { %v3815_v28 = vld [vmem:[%s10995_s24 + $0x68] sm:$0xff]  ;;  %v3340_v32 = vld [vmem:[%s10993_s23 + $0x190] sm:$0xff]  ;;  %v3341_v33 = vld [vmem:[%s10993_s23 + $0x198] sm:$0xff]  ;;  %v3087_v47 = vadd.f32 %v2831_v23, %v2575_v22  ;;  %v3594_v55 = vadd.f32 %v3338_v26, %v3082_v24  ;;  %v3561_v58 = vadd.f32 %v3305_v19, %v3049_v27 }
 0x274   : > { %v3339_v31 = vld [vmem:[%s10993_s23 + $0x188] sm:$0xff]  ;;  %v6084_v36 = vmax.f32 %v6083_v20, %v4068_v21  ;;  %v2576_v38 = vld [vmem:[%s10989_s21 + $0x1b0] sm:$0xff]  ;;  %v3342_v40 = vld [vmem:[%s10993_s23 + $0x1a0] sm:$0xff]  ;;  %v3596_v48 = vadd.f32 %v3340_v32, %v3084_v15  ;;  %v3597_v49 = vadd.f32 %v3341_v33, %v3085_v18  ;;  %v4322_v42 = vadd.f32 %v4321_v43, %v4066_v54 }
 0x275   : > { %v2832_v39 = vld [vmem:[%s10991_s22 + $0x1b0] sm:$0xff]  ;;  %v2577_v46 = vld [vmem:[%s10989_s21 + $0x1b8] sm:$0xff]  ;;  %v2578_v52 = vld [vmem:[%s10989_s21 + $0x1c0] sm:$0xff]  ;;  %v3595_v56 = vadd.f32 %v3339_v31, %v3083_v25  ;;  %v3598_v0 = vadd.f32 %v3342_v40, %v3086_v30  ;;  %v4071_v3 = vadd.f32 %v3815_v28, %v3559_v34 }
 0x276   : > { %v3816_v41 = vld [vmem:[%s10995_s24 + $0x70] sm:$0xff]  ;;  %v2833_v29 = vld [vmem:[%s10991_s22 + $0x1b8] sm:$0xff]  ;;  %v6085_v50 = vmax.f32 %v6084_v36, %v4069_v37  ;;  %v3343_v53 = vld [vmem:[%s10993_s23 + $0x1a8] sm:$0xff]  ;;  %v3088_v60 = vadd.f32 %v2832_v39, %v2576_v38  ;;  %v4323_v13 = vadd.f32 %v4322_v42, %v4067_v8 }
 0x277   : > { %v3817_v59 = vld [vmem:[%s10995_s24 + $0x78] sm:$0xff]  ;;  %v2834_v57 = vld [vmem:[%s10991_s22 + $0x1c0] sm:$0xff]  ;;  %v3344_v61 = vld [vmem:[%s10993_s23 + $0x1b0] sm:$0xff]  ;;  %v11171_v4 = vadd.f32 %v3816_v41, %v3560_v35  ;;  %v3089_v9 = vadd.f32 %v2833_v29, %v2577_v46  ;;  %v3599_v5 = vadd.f32 %v3343_v53, %v3087_v47 }
 0x278   : > { %v3850_v1 = vld [vmem:[%s10995_s24 + $0x180] sm:$0xff]  ;;  %v6086_v2 = vmax.f32 %v6085_v50, %v4070_v51  ;;  %v3851_v10 = vld [vmem:[%s10995_s24 + $0x188] sm:$0xff]  ;;  %v3852_v11 = vld [vmem:[%s10995_s24 + $0x190] sm:$0xff]  ;;  %v3090_v22 = vadd.f32 %v2834_v57, %v2578_v52  ;;  %v4324_v27 = vadd.f32 %v4323_v13, %v4068_v21  ;;  %v3600_v16 = vadd.f32 %v3344_v61, %v3088_v60 }
 0x279   : > { %v3853_v12 = vld [vmem:[%s10995_s24 + $0x198] sm:$0xff]  ;;  %v2579_v54 = vld [vmem:[%s10989_s21 + $0x1c8] sm:$0xff]  ;;  %v3854_v15 = vld [vmem:[%s10995_s24 + $0x1a0] sm:$0xff]  ;;  %v4108_v18 = vadd.f32 %v3852_v11, %v3596_v48  ;;  %v11181_v25 = vadd.f32 %v3850_v1, %v3594_v55  ;;  %v11183_v26 = vadd.f32 %v3851_v10, %v3595_v56  ;;  %v11190_v33 = vadd.f32 %v3817_v59, %v3561_v58 }
 0x27a   : > { %v2835_v14 = vld [vmem:[%s10991_s22 + $0x1c8] sm:$0xff]  ;;  %v4109_v19 = vadd.f32 %v3853_v12, %v3597_v49  ;;  %v6087_v20 = vmax.f32 %v6086_v2, %v4071_v3  ;;  %v3345_v23 = vld [vmem:[%s10993_s23 + $0x1b8] sm:$0xff]  ;;  %v2580_v8 = vld [vmem:[%s10989_s21 + $0x1d0] sm:$0xff]  ;;  %v4110_v31 = vadd.f32 %v3854_v15, %v3598_v0  ;;  %v4325_v38 = vadd.f32 %v4324_v27, %v4069_v37 }
 0x27b   : > { %v3855_v24 = vld [vmem:[%s10995_s24 + $0x1a8] sm:$0xff]  ;;  %v2836_v28 = vld [vmem:[%s10991_s22 + $0x1d0] sm:$0xff]  ;;  %v3091_v34 = vadd.f32 %v2835_v14, %v2579_v54  ;;  %v3346_v35 = vld [vmem:[%s10993_s23 + $0x1c0] sm:$0xff]  ;;  %v3601_v40 = vadd.f32 %v3345_v23, %v3089_v9  ;;  %v4366_v37 = vadd.f32 %v11183_v26, %v11181_v25 }
 0x27c   : > { %v6128_v30 = vmax.f32 %v4109_v19, %v4108_v18  ;;  %v11188_v32 = vmax.f32 %v6087_v20, %v11171_v4  ;;  %v3856_v36 = vld [vmem:[%s10995_s24 + $0x1b0] sm:$0xff]  ;;  %v2581_v39 = vld [vmem:[%s10989_s21 + $0x1d8] sm:$0xff]  ;;  %v4111_v43 = vadd.f32 %v3855_v24, %v3599_v5  ;;  %v3092_v29 = vadd.f32 %v2836_v28, %v2580_v8  ;;  %v3347_v47 = vld [vmem:[%s10993_s23 + $0x1c8] sm:$0xff] }
 0x27d   : > { %v2837_v21 = vld [vmem:[%s10991_s22 + $0x1d8] sm:$0xff]  ;;  %v4326_v49 = vadd.f32 %v4325_v38, %v4070_v51  ;;  %v2582_v50 = vld [vmem:[%s10989_s21 + $0x1e0] sm:$0xff]  ;;  %v3602_v53 = vadd.f32 %v3346_v35, %v3090_v22  ;;  %v4112_v56 = vadd.f32 %v3856_v36, %v3600_v16  ;;  %v2583_v58 = vld [vmem:[%s10989_s21 + $0x1e8] sm:$0xff]  ;;  %v4367_v60 = vadd.f32 %v4366_v37, %v4108_v18 }
 0x27e   : > { %v6129_v41 = vmax.f32 %v6128_v30, %v4110_v31  ;;  %v3857_v48 = vld [vmem:[%s10995_s24 + $0x1b8] sm:$0xff]  ;;  %v2838_v52 = vld [vmem:[%s10991_s22 + $0x1e0] sm:$0xff]  ;;  %v3093_v59 = vadd.f32 %v2837_v21, %v2581_v39  ;;  %v3348_v42 = vld [vmem:[%s10993_s23 + $0x1d0] sm:$0xff]  ;;  %v3603_v10 = vadd.f32 %v3347_v47, %v3091_v34 }
 0x27f   : > { %v3858_v57 = vld [vmem:[%s10995_s24 + $0x1c0] sm:$0xff]  ;;  %v4327_v61 = vadd.f32 %v4326_v49, %v4071_v3  ;;  %v2584_v0 = vld [vmem:[%s10989_s21 + $0x1f0] sm:$0xff]  ;;  %v2585_v1 = vld [vmem:[%s10989_s21 + $0x1f8] sm:$0xff]  ;;  %v4113_v12 = vadd.f32 %v3857_v48, %v3601_v40  ;;  %v3094_v13 = vadd.f32 %v2838_v52, %v2582_v50  ;;  %v4368_v3 = vadd.f32 %v4367_v60, %v4109_v19 }
 0x280   : > { %v6130_v55 = vmax.f32 %v6129_v41, %v4111_v43  ;;  %v2839_v2 = vld [vmem:[%s10991_s22 + $0x1e8] sm:$0xff]  ;;  %v2840_v51 = vld [vmem:[%s10991_s22 + $0x1f0] sm:$0xff]  ;;  %v2841_v9 = vld [vmem:[%s10991_s22 + $0x1f8] sm:$0xff]  ;;  %v3604_v18 = vadd.f32 %v3348_v42, %v3092_v29  ;;  %v4114_v23 = vadd.f32 %v3858_v57, %v3602_v53 }
 0x281   : > { %v3349_v54 = vld [vmem:[%s10993_s23 + $0x1d8] sm:$0xff]  ;;  %v3350_v14 = vld [vmem:[%s10993_s23 + $0x1e0] sm:$0xff]  ;;  %v3859_v5 = vld [vmem:[%s10995_s24 + $0x1c8] sm:$0xff]  ;;  %v4328_v15 = vadd.f32 %v4327_v61, %v11171_v4  ;;  %v3095_v8 = vadd.f32 %v2839_v2, %v2583_v58  ;;  %v4369_v16 = vadd.f32 %v4368_v3, %v4110_v31  ;;  %v3096_v29 = vadd.f32 %v2840_v51, %v2584_v0 }
 0x282   : > { %v6131_v11 = vmax.f32 %v6130_v55, %v4112_v56  ;;  %v3860_v20 = vld [vmem:[%s10995_s24 + $0x1d0] sm:$0xff]  ;;  %v2538_v24 = vld [vmem:[%s10989_s21 + $0x80] sm:$0xff]  ;;  %v3351_v28 = vld [vmem:[%s10993_s23 + $0x1e8] sm:$0xff]  ;;  %v3605_v36 = vadd.f32 %v3349_v54, %v3093_v59  ;;  %v4115_v39 = vadd.f32 %v3859_v5, %v3603_v10  ;;  %v3097_v31 = vadd.f32 %v2841_v9, %v2585_v1 }
 0x283   : > { %v2540_v27 = vld [vmem:[%s10989_s21 + $0x90] sm:$0xff]  ;;  %v2541_v30 = vld [vmem:[%s10989_s21 + $0x98] sm:$0xff]  ;;  %v4329_v4 = vadd.f32 %v4328_v15, %v11190_v33  ;;  %v2539_v21 = vld [vmem:[%s10989_s21 + $0x88] sm:$0xff]  ;;  %v3606_v47 = vadd.f32 %v3350_v14, %v3094_v13  ;;  %v4370_v37 = vadd.f32 %v4369_v16, %v4111_v43  ;;  %v4116_v58 = vadd.f32 %v3860_v20, %v3604_v18 }
 0x284   : > { %v6132_v22 = vmax.f32 %v6131_v11, %v4113_v12  ;;  %v2796_v34 = vld [vmem:[%s10991_s22 + $0x90] sm:$0xff]  ;;  %v2797_v19 = vld [vmem:[%s10991_s22 + $0x98] sm:$0xff]  ;;  %v2794_v40 = vld [vmem:[%s10991_s22 + $0x80] sm:$0xff]  ;;  %v3607_v9 = vadd.f32 %v3351_v28, %v3095_v8 }
 0x285   : > { %v3352_v35 = vld [vmem:[%s10993_s23 + $0x1f0] sm:$0xff]  ;;  %v2795_v41 = vld [vmem:[%s10991_s22 + $0x88] sm:$0xff]  ;;  %v3861_v48 = vld [vmem:[%s10995_s24 + $0x1d8] sm:$0xff]  ;;  %4330 = vadd.xlane.f32.xlu0 %v4329_v4  ;;  %v3052_v42 = vadd.f32 %v2796_v34, %v2540_v27  ;;  %v3053_v57 = vadd.f32 %v2797_v19, %v2541_v30  ;;  %v4371_v61 = vadd.f32 %v4370_v37, %v4112_v56  ;;  %v3050_v43 = vadd.f32 %v2794_v40, %v2538_v24 }
 0x286   : > { %v6133_v38 = vmax.f32 %v6132_v22, %v4114_v23  ;;  %v2542_v49 = vld [vmem:[%s10989_s21 + $0xa0] sm:$0xff]  ;;  %v3353_v52 = vld [vmem:[%s10993_s23 + $0x1f8] sm:$0xff]  ;;  %v2543_v59 = vld [vmem:[%s10989_s21 + $0xa8] sm:$0xff]  ;;  %v3051_v1 = vadd.f32 %v2795_v41, %v2539_v21  ;;  %v4117_v13 = vadd.f32 %v3861_v48, %v3605_v36  ;;  %v3608_v56 = vadd.f32 %v3352_v35, %v3096_v29 }
 0x287   : > { %v2798_v50 = vld [vmem:[%s10991_s22 + $0xa0] sm:$0xff]  ;;  %v3863_v60 = vld [vmem:[%s10995_s24 + $0x1e8] sm:$0xff]  ;;  %v3308_v2 = vld [vmem:[%s10993_s23 + $0x90] sm:$0xff]  ;;  %v3609_v3 = vadd.f32 %v3353_v52, %v3097_v31  ;;  %v4372_v18 = vadd.f32 %v4371_v61, %v4113_v12 }
 0x288   : > { %v3862_v53 = vld [vmem:[%s10995_s24 + $0x1e0] sm:$0xff]  ;;  %v6134_v55 = vmax.f32 %v6133_v38, %v4115_v39  ;;  %v2799_v0 = vld [vmem:[%s10991_s22 + $0xa8] sm:$0xff]  ;;  %v3309_v51 = vld [vmem:[%s10993_s23 + $0x98] sm:$0xff]  ;;  %v3054_v54 = vadd.f32 %v2798_v50, %v2542_v49  ;;  %v3564_v34 = vadd.f32 %v3308_v2, %v3052_v42  ;;  %v4119_v41 = vadd.f32 %v3863_v60, %v3607_v9 }
 0x289   : > { %v3864_v10 = vld [vmem:[%s10995_s24 + $0x1f0] sm:$0xff]  ;;  %v3306_v14 = vld [vmem:[%s10993_s23 + $0x80] sm:$0xff]  ;;  %v3307_v5 = vld [vmem:[%s10993_s23 + $0x88] sm:$0xff]  ;;  %v4118_v15 = vadd.f32 %v3862_v53, %v3606_v47  ;;  %v3055_v30 = vadd.f32 %v2799_v0, %v2543_v59  ;;  %v3565_v19 = vadd.f32 %v3309_v51, %v3053_v57  ;;  %v4373_v4 = vadd.f32 %v4372_v18, %v4114_v23 }
 0x28a   : > { %v6135_v11 = vmax.f32 %v6134_v55, %v4116_v58  ;;  %v2544_v20 = vld [vmem:[%s10989_s21 + $0xb0] sm:$0xff]  ;;  %v3310_v24 = vld [vmem:[%s10993_s23 + $0xa0] sm:$0xff]  ;;  %v3865_v27 = vld [vmem:[%s10995_s24 + $0x1f8] sm:$0xff]  ;;  %v3562_v12 = vadd.f32 %v3306_v14, %v3050_v43  ;;  %v3563_v21 = vadd.f32 %v3307_v5, %v3051_v1  ;;  %v4120_v49 = vadd.f32 %v3864_v10, %v3608_v56 }
 0x28b   : > { %v2800_v22 = vld [vmem:[%s10991_s22 + $0xb0] sm:$0xff]  ;;  %v2545_v28 = vld [vmem:[%s10989_s21 + $0xb8] sm:$0xff]  ;;  %v2546_v35 = vld [vmem:[%s10989_s21 + $0xc0] sm:$0xff]  ;;  %v3566_v31 = vadd.f32 %v3310_v24, %v3054_v54  ;;  %v11253_v23 = vadd.f32 %v3865_v27, %v3609_v3  ;;  %v4374_v50 = vadd.f32 %v4373_v4, %v4115_v39 }
 0x28c   : > { %v6136_v8 = vmax.f32 %v6135_v11, %v4117_v13  ;;  %v2801_v16 = vld [vmem:[%s10991_s22 + $0xb8] sm:$0xff]  ;;  %v2802_v36 = vld [vmem:[%s10991_s22 + $0xc0] sm:$0xff]  ;;  %v3311_v38 = vld [vmem:[%s10993_s23 + $0xa8] sm:$0xff]  ;;  %v3056_v29 = vadd.f32 %v2800_v22, %v2544_v20 }
 0x28d   : > { %v3818_v47 = vld [vmem:[%s10995_s24 + $0x80] sm:$0xff]  ;;  %v3819_v48 = vld [vmem:[%s10995_s24 + $0x88] sm:$0xff]  ;;  %v3820_v37 = vld [vmem:[%s10995_s24 + $0x90] sm:$0xff]  ;;  %13495 = vst [vmem:[#allocation8_spill] sm:$0xff] %v11253_v23  ;;  %v3057_v52 = vadd.f32 %v2801_v16, %v2545_v28  ;;  %v3567_v60 = vadd.f32 %v3311_v38, %v3055_v30  ;;  %v4375_v1 = vadd.f32 %v4374_v50, %v4116_v58  ;;  %v3058_v2 = vadd.f32 %v2802_v36, %v2546_v35 }
 0x28e   : > { %v6137_v40 = vmax.f32 %v6136_v8, %v4118_v15  ;;  %v3312_v53 = vld [vmem:[%s10993_s23 + $0xb0] sm:$0xff]  ;;  %v3821_v55 = vld [vmem:[%s10995_s24 + $0x98] sm:$0xff]  ;;  %v3822_v59 = vld [vmem:[%s10995_s24 + $0xa0] sm:$0xff]  ;;  %v4076_v0 = vadd.f32 %v3820_v37, %v3564_v34  ;;  %v11262_v9 = vadd.f32 %v3818_v47, %v3562_v12  ;;  %v11264_v10 = vadd.f32 %v3819_v48, %v3563_v21 }
 0x28f   : > { %v2547_v57 = vld [vmem:[%s10989_s21 + $0xc8] sm:$0xff]  ;;  %v4077_v43 = vadd.f32 %v3821_v55, %v3565_v19  ;;  %v3313_v51 = vld [vmem:[%s10993_s23 + $0xb8] sm:$0xff]  ;;  %v2548_v54 = vld [vmem:[%s10989_s21 + $0xd0] sm:$0xff]  ;;  %v3568_v14 = vadd.f32 %v3312_v53, %v3056_v29  ;;  %v4078_v56 = vadd.f32 %v3822_v59, %v3566_v31  ;;  %v4376_v3 = vadd.f32 %v4375_v1, %v4117_v13 }
 0x290   : > { %v6138_v42 = vmax.f32 %v6137_v40, %v4119_v41  ;;  %v2803_v61 = vld [vmem:[%s10991_s22 + $0xc8] sm:$0xff]  ;;  %v2804_v58 = vld [vmem:[%s10991_s22 + $0xd0] sm:$0xff]  ;;  %v3314_v20 = vld [vmem:[%s10993_s23 + $0xc0] sm:$0xff]  ;;  %v3569_v28 = vadd.f32 %v3313_v51, %v3057_v52  ;;  %v4332_v35 = vadd.f32 %v11264_v10, %v11262_v9 }
 0x291   : > { %v3823_v39 = vld [vmem:[%s10995_s24 + $0xa8] sm:$0xff]  ;;  %v6094_v5 = vmax.f32 %v4077_v43, %v4076_v0  ;;  %v3059_v18 = vadd.f32 %v2803_v61, %v2547_v57  ;;  %v3824_v22 = vld [vmem:[%s10995_s24 + $0xb0] sm:$0xff]  ;;  %v2549_v27 = vld [vmem:[%s10989_s21 + $0xd8] sm:$0xff]  ;;  %v4377_v34 = vadd.f32 %v4376_v3, %v4118_v15  ;;  %v3060_v21 = vadd.f32 %v2804_v58, %v2548_v54 }
 0x292   : > { %v11266_v11 = vmax.f32 %v6138_v42, %v4120_v49  ;;  %v2550_v8 = vld [vmem:[%s10989_s21 + $0xe0] sm:$0xff]  ;;  %v4079_v30 = vadd.f32 %v3823_v39, %v3567_v60  ;;  %v2805_v13 = vld [vmem:[%s10991_s22 + $0xd8] sm:$0xff]  ;;  %v3315_v19 = vld [vmem:[%s10993_s23 + $0xc8] sm:$0xff]  ;;  %v3570_v40 = vadd.f32 %v3314_v20, %v3058_v2  ;;  %v4080_v31 = vadd.f32 %v3824_v22, %v3568_v14 }
 0x293   : > { %v6095_v16 = vmax.f32 %v6094_v5, %v4078_v56  ;;  %v3825_v4 = vld [vmem:[%s10995_s24 + $0xb8] sm:$0xff]  ;;  %v2551_v36 = vld [vmem:[%s10989_s21 + $0xe8] sm:$0xff]  ;;  %v2806_v38 = vld [vmem:[%s10991_s22 + $0xe0] sm:$0xff]  ;;  %v4378_v47 = vadd.f32 %v4377_v34, %v4119_v41  ;;  %v4333_v52 = vadd.f32 %v4332_v35, %v4076_v0  ;;  %v3061_v53 = vadd.f32 %v2805_v13, %v2549_v27 }
 0x294   : > { %13496 = vst [vmem:[#allocation9_spill] sm:$0xff] %v11266_v11  ;;  %v2807_v12 = vld [vmem:[%s10991_s22 + $0xe8] sm:$0xff]  ;;  %v2552_v15 = vld [vmem:[%s10989_s21 + $0xf0] sm:$0xff]  ;;  %v3826_v50 = vld [vmem:[%s10995_s24 + $0xc0] sm:$0xff]  ;;  %v3571_v42 = vadd.f32 %v3315_v19, %v3059_v18  ;;  %v4081_v60 = vadd.f32 %v3825_v4, %v3569_v28  ;;  %v3062_v1 = vadd.f32 %v2806_v38, %v2550_v8 }
 0x295   : > { %v6096_v29 = vmax.f32 %v6095_v16, %v4079_v30  ;;  %v2808_v48 = vld [vmem:[%s10991_s22 + $0xf0] sm:$0xff]  ;;  %v3317_v55 = vld [vmem:[%s10993_s23 + $0xd8] sm:$0xff]  ;;  %v3318_v59 = vld [vmem:[%s10993_s23 + $0xe0] sm:$0xff]  ;;  %v4379_v41 = vadd.f32 %v4378_v47, %v4120_v49  ;;  %v4334_v51 = vadd.f32 %v4333_v52, %v4077_v43  ;;  %v4082_v58 = vadd.f32 %v3826_v50, %v3570_v40 }
 0x296   : > { %v3316_v37 = vld [vmem:[%s10993_s23 + $0xd0] sm:$0xff]  ;;  %v3827_v57 = vld [vmem:[%s10995_s24 + $0xc8] sm:$0xff]  ;;  %v2602_v39 = vld [vmem:[%s10989_s21 + $0x280] sm:$0xff]  ;;  %v3063_v27 = vadd.f32 %v2807_v12, %v2551_v36  ;;  %v3064_v34 = vadd.f32 %v2808_v48, %v2552_v15  ;;  %v3573_v19 = vadd.f32 %v3317_v55, %v3061_v53  ;;  %v3574_v36 = vadd.f32 %v3318_v59, %v3062_v1 }
 0x297   : > { %v6097_v61 = vmax.f32 %v6096_v29, %v4080_v31  ;;  %v3828_v2 = vld [vmem:[%s10995_s24 + $0xd0] sm:$0xff]  ;;  %v2553_v0 = vld [vmem:[%s10989_s21 + $0xf8] sm:$0xff]  ;;  %v3572_v5 = vadd.f32 %v3316_v37, %v3060_v21  ;;  %v4380_v22 = vadd.f32 %v4379_v41, %v11253_v23  ;;  %v4335_v43 = vadd.f32 %v4334_v51, %v4078_v56  ;;  %v2603_v8 = vld [vmem:[%s10989_s21 + $0x288] sm:$0xff] }
 0x298   : > { %v2604_v54 = vld [vmem:[%s10989_s21 + $0x290] sm:$0xff]  ;;  %v2809_v14 = vld [vmem:[%s10991_s22 + $0xf8] sm:$0xff]  ;;  %v2858_v28 = vld [vmem:[%s10991_s22 + $0x280] sm:$0xff]  ;;  %v4083_v35 = vadd.f32 %v3827_v57, %v3571_v42 }
 0x299   : > { %v6098_v3 = vmax.f32 %v6097_v61, %v4081_v60  ;;  %v2605_v18 = vld [vmem:[%s10989_s21 + $0x298] sm:$0xff]  ;;  %v2860_v20 = vld [vmem:[%s10991_s22 + $0x290] sm:$0xff]  ;;  %v2859_v16 = vld [vmem:[%s10991_s22 + $0x288] sm:$0xff]  ;;  %4381 = vadd.xlane.f32.xlu1 %v4380_v22  ;;  %v4336_v29 = vadd.f32 %v4335_v43, %v4079_v30  ;;  %v4084_v50 = vadd.f32 %v3828_v2, %v3572_v5  ;;  %v3114_v55 = vadd.f32 %v2858_v28, %v2602_v39 }
 0x29a   : > { %v2861_v49 = vld [vmem:[%s10991_s22 + $0x298] sm:$0xff]  ;;  %v3319_v13 = vld [vmem:[%s10993_s23 + $0xe8] sm:$0xff]  ;;  %v2606_v38 = vld [vmem:[%s10989_s21 + $0x2a0] sm:$0xff]  ;;  %v3116_v47 = vadd.f32 %v2860_v20, %v2604_v54  ;;  %v3115_v42 = vadd.f32 %v2859_v16, %v2603_v8  ;;  %v3065_v57 = vadd.f32 %v2809_v14, %v2553_v0 }
 0x29b   : > { %v6099_v4 = vmax.f32 %v6098_v3, %v4082_v58  ;;  %v2862_v21 = vld [vmem:[%s10991_s22 + $0x2a0] sm:$0xff]  ;;  %v3320_v40 = vld [vmem:[%s10993_s23 + $0xf0] sm:$0xff]  ;;  %v3829_v12 = vld [vmem:[%s10995_s24 + $0xd8] sm:$0xff]  ;;  %v3117_v15 = vadd.f32 %v2861_v49, %v2605_v18  ;;  %v4337_v30 = vadd.f32 %v4336_v29, %v4080_v31  ;;  %v3575_v3 = vadd.f32 %v3319_v13, %v3063_v27 }
 0x29c   : > { %v3830_v56 = vld [vmem:[%s10995_s24 + $0xe0] sm:$0xff]  ;;  %v3321_v48 = vld [vmem:[%s10993_s23 + $0xf8] sm:$0xff]  ;;  %v2607_v52 = vld [vmem:[%s10989_s21 + $0x2a8] sm:$0xff]  ;;  %v3118_v41 = vadd.f32 %v2862_v21, %v2606_v38  ;;  %v3576_v2 = vadd.f32 %v3320_v40, %v3064_v34  ;;  %v4085_v39 = vadd.f32 %v3829_v12, %v3573_v19 }
 0x29d   : > { %v6100_v37 = vmax.f32 %v6099_v4, %v4083_v35  ;;  %v2863_v53 = vld [vmem:[%s10991_s22 + $0x2a8] sm:$0xff]  ;;  %v3372_v59 = vld [vmem:[%s10993_s23 + $0x290] sm:$0xff]  ;;  %v3370_v1 = vld [vmem:[%s10993_s23 + $0x280] sm:$0xff]  ;;  %v4338_v0 = vadd.f32 %v4337_v30, %v4081_v60  ;;  %v4086_v16 = vadd.f32 %v3830_v56, %v3574_v36  ;;  %v3577_v60 = vadd.f32 %v3321_v48, %v3065_v57 }
 0x29e   : > { %v3831_v61 = vld [vmem:[%s10995_s24 + $0xe8] sm:$0xff]  ;;  %v3373_v54 = vld [vmem:[%s10993_s23 + $0x298] sm:$0xff]  ;;  %v2608_v18 = vld [vmem:[%s10989_s21 + $0x2b0] sm:$0xff]  ;;  %v3119_v31 = vadd.f32 %v2863_v53, %v2607_v52  ;;  %v3628_v8 = vadd.f32 %v3372_v59, %v3116_v47  ;;  %v3626_v4 = vadd.f32 %v3370_v1, %v3114_v55 }
 0x29f   : > { %v3371_v51 = vld [vmem:[%s10993_s23 + $0x288] sm:$0xff]  ;;  %v6101_v5 = vmax.f32 %v6100_v37, %v4084_v50  ;;  %v2864_v20 = vld [vmem:[%s10991_s22 + $0x2b0] sm:$0xff]  ;;  %v3374_v49 = vld [vmem:[%s10993_s23 + $0x2a0] sm:$0xff]  ;;  %v3629_v28 = vadd.f32 %v3373_v54, %v3117_v15  ;;  %v4339_v21 = vadd.f32 %v4338_v0, %v4082_v58  ;;  %v4087_v36 = vadd.f32 %v3831_v61, %v3575_v3 }
 0x2a0   : > { %v3832_v22 = vld [vmem:[%s10995_s24 + $0xf0] sm:$0xff]  ;;  %v2609_v14 = vld [vmem:[%s10989_s21 + $0x2b8] sm:$0xff]  ;;  %v2610_v34 = vld [vmem:[%s10989_s21 + $0x2c0] sm:$0xff]  ;;  %v3627_v38 = vadd.f32 %v3371_v51, %v3115_v42  ;;  %v3120_v40 = vadd.f32 %v2864_v20, %v2608_v18  ;;  %v3630_v29 = vadd.f32 %v3374_v49, %v3118_v41 }
 0x2a1   : > { %v2865_v43 = vld [vmem:[%s10991_s22 + $0x2b8] sm:$0xff]  ;;  %v6102_v27 = vmax.f32 %v6101_v5, %v4085_v39  ;;  %v2866_v13 = vld [vmem:[%s10991_s22 + $0x2c0] sm:$0xff]  ;;  %v3375_v19 = vld [vmem:[%s10993_s23 + $0x2a8] sm:$0xff]  ;;  %v11329_v56 = vadd.f32 %v3832_v22, %v3576_v2  ;;  %v4340_v58 = vadd.f32 %v4339_v21, %v4083_v35 }
 0x2a2   : > { %v3376_v12 = vld [vmem:[%s10993_s23 + $0x2b0] sm:$0xff]  ;;  %v3882_v47 = vld [vmem:[%s10995_s24 + $0x280] sm:$0xff]  ;;  %v3883_v15 = vld [vmem:[%s10995_s24 + $0x288] sm:$0xff]  ;;  %v3121_v52 = vadd.f32 %v2865_v43, %v2609_v14  ;;  %v3631_v30 = vadd.f32 %v3375_v19, %v3119_v31  ;;  %v3122_v61 = vadd.f32 %v2866_v13, %v2610_v34 }
 0x2a3   : > { %v6103_v37 = vmax.f32 %v6102_v27, %v4086_v16  ;;  %v3884_v53 = vld [vmem:[%s10995_s24 + $0x290] sm:$0xff]  ;;  %v3885_v55 = vld [vmem:[%s10995_s24 + $0x298] sm:$0xff]  ;;  %v3886_v42 = vld [vmem:[%s10995_s24 + $0x2a0] sm:$0xff]  ;;  %v11339_v2 = vadd.f32 %v3882_v47, %v3626_v4  ;;  %v11341_v5 = vadd.f32 %v3883_v15, %v3627_v38  ;;  %v4341_v18 = vadd.f32 %v4340_v58, %v4084_v50 }
 0x2a4   : > { %v3833_v48 = vld [vmem:[%s10995_s24 + $0xf8] sm:$0xff]  ;;  %v2611_v59 = vld [vmem:[%s10989_s21 + $0x2c8] sm:$0xff]  ;;  %v4140_v41 = vadd.f32 %v3884_v53, %v3628_v8  ;;  %v4141_v1 = vadd.f32 %v3885_v55, %v3629_v28  ;;  %v2612_v20 = vld [vmem:[%s10989_s21 + $0x2d0] sm:$0xff]  ;;  %v3632_v49 = vadd.f32 %v3376_v12, %v3120_v40  ;;  %v4142_v0 = vadd.f32 %v3886_v42, %v3630_v29 }
 0x2a5   : > { %v2867_v57 = vld [vmem:[%s10991_s22 + $0x2c8] sm:$0xff]  ;;  %v6104_v51 = vmax.f32 %v6103_v37, %v4087_v36  ;;  %v3377_v54 = vld [vmem:[%s10993_s23 + $0x2b8] sm:$0xff]  ;;  %v2868_v35 = vld [vmem:[%s10991_s22 + $0x2d0] sm:$0xff]  ;;  %v11348_v43 = vadd.f32 %v3833_v48, %v3577_v60  ;;  %v4342_v27 = vadd.f32 %v4341_v18, %v4085_v39  ;;  %v4400_v39 = vadd.f32 %v11341_v5, %v11339_v2 }
 0x2a6   : > { %v3887_v3 = vld [vmem:[%s10995_s24 + $0x2a8] sm:$0xff]  ;;  %v6162_v22 = vmax.f32 %v4141_v1, %v4140_v41  ;;  %v3123_v31 = vadd.f32 %v2867_v57, %v2611_v59  ;;  %v3378_v8 = vld [vmem:[%s10993_s23 + $0x2c0] sm:$0xff]  ;;  %v3888_v28 = vld [vmem:[%s10995_s24 + $0x2b0] sm:$0xff]  ;;  %v3633_v13 = vadd.f32 %v3377_v54, %v3121_v52  ;;  %v3124_v21 = vadd.f32 %v2868_v35, %v2612_v20 }
 0x2a7   : > { %v11346_v14 = vmax.f32 %v6104_v51, %v11329_v56  ;;  %v2613_v34 = vld [vmem:[%s10989_s21 + $0x2d8] sm:$0xff]  ;;  %v4143_v4 = vadd.f32 %v3887_v3, %v3631_v30  ;;  %v3379_v60 = vld [vmem:[%s10993_s23 + $0x2c8] sm:$0xff]  ;;  %v4343_v12 = vadd.f32 %v4342_v27, %v4086_v16  ;;  %v2614_v29 = vld [vmem:[%s10989_s21 + $0x2e0] sm:$0xff]  ;;  %v3634_v15 = vadd.f32 %v3378_v8, %v3122_v61 }
 0x2a8   : > { %v2869_v50 = vld [vmem:[%s10991_s22 + $0x2d8] sm:$0xff]  ;;  %v6163_v19 = vmax.f32 %v6162_v22, %v4142_v0  ;;  %v2870_v47 = vld [vmem:[%s10991_s22 + $0x2e0] sm:$0xff]  ;;  %v4144_v52 = vadd.f32 %v3888_v28, %v3632_v49  ;;  %v2615_v53 = vld [vmem:[%s10989_s21 + $0x2e8] sm:$0xff]  ;;  %v4401_v58 = vadd.f32 %v4400_v39, %v4140_v41  ;;  %v3635_v61 = vadd.f32 %v3379_v60, %v3123_v31 }
 0x2a9   : > { %v3889_v40 = vld [vmem:[%s10995_s24 + $0x2b8] sm:$0xff]  ;;  %v3125_v55 = vadd.f32 %v2869_v50, %v2613_v34  ;;  %v3380_v42 = vld [vmem:[%s10993_s23 + $0x2d0] sm:$0xff]  ;;  %v3890_v48 = vld [vmem:[%s10995_s24 + $0x2c0] sm:$0xff]  ;;  %v4344_v59 = vadd.f32 %v4343_v12, %v4087_v36  ;;  %v3126_v20 = vadd.f32 %v2870_v47, %v2614_v29 }
 0x2aa   : > { %v6164_v37 = vmax.f32 %v6163_v19, %v4143_v4  ;;  %v2616_v57 = vld [vmem:[%s10989_s21 + $0x2f0] sm:$0xff]  ;;  %v2617_v30 = vld [vmem:[%s10989_s21 + $0x2f8] sm:$0xff]  ;;  %v2871_v51 = vld [vmem:[%s10991_s22 + $0x2e8] sm:$0xff]  ;;  %v4145_v18 = vadd.f32 %v3889_v40, %v3633_v13  ;;  %v4402_v36 = vadd.f32 %v4401_v58, %v4141_v1  ;;  %v3636_v8 = vadd.f32 %v3380_v42, %v3124_v21 }
 0x2ab   : > { %v2872_v16 = vld [vmem:[%s10991_s22 + $0x2f0] sm:$0xff]  ;;  %v2873_v54 = vld [vmem:[%s10991_s22 + $0x2f8] sm:$0xff]  ;;  %v3382_v49 = vld [vmem:[%s10993_s23 + $0x2e0] sm:$0xff]  ;;  %v4345_v22 = vadd.f32 %v4344_v59, %v11329_v56  ;;  %v4146_v31 = vadd.f32 %v3890_v48, %v3634_v15  ;;  %v3127_v13 = vadd.f32 %v2871_v51, %v2615_v53 }
 0x2ac   : > { %v6165_v3 = vmax.f32 %v6164_v37, %v4144_v52  ;;  %v3381_v35 = vld [vmem:[%s10993_s23 + $0x2d8] sm:$0xff]  ;;  %v3891_v41 = vld [vmem:[%s10995_s24 + $0x2c8] sm:$0xff]  ;;  %v3892_v28 = vld [vmem:[%s10995_s24 + $0x2d0] sm:$0xff]  ;;  %v4403_v60 = vadd.f32 %v4402_v36, %v4142_v0  ;;  %v3128_v0 = vadd.f32 %v2872_v16, %v2616_v57  ;;  %v3129_v42 = vadd.f32 %v2873_v54, %v2617_v30 }
 0x2ad   : > { %v2586_v34 = vld [vmem:[%s10989_s21 + $0x200] sm:$0xff]  ;;  %v2588_v50 = vld [vmem:[%s10989_s21 + $0x210] sm:$0xff]  ;;  %v3383_v19 = vld [vmem:[%s10993_s23 + $0x2e8] sm:$0xff]  ;;  %v4346_v56 = vadd.f32 %v4345_v22, %v11348_v43  ;;  %v3637_v12 = vadd.f32 %v3381_v35, %v3125_v55  ;;  %v11383_v47 = vadd.f32 %v3891_v41, %v3635_v61  ;;  %v3638_v48 = vadd.f32 %v3382_v49, %v3126_v20 }
 0x2ae   : > { %v6166_v27 = vmax.f32 %v6165_v3, %v4145_v18  ;;  %v2589_v40 = vld [vmem:[%s10989_s21 + $0x218] sm:$0xff]  ;;  %v2844_v39 = vld [vmem:[%s10991_s22 + $0x210] sm:$0xff]  ;;  %v2587_v15 = vld [vmem:[%s10989_s21 + $0x208] sm:$0xff]  ;;  %v4404_v59 = vadd.f32 %v4403_v60, %v4143_v4  ;;  %v4148_v41 = vadd.f32 %v3892_v28, %v3636_v8  ;;  %v3639_v60 = vadd.f32 %v3383_v19, %v3127_v13 }
 0x2af   : > { %v2845_v1 = vld [vmem:[%s10991_s22 + $0x218] sm:$0xff]  ;;  %v3384_v21 = vld [vmem:[%s10993_s23 + $0x2f0] sm:$0xff]  ;;  %v2842_v37 = vld [vmem:[%s10991_s22 + $0x200] sm:$0xff]  ;;  %4347 = vadd.xlane.f32.xlu0 %v4346_v56  ;;  %v3100_v57 = vadd.f32 %v2844_v39, %v2588_v50 }
 0x2b0   : > { %v6167_v29 = vmax.f32 %v6166_v27, %v4146_v31  ;;  %v2843_v53 = vld [vmem:[%s10991_s22 + $0x208] sm:$0xff]  ;;  %v3893_v58 = vld [vmem:[%s10995_s24 + $0x2d8] sm:$0xff]  ;;  %v2590_v51 = vld [vmem:[%s10989_s21 + $0x220] sm:$0xff]  ;;  %v3101_v30 = vadd.f32 %v2845_v1, %v2589_v40  ;;  %v4405_v54 = vadd.f32 %v4404_v59, %v4144_v52  ;;  %v3098_v20 = vadd.f32 %v2842_v37, %v2586_v34 }
 0x2b1   : > { %v2846_v3 = vld [vmem:[%s10991_s22 + $0x220] sm:$0xff]  ;;  %v3385_v55 = vld [vmem:[%s10993_s23 + $0x2f8] sm:$0xff]  ;;  %v2591_v36 = vld [vmem:[%s10989_s21 + $0x228] sm:$0xff]  ;;  %v3099_v49 = vadd.f32 %v2843_v53, %v2587_v15  ;;  %v4149_v50 = vadd.f32 %v3893_v58, %v3637_v12  ;;  %v3640_v52 = vadd.f32 %v3384_v21, %v3128_v0 }
 0x2b2   : > { %v3894_v61 = vld [vmem:[%s10995_s24 + $0x2e0] sm:$0xff]  ;;  %v6168_v35 = vmax.f32 %v6167_v29, %v11383_v47  ;;  %v3895_v16 = vld [vmem:[%s10995_s24 + $0x2e8] sm:$0xff]  ;;  %v3356_v22 = vld [vmem:[%s10993_s23 + $0x210] sm:$0xff]  ;;  %v3102_v39 = vadd.f32 %v2846_v3, %v2590_v51  ;;  %v3641_v34 = vadd.f32 %v3385_v55, %v3129_v42  ;;  %v4406_v15 = vadd.f32 %v4405_v54, %v4145_v18 }
 0x2b3   : > { %v2847_v4 = vld [vmem:[%s10991_s22 + $0x228] sm:$0xff]  ;;  %v3357_v27 = vld [vmem:[%s10993_s23 + $0x218] sm:$0xff]  ;;  %v3896_v56 = vld [vmem:[%s10995_s24 + $0x2f0] sm:$0xff]  ;;  %v4150_v29 = vadd.f32 %v3894_v61, %v3638_v48  ;;  %v3612_v58 = vadd.f32 %v3356_v22, %v3100_v57  ;;  %v4151_v61 = vadd.f32 %v3895_v16, %v3639_v60 }
 0x2b4   : > { %v3897_v8 = vld [vmem:[%s10995_s24 + $0x2f8] sm:$0xff]  ;;  %v6169_v28 = vmax.f32 %v6168_v35, %v4148_v41  ;;  %v3354_v40 = vld [vmem:[%s10993_s23 + $0x200] sm:$0xff]  ;;  %v3355_v1 = vld [vmem:[%s10993_s23 + $0x208] sm:$0xff]  ;;  %v3103_v12 = vadd.f32 %v2847_v4, %v2591_v36  ;;  %v3613_v51 = vadd.f32 %v3357_v27, %v3101_v30  ;;  %v4407_v3 = vadd.f32 %v4406_v15, %v4146_v31 }
 0x2b5   : > { %v2592_v37 = vld [vmem:[%s10989_s21 + $0x230] sm:$0xff]  ;;  %v3358_v13 = vld [vmem:[%s10993_s23 + $0x220] sm:$0xff]  ;;  %v2593_v59 = vld [vmem:[%s10989_s21 + $0x238] sm:$0xff]  ;;  %v3610_v18 = vadd.f32 %v3354_v40, %v3098_v20  ;;  %v3611_v42 = vadd.f32 %v3355_v1, %v3099_v49  ;;  %v4152_v57 = vadd.f32 %v3896_v56, %v3640_v52  ;;  %v11415_v31 = vadd.f32 %v3897_v8, %v3641_v34 }
 0x2b6   : > { %v2848_v53 = vld [vmem:[%s10991_s22 + $0x230] sm:$0xff]  ;;  %v6170_v19 = vmax.f32 %v6169_v28, %v4149_v50  ;;  %v2594_v24 = vld [vmem:[%s10989_s21 + $0x240] sm:$0xff]  ;;  %v2849_v35 = vld [vmem:[%s10991_s22 + $0x238] sm:$0xff]  ;;  %v3614_v28 = vadd.f32 %v3358_v13, %v3102_v39  ;;  %v4408_v30 = vadd.f32 %v4407_v3, %v11383_v47 }
 0x2b7   : > { %v2850_v21 = vld [vmem:[%s10991_s22 + $0x240] sm:$0xff]  ;;  %v3359_v0 = vld [vmem:[%s10993_s23 + $0x228] sm:$0xff]  ;;  %v3104_v54 = vadd.f32 %v2848_v53, %v2592_v37  ;;  %v3868_v38 = vld [vmem:[%s10995_s24 + $0x210] sm:$0xff]  ;;  %13497 = vst [vmem:[#allocation10_spill] sm:$0xff] %v11415_v31  ;;  %v3105_v4 = vadd.f32 %v2849_v35, %v2593_v59 }
 0x2b8   : > { %v3866_v48 = vld [vmem:[%s10995_s24 + $0x200] sm:$0xff]  ;;  %v6171_v55 = vmax.f32 %v6170_v19, %v4150_v29  ;;  %v3867_v17 = vld [vmem:[%s10995_s24 + $0x208] sm:$0xff]  ;;  %v3869_v36 = vld [vmem:[%s10995_s24 + $0x218] sm:$0xff]  ;;  %v3615_v16 = vadd.f32 %v3359_v0, %v3103_v12  ;;  %v4124_v60 = vadd.f32 %v3868_v38, %v3612_v58  ;;  %v4409_v1 = vadd.f32 %v4408_v30, %v4148_v41 }
 0x2b9   : > { %v3360_v20 = vld [vmem:[%s10993_s23 + $0x230] sm:$0xff]  ;;  %v3870_v49 = vld [vmem:[%s10995_s24 + $0x220] sm:$0xff]  ;;  %v2595_v27 = vld [vmem:[%s10989_s21 + $0x248] sm:$0xff]  ;;  %v4125_v39 = vadd.f32 %v3869_v36, %v3613_v51  ;;  %v3106_v15 = vadd.f32 %v2850_v21, %v2594_v24  ;;  %v11424_v47 = vadd.f32 %v3866_v48, %v3610_v18  ;;  %v11426_v52 = vadd.f32 %v3867_v17, %v3611_v42 }
 0x2ba   : > { %v6172_v22 = vmax.f32 %v6171_v55, %v4151_v61  ;;  %v2851_v40 = vld [vmem:[%s10991_s22 + $0x248] sm:$0xff]  ;;  %v3361_v56 = vld [vmem:[%s10993_s23 + $0x238] sm:$0xff]  ;;  %v2596_v37 = vld [vmem:[%s10989_s21 + $0x250] sm:$0xff]  ;;  %v3616_v53 = vadd.f32 %v3360_v20, %v3104_v54  ;;  %v4126_v13 = vadd.f32 %v3870_v49, %v3614_v28  ;;  %v4410_v19 = vadd.f32 %v4409_v1, %v4149_v50 }
 0x2bb   : > { %v3871_v8 = vld [vmem:[%s10995_s24 + $0x228] sm:$0xff]  ;;  %v6145_v38 = vmax.f32 %v4125_v39, %v4124_v60  ;;  %v2852_v24 = vld [vmem:[%s10991_s22 + $0x250] sm:$0xff]  ;;  %v3107_v41 = vadd.f32 %v2851_v40, %v2595_v27  ;;  %v3362_v59 = vld [vmem:[%s10993_s23 + $0x240] sm:$0xff]  ;;  %v3617_v51 = vadd.f32 %v3361_v56, %v3105_v4  ;;  %v4383_v48 = vadd.f32 %v11426_v52, %v11424_v47 }
 0x2bc   : > { %v11428_v34 = vmax.f32 %v6172_v22, %v4152_v57  ;;  %v3872_v35 = vld [vmem:[%s10995_s24 + $0x230] sm:$0xff]  ;;  %v2597_v12 = vld [vmem:[%s10989_s21 + $0x258] sm:$0xff]  ;;  %v2598_v58 = vld [vmem:[%s10989_s21 + $0x260] sm:$0xff]  ;;  %v4127_v21 = vadd.f32 %v3871_v8, %v3615_v16  ;;  %v4411_v0 = vadd.f32 %v4410_v19, %v4150_v29  ;;  %v3108_v36 = vadd.f32 %v2852_v24, %v2596_v37 }
 0x2bd   : > { %v6146_v3 = vmax.f32 %v6145_v38, %v4126_v13  ;;  %v2853_v50 = vld [vmem:[%s10991_s22 + $0x258] sm:$0xff]  ;;  %v3363_v18 = vld [vmem:[%s10993_s23 + $0x248] sm:$0xff]  ;;  %v2854_v54 = vld [vmem:[%s10991_s22 + $0x260] sm:$0xff]  ;;  %v3618_v30 = vadd.f32 %v3362_v59, %v3106_v15  ;;  %v4128_v20 = vadd.f32 %v3872_v35, %v3616_v53  ;;  %v4384_v16 = vadd.f32 %v4383_v48, %v4124_v60 }
 0x2be   : > { %13498 = vst [vmem:[#allocation11_spill] sm:$0xff] %v11428_v34  ;;  %v3873_v42 = vld [vmem:[%s10995_s24 + $0x238] sm:$0xff]  ;;  %v2599_v55 = vld [vmem:[%s10989_s21 + $0x268] sm:$0xff]  ;;  %v4412_v49 = vadd.f32 %v4411_v0, %v4151_v61  ;;  %v2600_v29 = vld [vmem:[%s10989_s21 + $0x270] sm:$0xff]  ;;  %v3109_v1 = vadd.f32 %v2853_v50, %v2597_v12  ;;  %v3619_v38 = vadd.f32 %v3363_v18, %v3107_v41  ;;  %v3110_v19 = vadd.f32 %v2854_v54, %v2598_v58 }
 0x2bf   : > { %v2855_v28 = vld [vmem:[%s10991_s22 + $0x268] sm:$0xff]  ;;  %v6147_v4 = vmax.f32 %v6146_v3, %v4127_v21  ;;  %v2856_v22 = vld [vmem:[%s10991_s22 + $0x270] sm:$0xff]  ;;  %v3874_v40 = vld [vmem:[%s10995_s24 + $0x240] sm:$0xff]  ;;  %v4129_v53 = vadd.f32 %v3873_v42, %v3617_v51  ;;  %v4385_v59 = vadd.f32 %v4384_v16, %v4125_v39 }
 0x2c0   : > { %v3364_v27 = vld [vmem:[%s10993_s23 + $0x250] sm:$0xff]  ;;  %v3365_v56 = vld [vmem:[%s10993_s23 + $0x258] sm:$0xff]  ;;  %v3366_v8 = vld [vmem:[%s10993_s23 + $0x260] sm:$0xff]  ;;  %v4413_v61 = vadd.f32 %v4412_v49, %v4152_v57  ;;  %v4130_v50 = vadd.f32 %v3874_v40, %v3618_v30  ;;  %v3111_v42 = vadd.f32 %v2855_v28, %v2599_v55 }
 0x2c1   : > { %v3875_v15 = vld [vmem:[%s10995_s24 + $0x248] sm:$0xff]  ;;  %v6148_v37 = vmax.f32 %v6147_v4, %v4128_v20  ;;  %v3876_v24 = vld [vmem:[%s10995_s24 + $0x250] sm:$0xff]  ;;  %v2634_v35 = vld [vmem:[%s10989_s21 + $0x380] sm:$0xff]  ;;  %v3620_v0 = vadd.f32 %v3364_v27, %v3108_v36  ;;  %v4386_v48 = vadd.f32 %v4385_v59, %v4126_v13  ;;  %v3112_v36 = vadd.f32 %v2856_v22, %v2600_v29 }
 0x2c2   : > { %v2636_v60 = vld [vmem:[%s10989_s21 + $0x390] sm:$0xff]  ;;  %v2601_v12 = vld [vmem:[%s10989_s21 + $0x278] sm:$0xff]  ;;  %v4414_v58 = vadd.f32 %v4413_v61, %v11415_v31  ;;  %v3367_v39 = vld [vmem:[%s10993_s23 + $0x268] sm:$0xff]  ;;  %v3621_v30 = vadd.f32 %v3365_v56, %v3109_v1  ;;  %v4131_v16 = vadd.f32 %v3875_v15, %v3619_v38  ;;  %v3622_v55 = vadd.f32 %v3366_v8, %v3110_v19 }
 0x2c3   : > { %v2857_v3 = vld [vmem:[%s10991_s22 + $0x278] sm:$0xff]  ;;  %v6149_v41 = vmax.f32 %v6148_v37, %v4129_v53  ;;  %v2892_v51 = vld [vmem:[%s10991_s22 + $0x390] sm:$0xff]  ;;  %v2635_v54 = vld [vmem:[%s10989_s21 + $0x388] sm:$0xff]  ;;  %v4387_v61 = vadd.f32 %v4386_v48, %v4127_v21  ;;  %v4132_v56 = vadd.f32 %v3876_v24, %v3620_v0 }
 0x2c4   : > { %v2637_v18 = vld [vmem:[%s10989_s21 + $0x398] sm:$0xff]  ;;  %v2890_v4 = vld [vmem:[%s10991_s22 + $0x380] sm:$0xff]  ;;  %v2891_v49 = vld [vmem:[%s10991_s22 + $0x388] sm:$0xff]  ;;  %4415 = vadd.xlane.f32.xlu1 %v4414_v58  ;;  %v3148_v46 = vadd.f32 %v2892_v51, %v2636_v60  ;;  %v3113_v58 = vadd.f32 %v2857_v3, %v2601_v12  ;;  %v3623_v51 = vadd.f32 %v3367_v39, %v3111_v42 }
 0x2c5   : > { %v2893_v57 = vld [vmem:[%s10991_s22 + $0x398] sm:$0xff]  ;;  %v3368_v27 = vld [vmem:[%s10993_s23 + $0x270] sm:$0xff]  ;;  %v6150_v40 = vmax.f32 %v6149_v41, %v4130_v50  ;;  %v2638_v37 = vld [vmem:[%s10989_s21 + $0x3a0] sm:$0xff]  ;;  %v3146_v15 = vadd.f32 %v2890_v4, %v2634_v35  ;;  %v3147_v41 = vadd.f32 %v2891_v49, %v2635_v54  ;;  %v4388_v48 = vadd.f32 %v4387_v61, %v4128_v20 }
 0x2c6   : > { %v2894_v17 = vld [vmem:[%s10991_s22 + $0x3a0] sm:$0xff]  ;;  %v3877_v28 = vld [vmem:[%s10995_s24 + $0x258] sm:$0xff]  ;;  %v2639_v59 = vld [vmem:[%s10989_s21 + $0x3a8] sm:$0xff]  ;;  %v3149_v29 = vadd.f32 %v2893_v57, %v2637_v18  ;;  %v3624_v24 = vadd.f32 %v3368_v27, %v3112_v36 }
 0x2c7   : > { %v3878_v13 = vld [vmem:[%s10995_s24 + $0x260] sm:$0xff]  ;;  %v3369_v22 = vld [vmem:[%s10993_s23 + $0x278] sm:$0xff]  ;;  %v6151_v1 = vmax.f32 %v6150_v40, %v4131_v16  ;;  %v2895_v38 = vld [vmem:[%s10991_s22 + $0x3a8] sm:$0xff]  ;;  %v3150_v31 = vadd.f32 %v2894_v17, %v2638_v37  ;;  %v4133_v35 = vadd.f32 %v3877_v28, %v3621_v30  ;;  %v4389_v40 = vadd.f32 %v4388_v48, %v4129_v53 }
 0x2c8   : > { %v3404_v8 = vld [vmem:[%s10993_s23 + $0x390] sm:$0xff]  ;;  %v3405_v19 = vld [vmem:[%s10993_s23 + $0x398] sm:$0xff]  ;;  %v3879_v21 = vld [vmem:[%s10995_s24 + $0x268] sm:$0xff]  ;;  %v3151_v20 = vadd.f32 %v2895_v38, %v2639_v59  ;;  %v4134_v39 = vadd.f32 %v3878_v13, %v3622_v55  ;;  %v3625_v53 = vadd.f32 %v3369_v22, %v3113_v58 }
 0x2c9   : > { %v3402_v60 = vld [vmem:[%s10993_s23 + $0x380] sm:$0xff]  ;;  %v3403_v18 = vld [vmem:[%s10993_s23 + $0x388] sm:$0xff]  ;;  %v6152_v0 = vmax.f32 %v6151_v1, %v4132_v56  ;;  %v2640_v57 = vld [vmem:[%s10989_s21 + $0x3b0] sm:$0xff]  ;;  %v3660_v17 = vadd.f32 %v3404_v8, %v3148_v46  ;;  %v3661_v3 = vadd.f32 %v3405_v19, %v3149_v29  ;;  %v4390_v61 = vadd.f32 %v4389_v40, %v4130_v50 }
 0x2ca   : > { %v2896_v54 = vld [vmem:[%s10991_s22 + $0x3b0] sm:$0xff]  ;;  %v3406_v4 = vld [vmem:[%s10993_s23 + $0x3a0] sm:$0xff]  ;;  %v2641_v34 = vld [vmem:[%s10989_s21 + $0x3b8] sm:$0xff]  ;;  %v3658_v37 = vadd.f32 %v3402_v60, %v3146_v15  ;;  %v3659_v28 = vadd.f32 %v3403_v18, %v3147_v41  ;;  %v4135_v55 = vadd.f32 %v3879_v21, %v3623_v51 }
 0x2cb   : > { %v3880_v49 = vld [vmem:[%s10995_s24 + $0x270] sm:$0xff]  ;;  %v2897_v12 = vld [vmem:[%s10991_s22 + $0x3b8] sm:$0xff]  ;;  %v6153_v42 = vmax.f32 %v6152_v0, %v4133_v35  ;;  %v2642_v36 = vld [vmem:[%s10989_s21 + $0x3c0] sm:$0xff]  ;;  %v3152_v1 = vadd.f32 %v2896_v54, %v2640_v57  ;;  %v3662_v59 = vadd.f32 %v3406_v4, %v3150_v31  ;;  %v4391_v50 = vadd.f32 %v4390_v61, %v4131_v16 }
 0x2cc   : > { %v2898_v27 = vld [vmem:[%s10991_s22 + $0x3c0] sm:$0xff]  ;;  %v3407_v30 = vld [vmem:[%s10993_s23 + $0x3a8] sm:$0xff]  ;;  %v3916_v29 = vld [vmem:[%s10995_s24 + $0x390] sm:$0xff]  ;;  %v11491_v13 = vadd.f32 %v3880_v49, %v3624_v24  ;;  %v3153_v19 = vadd.f32 %v2897_v12, %v2641_v34 }
 0x2cd   : > { %v3914_v38 = vld [vmem:[%s10995_s24 + $0x380] sm:$0xff]  ;;  %v3915_v46 = vld [vmem:[%s10995_s24 + $0x388] sm:$0xff]  ;;  %v6154_v8 = vmax.f32 %v6153_v42, %v4134_v39  ;;  %v3408_v48 = vld [vmem:[%s10993_s23 + $0x3b0] sm:$0xff]  ;;  %v3663_v31 = vadd.f32 %v3407_v30, %v3151_v20  ;;  %v4172_v18 = vadd.f32 %v3916_v29, %v3660_v17  ;;  %v3154_v21 = vadd.f32 %v2898_v27, %v2642_v36 }
 0x2ce   : > { %v3917_v15 = vld [vmem:[%s10995_s24 + $0x398] sm:$0xff]  ;;  %v3918_v41 = vld [vmem:[%s10995_s24 + $0x3a0] sm:$0xff]  ;;  %v2643_v58 = vld [vmem:[%s10989_s21 + $0x3c8] sm:$0xff]  ;;  %v11501_v34 = vadd.f32 %v3914_v38, %v3658_v37  ;;  %v11503_v54 = vadd.f32 %v3915_v46, %v3659_v28  ;;  %v4392_v4 = vadd.f32 %v4391_v50, %v4132_v56  ;;  %v3664_v40 = vadd.f32 %v3408_v48, %v3152_v1 }
 0x2cf   : > { %v3881_v22 = vld [vmem:[%s10995_s24 + $0x278] sm:$0xff]  ;;  %v2899_v60 = vld [vmem:[%s10991_s22 + $0x3c8] sm:$0xff]  ;;  %v4173_v0 = vadd.f32 %v3917_v15, %v3661_v3  ;;  %v6155_v57 = vmax.f32 %v6154_v8, %v4135_v55  ;;  %v2644_v49 = vld [vmem:[%s10989_s21 + $0x3d0] sm:$0xff]  ;;  %v4174_v20 = vadd.f32 %v3918_v41, %v3662_v59 }
 0x2d0   : > { %v3409_v51 = vld [vmem:[%s10993_s23 + $0x3b8] sm:$0xff]  ;;  %v3919_v24 = vld [vmem:[%s10995_s24 + $0x3a8] sm:$0xff]  ;;  %13499 = vst [vmem:[#allocation12_spill] sm:$0xff] %v11501_v34  ;;  %13500 = vst [vmem:[#allocation13_spill] sm:$0xff] %v11503_v54  ;;  %v11510_v3 = vadd.f32 %v3881_v22, %v3625_v53  ;;  %v3155_v42 = vadd.f32 %v2899_v60, %v2643_v58  ;;  %v4393_v30 = vadd.f32 %v4392_v4, %v4133_v35 }
 0x2d1   : > { %v2900_v16 = vld [vmem:[%s10991_s22 + $0x3d0] sm:$0xff]  ;;  %v6196_v12 = vmax.f32 %v4173_v0, %v4172_v18  ;;  %v11508_v17 = vmax.f32 %v6155_v57, %v11491_v13  ;;  %v3410_v36 = vld [vmem:[%s10993_s23 + $0x3c0] sm:$0xff]  ;;  %v2645_v37 = vld [vmem:[%s10989_s21 + $0x3d8] sm:$0xff]  ;;  %v3665_v28 = vadd.f32 %v3409_v51, %v3153_v19  ;;  %v4175_v1 = vadd.f32 %v3919_v24, %v3663_v31 }
 0x2d2   : > { %13502 = vst [vmem:[#allocation15_spill] sm:$0xff] %v11510_v3  ;;  %v3920_v27 = vld [vmem:[%s10995_s24 + $0x3b0] sm:$0xff]  ;;  %v2901_v56 = vld [vmem:[%s10991_s22 + $0x3d8] sm:$0xff]  ;;  %v3156_v38 = vadd.f32 %v2900_v16, %v2644_v49  ;;  %v3411_v53 = vld [vmem:[%s10993_s23 + $0x3c8] sm:$0xff]  ;;  %v4434_v35 = vadd.f32 %v11503_v54, %v11501_v34  ;;  %v4394_v29 = vadd.f32 %v4393_v30, %v4134_v39  ;;  %v3666_v48 = vadd.f32 %v3410_v36, %v3154_v21 }
 0x2d3   : > { %13501 = vst [vmem:[#allocation14_spill] sm:$0xff] %v11508_v17  ;;  %v6197_v61 = vmax.f32 %v6196_v12, %v4174_v20  ;;  %v3921_v46 = vld [vmem:[%s10995_s24 + $0x3b8] sm:$0xff]  ;;  %v2646_v8 = vld [vmem:[%s10989_s21 + $0x3e0] sm:$0xff]  ;;  %v4176_v41 = vadd.f32 %v3920_v27, %v3664_v40  ;;  %v2647_v22 = vld [vmem:[%s10989_s21 + $0x3e8] sm:$0xff]  ;;  %v3157_v50 = vadd.f32 %v2901_v56, %v2645_v37  ;;  %v3667_v21 = vadd.f32 %v3411_v53, %v3155_v42 }
 0x2d4   : > { %v2902_v19 = vld [vmem:[%s10991_s22 + $0x3e0] sm:$0xff]  ;;  %v3412_v58 = vld [vmem:[%s10993_s23 + $0x3d0] sm:$0xff]  ;;  %v4435_v31 = vadd.f32 %v4434_v35, %v4172_v18  ;;  %v4395_v57 = vadd.f32 %v4394_v29, %v4135_v55  ;;  %v2649_v24 = vld [vmem:[%s10989_s21 + $0x3f8] sm:$0xff]  ;;  %v4177_v40 = vadd.f32 %v3921_v46, %v3665_v28 }
 0x2d5   : > { %v6198_v15 = vmax.f32 %v6197_v61, %v4175_v1  ;;  %v3922_v60 = vld [vmem:[%s10995_s24 + $0x3c0] sm:$0xff]  ;;  %v2648_v51 = vld [vmem:[%s10989_s21 + $0x3f0] sm:$0xff]  ;;  %v2903_v4 = vld [vmem:[%s10991_s22 + $0x3e8] sm:$0xff]  ;;  %v3158_v12 = vadd.f32 %v2902_v19, %v2646_v8  ;;  %v3668_v37 = vadd.f32 %v3412_v58, %v3156_v38 }
 0x2d6   : > { %v2904_v39 = vld [vmem:[%s10991_s22 + $0x3f0] sm:$0xff]  ;;  %v2905_v49 = vld [vmem:[%s10991_s22 + $0x3f8] sm:$0xff]  ;;  %v3414_v27 = vld [vmem:[%s10993_s23 + $0x3e0] sm:$0xff]  ;;  %v4436_v55 = vadd.f32 %v4435_v31, %v4173_v0  ;;  %v4396_v30 = vadd.f32 %v4395_v57, %v11491_v13  ;;  %v4178_v42 = vadd.f32 %v3922_v60, %v3666_v48  ;;  %v3159_v46 = vadd.f32 %v2903_v4, %v2647_v22 }
 0x2d7   : > { %v6199_v16 = vmax.f32 %v6198_v15, %v4176_v41  ;;  %v3413_v36 = vld [vmem:[%s10993_s23 + $0x3d8] sm:$0xff]  ;;  %v3923_v18 = vld [vmem:[%s10995_s24 + $0x3c8] sm:$0xff]  ;;  %v3924_v56 = vld [vmem:[%s10995_s24 + $0x3d0] sm:$0xff]  ;;  %v3161_v57 = vadd.f32 %v2905_v49, %v2649_v24  ;;  %v3670_v4 = vadd.f32 %v3414_v27, %v3158_v12 }
 0x2d8   : > { %v2618_v53 = vld [vmem:[%s10989_s21 + $0x300] sm:$0xff]  ;;  %v2620_v28 = vld [vmem:[%s10989_s21 + $0x310] sm:$0xff]  ;;  %v3415_v35 = vld [vmem:[%s10993_s23 + $0x3e8] sm:$0xff]  ;;  %v4437_v29 = vadd.f32 %v4436_v55, %v4174_v20  ;;  %v4397_v13 = vadd.f32 %v4396_v30, %v11510_v3  ;;  %v3669_v15 = vadd.f32 %v3413_v36, %v3157_v50  ;;  %v11545_v48 = vadd.f32 %v3923_v18, %v3667_v21 }
 0x2d9   : > { %v6200_v61 = vmax.f32 %v6199_v16, %v4177_v40  ;;  %v2621_v8 = vld [vmem:[%s10989_s21 + $0x318] sm:$0xff]  ;;  %v2876_v19 = vld [vmem:[%s10991_s22 + $0x310] sm:$0xff]  ;;  %v2619_v60 = vld [vmem:[%s10989_s21 + $0x308] sm:$0xff]  ;;  %v3160_v20 = vadd.f32 %v2904_v39, %v2648_v51  ;;  %v4180_v18 = vadd.f32 %v3924_v56, %v3668_v37  ;;  %v3671_v34 = vadd.f32 %v3415_v35, %v3159_v46 }
 0x2da   : > { %v2877_v0 = vld [vmem:[%s10991_s22 + $0x318] sm:$0xff]  ;;  %v3416_v38 = vld [vmem:[%s10993_s23 + $0x3f0] sm:$0xff]  ;;  %v2874_v22 = vld [vmem:[%s10991_s22 + $0x300] sm:$0xff]  ;;  %v4438_v55 = vadd.f32 %v4437_v29, %v4175_v1  ;;  %4398 = vadd.xlane.f32.xlu0 %v4397_v13  ;;  %v3132_v51 = vadd.f32 %v2876_v19, %v2620_v28 }
 0x2db   : > { %v6201_v58 = vmax.f32 %v6200_v61, %v4178_v42  ;;  %v2875_v31 = vld [vmem:[%s10991_s22 + $0x308] sm:$0xff]  ;;  %v3925_v16 = vld [vmem:[%s10995_s24 + $0x3d8] sm:$0xff]  ;;  %v2622_v30 = vld [vmem:[%s10989_s21 + $0x320] sm:$0xff]  ;;  %v3133_v24 = vadd.f32 %v2877_v0, %v2621_v8  ;;  %v3130_v12 = vadd.f32 %v2874_v22, %v2618_v53 }
 0x2dc   : > { %v2878_v59 = vld [vmem:[%s10991_s22 + $0x320] sm:$0xff]  ;;  %v3417_v50 = vld [vmem:[%s10993_s23 + $0x3f8] sm:$0xff]  ;;  %v2623_v61 = vld [vmem:[%s10989_s21 + $0x328] sm:$0xff]  ;;  %v4439_v49 = vadd.f32 %v4438_v55, %v4176_v41  ;;  %v3131_v27 = vadd.f32 %v2875_v31, %v2619_v60  ;;  %v4181_v28 = vadd.f32 %v3925_v16, %v3669_v15  ;;  %v3672_v41 = vadd.f32 %v3416_v38, %v3160_v20 }
 0x2dd   : > { %v3926_v21 = vld [vmem:[%s10995_s24 + $0x3e0] sm:$0xff]  ;;  %v6202_v36 = vmax.f32 %v6201_v58, %v11545_v48  ;;  %v3927_v39 = vld [vmem:[%s10995_s24 + $0x3e8] sm:$0xff]  ;;  %v3388_v29 = vld [vmem:[%s10993_s23 + $0x310] sm:$0xff]  ;;  %v3134_v19 = vadd.f32 %v2878_v59, %v2622_v30  ;;  %v3673_v53 = vadd.f32 %v3417_v50, %v3161_v57 }
 0x2de   : > { %v2879_v1 = vld [vmem:[%s10991_s22 + $0x328] sm:$0xff]  ;;  %v3389_v13 = vld [vmem:[%s10993_s23 + $0x318] sm:$0xff]  ;;  %v3928_v54 = vld [vmem:[%s10995_s24 + $0x3f0] sm:$0xff]  ;;  %v4182_v58 = vadd.f32 %v3926_v21, %v3670_v4  ;;  %v4440_v60 = vadd.f32 %v4439_v49, %v4177_v40  ;;  %v3644_v15 = vadd.f32 %v3388_v29, %v3132_v51  ;;  %v4183_v21 = vadd.f32 %v3927_v39, %v3671_v34 }
 0x2df   : > { %v3929_v37 = vld [vmem:[%s10995_s24 + $0x3f8] sm:$0xff]  ;;  %v6203_v56 = vmax.f32 %v6202_v36, %v4180_v18  ;;  %v3386_v8 = vld [vmem:[%s10993_s23 + $0x300] sm:$0xff]  ;;  %v3387_v0 = vld [vmem:[%s10993_s23 + $0x308] sm:$0xff]  ;;  %v3135_v59 = vadd.f32 %v2879_v1, %v2623_v61  ;;  %v3645_v16 = vadd.f32 %v3389_v13, %v3133_v24  ;;  %v4184_v51 = vadd.f32 %v3928_v54, %v3672_v41 }
 0x2e0   : > { %v2624_v22 = vld [vmem:[%s10989_s21 + $0x330] sm:$0xff]  ;;  %v3390_v46 = vld [vmem:[%s10993_s23 + $0x320] sm:$0xff]  ;;  %v2625_v55 = vld [vmem:[%s10989_s21 + $0x338] sm:$0xff]  ;;  %v4441_v30 = vadd.f32 %v4440_v60, %v4178_v42  ;;  %v3642_v40 = vadd.f32 %v3386_v8, %v3130_v12  ;;  %v3643_v57 = vadd.f32 %v3387_v0, %v3131_v27  ;;  %v11577_v42 = vadd.f32 %v3929_v37, %v3673_v53 }
 0x2e1   : > { %v2880_v31 = vld [vmem:[%s10991_s22 + $0x330] sm:$0xff]  ;;  %v6204_v35 = vmax.f32 %v6203_v56, %v4181_v28  ;;  %v2626_v3 = vld [vmem:[%s10989_s21 + $0x340] sm:$0xff]  ;;  %v2881_v36 = vld [vmem:[%s10991_s22 + $0x338] sm:$0xff]  ;;  %v3646_v56 = vadd.f32 %v3390_v46, %v3134_v19 }
 0x2e2   : > { %v2882_v38 = vld [vmem:[%s10991_s22 + $0x340] sm:$0xff]  ;;  %v3391_v20 = vld [vmem:[%s10993_s23 + $0x328] sm:$0xff]  ;;  %v3136_v49 = vadd.f32 %v2880_v31, %v2624_v22  ;;  %v3900_v23 = vld [vmem:[%s10995_s24 + $0x310] sm:$0xff]  ;;  %13503 = vst [vmem:[#allocation16_spill] sm:$0xff] %v11577_v42  ;;  %v4442_v24 = vadd.f32 %v4441_v30, %v11545_v48  ;;  %v3137_v1 = vadd.f32 %v2881_v36, %v2625_v55 }
 0x2e3   : > { %v3898_v4 = vld [vmem:[%s10995_s24 + $0x300] sm:$0xff]  ;;  %v6205_v50 = vmax.f32 %v6204_v35, %v4182_v58  ;;  %v3899_v17 = vld [vmem:[%s10995_s24 + $0x308] sm:$0xff]  ;;  %v3901_v61 = vld [vmem:[%s10995_s24 + $0x318] sm:$0xff]  ;;  %v3647_v34 = vadd.f32 %v3391_v20, %v3135_v59  ;;  %v4156_v39 = vadd.f32 %v3900_v23, %v3644_v15  ;;  %v3138_v60 = vadd.f32 %v2882_v38, %v2626_v3 }
 0x2e4   : > { %v3392_v12 = vld [vmem:[%s10993_s23 + $0x330] sm:$0xff]  ;;  %v3902_v27 = vld [vmem:[%s10995_s24 + $0x320] sm:$0xff]  ;;  %v2627_v13 = vld [vmem:[%s10989_s21 + $0x348] sm:$0xff]  ;;  %v4157_v19 = vadd.f32 %v3901_v61, %v3645_v16  ;;  %v4443_v0 = vadd.f32 %v4442_v24, %v4180_v18  ;;  %v11586_v48 = vadd.f32 %v3898_v4, %v3642_v40  ;;  %v11588_v41 = vadd.f32 %v3899_v17, %v3643_v57 }
 0x2e5   : > { %v6206_v29 = vmax.f32 %v6205_v50, %v4183_v21  ;;  %v2883_v8 = vld [vmem:[%s10991_s22 + $0x348] sm:$0xff]  ;;  %v3393_v54 = vld [vmem:[%s10993_s23 + $0x338] sm:$0xff]  ;;  %v2628_v22 = vld [vmem:[%s10989_s21 + $0x350] sm:$0xff]  ;;  %v3648_v31 = vadd.f32 %v3392_v12, %v3136_v49  ;;  %v4158_v46 = vadd.f32 %v3902_v27, %v3646_v56 }
 0x2e6   : > { %v3903_v37 = vld [vmem:[%s10995_s24 + $0x328] sm:$0xff]  ;;  %13504 = vst [vmem:[#allocation17_spill] sm:$0xff] %v11586_v48  ;;  %13505 = vst [vmem:[#allocation18_spill] sm:$0xff] %v11588_v41  ;;  %v6179_v23 = vmax.f32 %v4157_v19, %v4156_v39  ;;  %v4444_v35 = vadd.f32 %v4443_v0, %v4181_v28  ;;  %v2884_v3 = vld [vmem:[%s10991_s22 + $0x350] sm:$0xff]  ;;  %v3139_v18 = vadd.f32 %v2883_v8, %v2627_v13 }
 0x2e7   : > { %v11590_v53 = vmax.f32 %v6206_v29, %v4184_v51  ;;  %v3394_v55 = vld [vmem:[%s10993_s23 + $0x340] sm:$0xff]  ;;  %v3904_v36 = vld [vmem:[%s10995_s24 + $0x330] sm:$0xff]  ;;  %v2629_v59 = vld [vmem:[%s10989_s21 + $0x358] sm:$0xff]  ;;  %v3649_v16 = vadd.f32 %v3393_v54, %v3137_v1  ;;  %v4159_v38 = vadd.f32 %v3903_v37, %v3647_v34  ;;  %v4417_v4 = vadd.f32 %v11588_v41, %v11586_v48 }
 0x2e8   : > { %v2630_v15 = vld [vmem:[%s10989_s21 + $0x360] sm:$0xff]  ;;  %v6180_v30 = vmax.f32 %v6179_v23, %v4158_v46  ;;  %v4445_v20 = vadd.f32 %v4444_v35, %v4182_v58  ;;  %v2885_v28 = vld [vmem:[%s10991_s22 + $0x358] sm:$0xff]  ;;  %v3395_v40 = vld [vmem:[%s10993_s23 + $0x348] sm:$0xff]  ;;  %v3140_v61 = vadd.f32 %v2884_v3, %v2628_v22  ;;  %v3650_v24 = vadd.f32 %v3394_v55, %v3138_v60 }
 0x2e9   : > { %13506 = vst [vmem:[#allocation19_spill] sm:$0xff] %v11590_v53  ;;  %v3905_v57 = vld [vmem:[%s10995_s24 + $0x338] sm:$0xff]  ;;  %v2631_v50 = vld [vmem:[%s10989_s21 + $0x368] sm:$0xff]  ;;  %v2886_v49 = vld [vmem:[%s10991_s22 + $0x360] sm:$0xff]  ;;  %v4160_v12 = vadd.f32 %v3904_v36, %v3648_v31  ;;  %v4418_v34 = vadd.f32 %v4417_v4, %v4156_v39  ;;  %v3141_v0 = vadd.f32 %v2885_v28, %v2629_v59  ;;  %v3651_v23 = vadd.f32 %v3395_v40, %v3139_v18 }
 0x2ea   : > { %v2887_v56 = vld [vmem:[%s10991_s22 + $0x368] sm:$0xff]  ;;  %v6181_v1 = vmax.f32 %v6180_v30, %v4159_v38  ;;  %v4446_v27 = vadd.f32 %v4445_v20, %v4183_v21  ;;  %v2632_v58 = vld [vmem:[%s10989_s21 + $0x370] sm:$0xff]  ;;  %v3906_v8 = vld [vmem:[%s10995_s24 + $0x340] sm:$0xff]  ;;  %v4161_v31 = vadd.f32 %v3905_v57, %v3649_v16  ;;  %v3142_v35 = vadd.f32 %v2886_v49, %v2630_v15 }
 0x2eb   : > { %v2888_v29 = vld [vmem:[%s10991_s22 + $0x370] sm:$0xff]  ;;  %v3397_v54 = vld [vmem:[%s10993_s23 + $0x358] sm:$0xff]  ;;  %v3398_v37 = vld [vmem:[%s10993_s23 + $0x360] sm:$0xff]  ;;  %v4419_v55 = vadd.f32 %v4418_v34, %v4157_v19  ;;  %v11620_v28 = vadd.f32 %v3906_v8, %v3650_v24  ;;  %v3143_v19 = vadd.f32 %v2887_v56, %v2631_v50 }
 0x2ec   : > { %v3396_v13 = vld [vmem:[%s10993_s23 + $0x350] sm:$0xff]  ;;  %v3907_v60 = vld [vmem:[%s10995_s24 + $0x348] sm:$0xff]  ;;  %v6182_v22 = vmax.f32 %v6181_v1, %v4160_v12  ;;  %v4447_v21 = vadd.f32 %v4446_v27, %v4184_v51  ;;  %v2666_v36 = vld [vmem:[%s10989_s21 + $0x480] sm:$0xff]  ;;  %v3654_v50 = vadd.f32 %v3398_v37, %v3142_v35 }
 0x2ed   : > { %v3908_v3 = vld [vmem:[%s10995_s24 + $0x350] sm:$0xff]  ;;  %v2633_v59 = vld [vmem:[%s10989_s21 + $0x378] sm:$0xff]  ;;  %v3652_v20 = vadd.f32 %v3396_v13, %v3140_v61  ;;  %v3399_v57 = vld [vmem:[%s10993_s23 + $0x368] sm:$0xff]  ;;  %v4420_v4 = vadd.f32 %v4419_v55, %v4158_v46  ;;  %v3144_v61 = vadd.f32 %v2888_v29, %v2632_v58  ;;  %v3653_v13 = vadd.f32 %v3397_v54, %v3141_v0 }
 0x2ee   : > { %v2668_v39 = vld [vmem:[%s10989_s21 + $0x490] sm:$0xff]  ;;  %v2889_v30 = vld [vmem:[%s10991_s22 + $0x378] sm:$0xff]  ;;  %v6183_v18 = vmax.f32 %v6182_v22, %v4161_v31  ;;  %v4448_v15 = vadd.f32 %v4447_v21, %v11577_v42  ;;  %v2667_v49 = vld [vmem:[%s10989_s21 + $0x488] sm:$0xff]  ;;  %v4163_v34 = vadd.f32 %v3907_v60, %v3651_v23 }
 0x2ef   : > { %v2669_v40 = vld [vmem:[%s10989_s21 + $0x498] sm:$0xff]  ;;  %v2924_v51 = vld [vmem:[%s10991_s22 + $0x490] sm:$0xff]  ;;  %v2922_v1 = vld [vmem:[%s10991_s22 + $0x480] sm:$0xff]  ;;  %v4421_v55 = vadd.f32 %v4420_v4, %v4159_v38 }
 0x2f0   : > { %v2925_v16 = vld [vmem:[%s10991_s22 + $0x498] sm:$0xff]  ;;  %v2923_v27 = vld [vmem:[%s10991_s22 + $0x488] sm:$0xff]  ;;  %v3400_v24 = vld [vmem:[%s10993_s23 + $0x370] sm:$0xff]  ;;  %v6184_v8 = vmax.f32 %v6183_v18, %v11620_v28  ;;  %4449 = vadd.xlane.f32.xlu1 %v4448_v15  ;;  %v3180_v58 = vadd.f32 %v2924_v51, %v2668_v39  ;;  %v4164_v18 = vadd.f32 %v3908_v3, %v3652_v20  ;;  %v3178_v60 = vadd.f32 %v2922_v1, %v2666_v36 }
 0x2f1   : > { %v2670_v22 = vld [vmem:[%s10989_s21 + $0x4a0] sm:$0xff]  ;;  %v3909_v46 = vld [vmem:[%s10995_s24 + $0x358] sm:$0xff]  ;;  %v2671_v17 = vld [vmem:[%s10989_s21 + $0x4a8] sm:$0xff]  ;;  %v3181_v29 = vadd.f32 %v2925_v16, %v2669_v40  ;;  %v3179_v42 = vadd.f32 %v2923_v27, %v2667_v49  ;;  %v3145_v15 = vadd.f32 %v2889_v30, %v2633_v59  ;;  %v4422_v39 = vadd.f32 %v4421_v55, %v4160_v12 }
 0x2f2   : > { %v2926_v21 = vld [vmem:[%s10991_s22 + $0x4a0] sm:$0xff]  ;;  %v3401_v0 = vld [vmem:[%s10993_s23 + $0x378] sm:$0xff]  ;;  %v6185_v54 = vmax.f32 %v6184_v8, %v4163_v34  ;;  %v2927_v23 = vld [vmem:[%s10991_s22 + $0x4a8] sm:$0xff]  ;;  %v3655_v8 = vadd.f32 %v3399_v57, %v3143_v19  ;;  %v3656_v3 = vadd.f32 %v3400_v24, %v3144_v61  ;;  %v4165_v20 = vadd.f32 %v3909_v46, %v3653_v13 }
 0x2f3   : > { %v3910_v56 = vld [vmem:[%s10995_s24 + $0x360] sm:$0xff]  ;;  %v3436_v37 = vld [vmem:[%s10993_s23 + $0x490] sm:$0xff]  ;;  %v3437_v35 = vld [vmem:[%s10993_s23 + $0x498] sm:$0xff]  ;;  %v3182_v51 = vadd.f32 %v2926_v21, %v2670_v22  ;;  %v4423_v53 = vadd.f32 %v4422_v39, %v4161_v31  ;;  %v3183_v12 = vadd.f32 %v2927_v23, %v2671_v17  ;;  %v3657_v31 = vadd.f32 %v3401_v0, %v3145_v15 }
 0x2f4   : > { %v3911_v38 = vld [vmem:[%s10995_s24 + $0x368] sm:$0xff]  ;;  %v3912_v4 = vld [vmem:[%s10995_s24 + $0x370] sm:$0xff]  ;;  %v3434_v40 = vld [vmem:[%s10993_s23 + $0x480] sm:$0xff]  ;;  %v6186_v36 = vmax.f32 %v6185_v54, %v4164_v18  ;;  %v3692_v22 = vadd.f32 %v3436_v37, %v3180_v58  ;;  %v3693_v21 = vadd.f32 %v3437_v35, %v3181_v29  ;;  %v4166_v57 = vadd.f32 %v3910_v56, %v3654_v50 }
 0x2f5   : > { %v3435_v16 = vld [vmem:[%s10993_s23 + $0x488] sm:$0xff]  ;;  %v2672_v49 = vld [vmem:[%s10989_s21 + $0x4b0] sm:$0xff]  ;;  %v3438_v27 = vld [vmem:[%s10993_s23 + $0x4a0] sm:$0xff]  ;;  %v3690_v13 = vadd.f32 %v3434_v40, %v3178_v60  ;;  %v4424_v54 = vadd.f32 %v4423_v53, %v11620_v28  ;;  %v4167_v56 = vadd.f32 %v3911_v38, %v3655_v8  ;;  %v11658_v37 = vadd.f32 %v3912_v4, %v3656_v3 }
 0x2f6   : > { %v2928_v1 = vld [vmem:[%s10991_s22 + $0x4b0] sm:$0xff]  ;;  %v2673_v59 = vld [vmem:[%s10989_s21 + $0x4b8] sm:$0xff]  ;;  %v2674_v30 = vld [vmem:[%s10989_s21 + $0x4c0] sm:$0xff]  ;;  %v6187_v19 = vmax.f32 %v6186_v36, %v4165_v20  ;;  %v3691_v46 = vadd.f32 %v3435_v16, %v3179_v42  ;;  %v3694_v17 = vadd.f32 %v3438_v27, %v3182_v51 }
 0x2f7   : > { %v2929_v48 = vld [vmem:[%s10991_s22 + $0x4b8] sm:$0xff]  ;;  %v2930_v61 = vld [vmem:[%s10991_s22 + $0x4c0] sm:$0xff]  ;;  %v3439_v24 = vld [vmem:[%s10993_s23 + $0x4a8] sm:$0xff]  ;;  %v3184_v39 = vadd.f32 %v2928_v1, %v2672_v49  ;;  %v4425_v15 = vadd.f32 %v4424_v54, %v4163_v34 }
 0x2f8   : > { %v3946_v55 = vld [vmem:[%s10995_s24 + $0x480] sm:$0xff]  ;;  %v3947_v23 = vld [vmem:[%s10995_s24 + $0x488] sm:$0xff]  ;;  %v3948_v58 = vld [vmem:[%s10995_s24 + $0x490] sm:$0xff]  ;;  %v6188_v50 = vmax.f32 %v6187_v19, %v4166_v57  ;;  %v3185_v60 = vadd.f32 %v2929_v48, %v2673_v59  ;;  %v3695_v28 = vadd.f32 %v3439_v24, %v3183_v12  ;;  %v3186_v49 = vadd.f32 %v2930_v61, %v2674_v30 }
 0x2f9   : > { %v3949_v29 = vld [vmem:[%s10995_s24 + $0x498] sm:$0xff]  ;;  %v3440_v35 = vld [vmem:[%s10993_s23 + $0x4b0] sm:$0xff]  ;;  %v3950_v42 = vld [vmem:[%s10995_s24 + $0x4a0] sm:$0xff]  ;;  %v4204_v51 = vadd.f32 %v3948_v58, %v3692_v22  ;;  %v11667_v48 = vadd.f32 %v3946_v55, %v3690_v13  ;;  %v11669_v4 = vadd.f32 %v3947_v23, %v3691_v46  ;;  %v4426_v8 = vadd.f32 %v4425_v15, %v4164_v18 }
 0x2fa   : > { %v3913_v0 = vld [vmem:[%s10995_s24 + $0x378] sm:$0xff]  ;;  %v2675_v40 = vld [vmem:[%s10989_s21 + $0x4c8] sm:$0xff]  ;;  %v4205_v16 = vadd.f32 %v3949_v29, %v3693_v21  ;;  %v6189_v36 = vmax.f32 %v6188_v50, %v4167_v56  ;;  %v2676_v3 = vld [vmem:[%s10989_s21 + $0x4d0] sm:$0xff]  ;;  %v3696_v27 = vadd.f32 %v3440_v35, %v3184_v39  ;;  %v4206_v12 = vadd.f32 %v3950_v42, %v3694_v17 }
 0x2fb   : > { %v2931_v53 = vld [vmem:[%s10991_s22 + $0x4c8] sm:$0xff]  ;;  %v3441_v1 = vld [vmem:[%s10993_s23 + $0x4b8] sm:$0xff]  ;;  %13507 = vst [vmem:[#allocation20_spill] sm:$0xff] %v11667_v48  ;;  %13508 = vst [vmem:[#allocation21_spill] sm:$0xff] %v11669_v4  ;;  %v11676_v30 = vadd.f32 %v3913_v0, %v3657_v31  ;;  %v4427_v18 = vadd.f32 %v4426_v8, %v4165_v20  ;;  %v4468_v20 = vadd.f32 %v11669_v4, %v11667_v48 }
 0x2fc   : > { %v3951_v38 = vld [vmem:[%s10995_s24 + $0x4a8] sm:$0xff]  ;;  %v2932_v34 = vld [vmem:[%s10991_s22 + $0x4d0] sm:$0xff]  ;;  %v6230_v59 = vmax.f32 %v4205_v16, %v4204_v51  ;;  %v11674_v22 = vmax.f32 %v6189_v36, %v11658_v37  ;;  %v3187_v21 = vadd.f32 %v2931_v53, %v2675_v40  ;;  %v3442_v19 = vld [vmem:[%s10993_s23 + $0x4c0] sm:$0xff]  ;;  %v3697_v46 = vadd.f32 %v3441_v1, %v3185_v60 }
 0x2fd   : > { %13510 = vst [vmem:[#allocation23_spill] sm:$0xff] %v11676_v30  ;;  %v3952_v61 = vld [vmem:[%s10995_s24 + $0x4b0] sm:$0xff]  ;;  %v2677_v24 = vld [vmem:[%s10989_s21 + $0x4d8] sm:$0xff]  ;;  %v4207_v54 = vadd.f32 %v3951_v38, %v3695_v28  ;;  %v2678_v31 = vld [vmem:[%s10989_s21 + $0x4e0] sm:$0xff]  ;;  %v3188_v17 = vadd.f32 %v2932_v34, %v2676_v3  ;;  %v4428_v29 = vadd.f32 %v4427_v18, %v4166_v57  ;;  %v3698_v0 = vadd.f32 %v3442_v19, %v3186_v49 }
 0x2fe   : > { %13509 = vst [vmem:[#allocation22_spill] sm:$0xff] %v11674_v22  ;;  %v2933_v13 = vld [vmem:[%s10991_s22 + $0x4d8] sm:$0xff]  ;;  %v6231_v55 = vmax.f32 %v6230_v59, %v4206_v12  ;;  %v3443_v23 = vld [vmem:[%s10993_s23 + $0x4c8] sm:$0xff]  ;;  %v2680_v60 = vld [vmem:[%s10989_s21 + $0x4f0] sm:$0xff]  ;;  %v4208_v40 = vadd.f32 %v3952_v61, %v3696_v27  ;;  %v4469_v38 = vadd.f32 %v4468_v20, %v4204_v51 }
 0x2ff   : > { %v3953_v58 = vld [vmem:[%s10995_s24 + $0x4b8] sm:$0xff]  ;;  %v2679_v50 = vld [vmem:[%s10989_s21 + $0x4e8] sm:$0xff]  ;;  %v2934_v35 = vld [vmem:[%s10991_s22 + $0x4e0] sm:$0xff]  ;;  %v3189_v28 = vadd.f32 %v2933_v13, %v2677_v24  ;;  %v4429_v8 = vadd.f32 %v4428_v29, %v4167_v56  ;;  %v3699_v34 = vadd.f32 %v3443_v23, %v3187_v21 }
 0x300   : > { %v2935_v42 = vld [vmem:[%s10991_s22 + $0x4e8] sm:$0xff]  ;;  %v6232_v15 = vmax.f32 %v6231_v55, %v4207_v54  ;;  %v2936_v53 = vld [vmem:[%s10991_s22 + $0x4f0] sm:$0xff]  ;;  %v3954_v1 = vld [vmem:[%s10995_s24 + $0x4c0] sm:$0xff]  ;;  %v4209_v19 = vadd.f32 %v3953_v58, %v3697_v46  ;;  %v3190_v27 = vadd.f32 %v2934_v35, %v2678_v31  ;;  %v4470_v18 = vadd.f32 %v4469_v38, %v4205_v16 }
 0x301   : > { %v3444_v36 = vld [vmem:[%s10993_s23 + $0x4d0] sm:$0xff]  ;;  %v3445_v57 = vld [vmem:[%s10993_s23 + $0x4d8] sm:$0xff]  ;;  %v3446_v3 = vld [vmem:[%s10993_s23 + $0x4e0] sm:$0xff]  ;;  %v4430_v56 = vadd.f32 %v4429_v8, %v11658_v37  ;;  %v4210_v20 = vadd.f32 %v3954_v1, %v3698_v0  ;;  %v3191_v16 = vadd.f32 %v2935_v42, %v2679_v50  ;;  %v3192_v58 = vadd.f32 %v2936_v53, %v2680_v60 }
 0x302   : > { %v3955_v59 = vld [vmem:[%s10995_s24 + $0x4c8] sm:$0xff]  ;;  %v6233_v49 = vmax.f32 %v6232_v15, %v4208_v40  ;;  %v3956_v61 = vld [vmem:[%s10995_s24 + $0x4d0] sm:$0xff]  ;;  %v2650_v24 = vld [vmem:[%s10989_s21 + $0x400] sm:$0xff]  ;;  %v3700_v21 = vadd.f32 %v3444_v36, %v3188_v17  ;;  %v4471_v15 = vadd.f32 %v4470_v18, %v4206_v12  ;;  %v3701_v0 = vadd.f32 %v3445_v57, %v3189_v28 }
 0x303   : > { %v2652_v13 = vld [vmem:[%s10989_s21 + $0x410] sm:$0xff]  ;;  %v2681_v51 = vld [vmem:[%s10989_s21 + $0x4f8] sm:$0xff]  ;;  %v3447_v35 = vld [vmem:[%s10993_s23 + $0x4e8] sm:$0xff]  ;;  %v4431_v17 = vadd.f32 %v4430_v56, %v11676_v30  ;;  %v3702_v50 = vadd.f32 %v3446_v3, %v3190_v27 }
 0x304   : > { %v2937_v55 = vld [vmem:[%s10991_s22 + $0x4f8] sm:$0xff]  ;;  %v6234_v23 = vmax.f32 %v6233_v49, %v4209_v19  ;;  %v2908_v46 = vld [vmem:[%s10991_s22 + $0x410] sm:$0xff]  ;;  %v2651_v38 = vld [vmem:[%s10989_s21 + $0x408] sm:$0xff]  ;;  %v4211_v49 = vadd.f32 %v3955_v59, %v3699_v34  ;;  %v4472_v12 = vadd.f32 %v4471_v15, %v4207_v54  ;;  %v4212_v57 = vadd.f32 %v3956_v61, %v3700_v21 }
 0x305   : > { %v2653_v29 = vld [vmem:[%s10989_s21 + $0x418] sm:$0xff]  ;;  %v2906_v37 = vld [vmem:[%s10991_s22 + $0x400] sm:$0xff]  ;;  %v2907_v8 = vld [vmem:[%s10991_s22 + $0x408] sm:$0xff]  ;;  %v3164_v18 = vadd.f32 %v2908_v46, %v2652_v13  ;;  %4432 = vadd.xlane.f32.xlu0 %v4431_v17  ;;  %v3193_v54 = vadd.f32 %v2937_v55, %v2681_v51  ;;  %v3703_v17 = vadd.f32 %v3447_v35, %v3191_v16 }
 0x306   : > { %v2909_v31 = vld [vmem:[%s10991_s22 + $0x418] sm:$0xff]  ;;  %v3448_v36 = vld [vmem:[%s10993_s23 + $0x4f0] sm:$0xff]  ;;  %v6235_v1 = vmax.f32 %v6234_v23, %v4210_v20  ;;  %v2654_v39 = vld [vmem:[%s10989_s21 + $0x420] sm:$0xff]  ;;  %v3162_v59 = vadd.f32 %v2906_v37, %v2650_v24  ;;  %v3163_v23 = vadd.f32 %v2907_v8, %v2651_v38  ;;  %v4473_v13 = vadd.f32 %v4472_v12, %v4208_v40 }
 0x307   : > { %v2910_v22 = vld [vmem:[%s10991_s22 + $0x420] sm:$0xff]  ;;  %v3957_v60 = vld [vmem:[%s10995_s24 + $0x4d8] sm:$0xff]  ;;  %v2655_v53 = vld [vmem:[%s10989_s21 + $0x428] sm:$0xff]  ;;  %v3165_v48 = vadd.f32 %v2909_v31, %v2653_v29  ;;  %v3704_v61 = vadd.f32 %v3448_v36, %v3192_v58 }
 0x308   : > { %v3958_v42 = vld [vmem:[%s10995_s24 + $0x4e0] sm:$0xff]  ;;  %v3449_v56 = vld [vmem:[%s10993_s23 + $0x4f8] sm:$0xff]  ;;  %v6236_v28 = vmax.f32 %v6235_v1, %v4211_v49  ;;  %v2911_v34 = vld [vmem:[%s10991_s22 + $0x428] sm:$0xff]  ;;  %v3166_v46 = vadd.f32 %v2910_v22, %v2654_v39  ;;  %v4213_v24 = vadd.f32 %v3957_v60, %v3701_v0  ;;  %v4474_v30 = vadd.f32 %v4473_v13, %v4209_v19 }
 0x309   : > { %v3420_v3 = vld [vmem:[%s10993_s23 + $0x410] sm:$0xff]  ;;  %v3421_v27 = vld [vmem:[%s10993_s23 + $0x418] sm:$0xff]  ;;  %v3959_v15 = vld [vmem:[%s10995_s24 + $0x4e8] sm:$0xff]  ;;  %v3167_v40 = vadd.f32 %v2911_v34, %v2655_v53  ;;  %v4214_v16 = vadd.f32 %v3958_v42, %v3702_v50  ;;  %v3705_v19 = vadd.f32 %v3449_v56, %v3193_v54 }
 0x30a   : > { %v3418_v29 = vld [vmem:[%s10993_s23 + $0x400] sm:$0xff]  ;;  %v3419_v31 = vld [vmem:[%s10993_s23 + $0x408] sm:$0xff]  ;;  %v6237_v21 = vmax.f32 %v6236_v28, %v4212_v57  ;;  %v2656_v37 = vld [vmem:[%s10989_s21 + $0x430] sm:$0xff]  ;;  %v3676_v22 = vadd.f32 %v3420_v3, %v3164_v18  ;;  %v3677_v39 = vadd.f32 %v3421_v27, %v3165_v48  ;;  %v4475_v12 = vadd.f32 %v4474_v30, %v4210_v20 }
 0x30b   : > { %v2912_v38 = vld [vmem:[%s10991_s22 + $0x430] sm:$0xff]  ;;  %v3422_v8 = vld [vmem:[%s10993_s23 + $0x420] sm:$0xff]  ;;  %v2657_v4 = vld [vmem:[%s10989_s21 + $0x438] sm:$0xff]  ;;  %v3674_v0 = vadd.f32 %v3418_v29, %v3162_v59  ;;  %v3675_v60 = vadd.f32 %v3419_v31, %v3163_v23  ;;  %v4215_v50 = vadd.f32 %v3959_v15, %v3703_v17 }
 0x30c   : > { %v3960_v1 = vld [vmem:[%s10995_s24 + $0x4f0] sm:$0xff]  ;;  %v2913_v51 = vld [vmem:[%s10991_s22 + $0x438] sm:$0xff]  ;;  %v6238_v55 = vmax.f32 %v6237_v21, %v4213_v24  ;;  %v2658_v58 = vld [vmem:[%s10989_s21 + $0x440] sm:$0xff]  ;;  %v3168_v28 = vadd.f32 %v2912_v38, %v2656_v37  ;;  %v3678_v53 = vadd.f32 %v3422_v8, %v3166_v46  ;;  %v4476_v30 = vadd.f32 %v4475_v12, %v4211_v49 }
 0x30d   : > { %v2914_v35 = vld [vmem:[%s10991_s22 + $0x440] sm:$0xff]  ;;  %v3423_v36 = vld [vmem:[%s10993_s23 + $0x428] sm:$0xff]  ;;  %v3932_v48 = vld [vmem:[%s10995_s24 + $0x410] sm:$0xff]  ;;  %v11738_v42 = vadd.f32 %v3960_v1, %v3704_v61  ;;  %v3169_v27 = vadd.f32 %v2913_v51, %v2657_v4 }
 0x30e   : > { %v3930_v34 = vld [vmem:[%s10995_s24 + $0x400] sm:$0xff]  ;;  %v3931_v18 = vld [vmem:[%s10995_s24 + $0x408] sm:$0xff]  ;;  %v6239_v3 = vmax.f32 %v6238_v55, %v4214_v16  ;;  %v3424_v13 = vld [vmem:[%s10993_s23 + $0x430] sm:$0xff]  ;;  %v3679_v46 = vadd.f32 %v3423_v36, %v3167_v40  ;;  %v4188_v29 = vadd.f32 %v3932_v48, %v3676_v22  ;;  %v3170_v15 = vadd.f32 %v2914_v35, %v2658_v58 }
 0x30f   : > { %v3933_v59 = vld [vmem:[%s10995_s24 + $0x418] sm:$0xff]  ;;  %v3934_v23 = vld [vmem:[%s10995_s24 + $0x420] sm:$0xff]  ;;  %v2659_v20 = vld [vmem:[%s10989_s21 + $0x448] sm:$0xff]  ;;  %v11748_v4 = vadd.f32 %v3930_v34, %v3674_v0  ;;  %v11750_v37 = vadd.f32 %v3931_v18, %v3675_v60  ;;  %v4477_v38 = vadd.f32 %v4476_v30, %v4212_v57  ;;  %v3680_v1 = vadd.f32 %v3424_v13, %v3168_v28 }
 0x310   : > { %v3961_v56 = vld [vmem:[%s10995_s24 + $0x4f8] sm:$0xff]  ;;  %v2915_v54 = vld [vmem:[%s10991_s22 + $0x448] sm:$0xff]  ;;  %v4189_v31 = vadd.f32 %v3933_v59, %v3677_v39  ;;  %v6240_v21 = vmax.f32 %v6239_v3, %v4215_v50  ;;  %v2660_v8 = vld [vmem:[%s10989_s21 + $0x450] sm:$0xff]  ;;  %v4190_v40 = vadd.f32 %v3934_v23, %v3678_v53 }
 0x311   : > { %v3425_v17 = vld [vmem:[%s10993_s23 + $0x438] sm:$0xff]  ;;  %v3935_v61 = vld [vmem:[%s10995_s24 + $0x428] sm:$0xff]  ;;  %13511 = vst [vmem:[#allocation24_spill] sm:$0xff] %v11748_v4  ;;  %13512 = vst [vmem:[#allocation25_spill] sm:$0xff] %v11750_v37  ;;  %v11757_v39 = vadd.f32 %v3961_v56, %v3705_v19  ;;  %v3171_v55 = vadd.f32 %v2915_v54, %v2659_v20  ;;  %v4478_v36 = vadd.f32 %v4477_v38, %v4213_v24 }
 0x312   : > { %v2916_v49 = vld [vmem:[%s10991_s22 + $0x450] sm:$0xff]  ;;  %v6213_v51 = vmax.f32 %v4189_v31, %v4188_v29  ;;  %v11755_v22 = vmax.f32 %v6240_v21, %v11738_v42  ;;  %v3426_v58 = vld [vmem:[%s10993_s23 + $0x440] sm:$0xff]  ;;  %v2661_v0 = vld [vmem:[%s10989_s21 + $0x458] sm:$0xff]  ;;  %v3681_v60 = vadd.f32 %v3425_v17, %v3169_v27  ;;  %v4191_v28 = vadd.f32 %v3935_v61, %v3679_v46 }
 0x313   : > { %13514 = vst [vmem:[#allocation27_spill] sm:$0xff] %v11757_v39  ;;  %v3936_v35 = vld [vmem:[%s10995_s24 + $0x430] sm:$0xff]  ;;  %v2917_v57 = vld [vmem:[%s10991_s22 + $0x458] sm:$0xff]  ;;  %v3172_v34 = vadd.f32 %v2916_v49, %v2660_v8  ;;  %v3427_v19 = vld [vmem:[%s10993_s23 + $0x448] sm:$0xff]  ;;  %v4451_v24 = vadd.f32 %v11750_v37, %v11748_v4  ;;  %v4479_v48 = vadd.f32 %v4478_v36, %v4214_v16  ;;  %v3682_v13 = vadd.f32 %v3426_v58, %v3170_v15 }
 0x314   : > { %13513 = vst [vmem:[#allocation26_spill] sm:$0xff] %v11755_v22  ;;  %v6214_v12 = vmax.f32 %v6213_v51, %v4190_v40  ;;  %v3937_v18 = vld [vmem:[%s10995_s24 + $0x438] sm:$0xff]  ;;  %v2662_v3 = vld [vmem:[%s10989_s21 + $0x460] sm:$0xff]  ;;  %v4192_v23 = vadd.f32 %v3936_v35, %v3680_v1  ;;  %v2663_v56 = vld [vmem:[%s10989_s21 + $0x468] sm:$0xff]  ;;  %v3173_v30 = vadd.f32 %v2917_v57, %v2661_v0  ;;  %v3683_v15 = vadd.f32 %v3427_v19, %v3171_v55 }
 0x315   : > { %v2918_v27 = vld [vmem:[%s10991_s22 + $0x460] sm:$0xff]  ;;  %v3428_v20 = vld [vmem:[%s10993_s23 + $0x450] sm:$0xff]  ;;  %v4452_v46 = vadd.f32 %v4451_v24, %v4188_v29  ;;  %v4480_v21 = vadd.f32 %v4479_v48, %v4215_v50  ;;  %v2665_v61 = vld [vmem:[%s10989_s21 + $0x478] sm:$0xff]  ;;  %v4193_v1 = vadd.f32 %v3937_v18, %v3681_v60 }
 0x316   : > { %v6215_v59 = vmax.f32 %v6214_v12, %v4191_v28  ;;  %v3938_v54 = vld [vmem:[%s10995_s24 + $0x440] sm:$0xff]  ;;  %v2664_v17 = vld [vmem:[%s10989_s21 + $0x470] sm:$0xff]  ;;  %v2919_v38 = vld [vmem:[%s10991_s22 + $0x468] sm:$0xff]  ;;  %v3174_v51 = vadd.f32 %v2918_v27, %v2662_v3  ;;  %v3684_v0 = vadd.f32 %v3428_v20, %v3172_v34 }
 0x317   : > { %v2920_v16 = vld [vmem:[%s10991_s22 + $0x470] sm:$0xff]  ;;  %v2921_v8 = vld [vmem:[%s10991_s22 + $0x478] sm:$0xff]  ;;  %v3430_v35 = vld [vmem:[%s10993_s23 + $0x460] sm:$0xff]  ;;  %v4453_v50 = vadd.f32 %v4452_v46, %v4189_v31  ;;  %v4481_v36 = vadd.f32 %v4480_v21, %v11738_v42  ;;  %v4194_v55 = vadd.f32 %v3938_v54, %v3682_v13  ;;  %v3175_v18 = vadd.f32 %v2919_v38, %v2663_v56 }
 0x318   : > { %v6216_v49 = vmax.f32 %v6215_v59, %v4192_v23  ;;  %v3429_v58 = vld [vmem:[%s10993_s23 + $0x458] sm:$0xff]  ;;  %v3939_v29 = vld [vmem:[%s10995_s24 + $0x448] sm:$0xff]  ;;  %v3940_v57 = vld [vmem:[%s10995_s24 + $0x450] sm:$0xff]  ;;  %v3177_v21 = vadd.f32 %v2921_v8, %v2665_v61  ;;  %v3686_v38 = vadd.f32 %v3430_v35, %v3174_v51 }
 0x319   : > { %v2698_v19 = vld [vmem:[%s10989_s21 + $0x580] sm:$0xff]  ;;  %v2700_v60 = vld [vmem:[%s10989_s21 + $0x590] sm:$0xff]  ;;  %v3431_v24 = vld [vmem:[%s10993_s23 + $0x468] sm:$0xff]  ;;  %v4454_v48 = vadd.f32 %v4453_v50, %v4190_v40  ;;  %v4482_v42 = vadd.f32 %v4481_v36, %v11757_v39  ;;  %v3685_v59 = vadd.f32 %v3429_v58, %v3173_v30  ;;  %v11792_v13 = vadd.f32 %v3939_v29, %v3683_v15 }
 0x31a   : > { %v6217_v12 = vmax.f32 %v6216_v49, %v4193_v1  ;;  %v2701_v3 = vld [vmem:[%s10989_s21 + $0x598] sm:$0xff]  ;;  %v2956_v27 = vld [vmem:[%s10991_s22 + $0x590] sm:$0xff]  ;;  %v2699_v54 = vld [vmem:[%s10989_s21 + $0x588] sm:$0xff]  ;;  %v3176_v40 = vadd.f32 %v2920_v16, %v2664_v17  ;;  %v4196_v29 = vadd.f32 %v3940_v57, %v3684_v0  ;;  %v3687_v39 = vadd.f32 %v3431_v24, %v3175_v18 }
 0x31b   : > { %v2957_v31 = vld [vmem:[%s10991_s22 + $0x598] sm:$0xff]  ;;  %v3432_v34 = vld [vmem:[%s10993_s23 + $0x470] sm:$0xff]  ;;  %v2954_v56 = vld [vmem:[%s10991_s22 + $0x580] sm:$0xff]  ;;  %v4455_v50 = vadd.f32 %v4454_v48, %v4191_v28  ;;  %4483 = vadd.xlane.f32.xlu1 %v4482_v42  ;;  %v3212_v17 = vadd.f32 %v2956_v27, %v2700_v60 }
 0x31c   : > { %v6218_v20 = vmax.f32 %v6217_v12, %v4194_v55  ;;  %v2955_v46 = vld [vmem:[%s10991_s22 + $0x588] sm:$0xff]  ;;  %v3941_v49 = vld [vmem:[%s10995_s24 + $0x458] sm:$0xff]  ;;  %v2702_v36 = vld [vmem:[%s10989_s21 + $0x5a0] sm:$0xff]  ;;  %v3213_v61 = vadd.f32 %v2957_v31, %v2701_v3  ;;  %v3210_v51 = vadd.f32 %v2954_v56, %v2698_v19 }
 0x31d   : > { %v2958_v53 = vld [vmem:[%s10991_s22 + $0x5a0] sm:$0xff]  ;;  %v3433_v30 = vld [vmem:[%s10993_s23 + $0x478] sm:$0xff]  ;;  %v2703_v12 = vld [vmem:[%s10989_s21 + $0x5a8] sm:$0xff]  ;;  %v4456_v8 = vadd.f32 %v4455_v50, %v4192_v23  ;;  %v3211_v35 = vadd.f32 %v2955_v46, %v2699_v54  ;;  %v4197_v60 = vadd.f32 %v3941_v49, %v3685_v59  ;;  %v3688_v23 = vadd.f32 %v3432_v34, %v3176_v40 }
 0x31e   : > { %v3942_v15 = vld [vmem:[%s10995_s24 + $0x460] sm:$0xff]  ;;  %v6219_v58 = vmax.f32 %v6218_v20, %v11792_v13  ;;  %v3943_v16 = vld [vmem:[%s10995_s24 + $0x468] sm:$0xff]  ;;  %v3468_v48 = vld [vmem:[%s10993_s23 + $0x590] sm:$0xff]  ;;  %v3214_v27 = vadd.f32 %v2958_v53, %v2702_v36  ;;  %v3689_v19 = vadd.f32 %v3433_v30, %v3177_v21 }
 0x31f   : > { %v2959_v28 = vld [vmem:[%s10991_s22 + $0x5a8] sm:$0xff]  ;;  %v3469_v42 = vld [vmem:[%s10993_s23 + $0x598] sm:$0xff]  ;;  %v3944_v22 = vld [vmem:[%s10995_s24 + $0x470] sm:$0xff]  ;;  %v4198_v20 = vadd.f32 %v3942_v15, %v3686_v38  ;;  %v4457_v54 = vadd.f32 %v4456_v8, %v4193_v1  ;;  %v3724_v59 = vadd.f32 %v3468_v48, %v3212_v17  ;;  %v4199_v15 = vadd.f32 %v3943_v16, %v3687_v39 }
 0x320   : > { %v3945_v0 = vld [vmem:[%s10995_s24 + $0x478] sm:$0xff]  ;;  %v6220_v57 = vmax.f32 %v6219_v58, %v4196_v29  ;;  %v3466_v3 = vld [vmem:[%s10993_s23 + $0x580] sm:$0xff]  ;;  %v3467_v31 = vld [vmem:[%s10993_s23 + $0x588] sm:$0xff]  ;;  %v3215_v53 = vadd.f32 %v2959_v28, %v2703_v12  ;;  %v3725_v49 = vadd.f32 %v3469_v42, %v3213_v61  ;;  %v4200_v17 = vadd.f32 %v3944_v22, %v3688_v23 }
 0x321   : > { %v2704_v56 = vld [vmem:[%s10989_s21 + $0x5b0] sm:$0xff]  ;;  %v3470_v18 = vld [vmem:[%s10993_s23 + $0x5a0] sm:$0xff]  ;;  %v2705_v50 = vld [vmem:[%s10989_s21 + $0x5b8] sm:$0xff]  ;;  %v4458_v36 = vadd.f32 %v4457_v54, %v4194_v55  ;;  %v3722_v1 = vadd.f32 %v3466_v3, %v3210_v51  ;;  %v3723_v21 = vadd.f32 %v3467_v31, %v3211_v35  ;;  %v11824_v55 = vadd.f32 %v3945_v0, %v3689_v19 }
 0x322   : > { %v2960_v46 = vld [vmem:[%s10991_s22 + $0x5b0] sm:$0xff]  ;;  %v6221_v24 = vmax.f32 %v6220_v57, %v4197_v60  ;;  %v2706_v4 = vld [vmem:[%s10989_s21 + $0x5c0] sm:$0xff]  ;;  %v2961_v58 = vld [vmem:[%s10991_s22 + $0x5b8] sm:$0xff]  ;;  %v3726_v57 = vadd.f32 %v3470_v18, %v3214_v27 }
 0x323   : > { %v2962_v34 = vld [vmem:[%s10991_s22 + $0x5c0] sm:$0xff]  ;;  %v3471_v40 = vld [vmem:[%s10993_s23 + $0x5a8] sm:$0xff]  ;;  %v3216_v8 = vadd.f32 %v2960_v46, %v2704_v56  ;;  %v3980_v41 = vld [vmem:[%s10995_s24 + $0x590] sm:$0xff]  ;;  %13515 = vst [vmem:[#allocation28_spill] sm:$0xff] %v11824_v55  ;;  %v4459_v61 = vadd.f32 %v4458_v36, %v11792_v13  ;;  %v3217_v28 = vadd.f32 %v2961_v58, %v2705_v50 }
 0x324   : > { %v3978_v38 = vld [vmem:[%s10995_s24 + $0x580] sm:$0xff]  ;;  %v6222_v30 = vmax.f32 %v6221_v24, %v4198_v20  ;;  %v3979_v37 = vld [vmem:[%s10995_s24 + $0x588] sm:$0xff]  ;;  %v3981_v12 = vld [vmem:[%s10995_s24 + $0x598] sm:$0xff]  ;;  %v3727_v39 = vadd.f32 %v3471_v40, %v3215_v53  ;;  %v4236_v16 = vadd.f32 %v3980_v41, %v3724_v59  ;;  %v3218_v54 = vadd.f32 %v2962_v34, %v2706_v4 }
 0x325   : > { %v3472_v51 = vld [vmem:[%s10993_s23 + $0x5b0] sm:$0xff]  ;;  %v3982_v35 = vld [vmem:[%s10995_s24 + $0x5a0] sm:$0xff]  ;;  %v2707_v42 = vld [vmem:[%s10989_s21 + $0x5c8] sm:$0xff]  ;;  %v4237_v27 = vadd.f32 %v3981_v12, %v3725_v49  ;;  %v4460_v31 = vadd.f32 %v4459_v61, %v4196_v29  ;;  %v11833_v13 = vadd.f32 %v3978_v38, %v3722_v1  ;;  %v11835_v23 = vadd.f32 %v3979_v37, %v3723_v21 }
 0x326   : > { %v6223_v48 = vmax.f32 %v6222_v30, %v4199_v15  ;;  %v2963_v3 = vld [vmem:[%s10991_s22 + $0x5c8] sm:$0xff]  ;;  %v3473_v22 = vld [vmem:[%s10993_s23 + $0x5b8] sm:$0xff]  ;;  %v2708_v56 = vld [vmem:[%s10989_s21 + $0x5d0] sm:$0xff]  ;;  %v3728_v46 = vadd.f32 %v3472_v51, %v3216_v8  ;;  %v4238_v18 = vadd.f32 %v3982_v35, %v3726_v57 }
 0x327   : > { %v3983_v0 = vld [vmem:[%s10995_s24 + $0x5a8] sm:$0xff]  ;;  %13516 = vst [vmem:[#allocation29_spill] sm:$0xff] %v11833_v13  ;;  %13517 = vst [vmem:[#allocation30_spill] sm:$0xff] %v11835_v23  ;;  %v6264_v41 = vmax.f32 %v4237_v27, %v4236_v16  ;;  %v4461_v24 = vadd.f32 %v4460_v31, %v4197_v60  ;;  %v2964_v4 = vld [vmem:[%s10991_s22 + $0x5d0] sm:$0xff]  ;;  %v3219_v29 = vadd.f32 %v2963_v3, %v2707_v42 }
 0x328   : > { %v11837_v19 = vmax.f32 %v6223_v48, %v4200_v17  ;;  %v3474_v50 = vld [vmem:[%s10993_s23 + $0x5c0] sm:$0xff]  ;;  %v3984_v58 = vld [vmem:[%s10995_s24 + $0x5b0] sm:$0xff]  ;;  %v2709_v53 = vld [vmem:[%s10989_s21 + $0x5d8] sm:$0xff]  ;;  %v3729_v49 = vadd.f32 %v3473_v22, %v3217_v28  ;;  %v4239_v34 = vadd.f32 %v3983_v0, %v3727_v39  ;;  %v4502_v38 = vadd.f32 %v11835_v23, %v11833_v13 }
 0x329   : > { %v2710_v59 = vld [vmem:[%s10989_s21 + $0x5e0] sm:$0xff]  ;;  %v6265_v36 = vmax.f32 %v6264_v41, %v4238_v18  ;;  %v4462_v40 = vadd.f32 %v4461_v24, %v4198_v20  ;;  %v2965_v60 = vld [vmem:[%s10991_s22 + $0x5d8] sm:$0xff]  ;;  %v3475_v1 = vld [vmem:[%s10993_s23 + $0x5c8] sm:$0xff]  ;;  %v3220_v12 = vadd.f32 %v2964_v4, %v2708_v56  ;;  %v3730_v61 = vadd.f32 %v3474_v50, %v3218_v54 }
 0x32a   : > { %13518 = vst [vmem:[#allocation31_spill] sm:$0xff] %v11837_v19  ;;  %v3985_v21 = vld [vmem:[%s10995_s24 + $0x5b8] sm:$0xff]  ;;  %v2711_v30 = vld [vmem:[%s10989_s21 + $0x5e8] sm:$0xff]  ;;  %v2966_v8 = vld [vmem:[%s10991_s22 + $0x5e0] sm:$0xff]  ;;  %v4240_v51 = vadd.f32 %v3984_v58, %v3728_v46  ;;  %v4503_v39 = vadd.f32 %v4502_v38, %v4236_v16  ;;  %v3221_v31 = vadd.f32 %v2965_v60, %v2709_v53  ;;  %v3731_v41 = vadd.f32 %v3475_v1, %v3219_v29 }
 0x32b   : > { %v2967_v57 = vld [vmem:[%s10991_s22 + $0x5e8] sm:$0xff]  ;;  %v6266_v28 = vmax.f32 %v6265_v36, %v4239_v34  ;;  %v4463_v35 = vadd.f32 %v4462_v40, %v4199_v15  ;;  %v2712_v20 = vld [vmem:[%s10989_s21 + $0x5f0] sm:$0xff]  ;;  %v3986_v3 = vld [vmem:[%s10995_s24 + $0x5c0] sm:$0xff]  ;;  %v4241_v46 = vadd.f32 %v3985_v21, %v3729_v49  ;;  %v3222_v24 = vadd.f32 %v2966_v8, %v2710_v59 }
 0x32c   : > { %v2968_v48 = vld [vmem:[%s10991_s22 + $0x5f0] sm:$0xff]  ;;  %v3477_v22 = vld [vmem:[%s10993_s23 + $0x5d8] sm:$0xff]  ;;  %v3478_v0 = vld [vmem:[%s10993_s23 + $0x5e0] sm:$0xff]  ;;  %v4504_v50 = vadd.f32 %v4503_v39, %v4237_v27  ;;  %v11867_v60 = vadd.f32 %v3986_v3, %v3730_v61  ;;  %v3223_v27 = vadd.f32 %v2967_v57, %v2711_v30 }
 0x32d   : > { %v3476_v42 = vld [vmem:[%s10993_s23 + $0x5d0] sm:$0xff]  ;;  %v3987_v54 = vld [vmem:[%s10995_s24 + $0x5c8] sm:$0xff]  ;;  %v6267_v56 = vmax.f32 %v6266_v28, %v4240_v51  ;;  %v4464_v15 = vadd.f32 %v4463_v35, %v4200_v17  ;;  %v2682_v58 = vld [vmem:[%s10989_s21 + $0x500] sm:$0xff]  ;;  %v3734_v30 = vadd.f32 %v3478_v0, %v3222_v24 }
 0x32e   : > { %v3988_v4 = vld [vmem:[%s10995_s24 + $0x5d0] sm:$0xff]  ;;  %v2713_v53 = vld [vmem:[%s10989_s21 + $0x5f8] sm:$0xff]  ;;  %v3732_v40 = vadd.f32 %v3476_v42, %v3220_v12  ;;  %v3479_v21 = vld [vmem:[%s10993_s23 + $0x5e8] sm:$0xff]  ;;  %v4505_v38 = vadd.f32 %v4504_v50, %v4238_v18  ;;  %v3224_v12 = vadd.f32 %v2968_v48, %v2712_v20  ;;  %v3733_v42 = vadd.f32 %v3477_v22, %v3221_v31 }
 0x32f   : > { %v2684_v16 = vld [vmem:[%s10989_s21 + $0x510] sm:$0xff]  ;;  %v2969_v36 = vld [vmem:[%s10991_s22 + $0x5f8] sm:$0xff]  ;;  %v6268_v29 = vmax.f32 %v6267_v56, %v4241_v46  ;;  %v4465_v59 = vadd.f32 %v4464_v15, %v11824_v55  ;;  %v2683_v8 = vld [vmem:[%s10989_s21 + $0x508] sm:$0xff]  ;;  %v4243_v39 = vadd.f32 %v3987_v54, %v3731_v41 }
 0x330   : > { %v2685_v1 = vld [vmem:[%s10989_s21 + $0x518] sm:$0xff]  ;;  %v2940_v17 = vld [vmem:[%s10991_s22 + $0x510] sm:$0xff]  ;;  %v2938_v28 = vld [vmem:[%s10991_s22 + $0x500] sm:$0xff]  ;;  %v4506_v50 = vadd.f32 %v4505_v38, %v4239_v34 }
 0x331   : > { %v2941_v49 = vld [vmem:[%s10991_s22 + $0x518] sm:$0xff]  ;;  %v2939_v35 = vld [vmem:[%s10991_s22 + $0x508] sm:$0xff]  ;;  %v3480_v61 = vld [vmem:[%s10993_s23 + $0x5f0] sm:$0xff]  ;;  %v6269_v3 = vmax.f32 %v6268_v29, %v11867_v60  ;;  %4466 = vadd.xlane.f32.xlu0 %v4465_v59  ;;  %v3196_v20 = vadd.f32 %v2940_v17, %v2684_v16  ;;  %v4244_v29 = vadd.f32 %v3988_v4, %v3732_v40  ;;  %v3194_v54 = vadd.f32 %v2938_v28, %v2682_v58 }
 0x332   : > { %v2686_v56 = vld [vmem:[%s10989_s21 + $0x520] sm:$0xff]  ;;  %v3989_v18 = vld [vmem:[%s10995_s24 + $0x5d8] sm:$0xff]  ;;  %v2687_v37 = vld [vmem:[%s10989_s21 + $0x528] sm:$0xff]  ;;  %v3197_v48 = vadd.f32 %v2941_v49, %v2685_v1  ;;  %v3195_v13 = vadd.f32 %v2939_v35, %v2683_v8  ;;  %v3225_v59 = vadd.f32 %v2969_v36, %v2713_v53  ;;  %v4507_v16 = vadd.f32 %v4506_v50, %v4240_v51 }
 0x333   : > { %v2942_v15 = vld [vmem:[%s10991_s22 + $0x520] sm:$0xff]  ;;  %v3481_v31 = vld [vmem:[%s10993_s23 + $0x5f8] sm:$0xff]  ;;  %v6270_v22 = vmax.f32 %v6269_v3, %v4243_v39  ;;  %v2943_v41 = vld [vmem:[%s10991_s22 + $0x528] sm:$0xff]  ;;  %v3735_v3 = vadd.f32 %v3479_v21, %v3223_v27  ;;  %v3736_v4 = vadd.f32 %v3480_v61, %v3224_v12  ;;  %v4245_v40 = vadd.f32 %v3989_v18, %v3733_v42 }
 0x334   : > { %v3990_v57 = vld [vmem:[%s10995_s24 + $0x5e0] sm:$0xff]  ;;  %v3452_v0 = vld [vmem:[%s10993_s23 + $0x510] sm:$0xff]  ;;  %v3453_v24 = vld [vmem:[%s10993_s23 + $0x518] sm:$0xff]  ;;  %v3198_v17 = vadd.f32 %v2942_v15, %v2686_v56  ;;  %v4508_v23 = vadd.f32 %v4507_v16, %v4241_v46  ;;  %v3199_v51 = vadd.f32 %v2943_v41, %v2687_v37  ;;  %v3737_v46 = vadd.f32 %v3481_v31, %v3225_v59 }
 0x335   : > { %v3991_v34 = vld [vmem:[%s10995_s24 + $0x5e8] sm:$0xff]  ;;  %v3992_v38 = vld [vmem:[%s10995_s24 + $0x5f0] sm:$0xff]  ;;  %v3450_v1 = vld [vmem:[%s10993_s23 + $0x500] sm:$0xff]  ;;  %v6271_v58 = vmax.f32 %v6270_v22, %v4244_v29  ;;  %v3708_v56 = vadd.f32 %v3452_v0, %v3196_v20  ;;  %v3709_v15 = vadd.f32 %v3453_v24, %v3197_v48  ;;  %v4246_v21 = vadd.f32 %v3990_v57, %v3734_v30 }
 0x336   : > { %v3451_v49 = vld [vmem:[%s10993_s23 + $0x508] sm:$0xff]  ;;  %v2688_v8 = vld [vmem:[%s10989_s21 + $0x530] sm:$0xff]  ;;  %v3454_v35 = vld [vmem:[%s10993_s23 + $0x520] sm:$0xff]  ;;  %v3706_v42 = vadd.f32 %v3450_v1, %v3194_v54  ;;  %v4509_v22 = vadd.f32 %v4508_v23, %v11867_v60  ;;  %v4247_v57 = vadd.f32 %v3991_v34, %v3735_v3  ;;  %v11905_v0 = vadd.f32 %v3992_v38, %v3736_v4 }
 0x337   : > { %v2944_v28 = vld [vmem:[%s10991_s22 + $0x530] sm:$0xff]  ;;  %v2689_v53 = vld [vmem:[%s10989_s21 + $0x538] sm:$0xff]  ;;  %v2690_v36 = vld [vmem:[%s10989_s21 + $0x540] sm:$0xff]  ;;  %v6272_v27 = vmax.f32 %v6271_v58, %v4245_v40  ;;  %v3707_v18 = vadd.f32 %v3451_v49, %v3195_v13  ;;  %v3710_v37 = vadd.f32 %v3454_v35, %v3198_v17 }
 0x338   : > { %v2945_v55 = vld [vmem:[%s10991_s22 + $0x538] sm:$0xff]  ;;  %v2946_v12 = vld [vmem:[%s10991_s22 + $0x540] sm:$0xff]  ;;  %v3455_v61 = vld [vmem:[%s10993_s23 + $0x528] sm:$0xff]  ;;  %v3200_v16 = vadd.f32 %v2944_v28, %v2688_v8  ;;  %v4510_v59 = vadd.f32 %v4509_v22, %v4243_v39 }
 0x339   : > { %v3962_v50 = vld [vmem:[%s10995_s24 + $0x500] sm:$0xff]  ;;  %v3963_v41 = vld [vmem:[%s10995_s24 + $0x508] sm:$0xff]  ;;  %v3964_v20 = vld [vmem:[%s10995_s24 + $0x510] sm:$0xff]  ;;  %v6273_v30 = vmax.f32 %v6272_v27, %v4246_v21  ;;  %v3201_v54 = vadd.f32 %v2945_v55, %v2689_v53  ;;  %v3711_v60 = vadd.f32 %v3455_v61, %v3199_v51  ;;  %v3202_v8 = vadd.f32 %v2946_v12, %v2690_v36 }
 0x33a   : > { %v3965_v48 = vld [vmem:[%s10995_s24 + $0x518] sm:$0xff]  ;;  %v3456_v24 = vld [vmem:[%s10993_s23 + $0x530] sm:$0xff]  ;;  %v3966_v13 = vld [vmem:[%s10995_s24 + $0x520] sm:$0xff]  ;;  %v4220_v17 = vadd.f32 %v3964_v20, %v3708_v56  ;;  %v11914_v55 = vadd.f32 %v3962_v50, %v3706_v42  ;;  %v11916_v38 = vadd.f32 %v3963_v41, %v3707_v18  ;;  %v4511_v3 = vadd.f32 %v4510_v59, %v4244_v29 }
 0x33b   : > { %v3993_v31 = vld [vmem:[%s10995_s24 + $0x5f8] sm:$0xff]  ;;  %v2691_v1 = vld [vmem:[%s10989_s21 + $0x548] sm:$0xff]  ;;  %v4221_v49 = vadd.f32 %v3965_v48, %v3709_v15  ;;  %v6274_v58 = vmax.f32 %v6273_v30, %v4247_v57  ;;  %v2692_v4 = vld [vmem:[%s10989_s21 + $0x550] sm:$0xff]  ;;  %v3712_v35 = vadd.f32 %v3456_v24, %v3200_v16  ;;  %v4222_v51 = vadd.f32 %v3966_v13, %v3710_v37 }
 0x33c   : > { %v2947_v23 = vld [vmem:[%s10991_s22 + $0x548] sm:$0xff]  ;;  %v3457_v28 = vld [vmem:[%s10993_s23 + $0x538] sm:$0xff]  ;;  %v2948_v39 = vld [vmem:[%s10991_s22 + $0x550] sm:$0xff]  ;;  %v11923_v36 = vadd.f32 %v3993_v31, %v3737_v46  ;;  %v4512_v29 = vadd.f32 %v4511_v3, %v4245_v40  ;;  %v4485_v40 = vadd.f32 %v11916_v38, %v11914_v55 }
 0x33d   : > { %v3967_v34 = vld [vmem:[%s10995_s24 + $0x528] sm:$0xff]  ;;  %v6247_v53 = vmax.f32 %v4221_v49, %v4220_v17  ;;  %v11921_v56 = vmax.f32 %v6274_v58, %v11905_v0  ;;  %v3203_v15 = vadd.f32 %v2947_v23, %v2691_v1  ;;  %v3458_v27 = vld [vmem:[%s10993_s23 + $0x540] sm:$0xff]  ;;  %v3968_v12 = vld [vmem:[%s10995_s24 + $0x530] sm:$0xff]  ;;  %v3713_v18 = vadd.f32 %v3457_v28, %v3201_v54 }
 0x33e   : > { %13520 = vst [vmem:[#allocation33_spill] sm:$0xff] %v11923_v36  ;;  %v2693_v61 = vld [vmem:[%s10989_s21 + $0x558] sm:$0xff]  ;;  %v4223_v22 = vadd.f32 %v3967_v34, %v3711_v60  ;;  %v2694_v46 = vld [vmem:[%s10989_s21 + $0x560] sm:$0xff]  ;;  %v3204_v37 = vadd.f32 %v2948_v39, %v2692_v4  ;;  %v3459_v41 = vld [vmem:[%s10993_s23 + $0x548] sm:$0xff]  ;;  %v4513_v48 = vadd.f32 %v4512_v29, %v4246_v21  ;;  %v3714_v31 = vadd.f32 %v3458_v27, %v3202_v8 }
 0x33f   : > { %13519 = vst [vmem:[#allocation32_spill] sm:$0xff] %v11921_v56  ;;  %v2949_v42 = vld [vmem:[%s10991_s22 + $0x558] sm:$0xff]  ;;  %v6248_v50 = vmax.f32 %v6247_v53, %v4222_v51  ;;  %v2695_v30 = vld [vmem:[%s10989_s21 + $0x568] sm:$0xff]  ;;  %v2696_v54 = vld [vmem:[%s10989_s21 + $0x570] sm:$0xff]  ;;  %v4224_v1 = vadd.f32 %v3968_v12, %v3712_v35  ;;  %v4486_v34 = vadd.f32 %v4485_v40, %v4220_v17  ;;  %v3715_v39 = vadd.f32 %v3459_v41, %v3203_v15 }
 0x340   : > { %v3969_v20 = vld [vmem:[%s10995_s24 + $0x538] sm:$0xff]  ;;  %v2950_v24 = vld [vmem:[%s10991_s22 + $0x560] sm:$0xff]  ;;  %v2951_v13 = vld [vmem:[%s10991_s22 + $0x568] sm:$0xff]  ;;  %v3205_v60 = vadd.f32 %v2949_v42, %v2693_v61  ;;  %v4514_v3 = vadd.f32 %v4513_v48, %v4247_v57 }
 0x341   : > { %v6249_v59 = vmax.f32 %v6248_v50, %v4223_v22  ;;  %v2952_v23 = vld [vmem:[%s10991_s22 + $0x570] sm:$0xff]  ;;  %v3970_v28 = vld [vmem:[%s10995_s24 + $0x540] sm:$0xff]  ;;  %v3461_v21 = vld [vmem:[%s10993_s23 + $0x558] sm:$0xff]  ;;  %v4225_v27 = vadd.f32 %v3969_v20, %v3713_v18  ;;  %v3206_v35 = vadd.f32 %v2950_v24, %v2694_v46  ;;  %v4487_v29 = vadd.f32 %v4486_v34, %v4221_v49 }
 0x342   : > { %v3460_v58 = vld [vmem:[%s10993_s23 + $0x550] sm:$0xff]  ;;  %v3462_v4 = vld [vmem:[%s10993_s23 + $0x560] sm:$0xff]  ;;  %v3971_v53 = vld [vmem:[%s10995_s24 + $0x548] sm:$0xff]  ;;  %v4515_v57 = vadd.f32 %v4514_v3, %v11905_v0  ;;  %v4226_v40 = vadd.f32 %v3970_v28, %v3714_v31  ;;  %v3207_v49 = vadd.f32 %v2951_v13, %v2695_v30  ;;  %v3208_v20 = vadd.f32 %v2952_v23, %v2696_v54 }
 0x343   : > { %v6250_v8 = vmax.f32 %v6249_v59, %v4224_v1  ;;  %v3972_v12 = vld [vmem:[%s10995_s24 + $0x550] sm:$0xff]  ;;  %v2730_v61 = vld [vmem:[%s10989_s21 + $0x680] sm:$0xff]  ;;  %v2697_v17 = vld [vmem:[%s10989_s21 + $0x578] sm:$0xff]  ;;  %v3716_v15 = vadd.f32 %v3460_v58, %v3204_v37  ;;  %v4488_v59 = vadd.f32 %v4487_v29, %v4222_v51  ;;  %v3717_v31 = vadd.f32 %v3461_v21, %v3205_v60 }
 0x344   : > { %v2732_v42 = vld [vmem:[%s10989_s21 + $0x690] sm:$0xff]  ;;  %v2953_v50 = vld [vmem:[%s10991_s22 + $0x578] sm:$0xff]  ;;  %v3463_v24 = vld [vmem:[%s10993_s23 + $0x568] sm:$0xff]  ;;  %v4516_v37 = vadd.f32 %v4515_v57, %v11923_v36  ;;  %v3718_v30 = vadd.f32 %v3462_v4, %v3206_v35 }
 0x345   : > { %v6251_v41 = vmax.f32 %v6250_v8, %v4225_v27  ;;  %v2733_v48 = vld [vmem:[%s10989_s21 + $0x698] sm:$0xff]  ;;  %v2988_v18 = vld [vmem:[%s10991_s22 + $0x690] sm:$0xff]  ;;  %v2731_v34 = vld [vmem:[%s10989_s21 + $0x688] sm:$0xff]  ;;  %v4227_v8 = vadd.f32 %v3971_v53, %v3715_v39  ;;  %v4489_v51 = vadd.f32 %v4488_v59, %v4223_v22  ;;  %v4228_v21 = vadd.f32 %v3972_v12, %v3716_v15 }
 0x346   : > { %v2989_v46 = vld [vmem:[%s10991_s22 + $0x698] sm:$0xff]  ;;  %v2986_v0 = vld [vmem:[%s10991_s22 + $0x680] sm:$0xff]  ;;  %v2987_v3 = vld [vmem:[%s10991_s22 + $0x688] sm:$0xff]  ;;  %v3244_v29 = vadd.f32 %v2988_v18, %v2732_v42  ;;  %4517 = vadd.xlane.f32.xlu1 %v4516_v37  ;;  %v3209_v22 = vadd.f32 %v2953_v50, %v2697_v17  ;;  %v3719_v37 = vadd.f32 %v3463_v24, %v3207_v49 }
 0x347   : > { %v3464_v58 = vld [vmem:[%s10993_s23 + $0x570] sm:$0xff]  ;;  %v6252_v28 = vmax.f32 %v6251_v41, %v4226_v40  ;;  %v2734_v16 = vld [vmem:[%s10989_s21 + $0x6a0] sm:$0xff]  ;;  %v3973_v54 = vld [vmem:[%s10995_s24 + $0x558] sm:$0xff]  ;;  %v3245_v19 = vadd.f32 %v2989_v46, %v2733_v48  ;;  %v3242_v53 = vadd.f32 %v2986_v0, %v2730_v61  ;;  %v3243_v41 = vadd.f32 %v2987_v3, %v2731_v34 }
 0x348   : > { %v2990_v56 = vld [vmem:[%s10991_s22 + $0x6a0] sm:$0xff]  ;;  %v2735_v23 = vld [vmem:[%s10989_s21 + $0x6a8] sm:$0xff]  ;;  %v3465_v57 = vld [vmem:[%s10993_s23 + $0x578] sm:$0xff]  ;;  %v4490_v42 = vadd.f32 %v4489_v51, %v4224_v1  ;;  %v3720_v12 = vadd.f32 %v3464_v58, %v3208_v20  ;;  %v4229_v61 = vadd.f32 %v3973_v54, %v3717_v31 }
 0x349   : > { %v3974_v13 = vld [vmem:[%s10995_s24 + $0x560] sm:$0xff]  ;;  %v6253_v60 = vmax.f32 %v6252_v28, %v4227_v8  ;;  %v2991_v39 = vld [vmem:[%s10991_s22 + $0x6a8] sm:$0xff]  ;;  %v3500_v4 = vld [vmem:[%s10993_s23 + $0x690] sm:$0xff]  ;;  %v3246_v18 = vadd.f32 %v2990_v56, %v2734_v16 }
 0x34a   : > { %v3501_v35 = vld [vmem:[%s10993_s23 + $0x698] sm:$0xff]  ;;  %v3975_v59 = vld [vmem:[%s10995_s24 + $0x568] sm:$0xff]  ;;  %v3498_v48 = vld [vmem:[%s10993_s23 + $0x680] sm:$0xff]  ;;  %v4491_v36 = vadd.f32 %v4490_v42, %v4225_v27  ;;  %v3247_v1 = vadd.f32 %v2991_v39, %v2735_v23  ;;  %v3756_v56 = vadd.f32 %v3500_v4, %v3244_v29  ;;  %v4230_v49 = vadd.f32 %v3974_v13, %v3718_v30 }
 0x34b   : > { %v3499_v46 = vld [vmem:[%s10993_s23 + $0x688] sm:$0xff]  ;;  %v6254_v15 = vmax.f32 %v6253_v60, %v4228_v21  ;;  %v2736_v0 = vld [vmem:[%s10989_s21 + $0x6b0] sm:$0xff]  ;;  %v3502_v3 = vld [vmem:[%s10993_s23 + $0x6a0] sm:$0xff]  ;;  %v3757_v16 = vadd.f32 %v3501_v35, %v3245_v19  ;;  %v3754_v31 = vadd.f32 %v3498_v48, %v3242_v53  ;;  %v3721_v27 = vadd.f32 %v3465_v57, %v3209_v22 }
 0x34c   : > { %v2992_v34 = vld [vmem:[%s10991_s22 + $0x6b0] sm:$0xff]  ;;  %v2737_v11 = vld [vmem:[%s10989_s21 + $0x6b8] sm:$0xff]  ;;  %v2738_v20 = vld [vmem:[%s10989_s21 + $0x6c0] sm:$0xff]  ;;  %v3755_v54 = vadd.f32 %v3499_v46, %v3243_v41  ;;  %v4492_v51 = vadd.f32 %v4491_v36, %v4226_v40  ;;  %v3758_v23 = vadd.f32 %v3502_v3, %v3246_v18  ;;  %v4231_v30 = vadd.f32 %v3975_v59, %v3719_v37 }
 0x34d   : > { %v3976_v28 = vld [vmem:[%s10995_s24 + $0x570] sm:$0xff]  ;;  %v2993_v17 = vld [vmem:[%s10991_s22 + $0x6b8] sm:$0xff]  ;;  %v6255_v50 = vmax.f32 %v6254_v15, %v4229_v61  ;;  %v2994_v24 = vld [vmem:[%s10991_s22 + $0x6c0] sm:$0xff]  ;;  %v3248_v60 = vadd.f32 %v2992_v34, %v2736_v0 }
 0x34e   : > { %v3503_v58 = vld [vmem:[%s10993_s23 + $0x6a8] sm:$0xff]  ;;  %v4010_v39 = vld [vmem:[%s10995_s24 + $0x680] sm:$0xff]  ;;  %v4012_v19 = vld [vmem:[%s10995_s24 + $0x690] sm:$0xff]  ;;  %v11985_v13 = vadd.f32 %v3976_v28, %v3720_v12  ;;  %v3249_v35 = vadd.f32 %v2993_v17, %v2737_v11  ;;  %v4493_v36 = vadd.f32 %v4492_v51, %v4227_v8  ;;  %v3250_v59 = vadd.f32 %v2994_v24, %v2738_v20 }
 0x34f   : > { %v4011_v29 = vld [vmem:[%s10995_s24 + $0x688] sm:$0xff]  ;;  %v6256_v4 = vmax.f32 %v6255_v50, %v4230_v49  ;;  %v3504_v42 = vld [vmem:[%s10993_s23 + $0x6b0] sm:$0xff]  ;;  %v4013_v53 = vld [vmem:[%s10995_s24 + $0x698] sm:$0xff]  ;;  %v3759_v18 = vadd.f32 %v3503_v58, %v3247_v1  ;;  %v4268_v48 = vadd.f32 %v4012_v19, %v3756_v56  ;;  %v11995_v11 = vadd.f32 %v4010_v39, %v3754_v31 }
 0x350   : > { %v4014_v41 = vld [vmem:[%s10995_s24 + $0x6a0] sm:$0xff]  ;;  %v3977_v57 = vld [vmem:[%s10995_s24 + $0x578] sm:$0xff]  ;;  %v2739_v40 = vld [vmem:[%s10989_s21 + $0x6c8] sm:$0xff]  ;;  %v4269_v46 = vadd.f32 %v4013_v53, %v3757_v16  ;;  %v11997_v0 = vadd.f32 %v4011_v29, %v3755_v54  ;;  %v4494_v34 = vadd.f32 %v4493_v36, %v4228_v21  ;;  %v3760_v28 = vadd.f32 %v3504_v42, %v3248_v60 }
 0x351   : > { %v2995_v22 = vld [vmem:[%s10991_s22 + $0x6c8] sm:$0xff]  ;;  %v6257_v15 = vmax.f32 %v6256_v4, %v4231_v30  ;;  %v3505_v37 = vld [vmem:[%s10993_s23 + $0x6b8] sm:$0xff]  ;;  %v2740_v3 = vld [vmem:[%s10989_s21 + $0x6d0] sm:$0xff]  ;;  %v4270_v1 = vadd.f32 %v4014_v41, %v3758_v23  ;;  %v12004_v16 = vadd.f32 %v3977_v57, %v3721_v27 }
 0x352   : > { %v4015_v12 = vld [vmem:[%s10995_s24 + $0x6a8] sm:$0xff]  ;;  %v2996_v8 = vld [vmem:[%s10991_s22 + $0x6d0] sm:$0xff]  ;;  %v6298_v17 = vmax.f32 %v4269_v46, %v4268_v48  ;;  %v3251_v50 = vadd.f32 %v2995_v22, %v2739_v40  ;;  %v3506_v20 = vld [vmem:[%s10993_s23 + $0x6c0] sm:$0xff]  ;;  %v4495_v58 = vadd.f32 %v4494_v34, %v4229_v61  ;;  %v3761_v54 = vadd.f32 %v3505_v37, %v3249_v35 }
 0x353   : > { %v12002_v56 = vmax.f32 %v6257_v15, %v11985_v13  ;;  %v4016_v24 = vld [vmem:[%s10995_s24 + $0x6b0] sm:$0xff]  ;;  %v2741_v31 = vld [vmem:[%s10989_s21 + $0x6d8] sm:$0xff]  ;;  %v4271_v60 = vadd.f32 %v4015_v12, %v3759_v18  ;;  %v3252_v39 = vadd.f32 %v2996_v8, %v2740_v3  ;;  %v3507_v27 = vld [vmem:[%s10993_s23 + $0x6c8] sm:$0xff]  ;;  %v4536_v61 = vadd.f32 %v11997_v0, %v11995_v11 }
 0x354   : > { %v2997_v21 = vld [vmem:[%s10991_s22 + $0x6d8] sm:$0xff]  ;;  %v6299_v51 = vmax.f32 %v6298_v17, %v4270_v1  ;;  %v4496_v19 = vadd.f32 %v4495_v58, %v4230_v49  ;;  %v2742_v4 = vld [vmem:[%s10989_s21 + $0x6e0] sm:$0xff]  ;;  %v3762_v35 = vadd.f32 %v3506_v20, %v3250_v59  ;;  %v4272_v41 = vadd.f32 %v4016_v24, %v3760_v28  ;;  %v2743_v57 = vld [vmem:[%s10989_s21 + $0x6e8] sm:$0xff] }
 0x355   : > { %v6259_v23 = vmax.f32 %v12002_v56, %v12004_v16  ;;  %v4017_v29 = vld [vmem:[%s10995_s24 + $0x6b8] sm:$0xff]  ;;  %v2998_v42 = vld [vmem:[%s10991_s22 + $0x6e0] sm:$0xff]  ;;  %v3253_v36 = vadd.f32 %v2997_v21, %v2741_v31  ;;  %v3508_v40 = vld [vmem:[%s10993_s23 + $0x6d0] sm:$0xff]  ;;  %v4537_v18 = vadd.f32 %v4536_v61, %v4268_v48  ;;  %v3763_v34 = vadd.f32 %v3507_v27, %v3251_v50 }
 0x356   : > { %v6300_v53 = vmax.f32 %v6299_v51, %v4271_v60  ;;  %v4018_v22 = vld [vmem:[%s10995_s24 + $0x6c0] sm:$0xff]  ;;  %v4497_v15 = vadd.f32 %v4496_v19, %v4231_v30  ;;  %v2744_v37 = vld [vmem:[%s10989_s21 + $0x6f0] sm:$0xff]  ;;  %v2999_v49 = vld [vmem:[%s10991_s22 + $0x6e8] sm:$0xff]  ;;  %v4273_v59 = vadd.f32 %v4017_v29, %v3761_v54  ;;  %v3254_v17 = vadd.f32 %v2998_v42, %v2742_v4 }
 0x357   : > { %v3000_v12 = vld [vmem:[%s10991_s22 + $0x6f0] sm:$0xff]  ;;  %v2745_v8 = vld [vmem:[%s10989_s21 + $0x6f8] sm:$0xff]  ;;  %v4019_v24 = vld [vmem:[%s10995_s24 + $0x6c8] sm:$0xff]  ;;  %v4538_v58 = vadd.f32 %v4537_v18, %v4269_v46  ;;  %v3764_v21 = vadd.f32 %v3508_v40, %v3252_v39  ;;  %v4274_v54 = vadd.f32 %v4018_v22, %v3762_v35  ;;  %v3255_v27 = vadd.f32 %v2999_v49, %v2743_v57 }
 0x358   : > { %v6301_v3 = vmax.f32 %v6300_v53, %v4272_v41  ;;  %v3001_v28 = vld [vmem:[%s10991_s22 + $0x6f8] sm:$0xff]  ;;  %v4498_v48 = vadd.f32 %v4497_v15, %v11985_v13  ;;  %v3510_v30 = vld [vmem:[%s10993_s23 + $0x6e0] sm:$0xff]  ;;  %v3511_v31 = vld [vmem:[%s10993_s23 + $0x6e8] sm:$0xff]  ;;  %v4275_v53 = vadd.f32 %v4019_v24, %v3763_v34  ;;  %v3256_v35 = vadd.f32 %v3000_v12, %v2744_v37 }
 0x359   : > { %v3509_v20 = vld [vmem:[%s10993_s23 + $0x6d8] sm:$0xff]  ;;  %v4020_v50 = vld [vmem:[%s10995_s24 + $0x6d0] sm:$0xff]  ;;  %v4539_v61 = vadd.f32 %v4538_v58, %v4270_v1  ;;  %v2714_v19 = vld [vmem:[%s10989_s21 + $0x600] sm:$0xff]  ;;  %v3257_v1 = vadd.f32 %v3001_v28, %v2745_v8  ;;  %v3766_v58 = vadd.f32 %v3510_v30, %v3254_v17  ;;  %v3767_v24 = vadd.f32 %v3511_v31, %v3255_v27 }
 0x35a   : > { %v6302_v51 = vmax.f32 %v6301_v3, %v4273_v59  ;;  %v4021_v29 = vld [vmem:[%s10995_s24 + $0x6d8] sm:$0xff]  ;;  %v2715_v46 = vld [vmem:[%s10989_s21 + $0x608] sm:$0xff]  ;;  %v4499_v13 = vadd.f32 %v4498_v48, %v12004_v16  ;;  %v3765_v4 = vadd.f32 %v3509_v20, %v3253_v36  ;;  %v2716_v18 = vld [vmem:[%s10989_s21 + $0x610] sm:$0xff]  ;;  %v4276_v20 = vadd.f32 %v4020_v50, %v3764_v21 }
 0x35b   : > { %v2970_v39 = vld [vmem:[%s10991_s22 + $0x600] sm:$0xff]  ;;  %v2971_v40 = vld [vmem:[%s10991_s22 + $0x608] sm:$0xff]  ;;  %v4540_v22 = vadd.f32 %v4539_v61, %v4271_v60  ;;  %v2717_v57 = vld [vmem:[%s10989_s21 + $0x618] sm:$0xff] }
 0x35c   : > { %v6303_v42 = vmax.f32 %v6302_v51, %v4274_v54  ;;  %v2972_v15 = vld [vmem:[%s10991_s22 + $0x610] sm:$0xff]  ;;  %v2973_v49 = vld [vmem:[%s10991_s22 + $0x618] sm:$0xff]  ;;  %4500 = vadd.xlane.f32.xlu0 %v4499_v13  ;;  %v4022_v48 = vld [vmem:[%s10995_s24 + $0x6e0] sm:$0xff]  ;;  %v3226_v12 = vadd.f32 %v2970_v39, %v2714_v19  ;;  %v3227_v51 = vadd.f32 %v2971_v40, %v2715_v46  ;;  %v4277_v8 = vadd.f32 %v4021_v29, %v3765_v4 }
 0x35d   : > { %v3512_v3 = vld [vmem:[%s10993_s23 + $0x6f0] sm:$0xff]  ;;  %v3513_v34 = vld [vmem:[%s10993_s23 + $0x6f8] sm:$0xff]  ;;  %v4023_v37 = vld [vmem:[%s10995_s24 + $0x6e8] sm:$0xff]  ;;  %v4541_v60 = vadd.f32 %v4540_v22, %v4272_v41  ;;  %v3228_v13 = vadd.f32 %v2972_v15, %v2716_v18  ;;  %v3229_v17 = vadd.f32 %v2973_v49, %v2717_v57  ;;  %v4278_v4 = vadd.f32 %v4022_v48, %v3766_v58 }
 0x35e   : > { %v6304_v36 = vmax.f32 %v6303_v42, %v4275_v53  ;;  %v2718_v28 = vld [vmem:[%s10989_s21 + $0x620] sm:$0xff]  ;;  %v3483_v21 = vld [vmem:[%s10993_s23 + $0x608] sm:$0xff]  ;;  %v3484_v27 = vld [vmem:[%s10993_s23 + $0x610] sm:$0xff]  ;;  %v3768_v41 = vadd.f32 %v3512_v3, %v3256_v35  ;;  %v3769_v22 = vadd.f32 %v3513_v34, %v3257_v1  ;;  %v4279_v18 = vadd.f32 %v4023_v37, %v3767_v24 }
 0x35f   : > { %v3482_v30 = vld [vmem:[%s10993_s23 + $0x600] sm:$0xff]  ;;  %v4542_v50 = vadd.f32 %v4541_v60, %v4273_v59  ;;  %v3485_v42 = vld [vmem:[%s10993_s23 + $0x618] sm:$0xff]  ;;  %v4024_v19 = vld [vmem:[%s10995_s24 + $0x6f0] sm:$0xff]  ;;  %v3739_v49 = vadd.f32 %v3483_v21, %v3227_v51  ;;  %v3740_v3 = vadd.f32 %v3484_v27, %v3228_v13 }
 0x360   : > { %v6305_v61 = vmax.f32 %v6304_v36, %v4276_v20  ;;  %v2974_v31 = vld [vmem:[%s10991_s22 + $0x620] sm:$0xff]  ;;  %v4025_v46 = vld [vmem:[%s10995_s24 + $0x6f8] sm:$0xff]  ;;  %v2719_v40 = vld [vmem:[%s10989_s21 + $0x628] sm:$0xff]  ;;  %v3738_v15 = vadd.f32 %v3482_v30, %v3226_v12  ;;  %v3741_v34 = vadd.f32 %v3485_v42, %v3229_v17 }
 0x361   : > { %v4543_v39 = vadd.f32 %v4542_v50, %v4274_v54  ;;  %v2720_v57 = vld [vmem:[%s10989_s21 + $0x630] sm:$0xff]  ;;  %v2975_v59 = vld [vmem:[%s10991_s22 + $0x628] sm:$0xff]  ;;  %v3230_v1 = vadd.f32 %v2974_v31, %v2718_v28  ;;  %v3994_v60 = vld [vmem:[%s10995_s24 + $0x600] sm:$0xff]  ;;  %v4280_v50 = vadd.f32 %v4024_v19, %v3768_v41  ;;  %v12063_v12 = vadd.f32 %v4025_v46, %v3769_v22 }
 0x362   : > { %v6306_v29 = vmax.f32 %v6305_v61, %v4277_v8  ;;  %v2976_v35 = vld [vmem:[%s10991_s22 + $0x630] sm:$0xff]  ;;  %v3995_v61 = vld [vmem:[%s10995_s24 + $0x608] sm:$0xff]  ;;  %v3486_v24 = vld [vmem:[%s10993_s23 + $0x620] sm:$0xff]  ;;  %v3231_v51 = vadd.f32 %v2975_v59, %v2719_v40  ;;  %v12067_v21 = vadd.f32 %v3994_v60, %v3738_v15 }
 0x363   : > { %v4544_v58 = vadd.f32 %v4543_v39, %v4275_v53  ;;  %v3996_v54 = vld [vmem:[%s10995_s24 + $0x610] sm:$0xff]  ;;  %v3997_v48 = vld [vmem:[%s10995_s24 + $0x618] sm:$0xff]  ;;  %v3232_v17 = vadd.f32 %v2976_v35, %v2720_v57  ;;  %v12069_v53 = vadd.f32 %v3995_v61, %v3739_v49  ;;  %v2722_v27 = vld [vmem:[%s10989_s21 + $0x640] sm:$0xff]  ;;  %v3742_v22 = vadd.f32 %v3486_v24, %v3230_v1 }
 0x364   : > { %v6307_v36 = vmax.f32 %v6306_v29, %v4278_v4  ;;  %v2721_v28 = vld [vmem:[%s10989_s21 + $0x638] sm:$0xff]  ;;  %13521 = vst [vmem:[#allocation34_spill] sm:$0xff] %v12067_v21  ;;  %v2978_v42 = vld [vmem:[%s10991_s22 + $0x640] sm:$0xff]  ;;  %v3487_v41 = vld [vmem:[%s10993_s23 + $0x628] sm:$0xff]  ;;  %v4252_v19 = vadd.f32 %v3996_v54, %v3740_v3  ;;  %v4253_v46 = vadd.f32 %v3997_v48, %v3741_v34  ;;  %v6246_v24 = vmax.f32 %v11914_v55, %v11916_v38 }
 0x365   : > { %v4545_v30 = vadd.f32 %v4544_v58, %v4276_v20  ;;  %v2977_v13 = vld [vmem:[%s10991_s22 + $0x638] sm:$0xff]  ;;  %13522 = vst [vmem:[#allocation35_spill] sm:$0xff] %v12069_v53  ;;  %v3488_v29 = vld [vmem:[%s10993_s23 + $0x630] sm:$0xff]  ;;  %v3998_v39 = vld [vmem:[%s10995_s24 + $0x620] sm:$0xff]  ;;  %v3234_v35 = vadd.f32 %v2978_v42, %v2722_v27  ;;  %v3743_v1 = vadd.f32 %v3487_v41, %v3231_v51  ;;  %v4519_v3 = vadd.f32 %v12069_v53, %v12067_v21 }
 0x366   : > { %v6308_v37 = vmax.f32 %v6307_v36, %v4279_v18  ;;  %v3233_v57 = vadd.f32 %v2977_v13, %v2721_v28  ;;  %v6281_v59 = vmax.f32 %v4253_v46, %v4252_v19  ;;  %v2723_v49 = vld [vmem:[%s10989_s21 + $0x648] sm:$0xff]  ;;  %v3489_v34 = vld [vmem:[%s10993_s23 + $0x638] sm:$0xff]  ;;  %v3744_v60 = vadd.f32 %v3488_v29, %v3232_v17  ;;  %v3490_v17 = vld [vmem:[%s10993_s23 + $0x640] sm:$0xff] }
 0x367   : > { %v4546_v20 = vadd.f32 %v4545_v30, %v4277_v8  ;;  %v2979_v36 = vld [vmem:[%s10991_s22 + $0x648] sm:$0xff]  ;;  %v2724_v8 = vld [vmem:[%s10989_s21 + $0x650] sm:$0xff]  ;;  %v4254_v58 = vadd.f32 %v3998_v39, %v3742_v22  ;;  %v2725_v48 = vld [vmem:[%s10989_s21 + $0x658] sm:$0xff]  ;;  %v4520_v30 = vadd.f32 %v4519_v3, %v4252_v19  ;;  %v8775_v42 = vmov 0  }
 0x368   : > { %v12071_v31 = vmax.f32 %v6308_v37, %v4280_v50  ;;  %v3999_v61 = vld [vmem:[%s10995_s24 + $0x628] sm:$0xff]  ;;  %v2980_v37 = vld [vmem:[%s10991_s22 + $0x650] sm:$0xff]  ;;  %v2981_v51 = vld [vmem:[%s10991_s22 + $0x658] sm:$0xff]  ;;  %v3235_v13 = vadd.f32 %v2979_v36, %v2723_v49  ;;  %8700 = vset.pattern.permute.xlu1 %v8775_v42  ;;  %8699 = vset.pattern.permute.xlu0 %v8775_v42  ;;  %v3745_v22 = vadd.f32 %v3489_v34, %v3233_v57 }
 0x369   : > { %v4547_v15 = vadd.f32 %v4546_v20, %v4278_v4  ;;  %v3491_v27 = vld [vmem:[%s10993_s23 + $0x648] sm:$0xff]  ;;  %v4000_v55 = vld [vmem:[%s10995_s24 + $0x630] sm:$0xff]  ;;  %v6282_v38 = vmax.f32 %v6281_v59, %v4254_v58  ;;  %v4001_v19 = vld [vmem:[%s10995_s24 + $0x638] sm:$0xff]  ;;  %v4255_v20 = vadd.f32 %v3999_v61, %v3743_v1  ;;  %v4521_v29 = vadd.f32 %v4520_v30, %v4253_v46 }
 0x36a   : > { %v2762_v39 = vld [vmem:[%s10989_s21 + $0x780] sm:$0xff]  ;;  %v2764_v59 = vld [vmem:[%s10989_s21 + $0x790] sm:$0xff]  ;;  %v3021_v36 = vld [vmem:[%s10991_s22 + $0x798] sm:$0xff]  ;;  %v3746_v1 = vadd.f32 %v3490_v17, %v3234_v35  ;;  %v4256_v46 = vadd.f32 %v4000_v55, %v3744_v60  ;;  %v3747_v30 = vadd.f32 %v3491_v27, %v3235_v13  ;;  %v12124_v55 = vadd.f32 %v4001_v19, %v3745_v22 }
 0x36b   : > { %v4548_v54 = vadd.f32 %v4547_v15, %v4279_v18  ;;  %v12102_v18 = vmax.f32 %v6259_v23, %v6246_v24  ;;  %v2726_v56 = vld [vmem:[%s10989_s21 + $0x660] sm:$0xff]  ;;  %v3236_v23 = vadd.f32 %v2980_v37, %v2724_v8  ;;  %v2765_v15 = vld [vmem:[%s10989_s21 + $0x798] sm:$0xff]  ;;  %v3020_v49 = vld [vmem:[%s10991_s22 + $0x790] sm:$0xff]  ;;  %v4522_v3 = vadd.f32 %v4521_v29, %v4254_v58 }
 0x36c   : > { %v2982_v16 = vld [vmem:[%s10991_s22 + $0x660] sm:$0xff]  ;;  %v2727_v57 = vld [vmem:[%s10989_s21 + $0x668] sm:$0xff]  ;;  %v3237_v8 = vadd.f32 %v2981_v51, %v2725_v48  ;;  %v3492_v37 = vld [vmem:[%s10993_s23 + $0x650] sm:$0xff]  ;;  %v3276_v48 = vadd.f32 %v3020_v49, %v2764_v59  ;;  %v3277_v51 = vadd.f32 %v3021_v36, %v2765_v15 }
 0x36d   : > { %13523 = vst [vmem:[#allocation36_spill] sm:$0xff] %v12102_v18  ;;  %v4549_v41 = vadd.f32 %v4548_v54, %v4280_v50  ;;  %v2763_v34 = vld [vmem:[%s10989_s21 + $0x788] sm:$0xff]  ;;  %v3018_v61 = vld [vmem:[%s10991_s22 + $0x780] sm:$0xff]  ;;  %v2728_v35 = vld [vmem:[%s10989_s21 + $0x670] sm:$0xff]  ;;  %v4523_v29 = vadd.f32 %v4522_v3, %v4255_v20  ;;  %v3238_v22 = vadd.f32 %v2982_v16, %v2726_v56  ;;  %v3748_v19 = vadd.f32 %v3492_v37, %v3236_v23 }
 0x36e   : > { %v3019_v24 = vld [vmem:[%s10991_s22 + $0x788] sm:$0xff]  ;;  %v4002_v42 = vld [vmem:[%s10995_s24 + $0x640] sm:$0xff]  ;;  %v2984_v17 = vld [vmem:[%s10991_s22 + $0x670] sm:$0xff] }
 0x36f   : > { %v4550_v50 = vadd.f32 %v4549_v41, %v12063_v12  ;;  %v2983_v54 = vld [vmem:[%s10991_s22 + $0x668] sm:$0xff]  ;;  %v6283_v41 = vmax.f32 %v6282_v38, %v4255_v20  ;;  %v3493_v60 = vld [vmem:[%s10993_s23 + $0x658] sm:$0xff]  ;;  %v2766_v4 = vld [vmem:[%s10989_s21 + $0x7a0] sm:$0xff]  ;;  %v3274_v38 = vadd.f32 %v3018_v61, %v2762_v39  ;;  %v12132_v20 = vadd.f32 %v4002_v42, %v3746_v1 }
 0x370   : > { %v4003_v58 = vld [vmem:[%s10995_s24 + $0x648] sm:$0xff]  ;;  %v2729_v13 = vld [vmem:[%s10989_s21 + $0x678] sm:$0xff]  ;;  %v3022_v27 = vld [vmem:[%s10991_s22 + $0x7a0] sm:$0xff]  ;;  %v4524_v3 = vadd.f32 %v4523_v29, %v4256_v46  ;;  %v3239_v15 = vadd.f32 %v2983_v54, %v2727_v57  ;;  %v3749_v39 = vadd.f32 %v3493_v60, %v3237_v8  ;;  %v3240_v54 = vadd.f32 %v2984_v17, %v2728_v35 }
 0x371   : > { %4551 = vadd.xlane.f32.xlu1 %v4550_v50  ;;  %v3275_v50 = vadd.f32 %v3019_v24, %v2763_v34  ;;  %v3532_v40 = vld [vmem:[%s10993_s23 + $0x790] sm:$0xff]  ;;  %v3533_v28 = vld [vmem:[%s10993_s23 + $0x798] sm:$0xff]  ;;  %v3530_v59 = vld [vmem:[%s10993_s23 + $0x780] sm:$0xff]  ;;  %v6284_v61 = vmax.f32 %v6283_v41, %v4256_v46  ;;  %v12139_v24 = vadd.f32 %v4003_v58, %v3747_v30  ;;  %v3278_v1 = vadd.f32 %v3022_v27, %v2766_v4 }
 0x372   : > { %v2985_v18 = vld [vmem:[%s10991_s22 + $0x678] sm:$0xff]  ;;  %v3531_v49 = vld [vmem:[%s10993_s23 + $0x788] sm:$0xff]  ;;  %v3494_v36 = vld [vmem:[%s10993_s23 + $0x660] sm:$0xff]  ;;  %v4525_v56 = vadd.f32 %v4524_v3, %v12124_v55  ;;  %v3788_v37 = vadd.f32 %v3532_v40, %v3276_v48  ;;  %v3789_v57 = vadd.f32 %v3533_v28, %v3277_v51  ;;  %v3786_v42 = vadd.f32 %v3530_v59, %v3274_v38 }
 0x373   : > { %v3495_v53 = vld [vmem:[%s10993_s23 + $0x668] sm:$0xff]  ;;  %v4004_v34 = vld [vmem:[%s10995_s24 + $0x650] sm:$0xff]  ;;  %v4005_v21 = vld [vmem:[%s10995_s24 + $0x658] sm:$0xff]  ;;  %v3787_v46 = vadd.f32 %v3531_v49, %v3275_v50  ;;  %v6076_v41 = vmax.f32 %v11102_v62, %v11104_v63  ;;  %v3241_v60 = vadd.f32 %v2985_v18, %v2729_v13  ;;  %v3750_v58 = vadd.f32 %v3494_v36, %v3238_v22 }
 0x374   : > { %v2767_v16 = vld [vmem:[%s10989_s21 + $0x7a8] sm:$0xff]  ;;  %v3534_v8 = vld [vmem:[%s10993_s23 + $0x7a0] sm:$0xff]  ;;  %v12149_v29 = vadd.f32 %v4004_v34, %v3748_v19  ;;  %v4526_v40 = vadd.f32 %v4525_v56, %v12132_v20  ;;  %v4044_v28 = vld [vmem:[%s10995_s24 + $0x790] sm:$0xff]  ;;  %v3751_v51 = vadd.f32 %v3495_v53, %v3239_v15  ;;  %v6285_v38 = vmax.f32 %v6284_v61, %v12124_v55 }
 0x375   : > { %v3023_v23 = vld [vmem:[%s10991_s22 + $0x7a8] sm:$0xff]  ;;  %v4042_v30 = vld [vmem:[%s10995_s24 + $0x780] sm:$0xff]  ;;  %v4045_v35 = vld [vmem:[%s10995_s24 + $0x798] sm:$0xff]  ;;  %v12159_v62 = vadd.f32 %v4005_v21, %v3749_v39  ;;  %v3790_v19 = vadd.f32 %v3534_v8, %v3278_v1  ;;  %v4300_v3 = vadd.f32 %v4044_v28, %v3788_v37  ;;  %v6093_v55 = vmax.f32 %v11262_v9, %v11264_v10 }
 0x376   : > { %v4043_v4 = vld [vmem:[%s10995_s24 + $0x788] sm:$0xff]  ;;  %v3496_v17 = vld [vmem:[%s10993_s23 + $0x670] sm:$0xff]  ;;  %v3497_v48 = vld [vmem:[%s10993_s23 + $0x678] sm:$0xff]  ;;  %v3279_v63 = vadd.f32 %v3023_v23, %v2767_v16  ;;  %v4527_v13 = vadd.f32 %v4526_v40, %v12139_v24  ;;  %v4301_v59 = vadd.f32 %v4045_v35, %v3789_v57  ;;  %v12167_v15 = vadd.f32 %v4042_v30, %v3786_v42 }
 0x377   : > { %v4006_v27 = vld [vmem:[%s10995_s24 + $0x660] sm:$0xff]  ;;  %v4007_v18 = vld [vmem:[%s10995_s24 + $0x668] sm:$0xff]  ;;  %v2768_v50 = vld [vmem:[%s10989_s21 + $0x7b0] sm:$0xff]  ;;  %v12169_v21 = vadd.f32 %v4043_v4, %v3787_v46  ;;  %v3752_v39 = vadd.f32 %v3496_v17, %v3240_v54  ;;  %v3753_v1 = vadd.f32 %v3497_v48, %v3241_v60  ;;  %v13525_v8 = vmax.f32 %v11188_v32, %v11190_v33 }
 0x378   : > { %v3024_v22 = vld [vmem:[%s10991_s22 + $0x7b0] sm:$0xff]  ;;  %v3535_v49 = vld [vmem:[%s10993_s23 + $0x7a8] sm:$0xff]  ;;  %v4046_v53 = vld [vmem:[%s10995_s24 + $0x7a0] sm:$0xff]  ;;  %v12175_v34 = vadd.f32 %v4006_v27, %v3750_v58  ;;  %v4528_v61 = vadd.f32 %v4527_v13, %v12149_v29  ;;  %v6332_v23 = vmax.f32 %v4301_v59, %v4300_v3  ;;  %v12182_v10 = vadd.f32 %v4007_v18, %v3751_v51 }
 0x379   : > { %13524 = vst [vmem:[#allocation37_spill] sm:$0xff] %v12169_v21  ;;  %v2769_v56 = vld [vmem:[%s10989_s21 + $0x7b8] sm:$0xff]  ;;  %v4008_v37 = vld [vmem:[%s10995_s24 + $0x670] sm:$0xff]  ;;  %v2770_v57 = vld [vmem:[%s10989_s21 + $0x7c0] sm:$0xff]  ;;  %v3280_v54 = vadd.f32 %v3024_v22, %v2768_v50  ;;  %v12188_v42 = vmax.f32 %v13525_v8, %v6076_v41  ;;  %v12191_v46 = vmax.f32 %v6285_v38, %v12132_v20  ;;  %v3791_v4 = vadd.f32 %v3535_v49, %v3279_v63 }
 0x37a   : > { %v3025_v16 = vld [vmem:[%s10991_s22 + $0x7b8] sm:$0xff]  ;;  %v4529_v30 = vadd.f32 %v4528_v61, %v12159_v62  ;;  %v2771_v60 = vld [vmem:[%s10989_s21 + $0x7c8] sm:$0xff]  ;;  %v3026_v58 = vld [vmem:[%s10991_s22 + $0x7c0] sm:$0xff]  ;;  %v4302_v28 = vadd.f32 %v4046_v53, %v3790_v19  ;;  %v4570_v41 = vadd.f32 %v12169_v21, %v12167_v15  ;;  %v13526_v51 = vmax.f32 %v11995_v11, %v11997_v0 }
 0x37b   : > { %v4009_v9 = vld [vmem:[%s10995_s24 + $0x678] sm:$0xff]  ;;  %v3536_v40 = vld [vmem:[%s10993_s23 + $0x7b0] sm:$0xff]  ;;  %v3027_v32 = vld [vmem:[%s10991_s22 + $0x7c8] sm:$0xff]  ;;  %v3281_v33 = vadd.f32 %v3025_v16, %v2769_v56  ;;  %v13527_v27 = vmax.f32 %v12071_v31, %v12063_v12  ;;  %v12213_v63 = vadd.f32 %v4008_v37, %v3752_v39  ;;  %v3282_v39 = vadd.f32 %v3026_v58, %v2770_v57 }
 0x37c   : > { %v2772_v35 = vld [vmem:[%s10989_s21 + $0x7d0] sm:$0xff]  ;;  %v2773_v17 = vld [vmem:[%s10989_s21 + $0x7d8] sm:$0xff]  ;;  %v4047_v20 = vld [vmem:[%s10995_s24 + $0x7a8] sm:$0xff]  ;;  %v4530_v18 = vadd.f32 %v4529_v30, %v12175_v34  ;;  %v6333_v19 = vmax.f32 %v6332_v23, %v4302_v28  ;;  %v12221_v11 = vadd.f32 %v4009_v9, %v3753_v1  ;;  %v3792_v61 = vadd.f32 %v3536_v40, %v3280_v54 }
 0x37d   : > { %v12211_v38 = vmax.f32 %v13527_v27, %v13526_v51  ;;  %v2774_v13 = vld [vmem:[%s10989_s21 + $0x7e0] sm:$0xff]  ;;  %v3028_v50 = vld [vmem:[%s10991_s22 + $0x7d0] sm:$0xff]  ;;  %v3537_v22 = vld [vmem:[%s10993_s23 + $0x7b8] sm:$0xff]  ;;  %v4571_v56 = vadd.f32 %v4570_v41, %v4300_v3  ;;  %v6287_v16 = vmax.f32 %v12191_v46, %v12139_v24  ;;  %v3283_v37 = vadd.f32 %v3027_v32, %v2771_v60 }
 0x37e   : > { %v2775_v0 = vld [vmem:[%s10989_s21 + $0x7e8] sm:$0xff]  ;;  %v3029_v12 = vld [vmem:[%s10991_s22 + $0x7d8] sm:$0xff]  ;;  %v3030_v31 = vld [vmem:[%s10991_s22 + $0x7e0] sm:$0xff]  ;;  %v4531_v23 = vadd.f32 %v4530_v18, %v12182_v10  ;;  %v4303_v30 = vadd.f32 %v4047_v20, %v3791_v4  ;;  %v3793_v57 = vadd.f32 %v3537_v22, %v3281_v33  ;;  %v13529_v60 = vmax.f32 %v11346_v14, %v11348_v43 }
 0x37f   : > { %13528 = vst [vmem:[#allocation38_spill] sm:$0xff] %v12211_v38  ;;  %v3031_v53 = vld [vmem:[%s10991_s22 + $0x7e8] sm:$0xff]  ;;  %v3538_v8 = vld [vmem:[%s10993_s23 + $0x7c0] sm:$0xff]  ;;  %v4048_v9 = vld [vmem:[%s10995_s24 + $0x7b0] sm:$0xff]  ;;  %v4572_v54 = vadd.f32 %v4571_v56, %v4301_v59  ;;  %v3284_v32 = vadd.f32 %v3028_v50, %v2772_v35  ;;  %v3285_v33 = vadd.f32 %v3029_v12, %v2773_v17 }
 0x380   : > { %v3539_v1 = vld [vmem:[%s10993_s23 + $0x7c8] sm:$0xff]  ;;  %v2776_v51 = vld [vmem:[%s10989_s21 + $0x7f0] sm:$0xff]  ;;  %v4049_v3 = vld [vmem:[%s10995_s24 + $0x7b8] sm:$0xff]  ;;  %v12241_v58 = vmax.f32 %v13529_v60, %v6093_v55  ;;  %v4532_v4 = vadd.f32 %v4531_v23, %v12213_v63  ;;  %v6334_v59 = vmax.f32 %v6333_v19, %v4303_v30  ;;  %v3286_v55 = vadd.f32 %v3030_v31, %v2774_v13 }
 0x381   : > { %v3032_v27 = vld [vmem:[%s10991_s22 + $0x7f0] sm:$0xff]  ;;  %v2746_v24 = vld [vmem:[%s10989_s21 + $0x700] sm:$0xff]  ;;  %v2749_v41 = vld [vmem:[%s10989_s21 + $0x718] sm:$0xff]  ;;  %v3794_v60 = vadd.f32 %v3538_v8, %v3282_v39  ;;  %v4304_v23 = vadd.f32 %v4048_v9, %v3792_v61  ;;  %v4573_v35 = vadd.f32 %v4572_v54, %v4302_v28  ;;  %v12257_v19 = vmax.f32 %v6287_v16, %v12149_v29 }
 0x382   : > { %v2748_v46 = vld [vmem:[%s10989_s21 + $0x710] sm:$0xff]  ;;  %v3005_v22 = vld [vmem:[%s10991_s22 + $0x718] sm:$0xff]  ;;  %v2747_v50 = vld [vmem:[%s10989_s21 + $0x708] sm:$0xff]  ;;  %v4533_v49 = vadd.f32 %v4532_v4, %v12221_v11  ;;  %v3287_v40 = vadd.f32 %v3031_v53, %v2775_v0  ;;  %v3795_v48 = vadd.f32 %v3539_v1, %v3283_v37  ;;  %v12265_v61 = vadd.f32 %v4049_v3, %v3793_v57 }
 0x383   : > { %v3540_v20 = vld [vmem:[%s10993_s23 + $0x7d0] sm:$0xff]  ;;  %v2777_v14 = vld [vmem:[%s10989_s21 + $0x7f8] sm:$0xff]  ;;  %v3002_v17 = vld [vmem:[%s10991_s22 + $0x700] sm:$0xff]  ;;  %v4574_v8 = vadd.f32 %v4573_v35, %v4303_v30  ;;  %v3261_v9 = vadd.f32 %v3005_v22, %v2749_v41  ;;  %v3288_v0 = vadd.f32 %v3032_v27, %v2776_v51  ;;  %v6335_v53 = vmax.f32 %v6334_v59, %v4304_v23 }
 0x384   : > { %v3004_v18 = vld [vmem:[%s10991_s22 + $0x710] sm:$0xff]  ;;  %v3033_v43 = vld [vmem:[%s10991_s22 + $0x7f8] sm:$0xff]  ;;  %v3003_v12 = vld [vmem:[%s10991_s22 + $0x708] sm:$0xff]  ;;  %4534 = vadd.xlane.f32.xlu0 %v4533_v49  ;;  %v3258_v1 = vadd.f32 %v3002_v17, %v2746_v24  ;;  %v3796_v30 = vadd.f32 %v3540_v20, %v3284_v32  ;;  %v6289_v24 = vmax.f32 %v12257_v19, %v12159_v62 }
 0x385   : > { %v3541_v56 = vld [vmem:[%s10993_s23 + $0x7d8] sm:$0xff]  ;;  %v4050_v36 = vld [vmem:[%s10995_s24 + $0x7c0] sm:$0xff]  ;;  %v4051_v28 = vld [vmem:[%s10995_s24 + $0x7c8] sm:$0xff]  ;;  %v3260_v16 = vadd.f32 %v3004_v18, %v2748_v46  ;;  %v3259_v54 = vadd.f32 %v3003_v12, %v2747_v50  ;;  %v4575_v49 = vadd.f32 %v4574_v8, %v4304_v23  ;;  %v3289_v59 = vadd.f32 %v3033_v43, %v2777_v14 }
 0x386   : > { %v2750_v13 = vld [vmem:[%s10989_s21 + $0x720] sm:$0xff]  ;;  %v2751_v29 = vld [vmem:[%s10989_s21 + $0x728] sm:$0xff]  ;;  %v3516_v4 = vld [vmem:[%s10993_s23 + $0x710] sm:$0xff]  ;;  %v4306_v41 = vadd.f32 %v4050_v36, %v3794_v60  ;;  %v3797_v22 = vadd.f32 %v3541_v56, %v3285_v33  ;;  %v12278_v35 = vadd.f32 %v4051_v28, %v3795_v48  ;;  %v6336_v48 = vmax.f32 %v6335_v53, %v12265_v61 }
 0x387   : > { %v3006_v31 = vld [vmem:[%s10991_s22 + $0x720] sm:$0xff]  ;;  %v3007_v37 = vld [vmem:[%s10991_s22 + $0x728] sm:$0xff]  ;;  %v3517_v38 = vld [vmem:[%s10993_s23 + $0x718] sm:$0xff]  ;;  %v4576_v36 = vadd.f32 %v4575_v49, %v12265_v61 }
 0x388   : > { %v3542_v39 = vld [vmem:[%s10993_s23 + $0x7e0] sm:$0xff]  ;;  %v3543_v57 = vld [vmem:[%s10993_s23 + $0x7e8] sm:$0xff]  ;;  %v3544_v3 = vld [vmem:[%s10993_s23 + $0x7f0] sm:$0xff]  ;;  %v3262_v18 = vadd.f32 %v3006_v31, %v2750_v13  ;;  %v3263_v12 = vadd.f32 %v3007_v37, %v2751_v29  ;;  %v3772_v13 = vadd.f32 %v3516_v4, %v3260_v16  ;;  %v3773_v62 = vadd.f32 %v3517_v38, %v3261_v9 }
 0x389   : > { %v4052_v46 = vld [vmem:[%s10995_s24 + $0x7d0] sm:$0xff]  ;;  %v3514_v51 = vld [vmem:[%s10993_s23 + $0x700] sm:$0xff]  ;;  %v3515_v27 = vld [vmem:[%s10993_s23 + $0x708] sm:$0xff]  ;;  %v3798_v14 = vadd.f32 %v3542_v39, %v3286_v55  ;;  %v4577_v8 = vadd.f32 %v4576_v36, %v4306_v41  ;;  %v3799_v9 = vadd.f32 %v3543_v57, %v3287_v40  ;;  %v3800_v61 = vadd.f32 %v3544_v3, %v3288_v0 }
 0x38a   : > { %v2752_v50 = vld [vmem:[%s10989_s21 + $0x730] sm:$0xff]  ;;  %v3518_v20 = vld [vmem:[%s10993_s23 + $0x720] sm:$0xff]  ;;  %v4053_v17 = vld [vmem:[%s10995_s24 + $0x7d8] sm:$0xff]  ;;  %v3770_v56 = vadd.f32 %v3514_v51, %v3258_v1  ;;  %v3771_v19 = vadd.f32 %v3515_v27, %v3259_v54  ;;  %v12291_v28 = vadd.f32 %v4052_v46, %v3796_v30  ;;  %v6337_v40 = vmax.f32 %v6336_v48, %v4306_v41 }
 0x38b   : > { %v3008_v32 = vld [vmem:[%s10991_s22 + $0x730] sm:$0xff]  ;;  %v2753_v60 = vld [vmem:[%s10989_s21 + $0x738] sm:$0xff]  ;;  %v4054_v43 = vld [vmem:[%s10995_s24 + $0x7e0] sm:$0xff]  ;;  %v3774_v16 = vadd.f32 %v3518_v20, %v3262_v18  ;;  %v12296_v53 = vadd.f32 %v4053_v17, %v3797_v22  ;;  %v4578_v46 = vadd.f32 %v4577_v8, %v12278_v35  ;;  %v6290_v41 = vmax.f32 %v6289_v24, %v12175_v34 }
 0x38c   : > { %v3009_v23 = vld [vmem:[%s10991_s22 + $0x738] sm:$0xff]  ;;  %v3519_v33 = vld [vmem:[%s10993_s23 + $0x728] sm:$0xff]  ;;  %v3264_v29 = vadd.f32 %v3008_v32, %v2752_v50  ;;  %v4026_v38 = vld [vmem:[%s10995_s24 + $0x700] sm:$0xff]  ;;  %v12305_v0 = vadd.f32 %v4054_v43, %v3798_v14  ;;  %v13530_v24 = vmax.f32 %v11028_v44, %v11030_v45 }
 0x38d   : > { %v3545_v31 = vld [vmem:[%s10993_s23 + $0x7f8] sm:$0xff]  ;;  %v4027_v55 = vld [vmem:[%s10995_s24 + $0x708] sm:$0xff]  ;;  %v4028_v39 = vld [vmem:[%s10995_s24 + $0x710] sm:$0xff]  ;;  %v3265_v37 = vadd.f32 %v3009_v23, %v2753_v60  ;;  %v3775_v18 = vadd.f32 %v3519_v33, %v3263_v12  ;;  %v12309_v22 = vadd.f32 %v4026_v38, %v3770_v56  ;;  %v4579_v17 = vadd.f32 %v4578_v46, %v12291_v28 }
 0x38e   : > { %v3520_v1 = vld [vmem:[%s10993_s23 + $0x730] sm:$0xff]  ;;  %v4029_v54 = vld [vmem:[%s10995_s24 + $0x718] sm:$0xff]  ;;  %v4030_v4 = vld [vmem:[%s10995_s24 + $0x720] sm:$0xff]  ;;  %v4284_v27 = vadd.f32 %v4028_v39, %v3772_v13  ;;  %v12311_v32 = vadd.f32 %v4027_v55, %v3771_v19  ;;  %v3801_v12 = vadd.f32 %v3545_v31, %v3289_v59  ;;  %v13531_v59 = vmax.f32 %v11108_v6, %v11110_v7 }
 0x38f   : > { %v4055_v30 = vld [vmem:[%s10995_s24 + $0x7e8] sm:$0xff]  ;;  %v2754_v49 = vld [vmem:[%s10989_s21 + $0x740] sm:$0xff]  ;;  %v4285_v50 = vadd.f32 %v4029_v54, %v3773_v62  ;;  %v3521_v57 = vld [vmem:[%s10993_s23 + $0x738] sm:$0xff]  ;;  %v3776_v36 = vadd.f32 %v3520_v1, %v3264_v29  ;;  %v4286_v23 = vadd.f32 %v4030_v4, %v3774_v16  ;;  %v4580_v48 = vadd.f32 %v4579_v17, %v12296_v53 }
 0x390   : > { %v3010_v51 = vld [vmem:[%s10991_s22 + $0x740] sm:$0xff]  ;;  %v4031_v3 = vld [vmem:[%s10995_s24 + $0x728] sm:$0xff]  ;;  %v4056_v20 = vld [vmem:[%s10995_s24 + $0x7f0] sm:$0xff]  ;;  %v12316_v13 = vadd.f32 %v4055_v30, %v3799_v9  ;;  %v3777_v19 = vadd.f32 %v3521_v57, %v3265_v37  ;;  %v4553_v34 = vadd.f32 %v12311_v32, %v12309_v22  ;;  %v12335_v31 = vmax.f32 %v13531_v59, %v13530_v24 }
 0x391   : > { %v6315_v60 = vmax.f32 %v4285_v50, %v4284_v27  ;;  %v3266_v62 = vadd.f32 %v3010_v51, %v2754_v49  ;;  %v4032_v14 = vld [vmem:[%s10995_s24 + $0x730] sm:$0xff]  ;;  %v4057_v43 = vld [vmem:[%s10995_s24 + $0x7f8] sm:$0xff]  ;;  %v2755_v33 = vld [vmem:[%s10989_s21 + $0x748] sm:$0xff]  ;;  %v4287_v38 = vadd.f32 %v4031_v3, %v3775_v18  ;;  %v12323_v29 = vadd.f32 %v4056_v20, %v3800_v61 }
 0x392   : > { %v3011_v56 = vld [vmem:[%s10991_s22 + $0x748] sm:$0xff]  ;;  %v3522_v16 = vld [vmem:[%s10993_s23 + $0x740] sm:$0xff]  ;;  %v4033_v55 = vld [vmem:[%s10995_s24 + $0x738] sm:$0xff]  ;;  %v6161_v39 = vmax.f32 %v11339_v2, %v11341_v5  ;;  %v6338_v9 = vmax.f32 %v6337_v40, %v12278_v35  ;;  %v4581_v61 = vadd.f32 %v4580_v48, %v12305_v0  ;;  %v4288_v1 = vadd.f32 %v4032_v14, %v3776_v36 }
 0x393   : > { %v6316_v8 = vmax.f32 %v6315_v60, %v4286_v23  ;;  %v6291_v54 = vmax.f32 %v6290_v41, %v12182_v10  ;;  %v12342_v4 = vadd.f32 %v4057_v43, %v3801_v12  ;;  %v3267_v44 = vadd.f32 %v3011_v56, %v2755_v33  ;;  %v2756_v7 = vld [vmem:[%s10989_s21 + $0x750] sm:$0xff]  ;;  %v3523_v46 = vld [vmem:[%s10993_s23 + $0x748] sm:$0xff]  ;;  %v4034_v49 = vld [vmem:[%s10995_s24 + $0x740] sm:$0xff] }
 0x394   : > { %v4554_v45 = vadd.f32 %v4553_v34, %v4284_v27  ;;  %v4582_v6 = vadd.f32 %v4581_v61, %v12316_v13  ;;  %v3012_v2 = vld [vmem:[%s10991_s22 + $0x750] sm:$0xff]  ;;  %v3778_v5 = vadd.f32 %v3522_v16, %v3266_v62  ;;  %v4289_v30 = vadd.f32 %v4033_v55, %v3777_v19  ;;  %v13533_v18 = vld [vmem:[#allocation9_spill] sm:$0xff]  ;;  %v13534_v27 = vld [vmem:[#allocation8_spill] sm:$0xff] }
 0x395   : > { %v6317_v37 = vmax.f32 %v6316_v8, %v4287_v38  ;;  %v13532_v51 = vmax.f32 %v11181_v25, %v11183_v26  ;;  %v13535_v40 = vmax.f32 %v13533_v18, %v13534_v27  ;;  %v13536_v3 = vmax.f32 %v11424_v47, %v11426_v52  ;;  %v13537_v20 = vld [vmem:[#allocation14_spill] sm:$0xff]  ;;  %v13538_v17 = vld [vmem:[#allocation15_spill] sm:$0xff]  ;;  %v13541_v12 = vld [vmem:[#allocation17_spill] sm:$0xff] }
 0x396   : > { %v4555_v10 = vadd.f32 %v4554_v45, %v4285_v50  ;;  %v13539_v36 = vmax.f32 %v13537_v20, %v13538_v17  ;;  %v13540_v41 = vld [vmem:[#allocation18_spill] sm:$0xff]  ;;  %v6339_v50 = vmax.f32 %v6338_v9, %v12291_v28  ;;  %v4583_v25 = vadd.f32 %v4582_v6, %v12323_v29  ;;  %v2757_v26 = vld [vmem:[%s10989_s21 + $0x758] sm:$0xff]  ;;  %v2758_v14 = vld [vmem:[%s10989_s21 + $0x760] sm:$0xff] }
 0x397   : > { %v6318_v35 = vmax.f32 %v6317_v37, %v4288_v1  ;;  %v12355_v57 = vmax.f32 %v13535_v40, %v13532_v51  ;;  %v6178_v62 = vmax.f32 %v13541_v12, %v13540_v41  ;;  %v3013_v43 = vld [vmem:[%s10991_s22 + $0x758] sm:$0xff]  ;;  %v13542_v47 = vld [vmem:[#allocation13_spill] sm:$0xff]  ;;  %v13543_v52 = vld [vmem:[#allocation12_spill] sm:$0xff]  ;;  %v3268_v16 = vadd.f32 %v3012_v2, %v2756_v7 }
 0x398   : > { %v12363_v60 = vmax.f32 %v13539_v36, %v13536_v3  ;;  %v6195_v33 = vmax.f32 %v13543_v52, %v13542_v47  ;;  %v2759_v56 = vld [vmem:[%s10989_s21 + $0x768] sm:$0xff]  ;;  %v2760_v19 = vld [vmem:[%s10989_s21 + $0x770] sm:$0xff]  ;;  %v3014_v8 = vld [vmem:[%s10991_s22 + $0x760] sm:$0xff]  ;;  %v4556_v28 = vadd.f32 %v4555_v10, %v4286_v23  ;;  %v6292_v45 = vmax.f32 %v6291_v54, %v12213_v63 }
 0x399   : > { %v6319_v48 = vmax.f32 %v6318_v35, %v4289_v30  ;;  %v13544_v55 = vld [vmem:[#allocation11_spill] sm:$0xff]  ;;  %v13545_v34 = vld [vmem:[#allocation10_spill] sm:$0xff]  ;;  %v13547_v9 = vld [vmem:[#allocation25_spill] sm:$0xff]  ;;  %v4584_v6 = vadd.f32 %v4583_v25, %v12342_v4  ;;  %v3779_v27 = vadd.f32 %v3523_v46, %v3267_v44  ;;  %v4290_v40 = vadd.f32 %v4034_v49, %v3778_v5 }
 0x39a   : > { %v13546_v24 = vmax.f32 %v13544_v55, %v13545_v34  ;;  %v13548_v61 = vld [vmem:[#allocation24_spill] sm:$0xff]  ;;  %v3015_v35 = vld [vmem:[%s10991_s22 + $0x768] sm:$0xff]  ;;  %v3016_v51 = vld [vmem:[%s10991_s22 + $0x770] sm:$0xff]  ;;  %v3269_v2 = vadd.f32 %v3013_v43, %v2757_v26  ;;  %v13490_v63 = vlaneseq  ;;  %v6340_v54 = vmax.f32 %v6339_v50, %v12296_v53 }
 0x39b   : > { %v6212_v37 = vmax.f32 %v13548_v61, %v13547_v9  ;;  %v3524_v18 = vld [vmem:[%s10993_s23 + $0x750] sm:$0xff]  ;;  %v2761_v23 = vld [vmem:[%s10989_s21 + $0x778] sm:$0xff]  ;;  %v4035_v10 = vld [vmem:[%s10995_s24 + $0x748] sm:$0xff]  ;;  %4585 = vadd.xlane.f32.xlu1 %v4584_v6  ;;  %v3270_v36 = vadd.f32 %v3014_v8, %v2758_v14  ;;  %v6320_v44 = vmax.f32 %v6319_v48, %v4290_v40  ;;  %v3272_v25 = vadd.f32 %v3016_v51, %v2760_v19 }
 0x39c   : > { %v12380_v59 = vmax.f32 %v13546_v24, %v6161_v39  ;;  %v3017_v7 = vld [vmem:[%s10991_s22 + $0x778] sm:$0xff]  ;;  %v4557_v39 = vadd.f32 %v4556_v28, %v4287_v38  ;;  %v13549_v3 = vld [vmem:[#allocation21_spill] sm:$0xff]  ;;  %v13550_v20 = vld [vmem:[#allocation20_spill] sm:$0xff]  ;;  %v3271_v38 = vadd.f32 %v3015_v35, %v2759_v56  ;;  %v3780_v43 = vadd.f32 %v3524_v18, %v3268_v16 }
 0x39d   : > { %v6229_v17 = vmax.f32 %v13550_v20, %v13549_v3  ;;  %v3525_v41 = vld [vmem:[%s10993_s23 + $0x758] sm:$0xff]  ;;  %v13551_v5 = vld [vmem:[#allocation22_spill] sm:$0xff]  ;;  %v3526_v26 = vld [vmem:[%s10993_s23 + $0x760] sm:$0xff]  ;;  %v6293_v52 = vmax.f32 %v6292_v45, %v12221_v11  ;;  %v3273_v28 = vadd.f32 %v3017_v7, %v2761_v23  ;;  %v4291_v8 = vadd.f32 %v4035_v10, %v3779_v27 }
 0x39e   : > { %v13552_v46 = vld [vmem:[#allocation23_spill] sm:$0xff]  ;;  %v4558_v47 = vadd.f32 %v4557_v39, %v4288_v1  ;;  %v3527_v53 = vld [vmem:[%s10993_s23 + $0x768] sm:$0xff]  ;;  %v3528_v50 = vld [vmem:[%s10993_s23 + $0x770] sm:$0xff]  ;;  %v3781_v19 = vadd.f32 %v3525_v41, %v3269_v2  ;;  %v12420_v45 = vshrl.u32 %v13490_v63, 7  ;;  %v6341_v6 = vmax.f32 %v6340_v54, %v12305_v0 }
 0x39f   : > { %v13553_v49 = vmax.f32 %v13551_v5, %v13552_v46  ;;  %v4036_v14 = vld [vmem:[%s10995_s24 + $0x750] sm:$0xff]  ;;  %v13554_v55 = vld [vmem:[#allocation19_spill] sm:$0xff]  ;;  %v13555_v48 = vld [vmem:[#allocation16_spill] sm:$0xff]  ;;  %v6321_v51 = vmax.f32 %v6320_v44, %v4291_v8  ;;  %6091 = vmax.xlane.f32.xlu1 %v12188_v42  ;;  %v3783_v7 = vadd.f32 %v3527_v53, %v3271_v38  ;;  %v3784_v2 = vadd.f32 %v3528_v50, %v3272_v25 }
 0x3a0   : > { %v13556_v34 = vmax.f32 %v13554_v55, %v13555_v48  ;;  %v3529_v56 = vld [vmem:[%s10993_s23 + $0x778] sm:$0xff]  ;;  %v4559_v1 = vadd.f32 %v4558_v47, %v4289_v30  ;;  %v13558_v9 = vld [vmem:[#allocation28_spill] sm:$0xff]  ;;  %13560 = vst [vmem:[#allocation9_spill] sm:$0xff] %v12420_v45  ;;  %v13561_v18 = vld [vmem:[#allocation26_spill] sm:$0xff]  ;;  %v4292_v10 = vadd.f32 %v4036_v14, %v3780_v43  ;;  %v12442_v38 = vsub.s32 0, %v12420_v45 }
 0x3a1   : > { %v12399_v12 = vmax.f32 %v13553_v49, %v6178_v62  ;;  %v12411_v62 = vpop.xlane.xlu0 %4330  ;;  %v13557_v16 = vld [vmem:[#allocation31_spill] sm:$0xff]  ;;  %v3785_v3 = vadd.f32 %v3529_v56, %v3273_v28  ;;  %v4039_v20 = vld [vmem:[%s10995_s24 + $0x768] sm:$0xff]  ;;  %v4040_v41 = vld [vmem:[%s10995_s24 + $0x770] sm:$0xff]  ;;  %v12445_v25 = vsub.s32 1, %v12420_v45  ;;  %v12450_v53 = vsub.s32 2, %v12420_v45 }
 0x3a2   : > { %v12409_v24 = vmax.f32 %v13556_v34, %v6195_v33  ;;  %v13559_v11 = vmax.f32 %v13557_v16, %v13558_v9  ;;  %v3782_v33 = vadd.f32 %v3526_v26, %v3270_v36  ;;  %v4037_v35 = vld [vmem:[%s10995_s24 + $0x758] sm:$0xff]  ;;  %v4560_v39 = vadd.f32 %v4559_v1, %v4290_v40  ;;  %v13564_v0 = vld [vmem:[#allocation30_spill] sm:$0xff]  ;;  %v13565_v54 = vld [vmem:[#allocation29_spill] sm:$0xff] }
 0x3a3   : > { %v13562_v27 = vld [vmem:[#allocation27_spill] sm:$0xff]  ;;  %v13566_v5 = vld [vmem:[#allocation34_spill] sm:$0xff]  ;;  %v4293_v26 = vadd.f32 %v4037_v35, %v3781_v19  ;;  %v6342_v40 = vmax.f32 %v6341_v6, %v12316_v13  ;;  %v6322_v43 = vmax.f32 %v6321_v51, %v4292_v10  ;;  %6125 = vmax.xlane.f32.xlu1 %v12335_v31  ;;  %v12454_v50 = vadd.f32 %v4040_v41, %v3784_v2  ;;  %v4365_v51 = vpop.xlane.xlu1 %4364  ;;  %v13569_v21 = vld [vmem:[#allocation36_spill] sm:$0xff] }
 0x3a4   : > { %v12417_v61 = vmax.f32 %v13559_v11, %v6212_v37  ;;  %v13563_v30 = vmax.f32 %v13561_v18, %v13562_v27  ;;  %v4038_v37 = vld [vmem:[%s10995_s24 + $0x760] sm:$0xff]  ;;  %v13567_v44 = vld [vmem:[#allocation35_spill] sm:$0xff]  ;;  %v4606_v13 = vrot.slane %v12411_v62, %v12442_v38  ;;  %v4610_v34 = vrot.slane %v12411_v62, %v12445_v25 }
 0x3a5   : > { %v13568_v46 = vmax.f32 %v13566_v5, %v13567_v44  ;;  %v4041_v49 = vld [vmem:[%s10995_s24 + $0x778] sm:$0xff]  ;;  %v4294_v47 = vadd.f32 %v4038_v37, %v3782_v33  ;;  %v4348_v28 = vpop.xlane.xlu0 %4347  ;;  %v4614_v31 = vrot.slane %v12411_v62, %v12450_v53  ;;  %v12465_v19 = vsub.s32 3, %v12420_v45 }
 0x3a6   : > { %v12428_v23 = vmax.f32 %v13563_v30, %v6229_v17  ;;  %v4561_v17 = vadd.f32 %v4560_v39, %v4291_v8  ;;  %v8776_v8 = vmov 1966171168   ;;  %v12456_v48 = vadd.f32 %v4041_v49, %v3785_v3 }
 0x3a7   : > { %v12438_v42 = vmax.f32 %v6293_v52, %v13568_v46  ;;  %v12452_v52 = vadd.f32 %v4039_v20, %v3783_v7  ;;  %v5120_v55 = vunpack.c.l.s4 %v8776_v8  ;;  %v4638_v1 = vrot.slane %v4348_v28, %v12442_v38  ;;  %6142 = vmax.xlane.f32.xlu1 %v12355_v57 }
 0x3a8   : > { %v4562_v14 = vadd.f32 %v4561_v17, %v4292_v10  ;;  %v4642_v16 = vrot.slane %v4348_v28, %v12445_v25  ;;  %v6323_v9 = vmax.f32 %v6322_v43, %v4293_v26  ;;  %v12471_v11 = vsub.s32 4, %v12420_v45 }
 0x3a9   : > { %v12474_v6 = vsub.s32 5, %v12420_v45  ;;  %v12477_v33 = vsub.s32 6, %v12420_v45  ;;  %v4618_v18 = vrot.slane %v12411_v62, %v12465_v19  ;;  %v12482_v27 = vsub.s32 7, %v12420_v45 }
 0x3aa   : > { %v4563_v56 = vadd.f32 %v4562_v14, %v4293_v26  ;;  %v5121_v30 = vunpack.c.0.s8 %v5120_v55  ;;  %v4646_v57 = vrot.slane %v4348_v28, %v12450_v53  ;;  %v4650_v7 = vrot.slane %v4348_v28, %v12465_v19  ;;  %v4382_v14 = vpop.xlane.xlu1 %4381 }
 0x3ab   : > { %v4654_v2 = vrot.slane %v4348_v28, %v12471_v11  ;;  %v4658_v37 = vrot.slane %v4348_v28, %v12474_v6  ;;  %v4662_v39 = vrot.slane %v4348_v28, %v12477_v33  ;;  %v4666_v3 = vrot.slane %v4348_v28, %v12482_v27  ;;  %6159 = vmax.xlane.f32.xlu1 %v12363_v60 }
 0x3ac   : > { %v4564_v35 = vadd.f32 %v4563_v56, %v4294_v47  ;;  %v5164_v20 = vcombine.low %v4638_v1, %v4642_v16  ;;  %v12492_v41 = vmax.f32 %v6342_v40, %v12323_v29  ;;  %v6324_v5 = vmax.f32 %v6323_v9, %v4294_v47 }
 0x3ad   : > { %v4622_v44 = vrot.slane %v12411_v62, %v12471_v11  ;;  %v4626_v46 = vrot.slane %v12411_v62, %v12474_v6  ;;  %v4630_v26 = vrot.slane %v12411_v62, %v12477_v33  ;;  %v4634_v17 = vrot.slane %v12411_v62, %v12482_v27 }
 0x3ae   : > { %v4565_v10 = vadd.f32 %v4564_v35, %v12452_v52  ;;  %v12505_v29 = vsub.s32 %v5121_v30, %v12420_v45  ;;  %v12507_v40 = vcombine.low %v4606_v13, %v4610_v34  ;;  %v12509_v60 = vcombine.low %v4614_v31, %v4618_v18 }
 0x3af   : > { %v5165_v43 = vcombine.low %v4646_v57, %v4650_v7  ;;  %v5166_v47 = vcombine.low %v4654_v2, %v4658_v37  ;;  %v5167_v8 = vcombine.low %v4662_v39, %v4666_v3  ;;  %v4670_v56 = vrot.slane %v4365_v51, %v12442_v38  ;;  %6193 = vmax.xlane.f32.xlu1 %v12399_v12 }
 0x3b0   : > { %v4566_v49 = vadd.f32 %v4565_v10, %v12454_v50  ;;  %v5174_v55 = vrot.slane %v5164_v20, %v12505_v29  ;;  %v6325_v1 = vmax.f32 %v6324_v5, %v12452_v52  ;;  %v4674_v62 = vrot.slane %v4365_v51, %v12445_v25 }
 0x3b1   : > { %v4678_v13 = vrot.slane %v4365_v51, %v12450_v53  ;;  %v4682_v34 = vrot.slane %v4365_v51, %v12465_v19  ;;  %v4686_v31 = vrot.slane %v4365_v51, %v12471_v11  ;;  %v4690_v16 = vrot.slane %v4365_v51, %v12474_v6 }
 0x3b2   : > { %v4567_v28 = vadd.f32 %v4566_v49, %v12456_v48  ;;  %v4694_v9 = vrot.slane %v4365_v51, %v12477_v33  ;;  %v4698_v35 = vrot.slane %v4365_v51, %v12482_v27  ;;  %v4702_v18 = vrot.slane %v4382_v14, %v12442_v38  ;;  %v12533_v51 = vpop.xlane.xlu0 %4398 }
 0x3b3   : > { %v4706_v52 = vrot.slane %v4382_v14, %v12445_v25  ;;  %v4710_v12 = vrot.slane %v4382_v14, %v12450_v53  ;;  %v4714_v30 = vrot.slane %v4382_v14, %v12465_v19  ;;  %v4718_v57 = vrot.slane %v4382_v14, %v12471_v11  ;;  %6227 = vmax.xlane.f32.xlu1 %v12417_v61 }
 0x3b4   : > { %4568 = vadd.xlane.f32.xlu0 %v4567_v28  ;;  %v4722_v7 = vrot.slane %v4382_v14, %v12474_v6  ;;  %v4726_v2 = vrot.slane %v4382_v14, %v12477_v33  ;;  %v4730_v37 = vrot.slane %v4382_v14, %v12482_v27  ;;  %v6326_v10 = vmax.f32 %v6325_v1, %v12454_v50 }
 0x3b5   : > { %v5181_v39 = vrot.slane %v5165_v43, %v12505_v29  ;;  %v5188_v3 = vrot.slane %v5166_v47, %v12505_v29  ;;  %v5195_v20 = vrot.slane %v5167_v8, %v12505_v29  ;;  %v5213_v5 = vcombine.low %v4670_v56, %v4674_v62 }
 0x3b6   : > { %v5214_v49 = vcombine.low %v4678_v13, %v4682_v34  ;;  %v5215_v28 = vcombine.low %v4686_v31, %v4690_v16  ;;  %v5216_v63 = vcombine.low %v4694_v9, %v4698_v35  ;;  %v6314_v14 = vmax.f32 %v12309_v22, %v12311_v32 }
 0x3b7   : > { %v5117_v50 = vcombine.low %v4622_v44, %v4626_v46  ;;  %v5262_v1 = vcombine.low %v4702_v18, %v4706_v52  ;;  %v5263_v61 = vcombine.low %v4710_v12, %v4714_v30  ;;  %v5118_v36 = vcombine.low %v4630_v26, %v4634_v17  ;;  %6261 = vmax.xlane.f32.xlu1 %v13569_v21  ;;  %v13571_v26 = vld [vmem:[#allocation32_spill] sm:$0xff]  ;;  %v13572_v17 = vld [vmem:[#allocation33_spill] sm:$0xff] }
 0x3b8   : > { %6108 = vmax.xlane.f32.xlu0 %v12241_v58  ;;  %v5125_v43 = vrot.slane %v12507_v40, %v12505_v29  ;;  %v5264_v45 = vcombine.low %v4718_v57, %v4722_v7  ;;  %v5265_v47 = vcombine.low %v4726_v2, %v4730_v37  ;;  %v6327_v8 = vmax.f32 %v6326_v10, %v12456_v48 }
 0x3b9   : > { %v5132_v58 = vrot.slane %v12509_v60, %v12505_v29  ;;  %v5196_v56 = vcombine.low %v5174_v55, %v5181_v39  ;;  %v5197_v62 = vcombine.low %v5188_v3, %v5195_v20  ;;  %v5223_v22 = vrot.slane %v5213_v5, %v12505_v29  ;;  %v12560_v55 = vpop.xlane.xlu1 %4415 }
 0x3ba   : > { %v5230_v32 = vrot.slane %v5214_v49, %v12505_v29  ;;  %v5237_v44 = vrot.slane %v5215_v28, %v12505_v29  ;;  %v5244_v46 = vrot.slane %v5216_v63, %v12505_v29  ;;  %v6344_v48 = vmax.f32 %v12492_v41, %v12342_v4 }
 0x3bb   : > { %v13570_v21 = vmax.f32 %v13565_v54, %v13564_v0  ;;  %v13573_v40 = vmax.f32 %v13571_v26, %v13572_v17  ;;  %v5272_v13 = vrot.slane %v5262_v1, %v12505_v29  ;;  %v5279_v34 = vrot.slane %v5263_v61, %v12505_v29  ;;  %6295 = vmax.xlane.f32.xlu1 %v12438_v42 }
 0x3bc   : > { %6176 = vmax.xlane.f32.xlu0 %v12380_v59  ;;  %v4433_v59 = vpop.xlane.xlu0 %4432  ;;  %v5139_v31 = vrot.slane %v5117_v50, %v12505_v29  ;;  %v5146_v63 = vrot.slane %v5118_v36, %v12505_v29  ;;  %v5286_v4 = vrot.slane %v5264_v45, %v12505_v29  ;;  %v5293_v41 = vrot.slane %v5265_v47, %v12505_v29  ;;  %v13574_v50 = vld [vmem:[#allocation37_spill] sm:$0xff] }
 0x3bd   : > { %v6277_v60 = vmax.f32 %v13573_v40, %v13570_v21  ;;  %v6328_v0 = vmax.f32 %v6327_v8, %v6314_v14  ;;  %v12569_v54 = vcombine.low %v5125_v43, %v5132_v58  ;;  %v5204_v16 = vrot.slane %v5196_v56, %v12505_v29  ;;  %v12582_v37 = vpop.xlane.xlu1 %4449 }
 0x3be   : > { %v5211_v9 = vrot.slane %v5197_v62, %v12505_v29  ;;  %v5245_v35 = vcombine.low %v5223_v22, %v5230_v32  ;;  %v5246_v18 = vcombine.low %v5237_v44, %v5244_v46  ;;  %v4798_v52 = vrot.slane %v4433_v59, %v12442_v38 }
 0x3bf   : > { %v4802_v36 = vrot.slane %v4433_v59, %v12445_v25  ;;  %v5294_v45 = vcombine.low %v5272_v13, %v5279_v34  ;;  %v4806_v12 = vrot.slane %v4433_v59, %v12450_v53  ;;  %v4810_v42 = vrot.slane %v4433_v59, %v12465_v19  ;;  %6329 = vmax.xlane.f32.xlu1 %v6328_v0 }
 0x3c0   : > { %6210 = vmax.xlane.f32.xlu0 %v12409_v24  ;;  %v4814_v30 = vrot.slane %v4433_v59, %v12471_v11  ;;  %v5295_v57 = vcombine.low %v5286_v4, %v5293_v41  ;;  %v4818_v7 = vrot.slane %v4433_v59, %v12474_v6  ;;  %v4822_v2 = vrot.slane %v4433_v59, %v12477_v33 }
 0x3c1   : > { %v4826_v24 = vrot.slane %v4433_v59, %v12482_v27  ;;  %v4734_v10 = vrot.slane %v12533_v51, %v12442_v38  ;;  %v4738_v39 = vrot.slane %v12533_v51, %v12445_v25  ;;  %v4742_v3 = vrot.slane %v12533_v51, %v12450_v53  ;;  %v12620_v26 = vpop.xlane.xlu1 %4483 }
 0x3c2   : > { %v4746_v20 = vrot.slane %v12533_v51, %v12465_v19  ;;  %v4750_v5 = vrot.slane %v12533_v51, %v12471_v11  ;;  %v4754_v49 = vrot.slane %v12533_v51, %v12474_v6  ;;  %v4758_v28 = vrot.slane %v12533_v51, %v12477_v33 }
 0x3c3   : > { %v4762_v14 = vrot.slane %v12533_v51, %v12482_v27  ;;  %v13575_v1 = vmax.f32 %v12167_v15, %v13574_v50  ;;  %v12604_v43 = vcombine.low %v5139_v31, %v5146_v63  ;;  %v5212_v47 = vcombine.low %v5204_v16, %v5211_v9  ;;  %v13576_v9 = vld [vmem:[#allocation38_spill] sm:$0xff] }
 0x3c4   : > { %6244 = vmax.xlane.f32.xlu0 %v12428_v23  ;;  %v5155_v23 = vrot.slane %v12569_v54, %v12505_v29  ;;  %v5253_v8 = vrot.slane %v5245_v35, %v12505_v29  ;;  %v5260_v58 = vrot.slane %v5246_v18, %v12505_v29  ;;  %v12610_v56 = vcombine.low %v4798_v52, %v4802_v36 }
 0x3c5   : > { %v6345_v61 = vmax.f32 %v6344_v48, %v13575_v1  ;;  %v12612_v62 = vcombine.low %v4806_v12, %v4810_v42  ;;  %v5302_v51 = vrot.slane %v5294_v45, %v12505_v29  ;;  %v5309_v22 = vrot.slane %v5295_v57, %v12505_v29 }
 0x3c6   : > { %v12616_v15 = vcombine.low %v4814_v30, %v4818_v7  ;;  %v12618_v32 = vcombine.low %v4822_v2, %v4826_v24  ;;  %v5311_v44 = vcombine.low %v4734_v10, %v4738_v39  ;;  %v5312_v46 = vcombine.low %v4742_v3, %v4746_v20 }
 0x3c7   : > { %v5313_v48 = vcombine.low %v4750_v5, %v4754_v49  ;;  %v5314_v21 = vcombine.low %v4758_v28, %v4762_v14  ;;  %v4766_v17 = vrot.slane %v12560_v55, %v12442_v38  ;;  %v4770_v40 = vrot.slane %v12560_v55, %v12445_v25 }
 0x3c8   : > { %6278 = vmax.xlane.f32.xlu0 %v6277_v60  ;;  %v4774_v59 = vrot.slane %v12560_v55, %v12450_v53  ;;  %v4778_v13 = vrot.slane %v12560_v55, %v12465_v19  ;;  %v4782_v60 = vrot.slane %v12560_v55, %v12471_v11  ;;  %v4786_v34 = vrot.slane %v12560_v55, %v12474_v6 }
 0x3c9   : > { %v4790_v31 = vrot.slane %v12560_v55, %v12477_v33  ;;  %v4794_v63 = vrot.slane %v12560_v55, %v12482_v27  ;;  %v5261_v4 = vcombine.low %v5253_v8, %v5260_v58  ;;  %v5419_v41 = vrot.slane %v12610_v56, %v12505_v29 }
 0x3ca   : > { %v5426_v0 = vrot.slane %v12612_v62, %v12505_v29  ;;  %v5433_v16 = vrot.slane %v12616_v15, %v12505_v29  ;;  %v12645_v35 = vcombine.low %v5302_v51, %v5309_v22  ;;  %v5440_v18 = vrot.slane %v12618_v32, %v12505_v29 }
 0x3cb   : > { %v4894_v55 = vrot.slane %v12620_v26, %v12442_v38  ;;  %v4898_v52 = vrot.slane %v12620_v26, %v12445_v25  ;;  %v5321_v36 = vrot.slane %v5311_v44, %v12505_v29  ;;  %v5328_v45 = vrot.slane %v5312_v46, %v12505_v29 }
 0x3cc   : > { %6312 = vmax.xlane.f32.xlu0 %v13576_v9  ;;  %v5335_v12 = vrot.slane %v5313_v48, %v12505_v29  ;;  %v5342_v42 = vrot.slane %v5314_v21, %v12505_v29  ;;  %v5360_v30 = vcombine.low %v4766_v17, %v4770_v40  ;;  %v5361_v57 = vcombine.low %v4774_v59, %v4778_v13  ;;  %v4467_v21 = vpop.xlane.xlu0 %4466 }
 0x3cd   : > { %v5362_v7 = vcombine.low %v4782_v60, %v4786_v34  ;;  %v5363_v2 = vcombine.low %v4790_v31, %v4794_v63  ;;  %v4830_v24 = vrot.slane %v12582_v37, %v12442_v38  ;;  %v4834_v10 = vrot.slane %v12582_v37, %v12445_v25 }
 0x3ce   : > { %v4838_v39 = vrot.slane %v12582_v37, %v12450_v53  ;;  %v4842_v3 = vrot.slane %v12582_v37, %v12465_v19  ;;  %v4846_v20 = vrot.slane %v12582_v37, %v12471_v11  ;;  %v4850_v5 = vrot.slane %v12582_v37, %v12474_v6 }
 0x3cf   : > { %v4854_v49 = vrot.slane %v12582_v37, %v12477_v33  ;;  %v4858_v28 = vrot.slane %v12582_v37, %v12482_v27  ;;  %v5343_v14 = vcombine.low %v5321_v36, %v5328_v45  ;;  %v4902_v50 = vrot.slane %v12620_v26, %v12450_v53 }
 0x3d0   : > { %6346 = vmax.xlane.f32.xlu0 %v6345_v61  ;;  %v4906_v1 = vrot.slane %v12620_v26, %v12465_v19  ;;  %v4910_v61 = vrot.slane %v12620_v26, %v12471_v11  ;;  %v5344_v8 = vcombine.low %v5335_v12, %v5342_v42  ;;  %v4914_v58 = vrot.slane %v12620_v26, %v12474_v6 }
 0x3d1   : > { %v4918_v51 = vrot.slane %v12620_v26, %v12477_v33  ;;  %v4922_v37 = vrot.slane %v12620_v26, %v12482_v27  ;;  %v5370_v22 = vrot.slane %v5360_v30, %v12505_v29  ;;  %v5377_v44 = vrot.slane %v5361_v57, %v12505_v29  ;;  %5903 = vperm.xlu1 %8700, %v5212_v47  }
 0x3d2   : > { %v5384_v46 = vrot.slane %v5362_v7, %v12505_v29  ;;  %v5391_v48 = vrot.slane %v5363_v2, %v12505_v29  ;;  %v5458_v17 = vcombine.low %v4830_v24, %v4834_v10  ;;  %v5459_v40 = vcombine.low %v4838_v39, %v4842_v3 }
 0x3d3   : > { %v5460_v59 = vcombine.low %v4846_v20, %v4850_v5  ;;  %v5461_v13 = vcombine.low %v4854_v49, %v4858_v28  ;;  %v4862_v60 = vrot.slane %v4467_v21, %v12442_v38  ;;  %v4866_v34 = vrot.slane %v4467_v21, %v12445_v25 }
 0x3d4   : > { %v4870_v26 = vrot.slane %v4467_v21, %v12450_v53  ;;  %v4874_v31 = vrot.slane %v4467_v21, %v12465_v19  ;;  %v4878_v63 = vrot.slane %v4467_v21, %v12471_v11  ;;  %v4882_v9 = vrot.slane %v4467_v21, %v12474_v6 }
 0x3d5   : > { %v4886_v36 = vrot.slane %v4467_v21, %v12477_v33  ;;  %v4890_v47 = vrot.slane %v4467_v21, %v12482_v27  ;;  %v5351_v45 = vrot.slane %v5343_v14, %v12505_v29  ;;  %v5556_v12 = vcombine.low %v4894_v55, %v4898_v52  ;;  %5906 = vperm.xlu1 %8700, %v5261_v4  }
 0x3d6   : > { %v5557_v42 = vcombine.low %v4902_v50, %v4906_v1  ;;  %v5558_v30 = vcombine.low %v4910_v61, %v4914_v58  ;;  %v5358_v57 = vrot.slane %v5344_v8, %v12505_v29  ;;  %v5559_v7 = vcombine.low %v4918_v51, %v4922_v37 }
 0x3d7   : > { %v5392_v2 = vcombine.low %v5370_v22, %v5377_v44  ;;  %v5393_v24 = vcombine.low %v5384_v46, %v5391_v48  ;;  %v5468_v10 = vrot.slane %v5458_v17, %v12505_v29  ;;  %v5475_v39 = vrot.slane %v5459_v40, %v12505_v29 }
 0x3d8   : > { %v5482_v3 = vrot.slane %v5460_v59, %v12505_v29  ;;  %v5489_v20 = vrot.slane %v5461_v13, %v12505_v29  ;;  %v5507_v5 = vcombine.low %v4862_v60, %v4866_v34  ;;  %v5508_v49 = vcombine.low %v4870_v26, %v4874_v31  ;;  %v4518_v31 = vpop.xlane.xlu1 %4517 }
 0x3d9   : > { %v5509_v28 = vcombine.low %v4878_v63, %v4882_v9  ;;  %v5510_v55 = vcombine.low %v4886_v36, %v4890_v47  ;;  %v5162_v4 = vrot.slane %v12604_v43, %v12505_v29  ;;  %v5441_v52 = vcombine.low %v5419_v41, %v5426_v0  ;;  %5909 = vperm.xlu1 %8700, %v12645_v35  }
 0x3da   : > { %v5442_v14 = vcombine.low %v5433_v16, %v5440_v18  ;;  %v5566_v50 = vrot.slane %v5556_v12, %v12505_v29  ;;  %v5359_v1 = vcombine.low %v5351_v45, %v5358_v57  ;;  %v5573_v43 = vrot.slane %v5557_v42, %v12505_v29 }
 0x3db   : > { %v5580_v62 = vrot.slane %v5558_v30, %v12505_v29  ;;  %v5587_v61 = vrot.slane %v5559_v7, %v12505_v29  ;;  %v5400_v56 = vrot.slane %v5392_v2, %v12505_v29  ;;  %v5407_v41 = vrot.slane %v5393_v24, %v12505_v29 }
 0x3dc   : > { %v5490_v32 = vcombine.low %v5468_v10, %v5475_v39  ;;  %v5491_v0 = vcombine.low %v5482_v3, %v5489_v20  ;;  %v5517_v15 = vrot.slane %v5507_v5, %v12505_v29  ;;  %v5524_v16 = vrot.slane %v5508_v49, %v12505_v29 }
 0x3dd   : > { %v5531_v18 = vrot.slane %v5509_v28, %v12505_v29  ;;  %v5538_v35 = vrot.slane %v5510_v55, %v12505_v29  ;;  %v5163_v8 = vcombine.low %v5155_v23, %v5162_v4  ;;  %v5449_v58 = vrot.slane %v5441_v52, %v12505_v29  ;;  %5912 = vperm.xlu1 %8700, %v5359_v1  }
 0x3de   : > { %v5456_v51 = vrot.slane %v5442_v14, %v12505_v29  ;;  %v5588_v37 = vcombine.low %v5566_v50, %v5573_v43  ;;  %v5589_v22 = vcombine.low %v5580_v62, %v5587_v61  ;;  %v5408_v44 = vcombine.low %v5400_v56, %v5407_v41 }
 0x3df   : > { %v5498_v46 = vrot.slane %v5490_v32, %v12505_v29  ;;  %v5505_v48 = vrot.slane %v5491_v0, %v12505_v29  ;;  %v5539_v21 = vcombine.low %v5517_v15, %v5524_v16  ;;  %v5540_v17 = vcombine.low %v5531_v18, %v5538_v35 }
 0x3e0   : > { %v5457_v40 = vcombine.low %v5449_v58, %v5456_v51  ;;  %v5596_v59 = vrot.slane %v5588_v37, %v12505_v29  ;;  %v5603_v54 = vrot.slane %v5589_v22, %v12505_v29  ;;  %v4958_v9 = vrot.slane %v4518_v31, %v12442_v38 }
 0x3e1   : > { %5915 = vperm.xlu1 %8700, %v5408_v44   ;;  %v5506_v23 = vcombine.low %v5498_v46, %v5505_v48  ;;  %v5547_v13 = vrot.slane %v5539_v21, %v12505_v29  ;;  %v5554_v60 = vrot.slane %v5540_v17, %v12505_v29  ;;  %v4962_v36 = vrot.slane %v4518_v31, %v12445_v25 }
 0x3e2   : > { %v5604_v34 = vcombine.low %v5596_v59, %v5603_v54  ;;  %v4966_v47 = vrot.slane %v4518_v31, %v12450_v53  ;;  %v4970_v45 = vrot.slane %v4518_v31, %v12465_v19  ;;  %v4974_v42 = vrot.slane %v4518_v31, %v12471_v11 }
 0x3e3   : > { %v5555_v26 = vcombine.low %v5547_v13, %v5554_v60  ;;  %v4978_v30 = vrot.slane %v4518_v31, %v12474_v6  ;;  %v4982_v57 = vrot.slane %v4518_v31, %v12477_v33  ;;  %v4986_v7 = vrot.slane %v4518_v31, %v12482_v27 }
 0x3e4   : > { %v5654_v35 = vcombine.low %v4958_v9, %v4962_v36 }
 0x3e5   : > { %5921 = vperm.xlu1 %8700, %v5506_v23   ;;  %v5656_v58 = vcombine.low %v4974_v42, %v4978_v30  ;;  %v5657_v51 = vcombine.low %v4982_v57, %v4986_v7 }
 0x3e6   : > { %5900 = vperm.xlu0 %8699, %v5163_v8   ;;  %v5655_v8 = vcombine.low %v4966_v47, %v4970_v45  ;;  %v5664_v60 = vrot.slane %v5654_v35, %v12505_v29 }
 0x3e7   : > { %v5685_v31 = vrot.slane %v5657_v51, %v12505_v29 }
 0x3e9   : > { %5924 = vperm.xlu1 %8700, %v5555_v26   ;;  %v4501_v63 = vpop.xlane.xlu0 %4500  ;;  %v5678_v26 = vrot.slane %v5656_v58, %v12505_v29 }
 0x3ea   : > { %5918 = vperm.xlu0 %8699, %v5457_v40   ;;  %v4926_v2 = vrot.slane %v4501_v63, %v12442_v38  ;;  %v4930_v24 = vrot.slane %v4501_v63, %v12445_v25  ;;  %v4934_v10 = vrot.slane %v4501_v63, %v12450_v53  ;;  %v4938_v39 = vrot.slane %v4501_v63, %v12465_v19 }
 0x3eb   : > { %v4942_v3 = vrot.slane %v4501_v63, %v12471_v11  ;;  %v4946_v20 = vrot.slane %v4501_v63, %v12474_v6  ;;  %v4950_v5 = vrot.slane %v4501_v63, %v12477_v33  ;;  %v4954_v49 = vrot.slane %v4501_v63, %v12482_v27 }
 0x3ec   : > { %v5605_v37 = vcombine.low %v4926_v2, %v4930_v24  ;;  %v5606_v22 = vcombine.low %v4934_v10, %v4938_v39 }
 0x3ed   : > { %v5607_v44 = vcombine.low %v4942_v3, %v4946_v20  ;;  %v5608_v46 = vcombine.low %v4950_v5, %v4954_v49  ;;  %v5687_v20 = vcombine.low %v5678_v26, %v5685_v31 }
 0x3ee   : > { %5927 = vperm.xlu0 %8699, %v5604_v34   ;;  %v5671_v34 = vrot.slane %v5655_v8, %v12505_v29  ;;  %v5615_v63 = vrot.slane %v5605_v37, %v12505_v29  ;;  %v5622_v9 = vrot.slane %v5606_v22, %v12505_v29 }
 0x3ef   : > { %v5629_v36 = vrot.slane %v5607_v44, %v12505_v29  ;;  %v5636_v47 = vrot.slane %v5608_v46, %v12505_v29 }
 0x3f0   : > { %v5637_v10 = vcombine.low %v5615_v63, %v5622_v9  ;;  %v5686_v3 = vcombine.low %v5664_v60, %v5671_v34 }
 0x3f1   : > { %v5638_v39 = vcombine.low %v5629_v36, %v5636_v47 }
 0x3fe   : > { %v4552_v12 = vpop.xlane.xlu1 %4551 }
 0x3ff   : > { %v5022_v28 = vrot.slane %v4552_v12, %v12442_v38  ;;  %v5026_v55 = vrot.slane %v4552_v12, %v12445_v25  ;;  %v5030_v4 = vrot.slane %v4552_v12, %v12450_v53  ;;  %v5034_v52 = vrot.slane %v4552_v12, %v12465_v19 }
 0x400   : > { %v5038_v50 = vrot.slane %v4552_v12, %v12471_v11  ;;  %v5042_v1 = vrot.slane %v4552_v12, %v12474_v6  ;;  %v5046_v43 = vrot.slane %v4552_v12, %v12477_v33  ;;  %v5050_v62 = vrot.slane %v4552_v12, %v12482_v27 }
 0x401   : > { %v5752_v48 = vcombine.low %v5022_v28, %v5026_v55  ;;  %v5753_v21 = vcombine.low %v5030_v4, %v5034_v52  ;;  %v5645_v4 = vrot.slane %v5637_v10, %v12505_v29  ;;  %v5652_v52 = vrot.slane %v5638_v39, %v12505_v29 }
 0x402   : > { %v5754_v17 = vcombine.low %v5038_v50, %v5042_v1  ;;  %v5755_v40 = vcombine.low %v5046_v43, %v5050_v62  ;;  %v5701_v50 = vrot.slane %v5687_v20, %v12505_v29 }
 0x403   : > { %v5762_v45 = vrot.slane %v5752_v48, %v12505_v29  ;;  %v5769_v12 = vrot.slane %v5753_v21, %v12505_v29  ;;  %v12803_v58 = vcombine.low %v5645_v4, %v5652_v52 }
 0x404   : > { %v5776_v42 = vrot.slane %v5754_v17, %v12505_v29  ;;  %v5783_v30 = vrot.slane %v5755_v40, %v12505_v29 }
 0x405   : > { %v5784_v28 = vcombine.low %v5762_v45, %v5769_v12 }
 0x406   : > { %v5785_v55 = vcombine.low %v5776_v42, %v5783_v30 }
 0x411   : > { %v4535_v14 = vpop.xlane.xlu0 %4534 }
 0x412   : > { %v4990_v61 = vrot.slane %v4535_v14, %v12442_v38  ;;  %v4994_v56 = vrot.slane %v4535_v14, %v12445_v25  ;;  %v4998_v41 = vrot.slane %v4535_v14, %v12450_v53  ;;  %v5002_v32 = vrot.slane %v4535_v14, %v12465_v19 }
 0x413   : > { %v5006_v0 = vrot.slane %v4535_v14, %v12471_v11  ;;  %v5010_v15 = vrot.slane %v4535_v14, %v12474_v6  ;;  %v5014_v16 = vrot.slane %v4535_v14, %v12477_v33  ;;  %v5018_v18 = vrot.slane %v4535_v14, %v12482_v27 }
 0x414   : > { %v5703_v59 = vcombine.low %v4990_v61, %v4994_v56  ;;  %v5704_v54 = vcombine.low %v4998_v41, %v5002_v32  ;;  %v5694_v14 = vrot.slane %v5686_v3, %v12505_v29  ;;  %v5792_v61 = vrot.slane %v5784_v28, %v12505_v29 }
 0x415   : > { %v5705_v23 = vcombine.low %v5006_v0, %v5010_v15  ;;  %v5706_v13 = vcombine.low %v5014_v16, %v5018_v18  ;;  %v5799_v56 = vrot.slane %v5785_v55, %v12505_v29 }
 0x416   : > { %v5713_v57 = vrot.slane %v5703_v59, %v12505_v29  ;;  %v5720_v7 = vrot.slane %v5704_v54, %v12505_v29  ;;  %v12805_v51 = vcombine.low %v5694_v14, %v5701_v50 }
 0x417   : > { %v5727_v2 = vrot.slane %v5705_v23, %v12505_v29  ;;  %v5734_v24 = vrot.slane %v5706_v13, %v12505_v29  ;;  %v12813_v48 = vcombine.low %v5792_v61, %v5799_v56 }
 0x418   : > { %v5735_v5 = vcombine.low %v5713_v57, %v5720_v7 }
 0x419   : > { %v5736_v49 = vcombine.low %v5727_v2, %v5734_v24 }
 0x41a   : > { %v5743_v43 = vrot.slane %v5735_v5, %v12505_v29 }
 0x41b   : > { %v5750_v62 = vrot.slane %v5736_v49, %v12505_v29 }
 0x41d   : > { %v12811_v46 = vcombine.low %v5743_v43, %v5750_v62 }
 0x428   : > { %v4586_v1 = vpop.xlane.xlu1 %4585 }
 0x429   : > { %v5086_v41 = vrot.slane %v4586_v1, %v12442_v38  ;;  %v5090_v32 = vrot.slane %v4586_v1, %v12445_v25  ;;  %v5094_v0 = vrot.slane %v4586_v1, %v12450_v53  ;;  %v5098_v15 = vrot.slane %v4586_v1, %v12465_v19 }
 0x42a   : > { %v5102_v16 = vrot.slane %v4586_v1, %v12471_v11  ;;  %v5106_v18 = vrot.slane %v4586_v1, %v12474_v6  ;;  %v5110_v35 = vrot.slane %v4586_v1, %v12477_v33  ;;  %v5114_v8 = vrot.slane %v4586_v1, %v12482_v27 }
 0x42b   : > { %v12807_v37 = vcombine.low %v5086_v41, %v5090_v32  ;;  %v12809_v22 = vcombine.low %v5094_v0, %v5098_v15 }
 0x42c   : > { %v6092_v44 = vpop.xlane.xlu1 %6091  ;;  %v12815_v21 = vcombine.low %v5102_v16, %v5106_v18  ;;  %v12817_v17 = vcombine.low %v5110_v35, %v5114_v8 }
 0x42d   : > { %v6367_v40 = vrot.slane %v6092_v44, %v12442_v38  ;;  %v6371_v59 = vrot.slane %v6092_v44, %v12445_v25  ;;  %v6375_v54 = vrot.slane %v6092_v44, %v12450_v53  ;;  %v6379_v23 = vrot.slane %v6092_v44, %v12465_v19 }
 0x42e   : > { %v6383_v13 = vrot.slane %v6092_v44, %v12471_v11  ;;  %v6387_v60 = vrot.slane %v6092_v44, %v12474_v6  ;;  %v6391_v34 = vrot.slane %v6092_v44, %v12477_v33  ;;  %v6395_v26 = vrot.slane %v6092_v44, %v12482_v27 }
 0x42f   : > { %v6876_v31 = vcombine.low %v6367_v40, %v6371_v59  ;;  %v6877_v63 = vcombine.low %v6375_v54, %v6379_v23  ;;  %v5860_v9 = vrot.slane %v12807_v37, %v12505_v29  ;;  %v5867_v36 = vrot.slane %v12809_v22, %v12505_v29 }
 0x430   : > { %v6126_v47 = vpop.xlane.xlu1 %6125  ;;  %v6878_v45 = vcombine.low %v6383_v13, %v6387_v60  ;;  %v6879_v12 = vcombine.low %v6391_v34, %v6395_v26  ;;  %v5874_v42 = vrot.slane %v12815_v21, %v12505_v29  ;;  %v5881_v30 = vrot.slane %v12817_v17, %v12505_v29 }
 0x431   : > { %v6886_v57 = vrot.slane %v6876_v31, %v12505_v29  ;;  %v6893_v7 = vrot.slane %v6877_v63, %v12505_v29  ;;  %v6431_v2 = vrot.slane %v6126_v47, %v12442_v38  ;;  %v6435_v24 = vrot.slane %v6126_v47, %v12445_v25 }
 0x432   : > { %v6900_v10 = vrot.slane %v6878_v45, %v12505_v29  ;;  %v6907_v39 = vrot.slane %v6879_v12, %v12505_v29  ;;  %v6439_v3 = vrot.slane %v6126_v47, %v12450_v53  ;;  %v6443_v20 = vrot.slane %v6126_v47, %v12465_v19 }
 0x433   : > { %v6908_v5 = vcombine.low %v6886_v57, %v6893_v7  ;;  %v6447_v49 = vrot.slane %v6126_v47, %v12471_v11  ;;  %v6451_v28 = vrot.slane %v6126_v47, %v12474_v6  ;;  %v6455_v55 = vrot.slane %v6126_v47, %v12477_v33 }
 0x434   : > { %v6143_v4 = vpop.xlane.xlu1 %6142  ;;  %v6909_v52 = vcombine.low %v6900_v10, %v6907_v39  ;;  %v6459_v14 = vrot.slane %v6126_v47, %v12482_v27  ;;  %v6974_v50 = vcombine.low %v6431_v2, %v6435_v24  ;;  %v6975_v1 = vcombine.low %v6439_v3, %v6443_v20 }
 0x435   : > { %v6916_v43 = vrot.slane %v6908_v5, %v12505_v29  ;;  %v6976_v62 = vcombine.low %v6447_v49, %v6451_v28  ;;  %v6463_v61 = vrot.slane %v6143_v4, %v12442_v38  ;;  %v6467_v56 = vrot.slane %v6143_v4, %v12445_v25 }
 0x436   : > { %v6923_v41 = vrot.slane %v6909_v52, %v12505_v29  ;;  %v6977_v32 = vcombine.low %v6455_v55, %v6459_v14  ;;  %v6984_v0 = vrot.slane %v6974_v50, %v12505_v29  ;;  %v6991_v15 = vrot.slane %v6975_v1, %v12505_v29 }
 0x437   : > { %v6998_v16 = vrot.slane %v6976_v62, %v12505_v29  ;;  %v6471_v18 = vrot.slane %v6143_v4, %v12450_v53  ;;  %v6475_v35 = vrot.slane %v6143_v4, %v12465_v19  ;;  %v6479_v8 = vrot.slane %v6143_v4, %v12471_v11 }
 0x438   : > { %v6160_v44 = vpop.xlane.xlu1 %6159  ;;  %v6924_v40 = vcombine.low %v6916_v43, %v6923_v41  ;;  %v7005_v59 = vrot.slane %v6977_v32, %v12505_v29  ;;  %v7006_v54 = vcombine.low %v6984_v0, %v6991_v15  ;;  %v6483_v23 = vrot.slane %v6143_v4, %v12474_v6 }
 0x439   : > { %v6487_v13 = vrot.slane %v6143_v4, %v12477_v33  ;;  %v6491_v60 = vrot.slane %v6143_v4, %v12482_v27  ;;  %v7023_v34 = vcombine.low %v6463_v61, %v6467_v56  ;;  %v7024_v26 = vcombine.low %v6471_v18, %v6475_v35 }
 0x43a   : > { %7661 = vperm.xlu1 %8700, %v6924_v40   ;;  %v7007_v31 = vcombine.low %v6998_v16, %v7005_v59  ;;  %v7014_v63 = vrot.slane %v7006_v54, %v12505_v29  ;;  %v7025_v47 = vcombine.low %v6479_v8, %v6483_v23  ;;  %v6495_v45 = vrot.slane %v6160_v44, %v12442_v38 }
 0x43b   : > { %v7026_v12 = vcombine.low %v6487_v13, %v6491_v60  ;;  %v7033_v57 = vrot.slane %v7023_v34, %v12505_v29  ;;  %v7040_v7 = vrot.slane %v7024_v26, %v12505_v29  ;;  %v6499_v2 = vrot.slane %v6160_v44, %v12445_v25 }
 0x43c   : > { %v7021_v24 = vrot.slane %v7007_v31, %v12505_v29  ;;  %v7047_v10 = vrot.slane %v7025_v47, %v12505_v29  ;;  %v6503_v39 = vrot.slane %v6160_v44, %v12450_v53  ;;  %v6507_v3 = vrot.slane %v6160_v44, %v12465_v19  ;;  %v12872_v5 = vpop.xlane.xlu1 %6193 }
 0x43d   : > { %v7054_v49 = vrot.slane %v7026_v12, %v12505_v29  ;;  %v7055_v28 = vcombine.low %v7033_v57, %v7040_v7  ;;  %v6511_v55 = vrot.slane %v6160_v44, %v12471_v11  ;;  %v6515_v4 = vrot.slane %v6160_v44, %v12474_v6 }
 0x43e   : > { %v7022_v52 = vcombine.low %v7014_v63, %v7021_v24  ;;  %v6519_v14 = vrot.slane %v6160_v44, %v12477_v33  ;;  %v6523_v50 = vrot.slane %v6160_v44, %v12482_v27  ;;  %v7072_v1 = vcombine.low %v6495_v45, %v6499_v2 }
 0x43f   : > { %v7056_v43 = vcombine.low %v7047_v10, %v7054_v49  ;;  %v7063_v62 = vrot.slane %v7055_v28, %v12505_v29  ;;  %v7073_v61 = vcombine.low %v6503_v39, %v6507_v3  ;;  %v7074_v56 = vcombine.low %v6511_v55, %v6515_v4 }
 0x440   : > { %7667 = vperm.xlu1 %8700, %v7022_v52   ;;  %v7075_v41 = vcombine.low %v6519_v14, %v6523_v50  ;;  %v7082_v32 = vrot.slane %v7072_v1, %v12505_v29  ;;  %v6559_v0 = vrot.slane %v12872_v5, %v12442_v38  ;;  %v6563_v15 = vrot.slane %v12872_v5, %v12445_v25 }
 0x441   : > { %v12870_v20 = vpop.xlane.xlu0 %4568  ;;  %v7070_v18 = vrot.slane %v7056_v43, %v12505_v29  ;;  %v7089_v35 = vrot.slane %v7073_v61, %v12505_v29  ;;  %v7096_v8 = vrot.slane %v7074_v56, %v12505_v29  ;;  %v6567_v44 = vrot.slane %v12872_v5, %v12450_v53 }
 0x442   : > { %v7103_v45 = vrot.slane %v7075_v41, %v12505_v29  ;;  %v6571_v24 = vrot.slane %v12872_v5, %v12465_v19 }
 0x443   : > { %v12898_v47 = vcombine.low %v7063_v62, %v7070_v18  ;;  %v7104_v2 = vcombine.low %v7082_v32, %v7089_v35 }
 0x444   : > { %v7105_v3 = vcombine.low %v7096_v8, %v7103_v45 }
 0x445   : > { %v6109_v16 = vpop.xlane.xlu0 %6108  ;;  %v7112_v4 = vrot.slane %v7104_v2, %v12505_v29  ;;  %v7171_v2 = vcombine.low %v6567_v44, %v6571_v24  ;;  %v6228_v24 = vpop.xlane.xlu1 %6227 }
 0x446   : > { %v6399_v40 = vrot.slane %v6109_v16, %v12442_v38  ;;  %v6403_v59 = vrot.slane %v6109_v16, %v12445_v25  ;;  %v6407_v54 = vrot.slane %v6109_v16, %v12450_v53  ;;  %v6411_v23 = vrot.slane %v6109_v16, %v12465_v19 }
 0x447   : > { %v6415_v13 = vrot.slane %v6109_v16, %v12471_v11  ;;  %v6419_v60 = vrot.slane %v6109_v16, %v12474_v6  ;;  %v6423_v34 = vrot.slane %v6109_v16, %v12477_v33  ;;  %v6427_v26 = vrot.slane %v6109_v16, %v12482_v27 }
 0x448   : > { %v6925_v31 = vcombine.low %v6399_v40, %v6403_v59  ;;  %v6926_v63 = vcombine.low %v6407_v54, %v6411_v23  ;;  %v7119_v50 = vrot.slane %v7105_v3, %v12505_v29  ;;  %v6575_v54 = vrot.slane %v12872_v5, %v12471_v11 }
 0x449   : > { %v6177_v12 = vpop.xlane.xlu0 %6176  ;;  %v6927_v57 = vcombine.low %v6415_v13, %v6419_v60  ;;  %v6928_v7 = vcombine.low %v6423_v34, %v6427_v26  ;;  %v6579_v34 = vrot.slane %v12872_v5, %v12474_v6  ;;  %v6583_v26 = vrot.slane %v12872_v5, %v12477_v33 }
 0x44a   : > { %v6935_v10 = vrot.slane %v6925_v31, %v12505_v29  ;;  %v6942_v39 = vrot.slane %v6926_v63, %v12505_v29  ;;  %v6527_v49 = vrot.slane %v6177_v12, %v12442_v38  ;;  %v6531_v52 = vrot.slane %v6177_v12, %v12445_v25 }
 0x44b   : > { %v6949_v28 = vrot.slane %v6927_v57, %v12505_v29  ;;  %v6956_v55 = vrot.slane %v6928_v7, %v12505_v29  ;;  %v6535_v1 = vrot.slane %v6177_v12, %v12450_v53  ;;  %v6539_v43 = vrot.slane %v6177_v12, %v12465_v19 }
 0x44c   : > { %v6957_v14 = vcombine.low %v6935_v10, %v6942_v39  ;;  %v6543_v61 = vrot.slane %v6177_v12, %v12471_v11  ;;  %v6547_v56 = vrot.slane %v6177_v12, %v12474_v6  ;;  %v6551_v41 = vrot.slane %v6177_v12, %v12477_v33 }
 0x44d   : > { %v6958_v62 = vcombine.low %v6949_v28, %v6956_v55  ;;  %v7120_v16 = vcombine.low %v7112_v4, %v7119_v50  ;;  %v6555_v18 = vrot.slane %v6177_v12, %v12482_v27  ;;  %v7121_v35 = vcombine.low %v6527_v49, %v6531_v52  ;;  %v6211_v23 = vpop.xlane.xlu0 %6210 }
 0x44e   : > { %v6965_v32 = vrot.slane %v6957_v14, %v12505_v29  ;;  %v7122_v40 = vcombine.low %v6535_v1, %v6539_v43  ;;  %v7123_v59 = vcombine.low %v6543_v61, %v6547_v56  ;;  %v6587_v12 = vrot.slane %v12872_v5, %v12482_v27 }
 0x44f   : > { %v6972_v8 = vrot.slane %v6958_v62, %v12505_v29  ;;  %7673 = vperm.xlu1 %8700, %v7120_v16   ;;  %v7124_v13 = vcombine.low %v6551_v41, %v6555_v18  ;;  %v7131_v60 = vrot.slane %v7121_v35, %v12505_v29  ;;  %v7170_v7 = vcombine.low %v6559_v0, %v6563_v15 }
 0x450   : > { %v7138_v63 = vrot.slane %v7122_v40, %v12505_v29  ;;  %v7145_v45 = vrot.slane %v7123_v59, %v12505_v29  ;;  %v7172_v10 = vcombine.low %v6575_v54, %v6579_v34  ;;  %v7173_v3 = vcombine.low %v6583_v26, %v6587_v12 }
 0x451   : > { %v6973_v31 = vcombine.low %v6965_v32, %v6972_v8  ;;  %v7152_v57 = vrot.slane %v7124_v13, %v12505_v29  ;;  %v6591_v49 = vrot.slane %v6211_v23, %v12442_v38  ;;  %v6595_v28 = vrot.slane %v6211_v23, %v12445_v25 }
 0x452   : > { %v7153_v39 = vcombine.low %v7131_v60, %v7138_v63  ;;  %v7180_v4 = vrot.slane %v7170_v7, %v12505_v29  ;;  %v7187_v52 = vrot.slane %v7171_v2, %v12505_v29  ;;  %v7194_v14 = vrot.slane %v7172_v10, %v12505_v29  ;;  %v6245_v60 = vpop.xlane.xlu0 %6244 }
 0x453   : > { %7664 = vperm.xlu0 %8699, %v6973_v31   ;;  %v7154_v55 = vcombine.low %v7145_v45, %v7152_v57  ;;  %v7201_v0 = vrot.slane %v7173_v3, %v12505_v29  ;;  %v6599_v15 = vrot.slane %v6211_v23, %v12450_v53  ;;  %v6603_v44 = vrot.slane %v6211_v23, %v12465_v19 }
 0x454   : > { %v7161_v5 = vrot.slane %v7153_v39, %v12505_v29  ;;  %v7202_v1 = vcombine.low %v7180_v4, %v7187_v52  ;;  %v6607_v43 = vrot.slane %v6211_v23, %v12471_v11  ;;  %v6611_v62 = vrot.slane %v6211_v23, %v12474_v6 }
 0x455   : > { %v7168_v50 = vrot.slane %v7154_v55, %v12505_v29  ;;  %v7203_v61 = vcombine.low %v7194_v14, %v7201_v0  ;;  %v6615_v56 = vrot.slane %v6211_v23, %v12477_v33  ;;  %v6619_v41 = vrot.slane %v6211_v23, %v12482_v27 }
 0x456   : > { %v7219_v32 = vcombine.low %v6591_v49, %v6595_v28  ;;  %v7210_v18 = vrot.slane %v7202_v1, %v12505_v29  ;;  %v7220_v35 = vcombine.low %v6599_v15, %v6603_v44  ;;  %v7221_v8 = vcombine.low %v6607_v43, %v6611_v62 }
 0x457   : > { %7670 = vperm.xlu0 %8699, %v12898_v47   ;;  %v7169_v16 = vcombine.low %v7161_v5, %v7168_v50  ;;  %v7217_v40 = vrot.slane %v7203_v61, %v12505_v29  ;;  %v7222_v59 = vcombine.low %v6615_v56, %v6619_v41  ;;  %v6623_v13 = vrot.slane %v6228_v24, %v12442_v38 }
 0x458   : > { %v7229_v54 = vrot.slane %v7219_v32, %v12505_v29  ;;  %v7236_v47 = vrot.slane %v7220_v35, %v12505_v29  ;;  %v7243_v34 = vrot.slane %v7221_v8, %v12505_v29  ;;  %v6627_v23 = vrot.slane %v6228_v24, %v12445_v25 }
 0x459   : > { %v6631_v26 = vrot.slane %v6228_v24, %v12450_v53  ;;  %v7218_v31 = vcombine.low %v7210_v18, %v7217_v40  ;;  %v7250_v63 = vrot.slane %v7222_v59, %v12505_v29  ;;  %v6635_v45 = vrot.slane %v6228_v24, %v12465_v19 }
 0x45a   : > { %v6639_v12 = vrot.slane %v6228_v24, %v12471_v11  ;;  %v7251_v57 = vcombine.low %v7229_v54, %v7236_v47  ;;  %v6643_v7 = vrot.slane %v6228_v24, %v12474_v6  ;;  %v6647_v2 = vrot.slane %v6228_v24, %v12477_v33 }
 0x45b   : > { %7676 = vperm.xlu0 %8699, %v7169_v16   ;;  %v6651_v10 = vrot.slane %v6228_v24, %v12482_v27  ;;  %7679 = vperm.xlu1 %8700, %v7218_v31   ;;  %v7252_v39 = vcombine.low %v7243_v34, %v7250_v63  ;;  %v7268_v3 = vcombine.low %v6623_v13, %v6627_v23  ;;  %v6262_v24 = vpop.xlane.xlu1 %6261  ;;  %v6279_v31 = vpop.xlane.xlu0 %6278 }
 0x45c   : > { %v7269_v49 = vcombine.low %v6631_v26, %v6635_v45  ;;  %v6655_v28 = vrot.slane %v6245_v60, %v12442_v38  ;;  %v7259_v55 = vrot.slane %v7251_v57, %v12505_v29  ;;  %v7270_v4 = vcombine.low %v6639_v12, %v6643_v7 }
 0x45d   : > { %v7271_v52 = vcombine.low %v6647_v2, %v6651_v10  ;;  %v6659_v14 = vrot.slane %v6245_v60, %v12445_v25  ;;  %v7266_v5 = vrot.slane %v7252_v39, %v12505_v29  ;;  %v7278_v0 = vrot.slane %v7268_v3, %v12505_v29 }
 0x45e   : > { %v7285_v15 = vrot.slane %v7269_v49, %v12505_v29  ;;  %v6663_v44 = vrot.slane %v6245_v60, %v12450_v53  ;;  %v7292_v50 = vrot.slane %v7270_v4, %v12505_v29  ;;  %v6667_v43 = vrot.slane %v6245_v60, %v12465_v19 }
 0x45f   : > { %v7299_v1 = vrot.slane %v7271_v52, %v12505_v29  ;;  %v6671_v62 = vrot.slane %v6245_v60, %v12471_v11  ;;  %v7267_v61 = vcombine.low %v7259_v55, %v7266_v5  ;;  %v6675_v41 = vrot.slane %v6245_v60, %v12474_v6 }
 0x460   : > { %v7300_v56 = vcombine.low %v7278_v0, %v7285_v15  ;;  %v6679_v32 = vrot.slane %v6245_v60, %v12477_v33  ;;  %v6683_v18 = vrot.slane %v6245_v60, %v12482_v27  ;;  %v7317_v35 = vcombine.low %v6655_v28, %v6659_v14 }
 0x461   : > { %v7301_v16 = vcombine.low %v7292_v50, %v7299_v1  ;;  %v7318_v8 = vcombine.low %v6663_v44, %v6667_v43  ;;  %7682 = vperm.xlu0 %8699, %v7267_v61   ;;  %v7319_v59 = vcombine.low %v6671_v62, %v6675_v41  ;;  %v6687_v54 = vrot.slane %v6262_v24, %v12442_v38  ;;  %v6296_v62 = vpop.xlane.xlu1 %6295 }
 0x462   : > { %v7308_v40 = vrot.slane %v7300_v56, %v12505_v29  ;;  %v6691_v13 = vrot.slane %v6262_v24, %v12445_v25  ;;  %v7320_v34 = vcombine.low %v6679_v32, %v6683_v18  ;;  %v7327_v23 = vrot.slane %v7317_v35, %v12505_v29 }
 0x463   : > { %v7315_v47 = vrot.slane %v7301_v16, %v12505_v29  ;;  %v7334_v26 = vrot.slane %v7318_v8, %v12505_v29  ;;  %v7341_v60 = vrot.slane %v7319_v59, %v12505_v29  ;;  %v6695_v63 = vrot.slane %v6262_v24, %v12450_v53 }
 0x464   : > { %v6699_v45 = vrot.slane %v6262_v24, %v12465_v19  ;;  %v6703_v12 = vrot.slane %v6262_v24, %v12471_v11  ;;  %v7348_v7 = vrot.slane %v7320_v34, %v12505_v29  ;;  %v6707_v10 = vrot.slane %v6262_v24, %v12474_v6 }
 0x465   : > { %v7316_v57 = vcombine.low %v7308_v40, %v7315_v47  ;;  %v7349_v2 = vcombine.low %v7327_v23, %v7334_v26  ;;  %v6711_v39 = vrot.slane %v6262_v24, %v12477_v33  ;;  %v6715_v3 = vrot.slane %v6262_v24, %v12482_v27 }
 0x466   : > { %v7366_v49 = vcombine.low %v6687_v54, %v6691_v13  ;;  %v7367_v28 = vcombine.low %v6695_v63, %v6699_v45  ;;  %v7350_v55 = vcombine.low %v7341_v60, %v7348_v7  ;;  %v7368_v52 = vcombine.low %v6703_v12, %v6707_v10  ;;  %v6313_v45 = vpop.xlane.xlu0 %6312 }
 0x467   : > { %7685 = vperm.xlu1 %8700, %v7316_v57   ;;  %v7357_v4 = vrot.slane %v7349_v2, %v12505_v29  ;;  %v6719_v14 = vrot.slane %v6279_v31, %v12442_v38  ;;  %v7369_v5 = vcombine.low %v6711_v39, %v6715_v3  ;;  %v6723_v44 = vrot.slane %v6279_v31, %v12445_v25 }
 0x468   : > { %v7376_v0 = vrot.slane %v7366_v49, %v12505_v29  ;;  %v7383_v15 = vrot.slane %v7367_v28, %v12505_v29  ;;  %v7364_v50 = vrot.slane %v7350_v55, %v12505_v29  ;;  %v7390_v24 = vrot.slane %v7368_v52, %v12505_v29 }
 0x469   : > { %v6727_v1 = vrot.slane %v6279_v31, %v12450_v53  ;;  %v6731_v43 = vrot.slane %v6279_v31, %v12465_v19  ;;  %v7397_v61 = vrot.slane %v7369_v5, %v12505_v29  ;;  %v6735_v41 = vrot.slane %v6279_v31, %v12471_v11 }
 0x46a   : > { %v7398_v56 = vcombine.low %v7376_v0, %v7383_v15  ;;  %v6739_v32 = vrot.slane %v6279_v31, %v12474_v6  ;;  %v7365_v16 = vcombine.low %v7357_v4, %v7364_v50  ;;  %v6743_v18 = vrot.slane %v6279_v31, %v12477_v33 }
 0x46b   : > { %5930 = vperm.xlu1 %8700, %v12803_v58   ;;  %v6747_v35 = vrot.slane %v6279_v31, %v12482_v27  ;;  %v7415_v8 = vcombine.low %v6719_v14, %v6723_v44  ;;  %v7399_v40 = vcombine.low %v7390_v24, %v7397_v61  ;;  %v7416_v54 = vcombine.low %v6727_v1, %v6731_v43 }
 0x46c   : > { %v7406_v59 = vrot.slane %v7398_v56, %v12505_v29  ;;  %v7417_v13 = vcombine.low %v6735_v41, %v6739_v32  ;;  %7688 = vperm.xlu0 %8699, %v7365_v16   ;;  %v6751_v23 = vrot.slane %v6296_v62, %v12442_v38  ;;  %v6755_v26 = vrot.slane %v6296_v62, %v12445_v25 }
 0x46d   : > { %v7418_v47 = vcombine.low %v6743_v18, %v6747_v35  ;;  %v7425_v34 = vrot.slane %v7415_v8, %v12505_v29  ;;  %v7413_v58 = vrot.slane %v7399_v40, %v12505_v29  ;;  %v7432_v60 = vrot.slane %v7416_v54, %v12505_v29 }
 0x46e   : > { %v7439_v31 = vrot.slane %v7417_v13, %v12505_v29  ;;  %v6759_v63 = vrot.slane %v6296_v62, %v12450_v53  ;;  %v6763_v57 = vrot.slane %v6296_v62, %v12465_v19  ;;  %v6767_v7 = vrot.slane %v6296_v62, %v12471_v11 }
 0x46f   : > { %5933 = vperm.xlu1 %8700, %v12805_v51   ;;  %v7446_v12 = vrot.slane %v7418_v47, %v12505_v29  ;;  %v6771_v2 = vrot.slane %v6296_v62, %v12474_v6  ;;  %v7414_v10 = vcombine.low %v7406_v59, %v7413_v58  ;;  %v7447_v39 = vcombine.low %v7425_v34, %v7432_v60 }
 0x470   : > { %v6775_v3 = vrot.slane %v6296_v62, %v12477_v33  ;;  %v6779_v49 = vrot.slane %v6296_v62, %v12482_v27  ;;  %v7464_v55 = vcombine.low %v6751_v23, %v6755_v26  ;;  %v7465_v4 = vcombine.low %v6759_v63, %v6763_v57  ;;  %v6330_v26 = vpop.xlane.xlu1 %6329 }
 0x471   : > { %v7448_v28 = vcombine.low %v7439_v31, %v7446_v12  ;;  %v7466_v52 = vcombine.low %v6767_v7, %v6771_v2  ;;  %7691 = vperm.xlu0 %8699, %v7414_v10   ;;  %v7455_v51 = vrot.slane %v7447_v39, %v12505_v29  ;;  %v6783_v5 = vrot.slane %v6313_v45, %v12442_v38 }
 0x472   : > { %v7467_v14 = vcombine.low %v6775_v3, %v6779_v49  ;;  %v6787_v0 = vrot.slane %v6313_v45, %v12445_v25  ;;  %v7474_v44 = vrot.slane %v7464_v55, %v12505_v29  ;;  %v7481_v50 = vrot.slane %v7465_v4, %v12505_v29 }
 0x473   : > { %v7462_v15 = vrot.slane %v7448_v28, %v12505_v29  ;;  %5936 = vperm.xlu1 %8700, %v12811_v46   ;;  %v7488_v24 = vrot.slane %v7466_v52, %v12505_v29  ;;  %v6791_v43 = vrot.slane %v6313_v45, %v12450_v53  ;;  %v6795_v62 = vrot.slane %v6313_v45, %v12465_v19 }
 0x474   : > { %v7495_v1 = vrot.slane %v7467_v14, %v12505_v29  ;;  %v6799_v61 = vrot.slane %v6313_v45, %v12471_v11  ;;  %v7496_v41 = vcombine.low %v7474_v44, %v7481_v50  ;;  %v6803_v32 = vrot.slane %v6313_v45, %v12474_v6 }
 0x475   : > { %v7463_v56 = vcombine.low %v7455_v51, %v7462_v15  ;;  %v6807_v46 = vrot.slane %v6313_v45, %v12477_v33  ;;  %v6811_v18 = vrot.slane %v6313_v45, %v12482_v27  ;;  %v7513_v35 = vcombine.low %v6783_v5, %v6787_v0 }
 0x476   : > { %v7497_v16 = vcombine.low %v7488_v24, %v7495_v1  ;;  %v7514_v8 = vcombine.low %v6791_v43, %v6795_v62  ;;  %v7504_v40 = vrot.slane %v7496_v41, %v12505_v29  ;;  %v7515_v59 = vcombine.low %v6799_v61, %v6803_v32  ;;  %v6347_v41 = vpop.xlane.xlu0 %6346 }
 0x477   : > { %7694 = vperm.xlu0 %8699, %v7463_v56   ;;  %5939 = vperm.xlu1 %8700, %v12813_v48   ;;  %v5054_v54 = vrot.slane %v12870_v20, %v12442_v38  ;;  %v7516_v47 = vcombine.low %v6807_v46, %v6811_v18  ;;  %v7523_v34 = vrot.slane %v7513_v35, %v12505_v29 }
 0x478   : > { %v7511_v13 = vrot.slane %v7497_v16, %v12505_v29  ;;  %v7530_v23 = vrot.slane %v7514_v8, %v12505_v29  ;;  %v7537_v58 = vrot.slane %v7515_v59, %v12505_v29  ;;  %v5058_v60 = vrot.slane %v12870_v20, %v12445_v25 }
 0x479   : > { %v5062_v48 = vrot.slane %v12870_v20, %v12450_v53  ;;  %v5066_v31 = vrot.slane %v12870_v20, %v12465_v19  ;;  %v7544_v45 = vrot.slane %v7516_v47, %v12505_v29  ;;  %v5070_v57 = vrot.slane %v12870_v20, %v12471_v11 }
 0x47a   : > { %v7512_v63 = vcombine.low %v7504_v40, %v7511_v13  ;;  %v7545_v12 = vcombine.low %v7523_v34, %v7530_v23  ;;  %v5074_v7 = vrot.slane %v12870_v20, %v12474_v6  ;;  %v5078_v2 = vrot.slane %v12870_v20, %v12477_v33 }
 0x47b   : > { %v5082_v10 = vrot.slane %v12870_v20, %v12482_v27  ;;  %v5801_v39 = vcombine.low %v5054_v54, %v5058_v60  ;;  %v7546_v3 = vcombine.low %v7537_v58, %v7544_v45  ;;  %v5802_v28 = vcombine.low %v5062_v48, %v5066_v31 }
 0x47c   : > { %7697 = vperm.xlu0 %8699, %v7512_v63   ;;  %v7553_v49 = vrot.slane %v7545_v12, %v12505_v29  ;;  %v6815_v55 = vrot.slane %v6330_v26, %v12442_v38  ;;  %v5803_v4 = vcombine.low %v5070_v57, %v5074_v7  ;;  %v6819_v14 = vrot.slane %v6330_v26, %v12445_v25 }
 0x47d   : > { %v5804_v52 = vcombine.low %v5078_v2, %v5082_v10  ;;  %v5811_v51 = vrot.slane %v5801_v39, %v12505_v29  ;;  %v7560_v5 = vrot.slane %v7546_v3, %v12505_v29  ;;  %v5818_v0 = vrot.slane %v5802_v28, %v12505_v29 }
 0x47e   : > { %v6823_v20 = vrot.slane %v6330_v26, %v12450_v53  ;;  %v6827_v15 = vrot.slane %v6330_v26, %v12465_v19  ;;  %v5825_v44 = vrot.slane %v5803_v4, %v12505_v29  ;;  %v6831_v24 = vrot.slane %v6330_v26, %v12471_v11 }
 0x47f   : > { %v5832_v50 = vrot.slane %v5804_v52, %v12505_v29  ;;  %v6835_v1 = vrot.slane %v6330_v26, %v12474_v6  ;;  %v7561_v43 = vcombine.low %v7553_v49, %v7560_v5  ;;  %v5833_v62 = vcombine.low %v5811_v51, %v5818_v0  ;;  %v5904_v49 = vpop.permute.xlu1 %5903 }
 0x480   : > { %v6839_v61 = vrot.slane %v6330_v26, %v12477_v33  ;;  %v6843_v56 = vrot.slane %v6330_v26, %v12482_v27  ;;  %v7562_v46 = vcombine.low %v6815_v55, %v6819_v14  ;;  %v7563_v16 = vcombine.low %v6823_v20, %v6827_v15  ;;  %v5901_v14 = vpop.permute.xlu0 %5900 }
 0x481   : > { %v5834_v32 = vcombine.low %v5825_v44, %v5832_v50  ;;  %v7564_v18 = vcombine.low %v6831_v24, %v6835_v1  ;;  %7700 = vperm.xlu0 %8699, %v7561_v43   ;;  %v5841_v35 = vrot.slane %v5833_v62, %v12505_v29  ;;  %v5882_v40 = vcombine.low %v5860_v9, %v5867_v36 }
 0x482   : > { %v7565_v8 = vcombine.low %v6839_v61, %v6843_v56  ;;  %v5883_v59 = vcombine.low %v5874_v42, %v5881_v30  ;;  %v7572_v13 = vrot.slane %v7562_v46, %v12505_v29  ;;  %v7579_v47 = vrot.slane %v7563_v16, %v12505_v29 }
 0x483   : > { %v5848_v54 = vrot.slane %v5834_v32, %v12505_v29  ;;  %v7586_v34 = vrot.slane %v7564_v18, %v12505_v29  ;;  %v5890_v37 = vrot.slane %v5882_v40, %v12505_v29  ;;  %v6847_v17 = vrot.slane %v6347_v41, %v12442_v38  ;;  %v5907_v28 = vpop.permute.xlu1 %5906 }
 0x484   : > { %v7593_v22 = vrot.slane %v7565_v8, %v12505_v29  ;;  %v5897_v9 = vrot.slane %v5883_v59, %v12505_v29  ;;  %v7594_v23 = vcombine.low %v7572_v13, %v7579_v47  ;;  %v6851_v21 = vrot.slane %v6347_v41, %v12445_v25  ;;  %v13110_v0 = vpop.permute.xlu0 %5918  ;;  %v13578_v59 = vld [vmem:[#allocation9_spill] sm:$0xff] }
 0x485   : > { %v5849_v36 = vcombine.low %v5841_v35, %v5848_v54  ;;  %v6855_v42 = vrot.slane %v6347_v41, %v12450_v53  ;;  %v6859_v26 = vrot.slane %v6347_v41, %v12465_v19  ;;  %v6863_v58 = vrot.slane %v6347_v41, %v12471_v11 }
 0x486   : > { %v7595_v30 = vcombine.low %v7586_v34, %v7593_v22  ;;  %v7602_v60 = vrot.slane %v7594_v23, %v12505_v29  ;;  %v6867_v48 = vrot.slane %v6347_v41, %v12474_v6  ;;  %v6871_v31 = vrot.slane %v6347_v41, %v12477_v33 }
 0x487   : > { %5942 = vperm.xlu1 %8700, %v5849_v36   ;;  %v6875_v38 = vrot.slane %v6347_v41, %v12482_v27  ;;  %v7611_v45 = vcombine.low %v6847_v17, %v6851_v21  ;;  %v7612_v25 = vcombine.low %v6855_v42, %v6859_v26  ;;  %v5898_v12 = vcombine.low %v5890_v37, %v5897_v9  ;;  %v5910_v55 = vpop.permute.xlu1 %5909 }
 0x488   : > { %v7609_v63 = vrot.slane %v7595_v30, %v12505_v29  ;;  %v7613_v53 = vcombine.low %v6863_v58, %v6867_v48  ;;  %v13114_v15 = vpop.permute.xlu0 %5927  ;;  %v13577_v41 = vlaneseq }
 0x489   : > { %v7614_v57 = vcombine.low %v6871_v31, %v6875_v38  ;;  %v7621_v19 = vrot.slane %v7611_v45, %v12505_v29  ;;  %v7628_v11 = vrot.slane %v7612_v25, %v12505_v29 }
 0x48a   : > { %v7610_v7 = vcombine.low %v7602_v60, %v7609_v63  ;;  %v7635_v2 = vrot.slane %v7613_v53, %v12505_v29  ;;  %v13133_v32 = vand.u32 127, %v13577_v41 }
 0x48b   : > { %5945 = vperm.xlu1 %8700, %v5898_v12   ;;  %v7642_v6 = vrot.slane %v7614_v57, %v12505_v29  ;;  %v7643_v33 = vcombine.low %v7621_v19, %v7628_v11  ;;  %v5913_v4 = vpop.permute.xlu1 %5912 }
 0x48c   : > { %7703 = vperm.xlu0 %8699, %v7610_v7   ;;  %v5953_v46 = vadd.s32 4294967288, %v13133_v32  ;;  %v5960_v16 = vadd.s32 4294967280, %v13133_v32  ;;  %v5967_v8 = vadd.s32 4294967272, %v13133_v32  ;;  %v5974_v40 = vadd.s32 4294967264, %v13133_v32 }
 0x48d   : > { %v7644_v27 = vcombine.low %v7635_v2, %v7642_v6  ;;  %v7651_v10 = vrot.slane %v7643_v33, %v12505_v29  ;;  %v5951_v13 = vsub.s32 %v13133_v32, %v13578_v59  ;;  %v5981_v47 = vadd.s32 4294967256, %v13133_v32 }
 0x48e   : > { %v5956_v54 = vsub.s32 %v5953_v46, %v13578_v59  ;;  %v5963_v34 = vsub.s32 %v5960_v16, %v13578_v59  ;;  %v5970_v22 = vsub.s32 %v5967_v8, %v13578_v59  ;;  %v13150_v37 = vsub.s32 %v5974_v40, %v13578_v59 }
 0x48f   : > { %v7658_v39 = vrot.slane %v7644_v27, %v12505_v29  ;;  %v5916_v52 = vpop.permute.xlu1 %5915  ;;  %v5995_v9 = vadd.s32 4294967240, %v13133_v32  ;;  %v5952_v21 = vrot.slane %v5901_v14, %v5951_v13  ;;  %v13158_v42 = vsub.s32 %v5981_v47, %v13578_v59 }
 0x490   : > { %v5957_v23 = vrot.slane %v5904_v49, %v5956_v54  ;;  %v5964_v30 = vrot.slane %v5907_v28, %v5963_v34  ;;  %v5988_v26 = vadd.s32 4294967248, %v13133_v32  ;;  %v6002_v58 = vadd.s32 4294967232, %v13133_v32 }
 0x491   : > { %v7659_v3 = vcombine.low %v7651_v10, %v7658_v39  ;;  %v5971_v60 = vrot.slane %v5910_v55, %v5970_v22  ;;  %v5978_v48 = vrot.slane %v5913_v4, %v13150_v37  ;;  %v6009_v31 = vadd.s32 4294967224, %v13133_v32 }
 0x492   : > { %v13165_v38 = vsub.s32 %v5995_v9, %v13578_v59  ;;  %v5959_v63 = vsel %vm5958_vm0, %v5957_v23, %v5952_v21  ;;  %v5985_v45 = vrot.slane %v5916_v52, %v13158_v42  ;;  %v5991_v12 = vsub.s32 %v5988_v26, %v13578_v59 }
 0x493   : > { %7706 = vperm.xlu0 %8699, %v7659_v3   ;;  %v13106_v51 = vpop.permute.xlu1 %5921  ;;  %v5966_v25 = vsel %vm5965_vm1, %v5964_v30, %v5959_v63  ;;  %v13172_v53 = vsub.s32 %v6002_v58, %v13578_v59  ;;  %v13179_v2 = vsub.s32 %v6009_v31, %v13578_v59  ;;  %v6016_v33 = vadd.s32 4294967216, %v13133_v32 }
 0x494   : > { %v5973_v19 = vsel %vm5972_vm2, %v5971_v60, %v5966_v25  ;;  %v5999_v6 = vrot.slane %v13106_v51, %v13165_v38  ;;  %v6023_v3 = vadd.s32 4294967208, %v13133_v32  ;;  %v5992_v49 = vrot.slane %v13110_v0, %v5991_v12 }
 0x495   : > { %v5980_v11 = vsel %vm5979_vm3, %v5978_v48, %v5973_v19  ;;  %v6030_v4 = vadd.s32 4294967200, %v13133_v32  ;;  %v6037_v51 = vadd.s32 4294967192, %v13133_v32  ;;  %v6013_v16 = vrot.slane %v13114_v15, %v13179_v2 }
 0x496   : > { %v5987_v27 = vsel %vm5986_vm4, %v5985_v45, %v5980_v11 }
 0x497   : > { %v13108_v5 = vpop.permute.xlu1 %5924  ;;  %v5994_v14 = vsel %vm5993_vm5, %v5992_v49, %v5987_v27  ;;  %v6033_v40 = vsub.s32 %v6030_v4, %v13578_v59  ;;  %v6040_v47 = vsub.s32 %v6037_v51, %v13578_v59 }
 0x498   : > { %v6006_v28 = vrot.slane %v13108_v5, %v13172_v53  ;;  %v6044_v5 = vadd.s32 4294967184, %v13133_v32 }
 0x49a   : > { %v6047_v9 = vsub.s32 %v6044_v5, %v13578_v59  ;;  %v7813_v5 = vld [vmem:[%s13455_s4 + $0x8] sm:$0xff] (!%p8445_p12) }
 0x4b9   : > { %v13112_v20 = vpop.permute.xlu1 %7661 }
 0x4ba   : > { %v7711_v10 = vrot.slane %v13112_v20, %v5951_v13 }
 0x4bf   : > { %v13118_v50 = vpop.permute.xlu1 %7667 }
 0x4c0   : > { %v7720_v55 = vrot.slane %v13118_v50, %v5963_v34  ;;  %v6001_v50 = vsel %vm6000_vm6, %v5999_v6, %v5994_v14  ;;  %v6051_v34 = vadd.s32 4294967176, %v13133_v32 }
 0x4c1   : > { %v6008_v8 = vsel %vm6007_vm7, %v6006_v28, %v6001_v50  ;;  %v7814_v50 = vld [vmem:[%s13455_s4 + $0x10] sm:$0xff] (!%p8445_p12) }
 0x4c2   : > { %v6015_v21 = vsel %vm6014_vm8, %v6013_v16, %v6008_v8  ;;  %v7815_v16 = vld [vmem:[%s13455_s4 + $0x18] sm:$0xff] (!%p8445_p12)  ;;  %v8779_v8 = vmov (!%p8445_p12), 0.0  }
 0x4c3   : > { %8524 = vmatprep.mubr.msk.f32.mxu0 (!%p8445_p12), %vm8778_vm15, %v8779_v8  ;;  %8531 = vmatprep.mubr.msk.f32.mxu1 (!%p8445_p12), %vm8778_vm15, %v8779_v8 }
 0x4ce   : > { %v13122_v1 = vpop.permute.xlu1 %7673 }
 0x4cf   : > { %v7730_v20 = vrot.slane %v13122_v1, %v13150_v37 }
 0x4d2   : > { %v13116_v44 = vpop.permute.xlu0 %7664 }
 0x4d3   : > { %v7715_v39 = vrot.slane %v13116_v44, %v5956_v54  ;;  %v6019_v44 = vsub.s32 %v6016_v33, %v13578_v59 }
 0x4d5   : > { %v7716_v46 = vsel %vm5958_vm0, %v7715_v39, %v7711_v10  ;;  %vm7901_vm0 = vcmask (!%p8445_p12), 130048  }
 0x4d6   : > { %v13120_v24 = vpop.permute.xlu0 %7670  ;;  %v7721_v1 = vsel %vm5965_vm1, %v7720_v55, %v7716_v46  ;;  %v8777_v46 = vmov (!%p8445_p12), 0.0|0.0   ;;  %vm8078_vm1 = vcmask (!%p8445_p12), 261120  }
 0x4d7   : > { %v7725_v52 = vrot.slane %v13120_v24, %v5970_v22  ;;  %v6026_v24 = vsub.s32 %v6023_v3, %v13578_v59  ;;  %8569 = vmatprep.subr.bf16.mxu0 (!%p8445_p12), %v8777_v46  ;;  %8593 = vmatprep.subr.bf16.mxu1 (!%p8445_p12), %v8777_v46 }
 0x4d9   : > { %v7726_v54 = vsel %vm5972_vm2, %v7725_v52, %v7721_v1  ;;  %v8573_v1 = vpack.c.bf16 (!%p8445_p12), %v7815_v16, %v7814_v50  ;;  %v8062_v50 = vld [vmem:[%s13458_s7] sm:$0xff] (!%p8445_p12) }
 0x4da   : > { %v13124_v43 = vpop.permute.xlu0 %7676  ;;  %v13126_v62 = vpop.permute.xlu1 %7679  ;;  %v7731_v22 = vsel %vm5979_vm3, %v7730_v20, %v7726_v54  ;;  %v6075_v20 = vld [vmem:[#allocation3] sm:$0x1]  ;;  %v7817_v54 = vld [vmem:[%s13455_s4 + $0x28] sm:$0xff] (!%p8445_p12) }
 0x4db   : > { %v7735_v13 = vrot.slane %v13124_v43, %v13158_v42  ;;  %v7740_v37 = vrot.slane %v13126_v62, %v5991_v12 }
 0x4dd   : > { %v7736_v32 = vsel %vm5986_vm4, %v7735_v13, %v7731_v22 }
 0x4de   : > { %v7741_v58 = vsel %vm5993_vm5, %v7740_v37, %v7736_v32  ;;  %v7820_v37 = vld [vmem:[%s13455_s4 + $0x40] sm:$0xff] (!%p8445_p12) }
 0x4e0   : > { %v13128_v61 = vpop.permute.xlu0 %7682 }
 0x4e1   : > { %v7745_v62 = vrot.slane %v13128_v61, %v13165_v38 }
 0x4e3   : > { %v7746_v61 = vsel %vm6000_vm6, %v7745_v62, %v7741_v58 }
 0x4e6   : > { %v13130_v56 = vpop.permute.xlu1 %7685 }
 0x4ea   : > { %v13139_v35 = vpop.permute.xlu1 %5930 }
 0x4eb   : > { %v13137_v18 = vpop.permute.xlu0 %7688  ;;  %v6020_v15 = vrot.slane %v13139_v35, %v6019_v44  ;;  %v6054_v35 = vsub.s32 %v6051_v34, %v13578_v59  ;;  %v7819_v34 = vld [vmem:[%s13455_s4 + $0x38] sm:$0xff] (!%p8445_p12) }
 0x4ec   : > { %v7755_v59 = vrot.slane %v13137_v18, %v13179_v2  ;;  %v4314_v2 = vld [vmem:[#allocation2] sm:$0x1] }
 0x4ed   : > { %v6022_v60 = vsel %vm6021_vm9, %v6020_v15, %v6015_v21  ;;  %v7821_v15 = vld [vmem:[%s13455_s4 + $0x48] sm:$0xff] (!%p8445_p12)  ;;  %v7823_v21 = vld [vmem:[%s13455_s4 + $0x58] sm:$0xff] (!%p8445_p12) }
 0x4ee   : > { %v13155_v36 = vpop.permute.xlu1 %5933 }
 0x4ef   : > { %v6027_v23 = vrot.slane %v13155_v36, %v6026_v24  ;;  %v7750_v36 = vrot.slane %v13130_v56, %v13172_v53 }
 0x4f0   : > { %v13153_v17 = vpop.permute.xlu0 %7691 }
 0x4f1   : > { %v6029_v31 = vsel %vm6028_vm10, %v6027_v23, %v6022_v60  ;;  %v7751_v56 = vsel %vm6007_vm7, %v7750_v36, %v7746_v61  ;;  %v7760_v12 = vrot.slane %v13153_v17, %v6019_v44  ;;  %v7822_v23 = vld [vmem:[%s13455_s4 + $0x50] sm:$0xff] (!%p8445_p12)  ;;  %v7975_v61 = vld [vmem:[%s13457_s6] sm:$0xff] (!%p8445_p12) }
 0x4f2   : > { %v5937_v7 = vpop.permute.xlu1 %5936  ;;  %v7756_v27 = vsel %vm6014_vm8, %v7755_v59, %v7751_v56  ;;  %v7976_v59 = vld [vmem:[%s13457_s6 + $0x8] sm:$0xff] (!%p8445_p12) }
 0x4f3   : > { %v6034_v43 = vrot.slane %v5937_v7, %v6033_v40  ;;  %v7761_v10 = vsel %vm6021_vm9, %v7760_v12, %v7756_v27  ;;  %v7981_v27 = vld [vmem:[%s13457_s6 + $0x30] sm:$0xff] (!%p8445_p12) }
 0x4f5   : > { %v6036_v63 = vsel %vm6035_vm11, %v6034_v43, %v6029_v31  ;;  %v8585_v43 = vpack.c.bf16 (!%p8445_p12), %v7823_v21, %v7822_v23  ;;  %v7899_v31 = vld [vmem:[%s13456_s5] sm:$0xff] (!%p8445_p12) }
 0x4f6   : > { %v13174_v57 = vpop.permute.xlu0 %7694  ;;  %v5940_v41 = vpop.permute.xlu1 %5939  ;;  %v8070_v21 = vld [vmem:[%s13458_s7 + $0x40] sm:$0xff] (!%p8445_p12) }
 0x4f7   : > { %v6041_v26 = vrot.slane %v5940_v41, %v6040_v47  ;;  %v7765_v19 = vrot.slane %v13174_v57, %v6026_v24  ;;  %v7812_v41 = vld [vmem:[%s13455_s4] sm:$0xff] (!%p8445_p12) }
 0x4f8   : > { %v8570_v24 = vpack.c.bf16 (!%p8445_p12), %v7813_v5, %v7812_v41  ;;  %v8069_v5 = vld [vmem:[%s13458_s7 + $0x38] sm:$0xff] (!%p8445_p12) }
 0x4f9   : > { %v6043_v38 = vsel %vm6042_vm12, %v6041_v26, %v6036_v63  ;;  %v7766_v17 = vsel %vm6028_vm10, %v7765_v19, %v7761_v10  ;;  %v7826_v26 = vld [vmem:[%s13455_s4 + $0x70] sm:$0xff] (!%p8445_p12)  ;;  %v7900_v63 = vld [vmem:[%s13456_s5 + $0x8] sm:$0xff] (!%p8445_p12)  ;;  %v7983_v10 = vld [vmem:[%s13457_s6 + $0x40] sm:$0xff] (!%p8445_p12) }
 0x4fa   : > { %8571 = vmatpush3.bf16.msra.mxu0 (!%p8445_p12), %v8570_v24 }
 0x4fb   : > { %v7698_v0 = vpop.permute.xlu0 %7697  ;;  %8572 = vmatprep.subr.bf16.mxu0 (!%p8445_p12), %v8777_v46 }
 0x4fc   : > { %v7770_v6 = vrot.slane %v7698_v0, %v6033_v40  ;;  %v7816_v40 = vld [vmem:[%s13455_s4 + $0x20] sm:$0xff] (!%p8445_p12) }
 0x4fd   : > { %v8576_v13 = vpack.c.bf16 (!%p8445_p12), %v7817_v54, %v7816_v40  ;;  %v8075_v40 = vld [vmem:[%s13458_s7 + $0x68] sm:$0xff] (!%p8445_p12) }
 0x4fe   : > { %v7771_v49 = vsel %vm6035_vm11, %v7770_v6, %v7766_v17  ;;  %8574 = vmatpush3.bf16.msra.mxu0 (!%p8445_p12), %v8573_v1  ;;  %v7980_v6 = vld [vmem:[%s13457_s6 + $0x28] sm:$0xff] (!%p8445_p12)  ;;  %v7985_v17 = vld [vmem:[%s13457_s6 + $0x50] sm:$0xff] (!%p8445_p12) }
 0x4ff   : > { %8575 = vmatprep.subr.bf16.mxu0 (!%p8445_p12), %v8777_v46  ;;  %v8071_v1 = vld [vmem:[%s13458_s7 + $0x48] sm:$0xff] (!%p8445_p12) }
 0x500   : > { %v7701_v42 = vpop.permute.xlu0 %7700  ;;  %v8624_v54 = vpack.c.bf16 (!%p8445_p12), %v8075_v40, %v8071_v1 }
 0x501   : > { %v7775_v18 = vrot.slane %v7701_v42, %v6040_v47  ;;  %v7818_v47 = vld [vmem:[%s13455_s4 + $0x30] sm:$0xff] (!%p8445_p12)  ;;  %v7824_v42 = vld [vmem:[%s13455_s4 + $0x60] sm:$0xff] (!%p8445_p12) }
 0x502   : > { %8577 = vmatpush3.bf16.msra.mxu0 (!%p8445_p12), %v8576_v13  ;;  %v8579_v22 = vpack.c.bf16 (!%p8445_p12), %v7819_v34, %v7818_v47  ;;  %v8064_v13 = vld [vmem:[%s13458_s7 + $0x10] sm:$0xff] (!%p8445_p12)  ;;  %v8073_v34 = vld [vmem:[%s13458_s7 + $0x58] sm:$0xff] (!%p8445_p12) }
 0x503   : > { %v7776_v55 = vsel %vm6042_vm12, %v7775_v18, %v7771_v49  ;;  %8578 = vmatprep.subr.bf16.mxu0 (!%p8445_p12), %v8777_v46  ;;  %v7982_v18 = vld [vmem:[%s13457_s6 + $0x38] sm:$0xff] (!%p8445_p12)  ;;  %v8068_v47 = vld [vmem:[%s13458_s7 + $0x30] sm:$0xff] (!%p8445_p12) }
 0x504   : > { %v7986_v49 = vld [vmem:[%s13457_s6 + $0x58] sm:$0xff] (!%p8445_p12) }
 0x506   : > { %v5943_v30 = vpop.permute.xlu1 %5942  ;;  %8580 = vmatpush3.bf16.msra.mxu0 (!%p8445_p12), %v8579_v22  ;;  %v8077_v22 = vld [vmem:[%s13458_s7 + $0x78] sm:$0xff] (!%p8445_p12) }
 0x507   : > { %v6048_v48 = vrot.slane %v5943_v30, %v6047_v9  ;;  %8581 = vmatprep.subr.bf16.mxu0 (!%p8445_p12), %v8777_v46  ;;  %v7825_v30 = vld [vmem:[%s13455_s4 + $0x68] sm:$0xff] (!%p8445_p12) }
 0x508   : > { %v8588_v32 = vpack.c.bf16 (!%p8445_p12), %v7825_v30, %v7824_v42  ;;  %v8072_v42 = vld [vmem:[%s13458_s7 + $0x50] sm:$0xff] (!%p8445_p12) }
 0x509   : > { %v6050_v53 = vsel %vm6049_vm13, %v6048_v48, %v6043_v38 }
 0x50a   : > { %v5946_v45 = vpop.permute.xlu1 %5945 }
 0x50b   : > { %v6055_v25 = vrot.slane %v5946_v45, %v6054_v35  ;;  %v7704_v7 = vpop.permute.xlu0 %7703  ;;  %v8594_v45 = vpack.c.bf16 (!%p8445_p12), %v7900_v63, %v7899_v31 }
 0x50c   : > { %v7780_v39 = vrot.slane %v7704_v7, %v6047_v9  ;;  %v8582_v9 = vpack.c.bf16 (!%p8445_p12), %v7821_v15, %v7820_v37  ;;  %v7978_v7 = vld [vmem:[%s13457_s6 + $0x18] sm:$0xff] (!%p8445_p12)  ;;  %v8630_v37 = vpack.c.bf16 (!%p8445_p12), %v8068_v47, %v8064_v13  ;;  %v8632_v15 = vpack.c.bf16 (!%p8445_p12), %v8077_v22, %v8073_v34 }
 0x50d   : > { %v6057_v11 = vsel %vm6056_vm14, %v6055_v25, %v6050_v53  ;;  %8595 = vmatpush3.bf16.msra.mxu1 (!%p8445_p12), %v8594_v45  ;;  %v8597_v25 = vpack.c.bf16 (!%p8445_p12), %v7976_v59, %v7975_v61  ;;  %v7977_v53 = vld [vmem:[%s13457_s6 + $0x10] sm:$0xff] (!%p8445_p12) }
 0x50e   : > { %v6064_v33 = vrot.slane %v6057_v11, %v12505_v29  ;;  %v7781_v52 = vsel %vm6049_vm13, %v7780_v39, %v7776_v55  ;;  %8583 = vmatpush3.bf16.msra.mxu0 (!%p8445_p12), %v8582_v9  ;;  %8596 = vmatprep.subr.bf16.mxu1 (!%p8445_p12), %v8777_v46  ;;  %v8600_v19 = vpack.c.bf16 (!%p8445_p12), %v7978_v7, %v7977_v53  ;;  %v7979_v11 = vld [vmem:[%s13457_s6 + $0x20] sm:$0xff] (!%p8445_p12)  ;;  %v7984_v39 = vld [vmem:[%s13457_s6 + $0x48] sm:$0xff] (!%p8445_p12) }
 0x50f   : > { %8584 = vmatprep.subr.bf16.mxu0 (!%p8445_p12), %v8777_v46  ;;  %v7988_v55 = vld [vmem:[%s13457_s6 + $0x68] sm:$0xff] (!%p8445_p12) }
 0x510   : > { %v6071_v3 = vrot.slane %v6064_v33, %v12505_v29  ;;  %v8603_v33 = vpack.c.bf16 (!%p8445_p12), %v7980_v6, %v7979_v11 }
 0x512   : > { %v6073_v28 = vadd.f32 %v6071_v3, %v4314_v2  ;;  %v7707_v57 = vpop.permute.xlu0 %7706  ;;  %8586 = vmatpush3.bf16.msra.mxu0 (!%p8445_p12), %v8585_v43  ;;  %v8606_v2 = vpack.c.bf16 (!%p8445_p12), %v7982_v18, %v7981_v27  ;;  %v8609_v3 = vpack.c.bf16 (!%p8445_p12), %v7984_v39, %v7983_v10  ;;  %v8074_v43 = vld [vmem:[%s13458_s7 + $0x60] sm:$0xff] (!%p8445_p12) }
 0x513   : > { %v7785_v4 = vrot.slane %v7707_v57, %v6054_v35  ;;  %8587 = vmatprep.subr.bf16.mxu0 (!%p8445_p12), %v8777_v46  ;;  %v7827_v35 = vld [vmem:[%s13455_s4 + $0x78] sm:$0xff] (!%p8445_p12)  ;;  %v7987_v57 = vld [vmem:[%s13457_s6 + $0x60] sm:$0xff] (!%p8445_p12)  ;;  %v8626_v30 = vpack.c.bf16 (!%p8445_p12), %v8074_v43, %v8070_v21 }
 0x514   : > { %6074 = vst [vmem:[#allocation2] sm:$0x1] %v6073_v28  ;;  %v8591_v36 = vpack.c.bf16 (!%p8445_p12), %v7827_v35, %v7826_v26  ;;  %v8612_v28 = vpack.c.bf16 (!%p8445_p12), %v7986_v49, %v7985_v17  ;;  %v13579_v17 = vlaneseq (!%p8445_p12) }
 0x515   : > { %v7786_v51 = vsel %vm6056_vm14, %v7785_v4, %v7781_v52  ;;  %v8615_v4 = vpack.c.bf16 (!%p8445_p12), %v7988_v55, %v7987_v57  ;;  %v7989_v52 = vld [vmem:[%s13457_s6 + $0x70] sm:$0xff] (!%p8445_p12) }
 0x516   : > { %v7793_v14 = vrot.slane %v7786_v51, %v12505_v29  ;;  %7807 = sbr.rel (%p8445_p12) target bundleno = 2208 (0x8a0), region = 152  ;;  %8589 = vmatpush3.bf16.msra.mxu0 (!%p8445_p12), %v8588_v32  ;;  %v7990_v51 = vld [vmem:[%s13457_s6 + $0x78] sm:$0xff] (!%p8445_p12)  ;;  %v8076_v32 = vld [vmem:[%s13458_s7 + $0x70] sm:$0xff] (!%p8445_p12)  ;;  %vm8279_vm2 = vcmp.lt.s32.totalorder (!%p8445_p12), %v13579_v17, 512 }
 0x517   : > { %8590 = vmatprep.subr.bf16.mxu0 (!%p8445_p12), %v8777_v46 }
 0x518   : > { %v7800_v44 = vrot.slane %v7793_v14, %v12505_v29  ;;  %v8618_v14 = vpack.c.bf16 (!%p8445_p12), %v7990_v51, %v7989_v52 }
 0x51a   : > { %v7802_v0 = vmax.f32 %v6075_v20, %v7800_v44  ;;  %8592 = vmatpush3.bf16.msra.mxu0 (!%p8445_p12), %v8591_v36  ;;  %v8063_v20 = vld [vmem:[%s13458_s7 + $0x8] sm:$0xff] (!%p8445_p12) }
 0x51b   : > { %v7808_v62 = vld [vmem:[#allocation2] sm:$0x1] (!%p8445_p12)  ;;  %v8067_v44 = vld [vmem:[%s13458_s7 + $0x28] sm:$0xff] (!%p8445_p12) }
 0x51c   : > { %7803 = vst [vmem:[#allocation3] sm:$0x1] %v7802_v0  ;;  %v7809_v58 = vmul.f32 (!%p8445_p12), 0.00024414063, %v7808_v62  ;;  %v8065_v0 = vld [vmem:[%s13458_s7 + $0x18] sm:$0xff] (!%p8445_p12)  ;;  %v8620_v41 = vpack.c.bf16 (!%p8445_p12), %v8067_v44, %v8063_v20  ;;  %v8634_v62 = vpack.c.bf16 (!%p8445_p12), %v8076_v32, %v8072_v42 }
 0x51d   : > { %v8628_v24 = vpack.c.bf16 %v8069_v5, %v8065_v0 }
 0x51e   : > { %8621 = vmatprep.subr.bf16.mxu0 %v8620_v41 }
 0x523   : > { %v7810_v60 = vld [vmem:[#allocation3] sm:$0x1] }
 0x524   : > { %v7811_v48 = vadd.f32 %v7810_v60, %v7809_v58 }
 0x526   : > { %8525 = vmatmul.mubr.f32.vlgmr.msra.gmra.mrb[0].mxu0 %v7811_v48 }
 0x527   : > { %8146 = vmatprep.mubr.f32.mxu0 %v8779_v8 }
 0x5f9   : > { %v7894_v38 = vpop.f32.mrb[0].mxu0 }
 0x5fa   : > { %v7898_v56 = vmax.f32 %v7894_v38, 0.0  ;;  %v8526_v12 = vpop.f32.mrb[1].mxu0 }
 0x5fc   : > { %8532 = vmatmul.mubr.msk.f32.vlgmr.msra.gmra.mrb[0].mxu1 %vm7901_vm0, %v7898_v56 }
 0x5fd   : > { %8598 = vmatpush3.bf16.msra.mxu1 %v8597_v25  ;;  %8566 = vmatprep.mubr.msk.f32.mxu1 %vm8778_vm15, %v8779_v8 }
 0x5fe   : > { %8599 = vmatprep.subr.bf16.mxu1 %v8777_v46 }
 0x601   : > { %8601 = vmatpush3.bf16.msra.mxu1 %v8600_v19 }
 0x602   : > { %8602 = vmatprep.subr.bf16.mxu1 %v8777_v46 }
 0x605   : > { %8604 = vmatpush3.bf16.msra.mxu1 %v8603_v33 }
 0x606   : > { %8605 = vmatprep.subr.bf16.mxu1 %v8777_v46 }
 0x609   : > { %8607 = vmatpush3.bf16.msra.mxu1 %v8606_v2 }
 0x60a   : > { %8608 = vmatprep.subr.bf16.mxu1 %v8777_v46 }
 0x60d   : > { %8610 = vmatpush3.bf16.msra.mxu1 %v8609_v3 }
 0x60e   : > { %8611 = vmatprep.subr.bf16.mxu1 %v8777_v46 }
 0x611   : > { %8613 = vmatpush3.bf16.msra.mxu1 %v8612_v28 }
 0x612   : > { %8614 = vmatprep.subr.bf16.mxu1 %v8777_v46 }
 0x615   : > { %8616 = vmatpush3.bf16.msra.mxu1 %v8615_v4 }
 0x616   : > { %8617 = vmatprep.subr.bf16.mxu1 %v8777_v46  ;;  %v8066_v46 = vld [vmem:[%s13458_s7 + $0x20] sm:$0xff] }
 0x617   : > { %v8622_v16 = vpack.c.bf16 %v8066_v46, %v8062_v50 }
 0x619   : > { %8619 = vmatpush3.bf16.msra.mxu1 %v8618_v14  ;;  %8623 = vmatpush1.bf16.msra.mxu0 %v8622_v16 }
 0x61a   : > { %8629 = vmatprep.subr.bf16.mxu1 %v8628_v24  ;;  %8625 = vmatprep.subr.bf16.mxu0 %v8624_v54 }
 0x61d   : > { %8627 = vmatpush1.bf16.msra.mxu0 %v8626_v30 }
 0x6cf   : > { %v7971_v9 = vpop.f32.mrb[0].mxu1 }
 0x6d0   : > { %v8533_v23 = vpop.f32.mrb[1].mxu1  ;;  %8567 = vmatmul.mubr.f32.vlgmr.msra.gmra.mrb[2].mxu1 %v7971_v9 }
 0x6d1   : > { %8631 = vmatpush1.bf16.msra.mxu1 %v8630_v37  ;;  %8217 = vmatprep.mubr.f32.mxu1 %v8779_v8 }
 0x6d2   : > { %8633 = vmatprep.subr.bf16.mxu1 %v8632_v15 }
 0x6d5   : > { %8635 = vmatpush1.bf16.msra.mxu1 %v8634_v62 }
 0x7a3   : > { %v8057_v8 = vpop.f32.mrb[2].mxu1 }
 0x7a4   : > { %v8061_v26 = vmax.f32 %v8057_v8, 0.0  ;;  %v8568_v35 = vpop.f32.mrb[3].mxu1 }
 0x7a6   : > { %8447 = vmatmul.mubr.msk.f32.vlgmr.msra.gmra.mrb[2].mxu0 %vm8078_vm1, %v8061_v26  ;;  %8448 = vmatmul.mubr.msk.f32.vlgmr.msra.gmra.mrb[4].mxu1 %vm8078_vm1, %v8061_v26 }
 0x879   : > { %v8148_v58 = vpop.f32.mrb[2].mxu0  ;;  %v8219_v36 = vpop.f32.mrb[4].mxu1 }
 0x87a   : > { %v8449_v60 = vmul.f32 -1.442695, %v8148_v58  ;;  %v8451_v48 = vmul.f32 -1.442695, %v8219_v36  ;;  %v8150_v31 = vpop.f32.mrb[3].mxu0  ;;  %v8221_v63 = vpop.f32.mrb[5].mxu1 }
 0x87b   : > { %v8450_v45 = vmul.f32 -1.442695, %v8150_v31  ;;  %v8452_v61 = vmul.f32 -1.442695, %v8221_v63 }
 0x87c   : > { %8701 = vpow2.f32 %v8449_v60 }
 0x87d   : > { %8703 = vpow2.f32 %v8451_v48 }
 0x87e   : > { %8705 = vpow2.f32 %v8450_v45 }
 0x87f   : > { %8707 = vpow2.f32 %v8452_v61 }
 0x886   : > { %v8702_v59 = vpop.eup %8701 }
 0x887   : > { %v8704_v38 = vpop.eup %8703  ;;  %v8236_v25 = vadd.f32 1.0, %v8702_v59 }
 0x888   : > { %v8706_v56 = vpop.eup %8705  ;;  %v8238_v12 = vadd.f32 1.0, %v8704_v38 }
 0x889   : > { %v8708_v53 = vpop.eup %8707  ;;  %8709 = vrcp.f32 %v8236_v25  ;;  %v8237_v7 = vadd.f32 1.0, %v8706_v56 }
 0x88a   : > { %8711 = vrcp.f32 %v8238_v12  ;;  %v8239_v19 = vadd.f32 1.0, %v8708_v53 }
 0x88b   : > { %8713 = vrcp.f32 %v8237_v7 }
 0x88c   : > { %8715 = vrcp.f32 %v8239_v19 }
 0x893   : > { %v8710_v11 = vpop.eup %8709 }
 0x894   : > { %v8712_v6 = vpop.eup %8711 }
 0x895   : > { %v8714_v33 = vpop.eup %8713 }
 0x896   : > { %v8716_v27 = vpop.eup %8715  ;;  %v8252_v18 = vcombine.low %v8710_v11, %v8714_v33 }
 0x897   : > { %v8253_v2 = vcombine.low %v8712_v6, %v8716_v27 }
 0x898   : > { %v8260_v10 = vrot.slane %v8252_v18, %v12505_v29 }
 0x899   : > { %v8267_v39 = vrot.slane %v8253_v2, %v12505_v29 }
 0x89b   : > { %v8268_v3 = vcombine.low %v8260_v10, %v8267_v39 }
 0x89d   : > { %v8275_v49 = vrot.slane %v8268_v3, %v12505_v29 }
 0x89f   : > { %8281 = vst.msk [vmem:[%s10987_s20] sm:$0xf] %vm8279_vm2, %v8275_v49 }
 0x8a0 PF: > { %s18_s11 = sadd.s32 1, %s8771_s11   ;;  %s13580_s27 = smov %s8751_s28 }
 0x8a1   : > { %p15_p13 = scmp.ge.s32.totalorder %s18_s11, 6   ;;  %s13581_s28 = smov %s8880_s19 }
 0x8a2   : > { %s13582_s29 = smov %s8763_s9  ;;  %s13583_s30 = smov %s8767_s10 }
 0x8a3   : > { %s13584_s9 = smov %s13587_s12  ;;  %s13585_s10 = smov %s13591_s13 }
 0x8a4   :  { %17 = sbr.rel (!%p15_p13) target bundleno = 4 (0x4), region = 211 }

</bundles_post_ra>
